<compile_context>
chip_gen: v7x
topology: tpu7x:2x2x1
jax: 0.10.0
libtpu: 0.0.40
codegen_flags: <defaults>
</compile_context>

<pallas_src>
import functools

import jax
import jax.numpy as jnp
from jax import lax
from jax.experimental import pallas as pl
from jax.experimental.pallas import tpu as pltpu


# ------------------------------- Pallas kernel -------------------------------


def inception_kernel(x_ref, w1_ref, b1_ref, w3_ref, b3_ref, w5_ref, b5_ref,
                     w4_ref, b4_ref, o_ref,
                     pad3_ref, pad5_ref, padx_ref,
                     *, H, W, C1, D3, C3, D5, C5, Cp):
    HW = H * W
    Cin = x_ref.shape[1]

    # Input arrives channel-first (Cin, H*W); go channel-last for the matmuls.
    x_hw_c = x_ref[0].T                                      # (HW, Cin) f32

    # ---- merged 1x1 convs: branch-1 | 3x3-reduce | 5x5-reduce (one matmul) --
    z = jnp.dot(x_hw_c.astype(jnp.bfloat16), w1_ref[...],
                preferred_element_type=jnp.float32)           # (HW, C1+D3+D5)
    z = jnp.maximum(z + b1_ref[...], 0.0)

    b1_out = z[:, 0:C1]                                       # (HW, C1)
    y2 = z[:, C1:C1 + D3]                                     # (HW, D3)
    y3 = z[:, C1 + D3:C1 + D3 + D5]                           # (HW, D5)

    def conv_kxk(pad_ref, value, K, pad_off, D, w_ref, b_ref):
        # Zero-pad the intermediate in VMEM, build the im2col matrix from the
        # K*K spatial taps, one (HW, K*K*D) x (K*K*D, Cout) MXU matmul.
        pad_ref[...] = jnp.zeros_like(pad_ref)
        pad_ref[pl.ds(pad_off, H), pl.ds(pad_off, W), :] = value.reshape(H, W, D)
        patches = []
        for kh in range(K):
            for kw in range(K):
                patches.append(
                    pad_ref[pl.ds(kh, H), pl.ds(kw, W), :].reshape(HW, D))
        col = jnp.concatenate(patches, axis=-1).astype(jnp.bfloat16)
        acc = jnp.dot(col, w_ref[...], preferred_element_type=jnp.float32)
        return jnp.maximum(acc + b_ref[...], 0.0)

    # ---- branch 2: 3x3 conv (pad 1) on the 3x3-reduce output ----------------
    b2_out = conv_kxk(pad3_ref, y2, 3, 1, D3, w3_ref, b3_ref)

    # ---- branch 3: 5x5 conv (pad 2) on the 5x5-reduce output ----------------
    b3_out = conv_kxk(pad5_ref, y3, 5, 2, D5, w5_ref, b5_ref)

    # ---- branch 4: 3x3 max-pool (stride 1, pad 1, -inf border) -> 1x1 conv --
    padx_ref[...] = jnp.full((H + 2, W + 2, Cin), -jnp.inf, jnp.float32)
    padx_ref[pl.ds(1, H), pl.ds(1, W), :] = x_hw_c.reshape(H, W, Cin)
    pooled = padx_ref[pl.ds(0, H), pl.ds(0, W), :]
    for kh in range(3):
        for kw in range(3):
            if kh == 0 and kw == 0:
                continue
            pooled = jnp.maximum(pooled, padx_ref[pl.ds(kh, H), pl.ds(kw, W), :])
    acc4 = jnp.dot(pooled.reshape(HW, Cin).astype(jnp.bfloat16), w4_ref[...],
                   preferred_element_type=jnp.float32)
    b4_out = jnp.maximum(acc4 + b4_ref[...], 0.0)

    # ---- lane-dense stores into the concatenated (C_total, H*W) output ------
    o_ref[0, pl.ds(0, C1), :] = b1_out.T.astype(o_ref.dtype)
    o_ref[0, pl.ds(C1, C3), :] = b2_out.T.astype(o_ref.dtype)
    o_ref[0, pl.ds(C1 + C3, C5), :] = b3_out.T.astype(o_ref.dtype)
    o_ref[0, pl.ds(C1 + C3 + C5, Cp), :] = b4_out.T.astype(o_ref.dtype)


# ------------------------------- JAX wrapper ---------------------------------


def inception_forward(x_nchw, packed):
    N, Cin, H, W = x_nchw.shape
    HW = H * W

    w1m, b1m = packed["w1m"], packed["b1m"]
    w3, b3 = packed["w3"], packed["b3"]
    w5, b5 = packed["w5"], packed["b5"]
    w4, b4 = packed["w4"], packed["b4"]

    D3, C3 = w3.shape[0] // 9, w3.shape[1]
    D5, C5 = w5.shape[0] // 25, w5.shape[1]
    Cp = w4.shape[1]
    C1 = w1m.shape[1] - D3 - D5
    Ctot = C1 + C3 + C5 + Cp

    kernel = functools.partial(
        inception_kernel, H=H, W=W, C1=C1, D3=D3, C3=C3, D5=D5, C5=C5, Cp=Cp)

    x_flat = x_nchw.reshape(N, Cin, HW)          # NCHW -> (N, Cin, H*W), free

    out = pl.pallas_call(
        kernel,
        out_shape=jax.ShapeDtypeStruct((N, Ctot, HW), jnp.float32),
        grid=(N,),
        in_specs=[
            pl.BlockSpec((1, Cin, HW), lambda n: (n, 0, 0)),
            pl.BlockSpec((Cin, C1 + D3 + D5), lambda n: (0, 0)),
            pl.BlockSpec((1, C1 + D3 + D5), lambda n: (0, 0)),
            pl.BlockSpec((9 * D3, C3), lambda n: (0, 0)),
            pl.BlockSpec((1, C3), lambda n: (0, 0)),
            pl.BlockSpec((25 * D5, C5), lambda n: (0, 0)),
            pl.BlockSpec((1, C5), lambda n: (0, 0)),
            pl.BlockSpec((Cin, Cp), lambda n: (0, 0)),
            pl.BlockSpec((1, Cp), lambda n: (0, 0)),
        ],
        out_specs=pl.BlockSpec((1, Ctot, HW), lambda n: (n, 0, 0)),
        scratch_shapes=[
            pltpu.VMEM((H + 2, W + 2, D3), jnp.float32),   # padded 3x3 input
            pltpu.VMEM((H + 4, W + 4, D5), jnp.float32),   # padded 5x5 input
            pltpu.VMEM((H + 2, W + 2, Cin), jnp.float32),  # -inf padded x (pool)
        ],
        compiler_params=pltpu.CompilerParams(dimension_semantics=("parallel",)),
    )(x_flat, w1m, b1m, w3, b3, w5, b5, w4, b4)

    return out.reshape(N, Ctot, H, W)            # (N, Ctot, H*W) -> NCHW, free


# ----------------------------- parameter setup -------------------------------


def make_conv_params(key, cin, cout, k):
    kw_, kb_ = jax.random.split(key)
    w = 0.1 * jax.random.normal(kw_, (k, k, cin, cout), jnp.float32)  # HWIO
    b = 0.1 * jax.random.normal(kb_, (cout,), jnp.float32)
    return w, b


def init_inception_params(key, in_ch, out_1x1, ds_3x3, out_3x3, ds_5x5, out_5x5,
                          out_pool):
    ks = jax.random.split(key, 6)
    return {
        "b1": make_conv_params(ks[0], in_ch, out_1x1, 1),
        "b2a": make_conv_params(ks[1], in_ch, ds_3x3, 1),
        "b2b": make_conv_params(ks[2], ds_3x3, out_3x3, 3),
        "b3a": make_conv_params(ks[3], in_ch, ds_5x5, 1),
        "b3b": make_conv_params(ks[4], ds_5x5, out_5x5, 5),
        "b4": make_conv_params(ks[5], in_ch, out_pool, 1),
    }


def pack_params(p):
    """Rearrange per-conv params into the fused kernel's layout (bf16 weights)."""
    (w1, c1b), (w2a, d3b), (w2b, c3b), (w3a, d5b), (w3b, c5b), (w4, cpb) = (
        p["b1"], p["b2a"], p["b2b"], p["b3a"], p["b3b"], p["b4"])
    cin = w1.shape[2]
    c1, d3, c3 = w1.shape[3], w2a.shape[3], w2b.shape[3]
    d5, c5, cp = w3a.shape[3], w3b.shape[3], w4.shape[3]
    return {
        # merged input-facing 1x1 convs: [branch1 | 3x3-reduce | 5x5-reduce]
        "w1m": jnp.concatenate(
            [w1.reshape(cin, c1), w2a.reshape(cin, d3), w3a.reshape(cin, d5)],
            axis=-1).astype(jnp.bfloat16),
        "b1m": jnp.concatenate([c1b, d3b, d5b]).reshape(1, -1),
        # KxK convs as im2col weights: row index = (kh*K + kw)*Cin_branch + ci
        "w3": w2b.reshape(9 * d3, c3).astype(jnp.bfloat16),
        "b3": c3b.reshape(1, c3),
        "w5": w3b.reshape(25 * d5, c5).astype(jnp.bfloat16),
        "b5": c5b.reshape(1, c5),
        "w4": w4.reshape(cin, cp).astype(jnp.bfloat16),
        "b4": cpb.reshape(1, cp),
    }


# ------------------------------ reference (check) ----------------------------


def _ref_conv_relu(x_nhwc, w, b, pad):
    # Reference uses the same bf16-rounded weights the kernel consumes.
    wq = w.astype(jnp.bfloat16).astype(jnp.float32)
    y = lax.conv_general_dilated(
        x_nhwc, wq, window_strides=(1, 1),
        padding=[(pad, pad), (pad, pad)],
        dimension_numbers=("NHWC", "HWIO", "NHWC"))
    return jnp.maximum(y + b.reshape(1, 1, 1, -1), 0.0)


def _ref_forward(x_nchw, p):
    x = jnp.transpose(x_nchw, (0, 2, 3, 1))
    b1 = _ref_conv_relu(x, *p["b1"], pad=0)
    b2 = _ref_conv_relu(_ref_conv_relu(x, *p["b2a"], pad=0), *p["b2b"], pad=1)
    b3 = _ref_conv_relu(_ref_conv_relu(x, *p["b3a"], pad=0), *p["b3b"], pad=2)
    pool = lax.reduce_window(x, -jnp.inf, lax.max, (1, 3, 3, 1), (1, 1, 1, 1), "SAME")
    b4 = _ref_conv_relu(pool, *p["b4"], pad=0)
    out = jnp.concatenate([b1, b2, b3, b4], axis=-1)
    return jnp.transpose(out, (0, 3, 1, 2))


# ----------------------------------- main -------------------------------------


if __name__ == "__main__":
    key = jax.random.PRNGKey(0)
    k_x, k_p = jax.random.split(key)

    # InceptionBlock(in=4, out_1x1=8, downSam_3x3=4, out_3x3=8,
    #                downSam_5x5=4, out_5x5=8, outPool_1x1=8)
    N, C, H, W = 2, 4, 16, 16
    x = jax.random.normal(k_x, (N, C, H, W), jnp.float32)   # NCHW like PyTorch
    raw = init_inception_params(k_p, C, 8, 4, 8, 4, 8, 8)
    packed = pack_params(raw)

    fwd = jax.jit(inception_forward)
    out = jax.block_until_ready(fwd(x, packed))

    assert out.shape == (N, 8 + 8 + 8 + 8, H, W), out.shape
    ref = jax.block_until_ready(_ref_forward(x, raw))
    max_err = float(jnp.max(jnp.abs(out - ref)))
    assert jnp.allclose(out, ref, rtol=2e-2, atol=2e-2), max_err
    print("KERNEL_OK")
</pallas_src>

<mosaic_0001>
module attributes {stable_mosaic.version = 11 : i64} {
  func.func @inception_kernel(%arg0: i32, %arg1: memref<1x4x256xf32, #tpu.memory_space<vmem>>, %arg2: memref<4x16xbf16, #tpu.memory_space<vmem>>, %arg3: memref<1x16xf32, #tpu.memory_space<vmem>>, %arg4: memref<36x8xbf16, #tpu.memory_space<vmem>>, %arg5: memref<1x8xf32, #tpu.memory_space<vmem>>, %arg6: memref<100x8xbf16, #tpu.memory_space<vmem>>, %arg7: memref<1x8xf32, #tpu.memory_space<vmem>>, %arg8: memref<4x8xbf16, #tpu.memory_space<vmem>>, %arg9: memref<1x8xf32, #tpu.memory_space<vmem>>, %arg10: memref<1x32x256xf32, #tpu.memory_space<vmem>>, %arg11: memref<18x18x4xf32, #tpu.memory_space<vmem>>, %arg12: memref<20x20x4xf32, #tpu.memory_space<vmem>>, %arg13: memref<18x18x4xf32, #tpu.memory_space<vmem>>) attributes {dimension_semantics = [#tpu.dimension_semantics<parallel>], iteration_bounds = array<i64: 2>, scalar_prefetch = 0 : i64, scratch_operands = 3 : i64, tpu.core_type = #tpu.core_type<tc>, window_params = [{transform_indices = @transform_0, window_bounds = array<i64: 1, 4, 256>}, {pipeline_mode = #tpu.pipeline_mode<synchronous>, transform_indices = @transform_1, window_bounds = array<i64: 4, 16>}, {pipeline_mode = #tpu.pipeline_mode<synchronous>, transform_indices = @transform_2, window_bounds = array<i64: 1, 16>}, {pipeline_mode = #tpu.pipeline_mode<synchronous>, transform_indices = @transform_3, window_bounds = array<i64: 36, 8>}, {pipeline_mode = #tpu.pipeline_mode<synchronous>, transform_indices = @transform_4, window_bounds = array<i64: 1, 8>}, {pipeline_mode = #tpu.pipeline_mode<synchronous>, transform_indices = @transform_5, window_bounds = array<i64: 100, 8>}, {pipeline_mode = #tpu.pipeline_mode<synchronous>, transform_indices = @transform_6, window_bounds = array<i64: 1, 8>}, {pipeline_mode = #tpu.pipeline_mode<synchronous>, transform_indices = @transform_7, window_bounds = array<i64: 4, 8>}, {pipeline_mode = #tpu.pipeline_mode<synchronous>, transform_indices = @transform_8, window_bounds = array<i64: 1, 8>}, {transform_indices = @transform_9, window_bounds = array<i64: 1, 32, 256>}]} {
    %c0 = arith.constant 0 : index
    %c0_0 = arith.constant 0 : index
    %c0_1 = arith.constant 0 : index
    %0 = vector.load %arg1[%c0, %c0_0, %c0_1] : memref<1x4x256xf32, #tpu.memory_space<vmem>>, vector<1x4x256xf32>
    %1 = vector.shape_cast %0 : vector<1x4x256xf32> to vector<4x256xf32>
    %2 = tpu.transpose %1, [1, 0] : vector<4x256xf32> -> vector<256x4xf32>
    %3 = arith.truncf %2 : vector<256x4xf32> to vector<256x4xbf16>
    %c0_2 = arith.constant 0 : index
    %c0_3 = arith.constant 0 : index
    %4 = vector.load %arg2[%c0_2, %c0_3] : memref<4x16xbf16, #tpu.memory_space<vmem>>, vector<4x16xbf16>
    %cst = arith.constant dense<0.000000e+00> : vector<256x16xf32>
    %5 = tpu.matmul %3, %4, %cst {dimension_numbers = #tpu.dot_dimension_numbers<[1], [0], [0], [1], [0, 0, 1, 1], [], []>} : vector<256x4xbf16>, vector<4x16xbf16>, vector<256x16xf32> -> vector<256x16xf32>
    %c0_4 = arith.constant 0 : index
    %c0_5 = arith.constant 0 : index
    %6 = vector.load %arg3[%c0_4, %c0_5] : memref<1x16xf32, #tpu.memory_space<vmem>>, vector<1x16xf32>
    %7 = vector.broadcast %6 : vector<1x16xf32> to vector<256x16xf32>
    %8 = arith.addf %5, %7 : vector<256x16xf32>
    %cst_6 = arith.constant 0.000000e+00 : f32
    %9 = vector.broadcast %cst_6 : f32 to vector<256x16xf32>
    %10 = arith.maximumf %8, %9 : vector<256x16xf32>
    %11 = vector.extract_strided_slice %10 {offsets = [0, 0], sizes = [256, 8], strides = [1, 1]} : vector<256x16xf32> to vector<256x8xf32>
    %12 = vector.extract_strided_slice %10 {offsets = [0, 8], sizes = [256, 4], strides = [1, 1]} : vector<256x16xf32> to vector<256x4xf32>
    %13 = vector.extract_strided_slice %10 {offsets = [0, 12], sizes = [256, 4], strides = [1, 1]} : vector<256x16xf32> to vector<256x4xf32>
    %cst_7 = arith.constant 0.000000e+00 : f32
    %14 = vector.broadcast %cst_7 : f32 to vector<18x18x4xf32>
    %c0_8 = arith.constant 0 : index
    %c0_9 = arith.constant 0 : index
    %c0_10 = arith.constant 0 : index
    %15 = vector.load %arg11[%c0_8, %c0_9, %c0_10] : memref<18x18x4xf32, #tpu.memory_space<vmem>>, vector<18x18x4xf32>
    tpu.vector_store %arg11[%c0_8, %c0_9, %c0_10], %14 {strides = array<i32>} : memref<18x18x4xf32, #tpu.memory_space<vmem>>, vector<18x18x4xf32>,
    %16 = vector.shape_cast %12 : vector<256x4xf32> to vector<16x16x4xf32>
    %c1 = arith.constant 1 : index
    %c1_11 = arith.constant 1 : index
    %c0_12 = arith.constant 0 : index
    %17 = vector.load %arg11[%c1, %c1_11, %c0_12] : memref<18x18x4xf32, #tpu.memory_space<vmem>>, vector<16x16x4xf32>
    tpu.vector_store %arg11[%c1, %c1_11, %c0_12], %16 {strides = array<i32>} : memref<18x18x4xf32, #tpu.memory_space<vmem>>, vector<16x16x4xf32>,
    %c0_13 = arith.constant 0 : index
    %c0_14 = arith.constant 0 : index
    %c0_15 = arith.constant 0 : index
    %18 = vector.load %arg11[%c0_13, %c0_14, %c0_15] : memref<18x18x4xf32, #tpu.memory_space<vmem>>, vector<16x16x4xf32>
    %19 = vector.shape_cast %18 : vector<16x16x4xf32> to vector<256x4xf32>
    %c0_16 = arith.constant 0 : index
    %c1_17 = arith.constant 1 : index
    %c0_18 = arith.constant 0 : index
    %20 = vector.load %arg11[%c0_16, %c1_17, %c0_18] : memref<18x18x4xf32, #tpu.memory_space<vmem>>, vector<16x16x4xf32>
    %21 = vector.shape_cast %20 : vector<16x16x4xf32> to vector<256x4xf32>
    %c0_19 = arith.constant 0 : index
    %c2 = arith.constant 2 : index
    %c0_20 = arith.constant 0 : index
    %22 = vector.load %arg11[%c0_19, %c2, %c0_20] : memref<18x18x4xf32, #tpu.memory_space<vmem>>, vector<16x16x4xf32>
    %23 = vector.shape_cast %22 : vector<16x16x4xf32> to vector<256x4xf32>
    %c1_21 = arith.constant 1 : index
    %c0_22 = arith.constant 0 : index
    %c0_23 = arith.constant 0 : index
    %24 = vector.load %arg11[%c1_21, %c0_22, %c0_23] : memref<18x18x4xf32, #tpu.memory_space<vmem>>, vector<16x16x4xf32>
    %25 = vector.shape_cast %24 : vector<16x16x4xf32> to vector<256x4xf32>
    %c1_24 = arith.constant 1 : index
    %c1_25 = arith.constant 1 : index
    %c0_26 = arith.constant 0 : index
    %26 = vector.load %arg11[%c1_24, %c1_25, %c0_26] : memref<18x18x4xf32, #tpu.memory_space<vmem>>, vector<16x16x4xf32>
    %27 = vector.shape_cast %26 : vector<16x16x4xf32> to vector<256x4xf32>
    %c1_27 = arith.constant 1 : index
    %c2_28 = arith.constant 2 : index
    %c0_29 = arith.constant 0 : index
    %28 = vector.load %arg11[%c1_27, %c2_28, %c0_29] : memref<18x18x4xf32, #tpu.memory_space<vmem>>, vector<16x16x4xf32>
    %29 = vector.shape_cast %28 : vector<16x16x4xf32> to vector<256x4xf32>
    %c2_30 = arith.constant 2 : index
    %c0_31 = arith.constant 0 : index
    %c0_32 = arith.constant 0 : index
    %30 = vector.load %arg11[%c2_30, %c0_31, %c0_32] : memref<18x18x4xf32, #tpu.memory_space<vmem>>, vector<16x16x4xf32>
    %31 = vector.shape_cast %30 : vector<16x16x4xf32> to vector<256x4xf32>
    %c2_33 = arith.constant 2 : index
    %c1_34 = arith.constant 1 : index
    %c0_35 = arith.constant 0 : index
    %32 = vector.load %arg11[%c2_33, %c1_34, %c0_35] : memref<18x18x4xf32, #tpu.memory_space<vmem>>, vector<16x16x4xf32>
    %33 = vector.shape_cast %32 : vector<16x16x4xf32> to vector<256x4xf32>
    %c2_36 = arith.constant 2 : index
    %c2_37 = arith.constant 2 : index
    %c0_38 = arith.constant 0 : index
    %34 = vector.load %arg11[%c2_36, %c2_37, %c0_38] : memref<18x18x4xf32, #tpu.memory_space<vmem>>, vector<16x16x4xf32>
    %35 = vector.shape_cast %34 : vector<16x16x4xf32> to vector<256x4xf32>
    %36 = tpu.concatenate %19, %21, %23, %25, %27, %29, %31, %33, %35 in 1 : vector<256x4xf32>, vector<256x4xf32>, vector<256x4xf32>, vector<256x4xf32>, vector<256x4xf32>, vector<256x4xf32>, vector<256x4xf32>, vector<256x4xf32>, vector<256x4xf32> -> vector<256x36xf32>
    %37 = arith.truncf %36 : vector<256x36xf32> to vector<256x36xbf16>
    %c0_39 = arith.constant 0 : index
    %c0_40 = arith.constant 0 : index
    %38 = vector.load %arg4[%c0_39, %c0_40] : memref<36x8xbf16, #tpu.memory_space<vmem>>, vector<36x8xbf16>
    %cst_41 = arith.constant dense<0.000000e+00> : vector<256x8xf32>
    %39 = tpu.matmul %37, %38, %cst_41 {dimension_numbers = #tpu.dot_dimension_numbers<[1], [0], [0], [1], [0, 0, 1, 1], [], []>} : vector<256x36xbf16>, vector<36x8xbf16>, vector<256x8xf32> -> vector<256x8xf32>
    %c0_42 = arith.constant 0 : index
    %c0_43 = arith.constant 0 : index
    %40 = vector.load %arg5[%c0_42, %c0_43] : memref<1x8xf32, #tpu.memory_space<vmem>>, vector<1x8xf32>
    %41 = vector.broadcast %40 : vector<1x8xf32> to vector<256x8xf32>
    %42 = arith.addf %39, %41 : vector<256x8xf32>
    %cst_44 = arith.constant 0.000000e+00 : f32
    %43 = vector.broadcast %cst_44 : f32 to vector<256x8xf32>
    %44 = arith.maximumf %42, %43 : vector<256x8xf32>
    %cst_45 = arith.constant 0.000000e+00 : f32
    %45 = vector.broadcast %cst_45 : f32 to vector<20x20x4xf32>
    %c0_46 = arith.constant 0 : index
    %c0_47 = arith.constant 0 : index
    %c0_48 = arith.constant 0 : index
    %46 = vector.load %arg12[%c0_46, %c0_47, %c0_48] : memref<20x20x4xf32, #tpu.memory_space<vmem>>, vector<20x20x4xf32>
    tpu.vector_store %arg12[%c0_46, %c0_47, %c0_48], %45 {strides = array<i32>} : memref<20x20x4xf32, #tpu.memory_space<vmem>>, vector<20x20x4xf32>,
    %47 = vector.shape_cast %13 : vector<256x4xf32> to vector<16x16x4xf32>
    %c2_49 = arith.constant 2 : index
    %c2_50 = arith.constant 2 : index
    %c0_51 = arith.constant 0 : index
    %48 = vector.load %arg12[%c2_49, %c2_50, %c0_51] : memref<20x20x4xf32, #tpu.memory_space<vmem>>, vector<16x16x4xf32>
    tpu.vector_store %arg12[%c2_49, %c2_50, %c0_51], %47 {strides = array<i32>} : memref<20x20x4xf32, #tpu.memory_space<vmem>>, vector<16x16x4xf32>,
    %c0_52 = arith.constant 0 : index
    %c0_53 = arith.constant 0 : index
    %c0_54 = arith.constant 0 : index
    %49 = vector.load %arg12[%c0_52, %c0_53, %c0_54] : memref<20x20x4xf32, #tpu.memory_space<vmem>>, vector<16x16x4xf32>
    %50 = vector.shape_cast %49 : vector<16x16x4xf32> to vector<256x4xf32>
    %c0_55 = arith.constant 0 : index
    %c1_56 = arith.constant 1 : index
    %c0_57 = arith.constant 0 : index
    %51 = vector.load %arg12[%c0_55, %c1_56, %c0_57] : memref<20x20x4xf32, #tpu.memory_space<vmem>>, vector<16x16x4xf32>
    %52 = vector.shape_cast %51 : vector<16x16x4xf32> to vector<256x4xf32>
    %c0_58 = arith.constant 0 : index
    %c2_59 = arith.constant 2 : index
    %c0_60 = arith.constant 0 : index
    %53 = vector.load %arg12[%c0_58, %c2_59, %c0_60] : memref<20x20x4xf32, #tpu.memory_space<vmem>>, vector<16x16x4xf32>
    %54 = vector.shape_cast %53 : vector<16x16x4xf32> to vector<256x4xf32>
    %c0_61 = arith.constant 0 : index
    %c3 = arith.constant 3 : index
    %c0_62 = arith.constant 0 : index
    %55 = vector.load %arg12[%c0_61, %c3, %c0_62] : memref<20x20x4xf32, #tpu.memory_space<vmem>>, vector<16x16x4xf32>
    %56 = vector.shape_cast %55 : vector<16x16x4xf32> to vector<256x4xf32>
    %c0_63 = arith.constant 0 : index
    %c4 = arith.constant 4 : index
    %c0_64 = arith.constant 0 : index
    %57 = vector.load %arg12[%c0_63, %c4, %c0_64] : memref<20x20x4xf32, #tpu.memory_space<vmem>>, vector<16x16x4xf32>
    %58 = vector.shape_cast %57 : vector<16x16x4xf32> to vector<256x4xf32>
    %c1_65 = arith.constant 1 : index
    %c0_66 = arith.constant 0 : index
    %c0_67 = arith.constant 0 : index
    %59 = vector.load %arg12[%c1_65, %c0_66, %c0_67] : memref<20x20x4xf32, #tpu.memory_space<vmem>>, vector<16x16x4xf32>
    %60 = vector.shape_cast %59 : vector<16x16x4xf32> to vector<256x4xf32>
    %c1_68 = arith.constant 1 : index
    %c1_69 = arith.constant 1 : index
    %c0_70 = arith.constant 0 : index
    %61 = vector.load %arg12[%c1_68, %c1_69, %c0_70] : memref<20x20x4xf32, #tpu.memory_space<vmem>>, vector<16x16x4xf32>
    %62 = vector.shape_cast %61 : vector<16x16x4xf32> to vector<256x4xf32>
    %c1_71 = arith.constant 1 : index
    %c2_72 = arith.constant 2 : index
    %c0_73 = arith.constant 0 : index
    %63 = vector.load %arg12[%c1_71, %c2_72, %c0_73] : memref<20x20x4xf32, #tpu.memory_space<vmem>>, vector<16x16x4xf32>
    %64 = vector.shape_cast %63 : vector<16x16x4xf32> to vector<256x4xf32>
    %c1_74 = arith.constant 1 : index
    %c3_75 = arith.constant 3 : index
    %c0_76 = arith.constant 0 : index
    %65 = vector.load %arg12[%c1_74, %c3_75, %c0_76] : memref<20x20x4xf32, #tpu.memory_space<vmem>>, vector<16x16x4xf32>
    %66 = vector.shape_cast %65 : vector<16x16x4xf32> to vector<256x4xf32>
    %c1_77 = arith.constant 1 : index
    %c4_78 = arith.constant 4 : index
    %c0_79 = arith.constant 0 : index
    %67 = vector.load %arg12[%c1_77, %c4_78, %c0_79] : memref<20x20x4xf32, #tpu.memory_space<vmem>>, vector<16x16x4xf32>
    %68 = vector.shape_cast %67 : vector<16x16x4xf32> to vector<256x4xf32>
    %c2_80 = arith.constant 2 : index
    %c0_81 = arith.constant 0 : index
    %c0_82 = arith.constant 0 : index
    %69 = vector.load %arg12[%c2_80, %c0_81, %c0_82] : memref<20x20x4xf32, #tpu.memory_space<vmem>>, vector<16x16x4xf32>
    %70 = vector.shape_cast %69 : vector<16x16x4xf32> to vector<256x4xf32>
    %c2_83 = arith.constant 2 : index
    %c1_84 = arith.constant 1 : index
    %c0_85 = arith.constant 0 : index
    %71 = vector.load %arg12[%c2_83, %c1_84, %c0_85] : memref<20x20x4xf32, #tpu.memory_space<vmem>>, vector<16x16x4xf32>
    %72 = vector.shape_cast %71 : vector<16x16x4xf32> to vector<256x4xf32>
    %c2_86 = arith.constant 2 : index
    %c2_87 = arith.constant 2 : index
    %c0_88 = arith.constant 0 : index
    %73 = vector.load %arg12[%c2_86, %c2_87, %c0_88] : memref<20x20x4xf32, #tpu.memory_space<vmem>>, vector<16x16x4xf32>
    %74 = vector.shape_cast %73 : vector<16x16x4xf32> to vector<256x4xf32>
    %c2_89 = arith.constant 2 : index
    %c3_90 = arith.constant 3 : index
    %c0_91 = arith.constant 0 : index
    %75 = vector.load %arg12[%c2_89, %c3_90, %c0_91] : memref<20x20x4xf32, #tpu.memory_space<vmem>>, vector<16x16x4xf32>
    %76 = vector.shape_cast %75 : vector<16x16x4xf32> to vector<256x4xf32>
    %c2_92 = arith.constant 2 : index
    %c4_93 = arith.constant 4 : index
    %c0_94 = arith.constant 0 : index
    %77 = vector.load %arg12[%c2_92, %c4_93, %c0_94] : memref<20x20x4xf32, #tpu.memory_space<vmem>>, vector<16x16x4xf32>
    %78 = vector.shape_cast %77 : vector<16x16x4xf32> to vector<256x4xf32>
    %c3_95 = arith.constant 3 : index
    %c0_96 = arith.constant 0 : index
    %c0_97 = arith.constant 0 : index
    %79 = vector.load %arg12[%c3_95, %c0_96, %c0_97] : memref<20x20x4xf32, #tpu.memory_space<vmem>>, vector<16x16x4xf32>
    %80 = vector.shape_cast %79 : vector<16x16x4xf32> to vector<256x4xf32>
    %c3_98 = arith.constant 3 : index
    %c1_99 = arith.constant 1 : index
    %c0_100 = arith.constant 0 : index
    %81 = vector.load %arg12[%c3_98, %c1_99, %c0_100] : memref<20x20x4xf32, #tpu.memory_space<vmem>>, vector<16x16x4xf32>
    %82 = vector.shape_cast %81 : vector<16x16x4xf32> to vector<256x4xf32>
    %c3_101 = arith.constant 3 : index
    %c2_102 = arith.constant 2 : index
    %c0_103 = arith.constant 0 : index
    %83 = vector.load %arg12[%c3_101, %c2_102, %c0_103] : memref<20x20x4xf32, #tpu.memory_space<vmem>>, vector<16x16x4xf32>
    %84 = vector.shape_cast %83 : vector<16x16x4xf32> to vector<256x4xf32>
    %c3_104 = arith.constant 3 : index
    %c3_105 = arith.constant 3 : index
    %c0_106 = arith.constant 0 : index
    %85 = vector.load %arg12[%c3_104, %c3_105, %c0_106] : memref<20x20x4xf32, #tpu.memory_space<vmem>>, vector<16x16x4xf32>
    %86 = vector.shape_cast %85 : vector<16x16x4xf32> to vector<256x4xf32>
    %c3_107 = arith.constant 3 : index
    %c4_108 = arith.constant 4 : index
    %c0_109 = arith.constant 0 : index
    %87 = vector.load %arg12[%c3_107, %c4_108, %c0_109] : memref<20x20x4xf32, #tpu.memory_space<vmem>>, vector<16x16x4xf32>
    %88 = vector.shape_cast %87 : vector<16x16x4xf32> to vector<256x4xf32>
    %c4_110 = arith.constant 4 : index
    %c0_111 = arith.constant 0 : index
    %c0_112 = arith.constant 0 : index
    %89 = vector.load %arg12[%c4_110, %c0_111, %c0_112] : memref<20x20x4xf32, #tpu.memory_space<vmem>>, vector<16x16x4xf32>
    %90 = vector.shape_cast %89 : vector<16x16x4xf32> to vector<256x4xf32>
    %c4_113 = arith.constant 4 : index
    %c1_114 = arith.constant 1 : index
    %c0_115 = arith.constant 0 : index
    %91 = vector.load %arg12[%c4_113, %c1_114, %c0_115] : memref<20x20x4xf32, #tpu.memory_space<vmem>>, vector<16x16x4xf32>
    %92 = vector.shape_cast %91 : vector<16x16x4xf32> to vector<256x4xf32>
    %c4_116 = arith.constant 4 : index
    %c2_117 = arith.constant 2 : index
    %c0_118 = arith.constant 0 : index
    %93 = vector.load %arg12[%c4_116, %c2_117, %c0_118] : memref<20x20x4xf32, #tpu.memory_space<vmem>>, vector<16x16x4xf32>
    %94 = vector.shape_cast %93 : vector<16x16x4xf32> to vector<256x4xf32>
    %c4_119 = arith.constant 4 : index
    %c3_120 = arith.constant 3 : index
    %c0_121 = arith.constant 0 : index
    %95 = vector.load %arg12[%c4_119, %c3_120, %c0_121] : memref<20x20x4xf32, #tpu.memory_space<vmem>>, vector<16x16x4xf32>
    %96 = vector.shape_cast %95 : vector<16x16x4xf32> to vector<256x4xf32>
    %c4_122 = arith.constant 4 : index
    %c4_123 = arith.constant 4 : index
    %c0_124 = arith.constant 0 : index
    %97 = vector.load %arg12[%c4_122, %c4_123, %c0_124] : memref<20x20x4xf32, #tpu.memory_space<vmem>>, vector<16x16x4xf32>
    %98 = vector.shape_cast %97 : vector<16x16x4xf32> to vector<256x4xf32>
    %99 = tpu.concatenate %50, %52, %54, %56, %58, %60, %62, %64, %66, %68, %70, %72, %74, %76, %78, %80 in 1 : vector<256x4xf32>, vector<256x4xf32>, vector<256x4xf32>, vector<256x4xf32>, vector<256x4xf32>, vector<256x4xf32>, vector<256x4xf32>, vector<256x4xf32>, vector<256x4xf32>, vector<256x4xf32>, vector<256x4xf32>, vector<256x4xf32>, vector<256x4xf32>, vector<256x4xf32>, vector<256x4xf32>, vector<256x4xf32> -> vector<256x64xf32>
    %100 = tpu.concatenate %82, %84, %86, %88, %90, %92, %94, %96, %98 in 1 : vector<256x4xf32>, vector<256x4xf32>, vector<256x4xf32>, vector<256x4xf32>, vector<256x4xf32>, vector<256x4xf32>, vector<256x4xf32>, vector<256x4xf32>, vector<256x4xf32> -> vector<256x36xf32>
    %101 = tpu.concatenate %99, %100 in 1 : vector<256x64xf32>, vector<256x36xf32> -> vector<256x100xf32>
    %102 = arith.truncf %101 : vector<256x100xf32> to vector<256x100xbf16>
    %c0_125 = arith.constant 0 : index
    %c0_126 = arith.constant 0 : index
    %103 = vector.load %arg6[%c0_125, %c0_126] : memref<100x8xbf16, #tpu.memory_space<vmem>>, vector<100x8xbf16>
    %cst_127 = arith.constant dense<0.000000e+00> : vector<256x8xf32>
    %104 = tpu.matmul %102, %103, %cst_127 {dimension_numbers = #tpu.dot_dimension_numbers<[1], [0], [0], [1], [0, 0, 1, 1], [], []>} : vector<256x100xbf16>, vector<100x8xbf16>, vector<256x8xf32> -> vector<256x8xf32>
    %c0_128 = arith.constant 0 : index
    %c0_129 = arith.constant 0 : index
    %105 = vector.load %arg7[%c0_128, %c0_129] : memref<1x8xf32, #tpu.memory_space<vmem>>, vector<1x8xf32>
    %106 = vector.broadcast %105 : vector<1x8xf32> to vector<256x8xf32>
    %107 = arith.addf %104, %106 : vector<256x8xf32>
    %cst_130 = arith.constant 0.000000e+00 : f32
    %108 = vector.broadcast %cst_130 : f32 to vector<256x8xf32>
    %109 = arith.maximumf %107, %108 : vector<256x8xf32>
    %cst_131 = arith.constant 0xFF800000 : f32
    %110 = vector.broadcast %cst_131 : f32 to vector<18x18x4xf32>
    %c0_132 = arith.constant 0 : index
    %c0_133 = arith.constant 0 : index
    %c0_134 = arith.constant 0 : index
    %111 = vector.load %arg13[%c0_132, %c0_133, %c0_134] : memref<18x18x4xf32, #tpu.memory_space<vmem>>, vector<18x18x4xf32>
    tpu.vector_store %arg13[%c0_132, %c0_133, %c0_134], %110 {strides = array<i32>} : memref<18x18x4xf32, #tpu.memory_space<vmem>>, vector<18x18x4xf32>,
    %112 = vector.shape_cast %2 : vector<256x4xf32> to vector<16x16x4xf32>
    %c1_135 = arith.constant 1 : index
    %c1_136 = arith.constant 1 : index
    %c0_137 = arith.constant 0 : index
    %113 = vector.load %arg13[%c1_135, %c1_136, %c0_137] : memref<18x18x4xf32, #tpu.memory_space<vmem>>, vector<16x16x4xf32>
    tpu.vector_store %arg13[%c1_135, %c1_136, %c0_137], %112 {strides = array<i32>} : memref<18x18x4xf32, #tpu.memory_space<vmem>>, vector<16x16x4xf32>,
    %c0_138 = arith.constant 0 : index
    %c0_139 = arith.constant 0 : index
    %c0_140 = arith.constant 0 : index
    %114 = vector.load %arg13[%c0_138, %c0_139, %c0_140] : memref<18x18x4xf32, #tpu.memory_space<vmem>>, vector<16x16x4xf32>
    %c0_141 = arith.constant 0 : index
    %c1_142 = arith.constant 1 : index
    %c0_143 = arith.constant 0 : index
    %115 = vector.load %arg13[%c0_141, %c1_142, %c0_143] : memref<18x18x4xf32, #tpu.memory_space<vmem>>, vector<16x16x4xf32>
    %116 = arith.maximumf %114, %115 : vector<16x16x4xf32>
    %c0_144 = arith.constant 0 : index
    %c2_145 = arith.constant 2 : index
    %c0_146 = arith.constant 0 : index
    %117 = vector.load %arg13[%c0_144, %c2_145, %c0_146] : memref<18x18x4xf32, #tpu.memory_space<vmem>>, vector<16x16x4xf32>
    %118 = arith.maximumf %116, %117 : vector<16x16x4xf32>
    %c1_147 = arith.constant 1 : index
    %c0_148 = arith.constant 0 : index
    %c0_149 = arith.constant 0 : index
    %119 = vector.load %arg13[%c1_147, %c0_148, %c0_149] : memref<18x18x4xf32, #tpu.memory_space<vmem>>, vector<16x16x4xf32>
    %120 = arith.maximumf %118, %119 : vector<16x16x4xf32>
    %c1_150 = arith.constant 1 : index
    %c1_151 = arith.constant 1 : index
    %c0_152 = arith.constant 0 : index
    %121 = vector.load %arg13[%c1_150, %c1_151, %c0_152] : memref<18x18x4xf32, #tpu.memory_space<vmem>>, vector<16x16x4xf32>
    %122 = arith.maximumf %120, %121 : vector<16x16x4xf32>
    %c1_153 = arith.constant 1 : index
    %c2_154 = arith.constant 2 : index
    %c0_155 = arith.constant 0 : index
    %123 = vector.load %arg13[%c1_153, %c2_154, %c0_155] : memref<18x18x4xf32, #tpu.memory_space<vmem>>, vector<16x16x4xf32>
    %124 = arith.maximumf %122, %123 : vector<16x16x4xf32>
    %c2_156 = arith.constant 2 : index
    %c0_157 = arith.constant 0 : index
    %c0_158 = arith.constant 0 : index
    %125 = vector.load %arg13[%c2_156, %c0_157, %c0_158] : memref<18x18x4xf32, #tpu.memory_space<vmem>>, vector<16x16x4xf32>
    %126 = arith.maximumf %124, %125 : vector<16x16x4xf32>
    %c2_159 = arith.constant 2 : index
    %c1_160 = arith.constant 1 : index
    %c0_161 = arith.constant 0 : index
    %127 = vector.load %arg13[%c2_159, %c1_160, %c0_161] : memref<18x18x4xf32, #tpu.memory_space<vmem>>, vector<16x16x4xf32>
    %128 = arith.maximumf %126, %127 : vector<16x16x4xf32>
    %c2_162 = arith.constant 2 : index
    %c2_163 = arith.constant 2 : index
    %c0_164 = arith.constant 0 : index
    %129 = vector.load %arg13[%c2_162, %c2_163, %c0_164] : memref<18x18x4xf32, #tpu.memory_space<vmem>>, vector<16x16x4xf32>
    %130 = arith.maximumf %128, %129 : vector<16x16x4xf32>
    %131 = vector.shape_cast %130 : vector<16x16x4xf32> to vector<256x4xf32>
    %132 = arith.truncf %131 : vector<256x4xf32> to vector<256x4xbf16>
    %c0_165 = arith.constant 0 : index
    %c0_166 = arith.constant 0 : index
    %133 = vector.load %arg8[%c0_165, %c0_166] : memref<4x8xbf16, #tpu.memory_space<vmem>>, vector<4x8xbf16>
    %cst_167 = arith.constant dense<0.000000e+00> : vector<256x8xf32>
    %134 = tpu.matmul %132, %133, %cst_167 {dimension_numbers = #tpu.dot_dimension_numbers<[1], [0], [0], [1], [0, 0, 1, 1], [], []>} : vector<256x4xbf16>, vector<4x8xbf16>, vector<256x8xf32> -> vector<256x8xf32>
    %c0_168 = arith.constant 0 : index
    %c0_169 = arith.constant 0 : index
    %135 = vector.load %arg9[%c0_168, %c0_169] : memref<1x8xf32, #tpu.memory_space<vmem>>, vector<1x8xf32>
    %136 = vector.broadcast %135 : vector<1x8xf32> to vector<256x8xf32>
    %137 = arith.addf %134, %136 : vector<256x8xf32>
    %cst_170 = arith.constant 0.000000e+00 : f32
    %138 = vector.broadcast %cst_170 : f32 to vector<256x8xf32>
    %139 = arith.maximumf %137, %138 : vector<256x8xf32>
    %140 = tpu.transpose %11, [1, 0] : vector<256x8xf32> -> vector<8x256xf32>
    %c0_171 = arith.constant 0 : index
    %c0_172 = arith.constant 0 : index
    %c0_173 = arith.constant 0 : index
    %141 = vector.load %arg10[%c0_171, %c0_172, %c0_173] : memref<1x32x256xf32, #tpu.memory_space<vmem>>, vector<1x8x256xf32>
    %142 = vector.shape_cast %141 : vector<1x8x256xf32> to vector<8x256xf32>
    %143 = vector.shape_cast %140 : vector<8x256xf32> to vector<1x8x256xf32>
    tpu.vector_store %arg10[%c0_171, %c0_172, %c0_173], %143 {strides = array<i32>} : memref<1x32x256xf32, #tpu.memory_space<vmem>>, vector<1x8x256xf32>,
    %144 = tpu.transpose %44, [1, 0] : vector<256x8xf32> -> vector<8x256xf32>
    %c0_174 = arith.constant 0 : index
    %c8 = arith.constant 8 : index
    %c0_175 = arith.constant 0 : index
    %145 = vector.load %arg10[%c0_174, %c8, %c0_175] : memref<1x32x256xf32, #tpu.memory_space<vmem>>, vector<1x8x256xf32>
    %146 = vector.shape_cast %145 : vector<1x8x256xf32> to vector<8x256xf32>
    %147 = vector.shape_cast %144 : vector<8x256xf32> to vector<1x8x256xf32>
    tpu.vector_store %arg10[%c0_174, %c8, %c0_175], %147 {strides = array<i32>} : memref<1x32x256xf32, #tpu.memory_space<vmem>>, vector<1x8x256xf32>,
    %148 = tpu.transpose %109, [1, 0] : vector<256x8xf32> -> vector<8x256xf32>
    %c0_176 = arith.constant 0 : index
    %c16 = arith.constant 16 : index
    %c0_177 = arith.constant 0 : index
    %149 = vector.load %arg10[%c0_176, %c16, %c0_177] : memref<1x32x256xf32, #tpu.memory_space<vmem>>, vector<1x8x256xf32>
    %150 = vector.shape_cast %149 : vector<1x8x256xf32> to vector<8x256xf32>
    %151 = vector.shape_cast %148 : vector<8x256xf32> to vector<1x8x256xf32>
    tpu.vector_store %arg10[%c0_176, %c16, %c0_177], %151 {strides = array<i32>} : memref<1x32x256xf32, #tpu.memory_space<vmem>>, vector<1x8x256xf32>,
    %152 = tpu.transpose %139, [1, 0] : vector<256x8xf32> -> vector<8x256xf32>
    %c0_178 = arith.constant 0 : index
    %c24 = arith.constant 24 : index
    %c0_179 = arith.constant 0 : index
    %153 = vector.load %arg10[%c0_178, %c24, %c0_179] : memref<1x32x256xf32, #tpu.memory_space<vmem>>, vector<1x8x256xf32>
    %154 = vector.shape_cast %153 : vector<1x8x256xf32> to vector<8x256xf32>
    %155 = vector.shape_cast %152 : vector<8x256xf32> to vector<1x8x256xf32>
    tpu.vector_store %arg10[%c0_178, %c24, %c0_179], %155 {strides = array<i32>} : memref<1x32x256xf32, #tpu.memory_space<vmem>>, vector<1x8x256xf32>,
    return
  }
  func.func @transform_0(%arg0: i32) -> (i32, i32, i32) {
    %c0_i32 = arith.constant 0 : i32
    %c0_i32_0 = arith.constant 0 : i32
    %c0_i32_1 = arith.constant 0 : i32
    return %arg0, %c0_i32, %c0_i32_0 : i32, i32, i32
  }
  func.func @transform_1(%arg0: i32) -> (i32, i32) {
    %c0_i32 = arith.constant 0 : i32
    %c0_i32_0 = arith.constant 0 : i32
    %c0_i32_1 = arith.constant 0 : i32
    return %c0_i32, %c0_i32_0 : i32, i32
  }
  func.func @transform_2(%arg0: i32) -> (i32, i32) {
    %c0_i32 = arith.constant 0 : i32
    %c0_i32_0 = arith.constant 0 : i32
    %c0_i32_1 = arith.constant 0 : i32
    return %c0_i32, %c0_i32_0 : i32, i32
  }
  func.func @transform_3(%arg0: i32) -> (i32, i32) {
    %c0_i32 = arith.constant 0 : i32
    %c0_i32_0 = arith.constant 0 : i32
    %c0_i32_1 = arith.constant 0 : i32
    return %c0_i32, %c0_i32_0 : i32, i32
  }
  func.func @transform_4(%arg0: i32) -> (i32, i32) {
    %c0_i32 = arith.constant 0 : i32
    %c0_i32_0 = arith.constant 0 : i32
    %c0_i32_1 = arith.constant 0 : i32
    return %c0_i32, %c0_i32_0 : i32, i32
  }
  func.func @transform_5(%arg0: i32) -> (i32, i32) {
    %c0_i32 = arith.constant 0 : i32
    %c0_i32_0 = arith.constant 0 : i32
    %c0_i32_1 = arith.constant 0 : i32
    return %c0_i32, %c0_i32_0 : i32, i32
  }
  func.func @transform_6(%arg0: i32) -> (i32, i32) {
    %c0_i32 = arith.constant 0 : i32
    %c0_i32_0 = arith.constant 0 : i32
    %c0_i32_1 = arith.constant 0 : i32
    return %c0_i32, %c0_i32_0 : i32, i32
  }
  func.func @transform_7(%arg0: i32) -> (i32, i32) {
    %c0_i32 = arith.constant 0 : i32
    %c0_i32_0 = arith.constant 0 : i32
    %c0_i32_1 = arith.constant 0 : i32
    return %c0_i32, %c0_i32_0 : i32, i32
  }
  func.func @transform_8(%arg0: i32) -> (i32, i32) {
    %c0_i32 = arith.constant 0 : i32
    %c0_i32_0 = arith.constant 0 : i32
    %c0_i32_1 = arith.constant 0 : i32
    return %c0_i32, %c0_i32_0 : i32, i32
  }
  func.func @transform_9(%arg0: i32) -> (i32, i32, i32) {
    %c0_i32 = arith.constant 0 : i32
    %c0_i32_0 = arith.constant 0 : i32
    %c0_i32_1 = arith.constant 0 : i32
    return %arg0, %c0_i32, %c0_i32_0 : i32, i32, i32
  }
}

</mosaic_0001>

<bundles_post_ra>
// kernel: inception_forward.1
= control target key start
LH: loop header
LB: loop body
LE: loop exit
PB: predicated region body
PF: predicated region fallthrough
CT: control target
= control target key end

     0   :  { %s12168_s30 = smov 0   ;;  %s19357_s0 = inlined_call_operand.vmem [shape: f32[2,4,256], index: 0, kind: input, shape index: {}]   ;;  %s19358_s1 = inlined_call_operand.vmem [shape: bf16[4,16], index: 1, kind: input, shape index: {}]   ;;  %s19359_s2 = inlined_call_operand.vmem [shape: f32[1,16], index: 2, kind: input, shape index: {}]   ;;  %s19360_s3 = inlined_call_operand.vmem [shape: bf16[36,8], index: 3, kind: input, shape index: {}]   ;;  %s19361_s4 = inlined_call_operand.vmem [shape: f32[1,8], index: 4, kind: input, shape index: {}]   ;;  %s19362_s5 = inlined_call_operand.vmem [shape: bf16[100,8], index: 5, kind: input, shape index: {}]   ;;  %s19363_s6 = inlined_call_operand.vmem [shape: f32[1,8], index: 6, kind: input, shape index: {}]   ;;  %s19364_s7 = inlined_call_operand.vmem [shape: bf16[4,8], index: 7, kind: input, shape index: {}]   ;;  %s19365_s8 = inlined_call_operand.vmem [shape: f32[1,8], index: 8, kind: input, shape index: {}]   ;;  %s19366_s9 = inlined_call_operand.vmem [shape: f32[2,32,256], index: 9, kind: output, shape index: {}]  }
   0x1 LB: > { %s9131_s10 = sadd.s32 4294967295, %s12096_s30   ;;  %p9135_p0 = scmp.ge.s32.totalorder %s12096_s30, 1  ;;  %s12096_s30 = sphi %s12168_s30, %s19_s30  }
   0x2   : > { %p287_p1 = scmp.lt.s32.totalorder %s12096_s30, 3 }
   0x4   : > { %p288_p2 = pnand %p9135_p0, %p287_p1 }
   0x6   : > { %291 = sbr.rel (%p288_p2) target bundleno = 2211 (0x8a3), region = 56 }
   0xd   : > { %p12178_p3 = scmp.lt.s32.totalorder %s9131_s10, 1  ;;  %vm426_vm0 = vcmask 31744   ;;  %v12098_v0 = vmov -inf   ;;  %vm674_vm1 = vcmask 25600   ;;  %v418_v2 = vld [vmem:[%s19358_s1] sm:$0x3] }
   0xe   : > { %7915 = vst.msk [vmem:[#allocation4 + $0x18] sm:$0xff] %vm426_vm0, %v12098_v0  ;;  %7916 = vst.msk [vmem:[#allocation4 + $0x20] sm:$0xff] %vm426_vm0, %v12098_v0  ;;  %vm475_vm2 = vcmask 1041408   ;;  %vm2754_vm3 = vcmask 27648   ;;  %v12099_v6 = vmov 0.0   ;;  %s12100_s18 = smov 4  }
   0xf   : > { %7912 = vst.msk [vmem:[#allocation4] sm:$0xff] %vm426_vm0, %v12098_v0  ;;  %7913 = vst.msk [vmem:[#allocation4 + $0x8] sm:$0xff] %vm426_vm0, %v12098_v0  ;;  %s21014_s10 = smov (!%p12178_p3, %s9131_s10), 1  ;;  %9450 = vmatprep.subr.msk.bf16.mxu0 %vm475_vm2, %v418_v2  ;;  %v477_v3 = vsel %vm475_vm2, %v418_v2, 0  ;;  %s12101_s19 = smov 8   ;;  %vm2233_vm4 = vcmask 64512  }
  0x10   : > { %7918 = vst.msk [vmem:[#allocation4 + $0x30] sm:$0xff] %vm426_vm0, %v12098_v0  ;;  %7919 = vst.msk [vmem:[#allocation4 + $0x38] sm:$0xff] %vm426_vm0, %v12098_v0  ;;  %s9220_s12 = sshll.u32 %s21014_s10, 3  ;;  %9299 = vmatpush3.bf16.msra.mxu0 %v477_v3  ;;  %s12102_s20 = smov 24   ;;  %vm2266_vm5 = vcmask 97280   ;;  %vm2299_vm6 = vcmask 130048  }
  0x11   : > { %7921 = vst.msk [vmem:[#allocation4 + $0x48] sm:$0xff] %vm426_vm0, %v12098_v0  ;;  %7922 = vst.msk [vmem:[#allocation4 + $0x50] sm:$0xff] %vm426_vm0, %v12098_v0  ;;  %s327_s15 = scalar_lea.vmem %s19357_s0, %s9220_s12  ;;  %s12103_s21 = smov 28   ;;  %vm2332_vm7 = vcmask 162816   ;;  %vm2365_vm8 = vcmask 195584   ;;  %vm2398_vm9 = vcmask 228352  }
  0x12   : > { %7924 = vst.msk [vmem:[#allocation4 + $0x60] sm:$0xff] %vm426_vm0, %v12098_v0  ;;  %7925 = vst.msk [vmem:[#allocation4 + $0x68] sm:$0xff] %vm426_vm0, %v12098_v0  ;;  %v334_v1 = vld [vmem:[%s327_s15] sm:$0xff]  ;;  %s12104_s22 = smov 32   ;;  %s12105_s25 = smov 120   ;;  %vm2431_vm10 = vcmask 261120  }
  0x13   : > { %7927 = vst.msk [vmem:[#allocation4 + $0x78] sm:$0xff] %vm426_vm0, %v12098_v0  ;;  %7928 = vst.msk [vmem:[#allocation4 + $0x80] sm:$0xff] %vm426_vm0, %v12098_v0  ;;  %338 = vxpose.xlu0.b32.start.end [1/1] (short) %v334_v1, 128  ;;  %v336_v4 = vcombine.high %v334_v1, %v334_v1  ;;  %s12106_s26 = smov 116   ;;  %s12107_s27 = smov 12   ;;  %vm2507_vm11 = vcmask 293888   ;;  %vm5953_vm12 = vcmask 326656  }
  0x14   : > { %7930 = vst.msk [vmem:[#allocation4 + $0x90] sm:$0xff] %vm426_vm0, %v12098_v0  ;;  %7931 = vst.msk [vmem:[#allocation4 + $0x98] sm:$0xff] %vm426_vm0, %v12098_v0  ;;  %s12108_s28 = smov 16   ;;  %s12109_s29 = smov 20   ;;  %vm5986_vm13 = vcmask 359424   ;;  %vm6019_vm14 = vcmask 392192  }
  0x15   : > { %7933 = vst.msk [vmem:[#allocation4 + $0xa8] sm:$0xff] %vm426_vm0, %v12098_v0  ;;  %7934 = vst.msk [vmem:[#allocation4 + $0xb0] sm:$0xff] %vm426_vm0, %v12098_v0  ;;  %s12110_s24 = smov 36   ;;  %s12113_s11 = smov 48   ;;  %vm6052_vm15 = vcmask 424960  }
  0x16   : > { %7936 = vst.msk [vmem:[#allocation4 + $0xc0] sm:$0xff] %vm426_vm0, %v12098_v0  ;;  %7937 = vst.msk [vmem:[#allocation4 + $0xc8] sm:$0xff] %vm426_vm0, %v12098_v0  ;;  %s12114_s12 = smov 52   ;;  %s12115_s13 = smov 56  }
  0x17   : > { %7939 = vst.msk [vmem:[#allocation4 + $0xd8] sm:$0xff] %vm426_vm0, %v12098_v0  ;;  %7940 = vst.msk [vmem:[#allocation4 + $0xe0] sm:$0xff] %vm426_vm0, %v12098_v0  ;;  %s12116_s14 = smov 60   ;;  %s12117_s16 = smov 64  }
  0x18   : > { %7942 = vst.msk [vmem:[#allocation4 + $0xf0] sm:$0xff] %vm426_vm0, %v12098_v0  ;;  %7943 = vst.msk [vmem:[#allocation4 + $0xf8] sm:$0xff] %vm426_vm0, %v12098_v0 }
  0x19   : > { %7945 = vst.msk [vmem:[#allocation4 + $0x108] sm:$0xff] %vm426_vm0, %v12098_v0  ;;  %7946 = vst.msk [vmem:[#allocation4 + $0x110] sm:$0xff] %vm426_vm0, %v12098_v0 }
  0x1a   : > { %7948 = vst.msk [vmem:[#allocation4 + $0x120] sm:$0xff] %vm426_vm0, %v12098_v0  ;;  %7949 = vst.msk [vmem:[#allocation4 + $0x128] sm:$0xff] %vm426_vm0, %v12098_v0 }
  0x1b   : > { %7951 = vst.msk [vmem:[#allocation4 + $0x138] sm:$0xff] %vm426_vm0, %v12098_v0  ;;  %7952 = vst.msk [vmem:[#allocation4 + $0x140] sm:$0xff] %vm426_vm0, %v12098_v0 }
  0x1c   : > { %7954 = vst.msk [vmem:[#allocation4 + $0x150] sm:$0xff] %vm426_vm0, %v12098_v0  ;;  %7955 = vst.msk [vmem:[#allocation4 + $0x158] sm:$0xff] %vm426_vm0, %v12098_v0 }
  0x1d   : > { %7957 = vst.msk [vmem:[#allocation4 + $0x168] sm:$0xff] %vm426_vm0, %v12098_v0  ;;  %7958 = vst.msk [vmem:[#allocation4 + $0x170] sm:$0xff] %vm426_vm0, %v12098_v0 }
  0x1e   : > { %7960 = vst.msk [vmem:[#allocation4 + $0x180] sm:$0xff] %vm426_vm0, %v12098_v0  ;;  %7961 = vst.msk [vmem:[#allocation4 + $0x188] sm:$0xff] %vm426_vm0, %v12098_v0 }
  0x1f   : > { %7963 = vst.msk [vmem:[#allocation4 + $0x198] sm:$0xff] %vm426_vm0, %v12098_v0  ;;  %7964 = vst.msk [vmem:[#allocation4 + $0x1a0] sm:$0xff] %vm426_vm0, %v12098_v0 }
  0x20   : > { %7917 = vst.msk [vmem:[#allocation4 + $0x28] sm:$0x3] %vm674_vm1, %v12098_v0  ;;  %7914 = vst.msk [vmem:[#allocation4 + $0x10] sm:$0x3] %vm674_vm1, %v12098_v0 }
  0x21   : > { %7920 = vst.msk [vmem:[#allocation4 + $0x40] sm:$0x3] %vm674_vm1, %v12098_v0  ;;  %7923 = vst.msk [vmem:[#allocation4 + $0x58] sm:$0x3] %vm674_vm1, %v12098_v0 }
  0x22   : > { %7926 = vst.msk [vmem:[#allocation4 + $0x70] sm:$0x3] %vm674_vm1, %v12098_v0  ;;  %7929 = vst.msk [vmem:[#allocation4 + $0x88] sm:$0x3] %vm674_vm1, %v12098_v0 }
  0x23   : > { %7932 = vst.msk [vmem:[#allocation4 + $0xa0] sm:$0x3] %vm674_vm1, %v12098_v0  ;;  %7935 = vst.msk [vmem:[#allocation4 + $0xb8] sm:$0x3] %vm674_vm1, %v12098_v0 }
  0x24   : > { %7938 = vst.msk [vmem:[#allocation4 + $0xd0] sm:$0x3] %vm674_vm1, %v12098_v0  ;;  %7941 = vst.msk [vmem:[#allocation4 + $0xe8] sm:$0x3] %vm674_vm1, %v12098_v0 }
  0x25   : > { %7944 = vst.msk [vmem:[#allocation4 + $0x100] sm:$0x3] %vm674_vm1, %v12098_v0  ;;  %7947 = vst.msk [vmem:[#allocation4 + $0x118] sm:$0x3] %vm674_vm1, %v12098_v0 }
  0x26   : > { %7950 = vst.msk [vmem:[#allocation4 + $0x130] sm:$0x3] %vm674_vm1, %v12098_v0  ;;  %7953 = vst.msk [vmem:[#allocation4 + $0x148] sm:$0x3] %vm674_vm1, %v12098_v0 }
  0x27   : > { %7956 = vst.msk [vmem:[#allocation4 + $0x160] sm:$0x3] %vm674_vm1, %v12098_v0  ;;  %7959 = vst.msk [vmem:[#allocation4 + $0x178] sm:$0x3] %vm674_vm1, %v12098_v0 }
  0x28   : > { %7962 = vst.msk [vmem:[#allocation4 + $0x190] sm:$0x3] %vm674_vm1, %v12098_v0  ;;  %7965 = vst.msk [vmem:[#allocation4 + $0x1a8] sm:$0x3] %vm674_vm1, %v12098_v0 }
  0x29   : > { %672 = vst.msk [vmem:[#allocation2] sm:$0xff] %vm426_vm0, %v12099_v6  ;;  %673 = vst.msk [vmem:[#allocation2 + $0x8] sm:$0xff] %vm426_vm0, %v12099_v6 }
  0x2a   : > { %675 = vst.msk [vmem:[#allocation2 + $0x10] sm:$0x3] %vm674_vm1, %v12099_v6  ;;  %678 = vst.msk [vmem:[#allocation2 + $0x28] sm:$0x3] %vm674_vm1, %v12099_v6 }
  0x2b   : > { %676 = vst.msk [vmem:[#allocation2 + $0x18] sm:$0xff] %vm426_vm0, %v12099_v6  ;;  %677 = vst.msk [vmem:[#allocation2 + $0x20] sm:$0xff] %vm426_vm0, %v12099_v6 }
  0x2c   : > { %679 = vst.msk [vmem:[#allocation2 + $0x30] sm:$0xff] %vm426_vm0, %v12099_v6  ;;  %680 = vst.msk [vmem:[#allocation2 + $0x38] sm:$0xff] %vm426_vm0, %v12099_v6 }
  0x2d   : > { %681 = vst.msk [vmem:[#allocation2 + $0x40] sm:$0x3] %vm674_vm1, %v12099_v6  ;;  %684 = vst.msk [vmem:[#allocation2 + $0x58] sm:$0x3] %vm674_vm1, %v12099_v6 }
  0x2e   : > { %682 = vst.msk [vmem:[#allocation2 + $0x48] sm:$0xff] %vm426_vm0, %v12099_v6  ;;  %683 = vst.msk [vmem:[#allocation2 + $0x50] sm:$0xff] %vm426_vm0, %v12099_v6 }
  0x2f   : > { %685 = vst.msk [vmem:[#allocation2 + $0x60] sm:$0xff] %vm426_vm0, %v12099_v6  ;;  %686 = vst.msk [vmem:[#allocation2 + $0x68] sm:$0xff] %vm426_vm0, %v12099_v6 }
  0x30   : > { %687 = vst.msk [vmem:[#allocation2 + $0x70] sm:$0x3] %vm674_vm1, %v12099_v6  ;;  %690 = vst.msk [vmem:[#allocation2 + $0x88] sm:$0x3] %vm674_vm1, %v12099_v6  ;;  %v920_v9 = vld [vmem:[#allocation2 + $0x1] sm:$0xff] }
  0x31   : > { %688 = vst.msk [vmem:[#allocation2 + $0x78] sm:$0xff] %vm426_vm0, %v12099_v6  ;;  %689 = vst.msk [vmem:[#allocation2 + $0x80] sm:$0xff] %vm426_vm0, %v12099_v6  ;;  %v921_v10 = vld [vmem:[#allocation2 + $0x9] sm:$0xff] }
  0x32   : > { %691 = vst.msk [vmem:[#allocation2 + $0x90] sm:$0xff] %vm426_vm0, %v12099_v6  ;;  %692 = vst.msk [vmem:[#allocation2 + $0x98] sm:$0xff] %vm426_vm0, %v12099_v6  ;;  %v9482_v12 = vpack.i.bf16 %v921_v10, %v920_v9  ;;  %v952_v13 = vld [vmem:[#allocation2 + $0x2] sm:$0xff]  ;;  %v953_v14 = vld [vmem:[#allocation2 + $0xa] sm:$0xff] }
  0x33   : > { %693 = vst.msk [vmem:[#allocation2 + $0xa0] sm:$0x3] %vm674_vm1, %v12099_v6  ;;  %696 = vst.msk [vmem:[#allocation2 + $0xb8] sm:$0x3] %vm674_vm1, %v12099_v6  ;;  %v9487_v15 = vpack.i.bf16 %v953_v14, %v952_v13 }
  0x34   : > { %694 = vst.msk [vmem:[#allocation2 + $0xa8] sm:$0xff] %vm426_vm0, %v12099_v6  ;;  %695 = vst.msk [vmem:[#allocation2 + $0xb0] sm:$0xff] %vm426_vm0, %v12099_v6  ;;  %9483 = vrot.lane.b32.xlu1 %v9482_v12, %s12100_s18 }
  0x35   : > { %697 = vst.msk [vmem:[#allocation2 + $0xc0] sm:$0xff] %vm426_vm0, %v12099_v6  ;;  %698 = vst.msk [vmem:[#allocation2 + $0xc8] sm:$0xff] %vm426_vm0, %v12099_v6 }
  0x36   : > { %699 = vst.msk [vmem:[#allocation2 + $0xd0] sm:$0x3] %vm674_vm1, %v12099_v6  ;;  %702 = vst.msk [vmem:[#allocation2 + $0xe8] sm:$0x3] %vm674_vm1, %v12099_v6 }
  0x37   : > { %700 = vst.msk [vmem:[#allocation2 + $0xd8] sm:$0xff] %vm426_vm0, %v12099_v6  ;;  %701 = vst.msk [vmem:[#allocation2 + $0xe0] sm:$0xff] %vm426_vm0, %v12099_v6 }
  0x38   : > { %703 = vst.msk [vmem:[#allocation2 + $0xf0] sm:$0xff] %vm426_vm0, %v12099_v6  ;;  %704 = vst.msk [vmem:[#allocation2 + $0xf8] sm:$0xff] %vm426_vm0, %v12099_v6  ;;  %9488 = vrot.lane.b32.xlu1 %v9487_v15, %s12101_s19 }
  0x39   : > { %705 = vst.msk [vmem:[#allocation2 + $0x100] sm:$0x3] %vm674_vm1, %v12099_v6  ;;  %708 = vst.msk [vmem:[#allocation2 + $0x118] sm:$0x3] %vm674_vm1, %v12099_v6 }
  0x3a   : > { %706 = vst.msk [vmem:[#allocation2 + $0x108] sm:$0xff] %vm426_vm0, %v12099_v6  ;;  %707 = vst.msk [vmem:[#allocation2 + $0x110] sm:$0xff] %vm426_vm0, %v12099_v6 }
  0x3b   : > { %709 = vst.msk [vmem:[#allocation2 + $0x120] sm:$0xff] %vm426_vm0, %v12099_v6  ;;  %710 = vst.msk [vmem:[#allocation2 + $0x128] sm:$0xff] %vm426_vm0, %v12099_v6 }
  0x3c   : > { %711 = vst.msk [vmem:[#allocation2 + $0x130] sm:$0x3] %vm674_vm1, %v12099_v6  ;;  %714 = vst.msk [vmem:[#allocation2 + $0x148] sm:$0x3] %vm674_vm1, %v12099_v6 }
  0x3d   : > { %712 = vst.msk [vmem:[#allocation2 + $0x138] sm:$0xff] %vm426_vm0, %v12099_v6  ;;  %713 = vst.msk [vmem:[#allocation2 + $0x140] sm:$0xff] %vm426_vm0, %v12099_v6 }
  0x3e   : > { %715 = vst.msk [vmem:[#allocation2 + $0x150] sm:$0xff] %vm426_vm0, %v12099_v6  ;;  %716 = vst.msk [vmem:[#allocation2 + $0x158] sm:$0xff] %vm426_vm0, %v12099_v6 }
  0x3f   : > { %717 = vst.msk [vmem:[#allocation2 + $0x160] sm:$0x3] %vm674_vm1, %v12099_v6  ;;  %720 = vst.msk [vmem:[#allocation2 + $0x178] sm:$0x3] %vm674_vm1, %v12099_v6 }
  0x40   : > { %718 = vst.msk [vmem:[#allocation2 + $0x168] sm:$0xff] %vm426_vm0, %v12099_v6  ;;  %719 = vst.msk [vmem:[#allocation2 + $0x170] sm:$0xff] %vm426_vm0, %v12099_v6 }
  0x41   : > { %721 = vst.msk [vmem:[#allocation2 + $0x180] sm:$0xff] %vm426_vm0, %v12099_v6  ;;  %722 = vst.msk [vmem:[#allocation2 + $0x188] sm:$0xff] %vm426_vm0, %v12099_v6 }
  0x42   : > { %723 = vst.msk [vmem:[#allocation2 + $0x190] sm:$0x3] %vm674_vm1, %v12099_v6  ;;  %726 = vst.msk [vmem:[#allocation2 + $0x1a8] sm:$0x3] %vm674_vm1, %v12099_v6  ;;  %vm6118_vm1 = vcmask 490496  }
  0x43   : > { %724 = vst.msk [vmem:[#allocation2 + $0x198] sm:$0xff] %vm426_vm0, %v12099_v6  ;;  %725 = vst.msk [vmem:[#allocation2 + $0x1a0] sm:$0xff] %vm426_vm0, %v12099_v6 }
  0x44   : > { %2752 = vst.msk [vmem:[#allocation3] sm:$0xff] %vm426_vm0, %v12099_v6  ;;  %2753 = vst.msk [vmem:[#allocation3 + $0x8] sm:$0xff] %vm426_vm0, %v12099_v6 }
  0x45   : > { %2756 = vst.msk [vmem:[#allocation3 + $0x18] sm:$0xff] %vm426_vm0, %v12099_v6  ;;  %2757 = vst.msk [vmem:[#allocation3 + $0x20] sm:$0xff] %vm426_vm0, %v12099_v6 }
  0x46   : > { %2759 = vst.msk [vmem:[#allocation3 + $0x30] sm:$0xff] %vm426_vm0, %v12099_v6  ;;  %2760 = vst.msk [vmem:[#allocation3 + $0x38] sm:$0xff] %vm426_vm0, %v12099_v6 }
  0x47   : > { %2762 = vst.msk [vmem:[#allocation3 + $0x48] sm:$0xff] %vm426_vm0, %v12099_v6  ;;  %2763 = vst.msk [vmem:[#allocation3 + $0x50] sm:$0xff] %vm426_vm0, %v12099_v6 }
  0x48   : > { %2765 = vst.msk [vmem:[#allocation3 + $0x60] sm:$0xff] %vm426_vm0, %v12099_v6  ;;  %2766 = vst.msk [vmem:[#allocation3 + $0x68] sm:$0xff] %vm426_vm0, %v12099_v6 }
  0x49   : > { %2768 = vst.msk [vmem:[#allocation3 + $0x78] sm:$0xff] %vm426_vm0, %v12099_v6  ;;  %2769 = vst.msk [vmem:[#allocation3 + $0x80] sm:$0xff] %vm426_vm0, %v12099_v6 }
  0x4a   : > { %2771 = vst.msk [vmem:[#allocation3 + $0x90] sm:$0xff] %vm426_vm0, %v12099_v6  ;;  %2772 = vst.msk [vmem:[#allocation3 + $0x98] sm:$0xff] %vm426_vm0, %v12099_v6  ;;  %v1111_v28 = vld [vmem:[#allocation2 + $0x198] sm:$0xff]  ;;  %v1112_v29 = vld [vmem:[#allocation2 + $0x1a0] sm:$0xff] }
  0x4b   : > { %2774 = vst.msk [vmem:[#allocation3 + $0xa8] sm:$0xff] %vm426_vm0, %v12099_v6  ;;  %2775 = vst.msk [vmem:[#allocation3 + $0xb0] sm:$0xff] %vm426_vm0, %v12099_v6  ;;  %v2974_v16 = vld [vmem:[#allocation3 + $0x1] sm:$0xff]  ;;  %v9492_v32 = vpack.i.bf16 %v1112_v29, %v1111_v28  ;;  %v1143_v33 = vld [vmem:[#allocation2 + $0x199] sm:$0xff] }
  0x4c   : > { %2777 = vst.msk [vmem:[#allocation3 + $0xc0] sm:$0xff] %vm426_vm0, %v12099_v6  ;;  %2778 = vst.msk [vmem:[#allocation3 + $0xc8] sm:$0xff] %vm426_vm0, %v12099_v6  ;;  %v3006_v21 = vld [vmem:[#allocation3 + $0x2] sm:$0xff]  ;;  %v1144_v34 = vld [vmem:[#allocation2 + $0x1a1] sm:$0xff] }
  0x4d   : > { %2780 = vst.msk [vmem:[#allocation3 + $0xd8] sm:$0xff] %vm426_vm0, %v12099_v6  ;;  %2781 = vst.msk [vmem:[#allocation3 + $0xe0] sm:$0xff] %vm426_vm0, %v12099_v6  ;;  %v9497_v36 = vpack.i.bf16 %v1144_v34, %v1143_v33  ;;  %v1175_v37 = vld [vmem:[#allocation2 + $0x19a] sm:$0xff]  ;;  %v1176_v38 = vld [vmem:[#allocation2 + $0x1a2] sm:$0xff] }
  0x4e   : > { %2783 = vst.msk [vmem:[#allocation3 + $0xf0] sm:$0xff] %vm426_vm0, %v12099_v6  ;;  %2784 = vst.msk [vmem:[#allocation3 + $0xf8] sm:$0xff] %vm426_vm0, %v12099_v6  ;;  %v9502_v41 = vpack.i.bf16 %v1176_v38, %v1175_v37  ;;  %v2976_v42 = vld [vmem:[#allocation3 + $0x19] sm:$0xff] }
  0x4f   : > { %2786 = vst.msk [vmem:[#allocation3 + $0x108] sm:$0xff] %vm426_vm0, %v12099_v6  ;;  %2787 = vst.msk [vmem:[#allocation3 + $0x110] sm:$0xff] %vm426_vm0, %v12099_v6  ;;  %v3008_v3 = vld [vmem:[#allocation3 + $0x1a] sm:$0xff] }
  0x50   : > { %370 = vxpose.xlu0.b32.start.end [1/1] (short) %v336_v4, 128  ;;  %2789 = vst.msk [vmem:[#allocation3 + $0x120] sm:$0xff] %vm426_vm0, %v12099_v6  ;;  %2790 = vst.msk [vmem:[#allocation3 + $0x128] sm:$0xff] %vm426_vm0, %v12099_v6 }
  0x51   : > { %2792 = vst.msk [vmem:[#allocation3 + $0x138] sm:$0xff] %vm426_vm0, %v12099_v6  ;;  %2793 = vst.msk [vmem:[#allocation3 + $0x140] sm:$0xff] %vm426_vm0, %v12099_v6 }
  0x52   : > { %2795 = vst.msk [vmem:[#allocation3 + $0x150] sm:$0xff] %vm426_vm0, %v12099_v6  ;;  %2796 = vst.msk [vmem:[#allocation3 + $0x158] sm:$0xff] %vm426_vm0, %v12099_v6 }
  0x53   : > { %2798 = vst.msk [vmem:[#allocation3 + $0x168] sm:$0xff] %vm426_vm0, %v12099_v6  ;;  %2799 = vst.msk [vmem:[#allocation3 + $0x170] sm:$0xff] %vm426_vm0, %v12099_v6 }
  0x54   : > { %2801 = vst.msk [vmem:[#allocation3 + $0x180] sm:$0xff] %vm426_vm0, %v12099_v6  ;;  %2802 = vst.msk [vmem:[#allocation3 + $0x188] sm:$0xff] %vm426_vm0, %v12099_v6 }
  0x55   : > { %2804 = vst.msk [vmem:[#allocation3 + $0x198] sm:$0xff] %vm426_vm0, %v12099_v6  ;;  %2805 = vst.msk [vmem:[#allocation3 + $0x1a0] sm:$0xff] %vm426_vm0, %v12099_v6 }
  0x56   : > { %2807 = vst.msk [vmem:[#allocation3 + $0x1b0] sm:$0xff] %vm426_vm0, %v12099_v6  ;;  %2808 = vst.msk [vmem:[#allocation3 + $0x1b8] sm:$0xff] %vm426_vm0, %v12099_v6 }
  0x57   : > { %2810 = vst.msk [vmem:[#allocation3 + $0x1c8] sm:$0xff] %vm426_vm0, %v12099_v6  ;;  %2811 = vst.msk [vmem:[#allocation3 + $0x1d0] sm:$0xff] %vm426_vm0, %v12099_v6 }
  0x58   : > { %2755 = vst.msk [vmem:[#allocation3 + $0x10] sm:$0xf] %vm2754_vm3, %v12099_v6  ;;  %2758 = vst.msk [vmem:[#allocation3 + $0x28] sm:$0xf] %vm2754_vm3, %v12099_v6 }
  0x59   : > { %2761 = vst.msk [vmem:[#allocation3 + $0x40] sm:$0xf] %vm2754_vm3, %v12099_v6  ;;  %2764 = vst.msk [vmem:[#allocation3 + $0x58] sm:$0xf] %vm2754_vm3, %v12099_v6 }
  0x5a   : > { %2767 = vst.msk [vmem:[#allocation3 + $0x70] sm:$0xf] %vm2754_vm3, %v12099_v6  ;;  %2770 = vst.msk [vmem:[#allocation3 + $0x88] sm:$0xf] %vm2754_vm3, %v12099_v6 }
  0x5b   : > { %2773 = vst.msk [vmem:[#allocation3 + $0xa0] sm:$0xf] %vm2754_vm3, %v12099_v6  ;;  %2776 = vst.msk [vmem:[#allocation3 + $0xb8] sm:$0xf] %vm2754_vm3, %v12099_v6 }
  0x5c   : > { %2779 = vst.msk [vmem:[#allocation3 + $0xd0] sm:$0xf] %vm2754_vm3, %v12099_v6  ;;  %2782 = vst.msk [vmem:[#allocation3 + $0xe8] sm:$0xf] %vm2754_vm3, %v12099_v6 }
  0x5d   : > { %2785 = vst.msk [vmem:[#allocation3 + $0x100] sm:$0xf] %vm2754_vm3, %v12099_v6  ;;  %2788 = vst.msk [vmem:[#allocation3 + $0x118] sm:$0xf] %vm2754_vm3, %v12099_v6 }
  0x5e   : > { %2791 = vst.msk [vmem:[#allocation3 + $0x130] sm:$0xf] %vm2754_vm3, %v12099_v6  ;;  %2794 = vst.msk [vmem:[#allocation3 + $0x148] sm:$0xf] %vm2754_vm3, %v12099_v6 }
  0x5f   : > { %2797 = vst.msk [vmem:[#allocation3 + $0x160] sm:$0xf] %vm2754_vm3, %v12099_v6  ;;  %2800 = vst.msk [vmem:[#allocation3 + $0x178] sm:$0xf] %vm2754_vm3, %v12099_v6  ;;  %v2975_v17 = vld [vmem:[#allocation3 + $0x9] sm:$0xff]  ;;  %v2977_v43 = vld [vmem:[#allocation3 + $0x21] sm:$0xff] }
  0x60   : > { %2803 = vst.msk [vmem:[#allocation3 + $0x190] sm:$0xf] %vm2754_vm3, %v12099_v6  ;;  %2806 = vst.msk [vmem:[#allocation3 + $0x1a8] sm:$0xf] %vm2754_vm3, %v12099_v6  ;;  %v9507_v20 = vpack.i.bf16 %v2975_v17, %v2974_v16  ;;  %v3007_v22 = vld [vmem:[#allocation3 + $0xa] sm:$0xff]  ;;  %v9512_v45 = vpack.i.bf16 %v2977_v43, %v2976_v42  ;;  %v3009_v4 = vld [vmem:[#allocation3 + $0x22] sm:$0xff] }
  0x61   : > { %2809 = vst.msk [vmem:[#allocation3 + $0x1c0] sm:$0xf] %vm2754_vm3, %v12099_v6  ;;  %2812 = vst.msk [vmem:[#allocation3 + $0x1d8] sm:$0xf] %vm2754_vm3, %v12099_v6  ;;  %v9517_v24 = vpack.i.bf16 %v3007_v22, %v3006_v21  ;;  %v12543_v17 = vld [vmem:[%s19359_s2] ss:$0 sm:$0xff] }
  0x62   : > { %9508 = vrot.lane.b32.xlu1 %v9507_v20, %s12100_s18  ;;  %vm7667_vm3 = vcmask 818176  }
  0x66   : > { %9518 = vrot.lane.b32.xlu1 %v9517_v24, %s12101_s19 }
  0x93   : > { %v12251_v5 = vpop.trf.xlu0 }
  0x94   : > { %7967 = vst.msk [vmem:[#allocation4 + $0x19] sm:$0xff] %vm426_vm0, %v12251_v5 }
  0x97   : > { %v355_v7 = vpop.trf.xlu0 }
  0x98   : > { %7968 = vst.msk [vmem:[#allocation4 + $0x21] sm:$0xff] %vm426_vm0, %v355_v7  ;;  %v402_v8 = vpack.c.bf16 %v355_v7, %v12251_v5  ;;  %v9522_v5 = vpack.i.bf16 %v3009_v4, %v3008_v3 }
  0x9a   : > { %9300 = vmatprep.mubr.msk.bf16.mxu0 %vm426_vm0, %v402_v8 }
  0x9b   : > { %v356_v11 = vpop.trf.xlu0 }
  0x9c   : > { %7969 = vst.msk [vmem:[#allocation4 + $0x31] sm:$0xff] %vm426_vm0, %v356_v11 }
  0x9f   : > { %v357_v18 = vpop.trf.xlu0 }
  0xa0   : > { %v403_v19 = vpack.c.bf16 %v357_v18, %v356_v11  ;;  %7970 = vst.msk [vmem:[#allocation4 + $0x39] sm:$0xff] %vm426_vm0, %v357_v18 }
  0xa2   : > { %9301 = vmatmul.mubr.msk.bf16.vlgmr.msra.gmra.mrb[0].mxu0 %vm426_vm0, %v403_v19 }
  0xa3   : > { %v358_v23 = vpop.trf.xlu0 }
  0xa4   : > { %7971 = vst.msk [vmem:[#allocation4 + $0x49] sm:$0xff] %vm426_vm0, %v358_v23 }
  0xa7   : > { %v359_v25 = vpop.trf.xlu0 }
  0xa8   : > { %v404_v26 = vpack.c.bf16 %v359_v25, %v358_v23  ;;  %7972 = vst.msk [vmem:[#allocation4 + $0x51] sm:$0xff] %vm426_vm0, %v359_v25 }
  0xaa   : > { %9304 = vmatprep.mubr.msk.bf16.mxu0 %vm426_vm0, %v404_v26 }
  0xab   : > { %v360_v27 = vpop.trf.xlu0 }
  0xac   : > { %7973 = vst.msk [vmem:[#allocation4 + $0x61] sm:$0xff] %vm426_vm0, %v360_v27 }
  0xaf   : > { %v361_v30 = vpop.trf.xlu0 }
  0xb0   : > { %v405_v31 = vpack.c.bf16 %v361_v30, %v360_v27  ;;  %7974 = vst.msk [vmem:[#allocation4 + $0x69] sm:$0xff] %vm426_vm0, %v361_v30 }
  0xb2   : > { %9305 = vmatmul.mubr.msk.bf16.gmra.mrb[4].mxu0 %vm426_vm0, %v405_v31 }
  0xb3   : > { %v362_v35 = vpop.trf.xlu0 }
  0xb4   : > { %7975 = vst.msk [vmem:[#allocation4 + $0x79] sm:$0xff] %vm426_vm0, %v362_v35 }
  0xb5   : > { %9493 = vrot.lane.b32.xlu0 %v9492_v32, %s12102_s20 }
  0xb7   : > { %v363_v39 = vpop.trf.xlu0 }
  0xb8   : > { %v406_v40 = vpack.c.bf16 %v363_v39, %v362_v35  ;;  %7976 = vst.msk [vmem:[#allocation4 + $0x81] sm:$0xff] %vm426_vm0, %v363_v39 }
  0xb9   : > { %9498 = vrot.lane.b32.xlu0 %v9497_v36, %s12103_s21 }
  0xba   : > { %9308 = vmatprep.mubr.msk.bf16.mxu0 %vm426_vm0, %v406_v40 }
  0xbb   : > { %v364_v44 = vpop.trf.xlu0 }
  0xbc   : > { %7977 = vst.msk [vmem:[#allocation4 + $0x91] sm:$0xff] %vm426_vm0, %v364_v44 }
  0xbd   : > { %9503 = vrot.lane.b32.xlu0 %v9502_v41, %s12104_s22 }
  0xbf   : > { %v365_v46 = vpop.trf.xlu0 }
  0xc0   : > { %v407_v47 = vpack.c.bf16 %v365_v46, %v364_v44  ;;  %7978 = vst.msk [vmem:[#allocation4 + $0x99] sm:$0xff] %vm426_vm0, %v365_v46 }
  0xc1   : > { %9513 = vrot.lane.b32.xlu0 %v9512_v45, %s12100_s18 }
  0xc2   : > { %9309 = vmatmul.mubr.msk.bf16.gmra.mrb[8].mxu0 %vm426_vm0, %v407_v47 }
  0xc3   : > { %v366_v48 = vpop.trf.xlu0 }
  0xc4   : > { %7979 = vst.msk [vmem:[#allocation4 + $0xa9] sm:$0xff] %vm426_vm0, %v366_v48 }
  0xc5   : > { %9523 = vrot.lane.b32.xlu0 %v9522_v5, %s12101_s19 }
  0xc7   : > { %v367_v49 = vpop.trf.xlu0 }
  0xc8   : > { %v408_v50 = vpack.c.bf16 %v367_v49, %v366_v48  ;;  %7980 = vst.msk [vmem:[#allocation4 + $0xb1] sm:$0xff] %vm426_vm0, %v367_v49 }
  0xca   : > { %9312 = vmatprep.mubr.msk.bf16.mxu0 %vm426_vm0, %v408_v50 }
  0xcb   : > { %v368_v51 = vpop.trf.xlu0 }
  0xcc   : > { %7981 = vst.msk [vmem:[#allocation4 + $0xc1] sm:$0xff] %vm426_vm0, %v368_v51 }
  0xcf   : > { %v369_v52 = vpop.trf.xlu0 }
  0xd0   : > { %v409_v53 = vpack.c.bf16 %v369_v52, %v368_v51  ;;  %7982 = vst.msk [vmem:[#allocation4 + $0xc9] sm:$0xff] %vm426_vm0, %v369_v52 }
  0xd2   : > { %9313 = vmatmul.mubr.msk.bf16.gmra.mrb[12].mxu0 %vm426_vm0, %v409_v53 }
  0xd3   : > { %v386_v54 = vpop.trf.xlu0 }
  0xd4   : > { %7983 = vst.msk [vmem:[#allocation4 + $0xd9] sm:$0xff] %vm426_vm0, %v386_v54 }
  0xd7   : > { %v387_v55 = vpop.trf.xlu0 }
  0xd8   : > { %v410_v56 = vpack.c.bf16 %v387_v55, %v386_v54  ;;  %7984 = vst.msk [vmem:[#allocation4 + $0xe1] sm:$0xff] %vm426_vm0, %v387_v55 }
  0xda   : > { %9316 = vmatprep.mubr.msk.bf16.mxu0 %vm426_vm0, %v410_v56 }
  0xdb   : > { %v388_v57 = vpop.trf.xlu0 }
  0xdc   : > { %7985 = vst.msk [vmem:[#allocation4 + $0xf1] sm:$0xff] %vm426_vm0, %v388_v57 }
  0xdf   : > { %v389_v58 = vpop.trf.xlu0 }
  0xe0   : > { %v411_v59 = vpack.c.bf16 %v389_v58, %v388_v57  ;;  %7986 = vst.msk [vmem:[#allocation4 + $0xf9] sm:$0xff] %vm426_vm0, %v389_v58 }
  0xe2   : > { %9317 = vmatmul.mubr.msk.bf16.gmra.mrb[16].mxu0 %vm426_vm0, %v411_v59 }
  0xe3   : > { %v390_v60 = vpop.trf.xlu0 }
  0xe4   : > { %7987 = vst.msk [vmem:[#allocation4 + $0x109] sm:$0xff] %vm426_vm0, %v390_v60 }
  0xe7   : > { %v391_v61 = vpop.trf.xlu0 }
  0xe8   : > { %v412_v62 = vpack.c.bf16 %v391_v61, %v390_v60  ;;  %7988 = vst.msk [vmem:[#allocation4 + $0x111] sm:$0xff] %vm426_vm0, %v391_v61 }
  0xea   : > { %9320 = vmatprep.mubr.msk.bf16.mxu0 %vm426_vm0, %v412_v62 }
  0xeb   : > { %v392_v63 = vpop.trf.xlu0 }
  0xec   : > { %7989 = vst.msk [vmem:[#allocation4 + $0x121] sm:$0xff] %vm426_vm0, %v392_v63 }
  0xef   : > { %v393_v0 = vpop.trf.xlu0 }
  0xf0   : > { %v413_v1 = vpack.c.bf16 %v393_v0, %v392_v63  ;;  %7990 = vst.msk [vmem:[#allocation4 + $0x129] sm:$0xff] %vm426_vm0, %v393_v0 }
  0xf2   : > { %9321 = vmatmul.mubr.msk.bf16.gmra.mrb[20].mxu0 %vm426_vm0, %v413_v1 }
  0xf3   : > { %v394_v2 = vpop.trf.xlu0 }
  0xf4   : > { %7991 = vst.msk [vmem:[#allocation4 + $0x139] sm:$0xff] %vm426_vm0, %v394_v2 }
  0xf7   : > { %v395_v6 = vpop.trf.xlu0 }
  0xf8   : > { %v414_v7 = vpack.c.bf16 %v395_v6, %v394_v2  ;;  %7992 = vst.msk [vmem:[#allocation4 + $0x141] sm:$0xff] %vm426_vm0, %v395_v6 }
  0xfa   : > { %9324 = vmatprep.mubr.msk.bf16.mxu0 %vm426_vm0, %v414_v7 }
  0xfb   : > { %v396_v8 = vpop.trf.xlu0 }
  0xfc   : > { %7993 = vst.msk [vmem:[#allocation4 + $0x151] sm:$0xff] %vm426_vm0, %v396_v8 }
  0xff   : > { %v397_v9 = vpop.trf.xlu0 }
 0x100   : > { %v415_v10 = vpack.c.bf16 %v397_v9, %v396_v8  ;;  %7994 = vst.msk [vmem:[#allocation4 + $0x159] sm:$0xff] %vm426_vm0, %v397_v9 }
 0x102   : > { %9325 = vmatmul.mubr.msk.bf16.gmra.mrb[24].mxu0 %vm426_vm0, %v415_v10 }
 0x103   : > { %v398_v11 = vpop.trf.xlu0 }
 0x104   : > { %7995 = vst.msk [vmem:[#allocation4 + $0x169] sm:$0xff] %vm426_vm0, %v398_v11 }
 0x107   : > { %v399_v12 = vpop.trf.xlu0 }
 0x108   : > { %v416_v13 = vpack.c.bf16 %v399_v12, %v398_v11  ;;  %7996 = vst.msk [vmem:[#allocation4 + $0x171] sm:$0xff] %vm426_vm0, %v399_v12 }
 0x10a   : > { %9328 = vmatprep.mubr.msk.bf16.mxu0 %vm426_vm0, %v416_v13 }
 0x10b   : > { %v400_v14 = vpop.trf.xlu0 }
 0x10c   : > { %7997 = vst.msk [vmem:[#allocation4 + $0x181] sm:$0xff] %vm426_vm0, %v400_v14 }
 0x10f   : > { %v401_v15 = vpop.trf.xlu0 }
 0x110   : > { %v417_v16 = vpack.c.bf16 %v401_v15, %v400_v14  ;;  %7998 = vst.msk [vmem:[#allocation4 + $0x189] sm:$0xff] %vm426_vm0, %v401_v15 }
 0x112   : > { %9329 = vmatmul.mubr.msk.bf16.gmra.mrb[28].mxu0 %vm426_vm0, %v417_v16 }
 0x175   : > { %v9302_v18 = vpop.f32.mrb[0].mxu0 }
 0x176   : > { %v522_v19 = vadd.f32 %v9302_v18, %v12543_v17  ;;  %v513_v20 = vpop.f32.mrb[1].mxu0 }
 0x177   : > { %v9303_v21 = vpop.f32.mrb[2].mxu0  ;;  %v514_v27 = vadd.f32 %v12543_v17, %v513_v20 }
 0x178   : > { %v12546_v22 = vmax.f32 %v522_v19, 0.0  ;;  %v525_v23 = vadd.f32 %v9303_v21, %v12543_v17  ;;  %v516_v24 = vpop.f32.mrb[3].mxu0  ;;  %v12673_v19 = vpop.permute.xlu0 %9493 }
 0x179   : > { %v517_v26 = vadd.f32 %v12543_v17, %v516_v24  ;;  %v12561_v29 = vmax.f32 %v514_v27, 0.0  ;;  %19830 = vst [vmem:[#allocation25_spill] sm:$0xff] %v12673_v19  ;;  %v12680_v21 = vpop.permute.xlu1 %9483 }
 0x17a   : > { %19810 = vst [vmem:[#allocation5_spill] sm:$0xff] %v12546_v22  ;;  %v12549_v25 = vmax.f32 %v525_v23, 0.0  ;;  %763 = vrot.lane.b32.xlu1 %v12546_v22, %s12105_s25 }
 0x17b   : > { %v12557_v28 = vmax.f32 %v517_v26, 0.0  ;;  %19813 = vst [vmem:[#allocation8_spill] sm:$0xff] %v12561_v29 }
 0x17c   : > { %19811 = vst [vmem:[#allocation6_spill] sm:$0xff] %v12549_v25  ;;  %2819 = vrot.lane.b32.xlu0 %v12549_v25, %s12106_s26  ;;  %v12684_v24 = vpop.permute.xlu0 %9498 }
 0x17d   : > { %19812 = vst [vmem:[#allocation7_spill] sm:$0xff] %v12557_v28  ;;  %19831 = vst [vmem:[#allocation26_spill] sm:$0xff] %v12684_v24 }
 0x17e   : > { %2817 = vrot.lane.b32.xlu1 %v12546_v22, %s12106_s26 }
 0x180   : > { %2815 = vrot.lane.b32.xlu0 %v12557_v28, %s12106_s26 }
 0x182   : > { %759 = vrot.lane.b32.xlu1 %v12561_v29, %s12105_s25 }
 0x185   : > { %v9306_v30 = vpop.f32.mrb[4].mxu0 }
 0x186   : > { %2813 = vrot.lane.b32.xlu1 %v12561_v29, %s12106_s26  ;;  %v529_v31 = vpop.f32.mrb[5].mxu0  ;;  %v538_v37 = vadd.f32 %v9306_v30, %v12543_v17  ;;  %v888_v29 = vld [vmem:[#allocation2] sm:$0xff] }
 0x187   : > { %v9307_v32 = vpop.f32.mrb[6].mxu0  ;;  %v530_v40 = vadd.f32 %v12543_v17, %v529_v31 }
 0x188   : > { %v541_v33 = vadd.f32 %v9307_v32, %v12543_v17  ;;  %v532_v34 = vpop.f32.mrb[7].mxu0  ;;  %v12582_v39 = vmax.f32 %v538_v37, 0.0 }
 0x189   : > { %v533_v36 = vadd.f32 %v12543_v17, %v532_v34  ;;  %v12591_v44 = vmax.f32 %v530_v40, 0.0  ;;  %v12699_v40 = vpop.permute.xlu0 %9503 }
 0x18a   : > { %v12570_v35 = vmax.f32 %v541_v33, 0.0  ;;  %765 = vrot.lane.b32.xlu1 %v12549_v25, %s12105_s25  ;;  %19816 = vst [vmem:[#allocation11_spill] sm:$0xff] %v12582_v39  ;;  %19834 = vst [vmem:[#allocation29_spill] sm:$0xff] %v12699_v40 }
 0x18b   : > { %v12578_v38 = vmax.f32 %v533_v36, 0.0  ;;  %19817 = vst [vmem:[#allocation12_spill] sm:$0xff] %v12591_v44  ;;  %v12696_v36 = vpop.permute.xlu1 %9488 }
 0x18c   : > { %19814 = vst [vmem:[#allocation9_spill] sm:$0xff] %v12570_v35  ;;  %2827 = vrot.lane.b32.xlu0 %v12570_v35, %s12106_s26 }
 0x18d   : > { %19815 = vst [vmem:[#allocation10_spill] sm:$0xff] %v12578_v38 }
 0x18e   : > { %761 = vrot.lane.b32.xlu1 %v12557_v28, %s12105_s25 }
 0x190   : > { %2823 = vrot.lane.b32.xlu0 %v12578_v38, %s12106_s26 }
 0x192   : > { %771 = vrot.lane.b32.xlu1 %v12582_v39, %s12105_s25 }
 0x195   : > { %v9310_v41 = vpop.f32.mrb[8].mxu0 }
 0x196   : > { %2825 = vrot.lane.b32.xlu1 %v12582_v39, %s12106_s26  ;;  %v545_v42 = vpop.f32.mrb[9].mxu0  ;;  %v554_v50 = vadd.f32 %v9310_v41, %v12543_v17 }
 0x197   : > { %v9311_v43 = vpop.f32.mrb[10].mxu0  ;;  %v546_v59 = vadd.f32 %v12543_v17, %v545_v42 }
 0x198   : > { %v557_v45 = vadd.f32 %v9311_v43, %v12543_v17  ;;  %v548_v46 = vpop.f32.mrb[11].mxu0  ;;  %v12612_v54 = vmax.f32 %v554_v50, 0.0  ;;  %v12711_v43 = vpop.permute.xlu1 %9508 }
 0x199   : > { %v549_v47 = vadd.f32 %v12543_v17, %v548_v46  ;;  %v12627_v61 = vmax.f32 %v546_v59, 0.0  ;;  %19837 = vst [vmem:[#allocation32_spill] sm:$0xff] %v12711_v43 }
 0x19a   : > { %767 = vrot.lane.b32.xlu1 %v12591_v44, %s12105_s25  ;;  %v12597_v48 = vmax.f32 %v557_v45, 0.0  ;;  %19820 = vst [vmem:[#allocation15_spill] sm:$0xff] %v12612_v54  ;;  %v12715_v45 = vpop.permute.xlu0 %9513 }
 0x19b   : > { %v12599_v49 = vmax.f32 %v549_v47, 0.0  ;;  %19823 = vst [vmem:[#allocation18_spill] sm:$0xff] %v12627_v61  ;;  %19838 = vst [vmem:[#allocation33_spill] sm:$0xff] %v12715_v45  ;;  %v3039_v45 = vld [vmem:[#allocation3 + $0xb] sm:$0xff] }
 0x19c   : > { %19818 = vst [vmem:[#allocation13_spill] sm:$0xff] %v12597_v48  ;;  %2835 = vrot.lane.b32.xlu0 %v12597_v48, %s12106_s26  ;;  %v12723_v50 = vpop.permute.xlu1 %9518 }
 0x19d   : > { %19819 = vst [vmem:[#allocation14_spill] sm:$0xff] %v12599_v49  ;;  %19839 = vst [vmem:[#allocation34_spill] sm:$0xff] %v12723_v50 }
 0x19e   : > { %2821 = vrot.lane.b32.xlu1 %v12591_v44, %s12106_s26 }
 0x1a0   : > { %2831 = vrot.lane.b32.xlu0 %v12599_v49, %s12106_s26 }
 0x1a2   : > { %773 = vrot.lane.b32.xlu1 %v12570_v35, %s12105_s25 }
 0x1a5   : > { %v9314_v51 = vpop.f32.mrb[12].mxu0 }
 0x1a6   : > { %769 = vrot.lane.b32.xlu1 %v12578_v38, %s12105_s25  ;;  %v561_v52 = vpop.f32.mrb[13].mxu0  ;;  %v570_v5 = vadd.f32 %v9314_v51, %v12543_v17 }
 0x1a7   : > { %v9315_v53 = vpop.f32.mrb[14].mxu0  ;;  %v562_v8 = vadd.f32 %v12543_v17, %v561_v52 }
 0x1a8   : > { %v573_v55 = vadd.f32 %v9315_v53, %v12543_v17  ;;  %v564_v56 = vpop.f32.mrb[15].mxu0  ;;  %v12648_v7 = vmax.f32 %v570_v5, 0.0  ;;  %v12726_v53 = vpop.permute.xlu0 %9523 }
 0x1a9   : > { %v565_v57 = vadd.f32 %v12543_v17, %v564_v56  ;;  %v12659_v12 = vmax.f32 %v562_v8, 0.0  ;;  %19840 = vst [vmem:[#allocation35_spill] sm:$0xff] %v12726_v53 }
 0x1aa   : > { %779 = vrot.lane.b32.xlu1 %v12612_v54, %s12105_s25  ;;  %v12618_v58 = vmax.f32 %v573_v55, 0.0  ;;  %19826 = vst [vmem:[#allocation21_spill] sm:$0xff] %v12648_v7 }
 0x1ab   : > { %v12621_v60 = vmax.f32 %v565_v57, 0.0  ;;  %19827 = vst [vmem:[#allocation22_spill] sm:$0xff] %v12659_v12 }
 0x1ac   : > { %19821 = vst [vmem:[#allocation16_spill] sm:$0xff] %v12618_v58  ;;  %2843 = vrot.lane.b32.xlu0 %v12618_v58, %s12106_s26 }
 0x1ad   : > { %19822 = vst [vmem:[#allocation17_spill] sm:$0xff] %v12621_v60 }
 0x1ae   : > { %2833 = vrot.lane.b32.xlu1 %v12612_v54, %s12106_s26 }
 0x1b0   : > { %2839 = vrot.lane.b32.xlu0 %v12621_v60, %s12106_s26 }
 0x1b2   : > { %775 = vrot.lane.b32.xlu1 %v12627_v61, %s12105_s25 }
 0x1b5   : > { %v9318_v62 = vpop.f32.mrb[16].mxu0 }
 0x1b6   : > { %2829 = vrot.lane.b32.xlu1 %v12627_v61, %s12106_s26  ;;  %v577_v63 = vpop.f32.mrb[17].mxu0  ;;  %v586_v20 = vadd.f32 %v9318_v62, %v12543_v17 }
 0x1b7   : > { %v9319_v0 = vpop.f32.mrb[18].mxu0  ;;  %v578_v37 = vadd.f32 %v12543_v17, %v577_v63 }
 0x1b8   : > { %v589_v1 = vadd.f32 %v9319_v0, %v12543_v17  ;;  %v580_v2 = vpop.f32.mrb[19].mxu0  ;;  %v12688_v30 = vmax.f32 %v586_v20, 0.0 }
 0x1b9   : > { %v581_v3 = vadd.f32 %v12543_v17, %v580_v2  ;;  %v12707_v42 = vmax.f32 %v578_v37, 0.0 }
 0x1ba   : > { %781 = vrot.lane.b32.xlu1 %v12597_v48, %s12105_s25  ;;  %v12639_v4 = vmax.f32 %v589_v1, 0.0  ;;  %19832 = vst [vmem:[#allocation27_spill] sm:$0xff] %v12688_v30 }
 0x1bb   : > { %v12642_v6 = vmax.f32 %v581_v3, 0.0  ;;  %19836 = vst [vmem:[#allocation31_spill] sm:$0xff] %v12707_v42 }
 0x1bc   : > { %19824 = vst [vmem:[#allocation19_spill] sm:$0xff] %v12639_v4  ;;  %2851 = vrot.lane.b32.xlu0 %v12639_v4, %s12106_s26 }
 0x1bd   : > { %19825 = vst [vmem:[#allocation20_spill] sm:$0xff] %v12642_v6 }
 0x1be   : > { %777 = vrot.lane.b32.xlu1 %v12599_v49, %s12105_s25 }
 0x1c0   : > { %793 = vrot.lane.b32.xlu0 %v12642_v6, %s12105_s25 }
 0x1c2   : > { %787 = vrot.lane.b32.xlu1 %v12648_v7, %s12105_s25 }
 0x1c4   : > { %2847 = vrot.lane.b32.xlu0 %v12642_v6, %s12106_s26 }
 0x1c5   : > { %v9322_v9 = vpop.f32.mrb[20].mxu0 }
 0x1c6   : > { %2841 = vrot.lane.b32.xlu1 %v12648_v7, %s12106_s26  ;;  %v593_v10 = vpop.f32.mrb[21].mxu0  ;;  %v602_v52 = vadd.f32 %v9322_v9, %v12543_v17 }
 0x1c7   : > { %v9323_v11 = vpop.f32.mrb[22].mxu0  ;;  %v594_v2 = vadd.f32 %v12543_v17, %v593_v10 }
 0x1c8   : > { %v605_v13 = vadd.f32 %v9323_v11, %v12543_v17  ;;  %v596_v14 = vpop.f32.mrb[23].mxu0  ;;  %v12734_v62 = vmax.f32 %v602_v52, 0.0 }
 0x1c9   : > { %v597_v15 = vadd.f32 %v12543_v17, %v596_v14  ;;  %v12751_v8 = vmax.f32 %v594_v2, 0.0 }
 0x1ca   : > { %783 = vrot.lane.b32.xlu1 %v12659_v12, %s12105_s25  ;;  %v12665_v16 = vmax.f32 %v605_v13, 0.0  ;;  %19842 = vst [vmem:[#allocation37_spill] sm:$0xff] %v12734_v62 }
 0x1cb   : > { %v12667_v18 = vmax.f32 %v597_v15, 0.0  ;;  %19844 = vst [vmem:[#allocation39_spill] sm:$0xff] %v12751_v8 }
 0x1cc   : > { %19828 = vst [vmem:[#allocation23_spill] sm:$0xff] %v12665_v16  ;;  %2859 = vrot.lane.b32.xlu0 %v12665_v16, %s12106_s26 }
 0x1cd   : > { %19829 = vst [vmem:[#allocation24_spill] sm:$0xff] %v12667_v18 }
 0x1ce   : > { %2837 = vrot.lane.b32.xlu1 %v12659_v12, %s12106_s26 }
 0x1d0   : > { %2855 = vrot.lane.b32.xlu0 %v12667_v18, %s12106_s26 }
 0x1d2   : > { %789 = vrot.lane.b32.xlu1 %v12618_v58, %s12105_s25 }
 0x1d5   : > { %v9326_v23 = vpop.f32.mrb[24].mxu0 }
 0x1d6   : > { %785 = vrot.lane.b32.xlu1 %v12621_v60, %s12105_s25  ;;  %v12686_v26 = vpop.f32.mrb[25].mxu0  ;;  %v618_v14 = vadd.f32 %v9326_v23, %v12543_v17 }
 0x1d7   : > { %v9327_v27 = vpop.f32.mrb[26].mxu0 }
 0x1d8   : > { %v621_v31 = vadd.f32 %v9327_v27, %v12543_v17  ;;  %v612_v32 = vpop.f32.mrb[27].mxu0  ;;  %v12768_v27 = vmax.f32 %v618_v14, 0.0 }
 0x1d9   : > { %v613_v33 = vadd.f32 %v12543_v17, %v612_v32 }
 0x1da   : > { %795 = vrot.lane.b32.xlu1 %v12688_v30, %s12105_s25  ;;  %v12694_v34 = vmax.f32 %v621_v31, 0.0  ;;  %19845 = vst [vmem:[#allocation40_spill] sm:$0xff] %v12768_v27 }
 0x1db   : > { %v12701_v41 = vmax.f32 %v613_v33, 0.0 }
 0x1dc   : > { %19833 = vst [vmem:[#allocation28_spill] sm:$0xff] %v12694_v34  ;;  %2867 = vrot.lane.b32.xlu0 %v12694_v34, %s12106_s26 }
 0x1dd   : > { %19835 = vst [vmem:[#allocation30_spill] sm:$0xff] %v12701_v41 }
 0x1de   : > { %2849 = vrot.lane.b32.xlu1 %v12688_v30, %s12106_s26 }
 0x1e0   : > { %2863 = vrot.lane.b32.xlu0 %v12701_v41, %s12106_s26 }
 0x1e2   : > { %791 = vrot.lane.b32.xlu1 %v12707_v42, %s12105_s25 }
 0x1e5   : > { %v12717_v46 = vpop.f32.mrb[28].mxu0 }
 0x1e6   : > { %2845 = vrot.lane.b32.xlu1 %v12707_v42, %s12106_s26  ;;  %v12721_v47 = vpop.f32.mrb[29].mxu0 }
 0x1e7   : > { %v9331_v51 = vpop.f32.mrb[30].mxu0 }
 0x1e8   : > { %v637_v55 = vadd.f32 %v9331_v51, %v12543_v17  ;;  %v628_v56 = vpop.f32.mrb[31].mxu0  ;;  %v610_v51 = vadd.f32 %v12543_v17, %v12686_v26 }
 0x1e9   : > { %v629_v57 = vadd.f32 %v12543_v17, %v628_v56 }
 0x1ea   : > { %797 = vrot.lane.b32.xlu1 %v12639_v4, %s12105_s25  ;;  %v12732_v59 = vmax.f32 %v637_v55, 0.0 }
 0x1eb   : > { %v12736_v0 = vmax.f32 %v629_v57, 0.0 }
 0x1ec   : > { %19841 = vst [vmem:[#allocation36_spill] sm:$0xff] %v12732_v59  ;;  %v764_v63 = vpop.permute.xlu1 %763  ;;  %2875 = vrot.lane.b32.xlu0 %v12732_v59, %s12106_s26 }
 0x1ed   : > { %19843 = vst [vmem:[#allocation38_spill] sm:$0xff] %v12736_v0  ;;  %858 = vst.msk [vmem:[#allocation2 + $0x31] sm:$0xff] %vm426_vm0, %v764_v63 }
 0x1ee   : > { %803 = vrot.lane.b32.xlu1 %v12734_v62, %s12105_s25  ;;  %v2820_v1 = vpop.permute.xlu0 %2819 }
 0x1ef   : > { %2913 = vst.msk [vmem:[#allocation3 + $0x52] sm:$0xff] %vm426_vm0, %v2820_v1  ;;  %v12786_v1 = vmax.f32 %v610_v51, 0.0 }
 0x1f0   : > { %v2818_v3 = vpop.permute.xlu1 %2817  ;;  %2871 = vrot.lane.b32.xlu0 %v12736_v0, %s12106_s26 }
 0x1f1   : > { %2912 = vst.msk [vmem:[#allocation3 + $0x4a] sm:$0xff] %vm426_vm0, %v2818_v3  ;;  %19846 = vst [vmem:[#allocation41_spill] sm:$0xff] %v12786_v1 }
 0x1f2   : > { %2857 = vrot.lane.b32.xlu1 %v12734_v62, %s12106_s26  ;;  %v2816_v5 = vpop.permute.xlu0 %2815 }
 0x1f3   : > { %2911 = vst.msk [vmem:[#allocation3 + $0x3a] sm:$0xff] %vm426_vm0, %v2816_v5 }
 0x1f4   : > { %v760_v9 = vpop.permute.xlu1 %759  ;;  %v986_v32 = vld [vmem:[#allocation2 + $0x30] sm:$0xff] }
 0x1f5   : > { %856 = vst.msk [vmem:[#allocation2 + $0x19] sm:$0xff] %vm426_vm0, %v760_v9  ;;  %v1018_v55 = vld [vmem:[#allocation2 + $0x31] sm:$0xff] }
 0x1f6   : > { %799 = vrot.lane.b32.xlu1 %v12751_v8, %s12105_s25 }
 0x1f8   : > { %v2814_v10 = vpop.permute.xlu1 %2813  ;;  %v2980_v3 = vld [vmem:[#allocation3 + $0x49] sm:$0xff]  ;;  %v2981_v5 = vld [vmem:[#allocation3 + $0x51] sm:$0xff] }
 0x1f9   : > { %2910 = vst.msk [vmem:[#allocation3 + $0x32] sm:$0xff] %vm426_vm0, %v2814_v10 }
 0x1fa   : > { %2853 = vrot.lane.b32.xlu1 %v12751_v8, %s12106_s26  ;;  %v9490_v8 = vunpack.i.l.bf16 %v12696_v36  ;;  %v13872_v19 = vld [vmem:[#allocation3 + $0x3a] sm:$0xff] }
 0x1fc   : > { %v766_v11 = vpop.permute.xlu1 %765 }
 0x1fd   : > { %859 = vst.msk [vmem:[#allocation2 + $0x39] sm:$0xff] %vm426_vm0, %v766_v11  ;;  %v9567_v11 = vpack.i.bf16 %v2981_v5, %v2980_v3 }
 0x1fe   : > { %805 = vrot.lane.b32.xlu1 %v12665_v16, %s12105_s25  ;;  %v2828_v13 = vpop.permute.xlu0 %2827 }
 0x1ff   : > { %2917 = vst.msk [vmem:[#allocation3 + $0x82] sm:$0xff] %vm426_vm0, %v2828_v13  ;;  %v3012_v13 = vld [vmem:[#allocation3 + $0x4a] sm:$0xff] }
 0x200   : > { %v762_v15 = vpop.permute.xlu1 %761  ;;  %v2979_v7 = vld [vmem:[#allocation3 + $0x39] sm:$0xff] }
 0x201   : > { %857 = vst.msk [vmem:[#allocation2 + $0x21] sm:$0xff] %vm426_vm0, %v762_v15  ;;  %v13855_v40 = vld [vmem:[#allocation3 + $0x32] sm:$0xff] }
 0x202   : > { %801 = vrot.lane.b32.xlu1 %v12667_v18, %s12105_s25  ;;  %v2824_v20 = vpop.permute.xlu0 %2823 }
 0x203   : > { %2915 = vst.msk [vmem:[#allocation3 + $0x6a] sm:$0xff] %vm426_vm0, %v2824_v20  ;;  %v3013_v20 = vld [vmem:[#allocation3 + $0x52] sm:$0xff] }
 0x204   : > { %v772_v31 = vpop.permute.xlu1 %771  ;;  %v987_v33 = vld [vmem:[#allocation2 + $0x38] sm:$0xff] }
 0x205   : > { %862 = vst.msk [vmem:[#allocation2 + $0x61] sm:$0xff] %vm426_vm0, %v772_v31  ;;  %v12771_v37 = vpack.i.bf16 %v987_v33, %v986_v32  ;;  %v1019_v23 = vld [vmem:[#allocation2 + $0x39] sm:$0xff]  ;;  %v9572_v31 = vpack.i.bf16 %v3013_v20, %v3012_v13 }
 0x206   : > { %811 = vrot.lane.b32.xlu1 %v12768_v27, %s12105_s25  ;;  %v12780_v56 = vpack.i.bf16 %v1019_v23, %v1018_v55  ;;  %v1050_v57 = vld [vmem:[#allocation2 + $0x32] sm:$0xff]  ;;  %v1051_v63 = vld [vmem:[#allocation2 + $0x3a] sm:$0xff]  ;;  %v634_v23 = vadd.f32 %v12717_v46, %v12543_v17 }
 0x207   : > { %9538 = vrot.lane.b32.xlu0 %v12771_v37, %s12107_s27  ;;  %v12789_v26 = vpack.i.bf16 %v1051_v63, %v1050_v57  ;;  %v13435_v53 = vld [vmem:[#allocation3 + $0x83] sm:$0xff] }
 0x208   : > { %v2826_v52 = vpop.permute.xlu1 %2825  ;;  %v954_v32 = vld [vmem:[#allocation2 + $0x1a] sm:$0xff]  ;;  %v955_v33 = vld [vmem:[#allocation2 + $0x22] sm:$0xff]  ;;  %v12814_v55 = vmax.f32 %v634_v23, 0.0 }
 0x209   : > { %2916 = vst.msk [vmem:[#allocation3 + $0x7a] sm:$0xff] %vm426_vm0, %v2826_v52  ;;  %v12808_v52 = vpack.i.bf16 %v955_v33, %v954_v32 }
 0x20a   : > { %2865 = vrot.lane.b32.xlu1 %v12768_v27, %s12106_s26  ;;  %19847 = vst [vmem:[#allocation42_spill] sm:$0xff] %v12814_v55 }
 0x20b   : > { %9543 = vrot.lane.b32.xlu0 %v12780_v56, %s12108_s28 }
 0x20c   : > { %v768_v2 = vpop.permute.xlu1 %767  ;;  %v990_v63 = vld [vmem:[#allocation2 + $0x60] sm:$0xff] }
 0x20d   : > { %860 = vst.msk [vmem:[#allocation2 + $0x49] sm:$0xff] %vm426_vm0, %v768_v2 }
 0x20e   : > { %807 = vrot.lane.b32.xlu1 %v12786_v1, %s12105_s25  ;;  %v2836_v9 = vpop.permute.xlu0 %2835 }
 0x20f   : > { %9548 = vrot.lane.b32.xlu0 %v12789_v26, %s12109_s29  ;;  %2921 = vst.msk [vmem:[#allocation3 + $0xb2] sm:$0xff] %vm426_vm0, %v2836_v9  ;;  %v626_v9 = vadd.f32 %v12543_v17, %v12721_v47 }
 0x210   : > { %v2822_v10 = vpop.permute.xlu1 %2821  ;;  %v2984_v32 = vld [vmem:[#allocation3 + $0x79] sm:$0xff]  ;;  %v2985_v33 = vld [vmem:[#allocation3 + $0x81] sm:$0xff] }
 0x211   : > { %2914 = vst.msk [vmem:[#allocation3 + $0x62] sm:$0xff] %vm426_vm0, %v2822_v10 }
 0x212   : > { %2861 = vrot.lane.b32.xlu1 %v12786_v1, %s12106_s26  ;;  %v2832_v14 = vpop.permute.xlu0 %2831 }
 0x213   : > { %9568 = vrot.lane.b32.xlu0 %v9567_v11, %s12100_s18  ;;  %2919 = vst.msk [vmem:[#allocation3 + $0x9a] sm:$0xff] %vm426_vm0, %v2832_v14  ;;  %v1022_v11 = vld [vmem:[#allocation2 + $0x61] sm:$0xff] }
 0x214   : > { %v774_v15 = vpop.permute.xlu1 %773 }
 0x215   : > { %863 = vst.msk [vmem:[#allocation2 + $0x69] sm:$0xff] %vm426_vm0, %v774_v15 }
 0x216   : > { %813 = vrot.lane.b32.xlu1 %v12694_v34, %s12105_s25  ;;  %v3021_v58 = vld [vmem:[#allocation3 + $0xb2] sm:$0xff] }
 0x217   : > { %9573 = vrot.lane.b32.xlu0 %v9572_v31, %s12101_s19  ;;  %v12834_v31 = vmax.f32 %v626_v9, 0.0 }
 0x218   : > { %v770_v51 = vpop.permute.xlu1 %769 }
 0x219   : > { %861 = vst.msk [vmem:[#allocation2 + $0x51] sm:$0xff] %vm426_vm0, %v770_v51  ;;  %19848 = vst [vmem:[#allocation43_spill] sm:$0xff] %v12834_v31  ;;  %v9652_v51 = vpack.i.bf16 %v2985_v33, %v2984_v32  ;;  %v1083_v32 = vld [vmem:[#allocation2 + $0x48] sm:$0xff] }
 0x21a   : > { %809 = vrot.lane.b32.xlu1 %v12701_v41, %s12105_s25 }
 0x21b   : > { %9583 = vrot.lane.b32.xlu0 %v12808_v52, %s12101_s19 }
 0x21c   : > { %v780_v57 = vpop.permute.xlu1 %779  ;;  %v991_v2 = vld [vmem:[#allocation2 + $0x68] sm:$0xff] }
 0x21d   : > { %866 = vst.msk [vmem:[#allocation2 + $0x91] sm:$0xff] %vm426_vm0, %v780_v57  ;;  %v12817_v3 = vpack.i.bf16 %v991_v2, %v990_v63  ;;  %v1023_v46 = vld [vmem:[#allocation2 + $0x69] sm:$0xff]  ;;  %v3017_v2 = vld [vmem:[#allocation3 + $0x82] sm:$0xff] }
 0x21e   : > { %819 = vrot.lane.b32.xlu1 %v12814_v55, %s12105_s25  ;;  %v2844_v5 = vpop.permute.xlu0 %2843  ;;  %v12827_v13 = vpack.i.bf16 %v1023_v46, %v1022_v11  ;;  %v1054_v14 = vld [vmem:[#allocation2 + $0x62] sm:$0xff]  ;;  %v1055_v15 = vld [vmem:[#allocation2 + $0x6a] sm:$0xff] }
 0x21f   : > { %9623 = vrot.lane.b32.xlu0 %v12817_v3, %s12107_s27  ;;  %2925 = vst.msk [vmem:[#allocation3 + $0xe2] sm:$0xff] %vm426_vm0, %v2844_v5  ;;  %v12837_v47 = vpack.i.bf16 %v1055_v15, %v1054_v14  ;;  %v3016_v57 = vld [vmem:[#allocation3 + $0x7a] sm:$0xff] }
 0x220   : > { %v2834_v10 = vpop.permute.xlu1 %2833  ;;  %v9657_v46 = vpack.i.bf16 %v3017_v2, %v3016_v57  ;;  %v958_v5 = vld [vmem:[#allocation2 + $0x4a] sm:$0xff]  ;;  %v959_v9 = vld [vmem:[#allocation2 + $0x52] sm:$0xff] }
 0x221   : > { %2920 = vst.msk [vmem:[#allocation3 + $0xaa] sm:$0xff] %vm426_vm0, %v2834_v10  ;;  %v12853_v14 = vpack.i.bf16 %v959_v9, %v958_v5  ;;  %v1084_v15 = vld [vmem:[#allocation2 + $0x50] sm:$0xff]  ;;  %v897_v50 = vld [vmem:[#allocation2 + $0x68] sm:$0xff] }
 0x222   : > { %2873 = vrot.lane.b32.xlu1 %v12814_v55, %s12106_s26  ;;  %v2840_v20 = vpop.permute.xlu0 %2839  ;;  %v12861_v33 = vpack.i.bf16 %v1084_v15, %v1083_v32 }
 0x223   : > { %9628 = vrot.lane.b32.xlu0 %v12827_v13, %s12108_s28  ;;  %2923 = vst.msk [vmem:[#allocation3 + $0xca] sm:$0xff] %vm426_vm0, %v2840_v20 }
 0x224   : > { %v776_v17 = vpop.permute.xlu1 %775  ;;  %v1026_v32 = vld [vmem:[#allocation2 + $0x91] sm:$0xff] }
 0x225   : > { %864 = vst.msk [vmem:[#allocation2 + $0x79] sm:$0xff] %vm426_vm0, %v776_v17 }
 0x226   : > { %815 = vrot.lane.b32.xlu1 %v12834_v31, %s12105_s25 }
 0x227   : > { %9633 = vrot.lane.b32.xlu0 %v12837_v47, %s12109_s29 }
 0x228   : > { %v2830_v23 = vpop.permute.xlu1 %2829 }
 0x229   : > { %2918 = vst.msk [vmem:[#allocation3 + $0x92] sm:$0xff] %vm426_vm0, %v2830_v23  ;;  %v1116_v23 = vld [vmem:[#allocation2 + $0x51] sm:$0xff] }
 0x22a   : > { %2869 = vrot.lane.b32.xlu1 %v12834_v31, %s12106_s26  ;;  %s12112_s26 = smov 44  }
 0x22b   : > { %9653 = vrot.lane.b32.xlu0 %v9652_v51, %s12100_s18 }
 0x22c   : > { %v782_v63 = vpop.permute.xlu1 %781 }
 0x22d   : > { %867 = vst.msk [vmem:[#allocation2 + $0x99] sm:$0xff] %vm426_vm0, %v782_v63  ;;  %v1115_v63 = vld [vmem:[#allocation2 + $0x49] sm:$0xff] }
 0x22e   : > { %821 = vrot.lane.b32.xlu1 %v12732_v59, %s12105_s25  ;;  %v2852_v10 = vpop.permute.xlu0 %2851  ;;  %v12869_v2 = vpack.i.bf16 %v1116_v23, %v1115_v63 }
 0x22f   : > { %9658 = vrot.lane.b32.xlu0 %v9657_v46, %s12101_s19  ;;  %2929 = vst.msk [vmem:[#allocation3 + $0x112] sm:$0xff] %vm426_vm0, %v2852_v10 }
 0x230   : > { %v778_v11 = vpop.permute.xlu1 %777  ;;  %v2987_v34 = vld [vmem:[#allocation3 + $0x99] sm:$0xff] }
 0x231   : > { %865 = vst.msk [vmem:[#allocation2 + $0x81] sm:$0xff] %vm426_vm0, %v778_v11  ;;  %v994_v11 = vld [vmem:[#allocation2 + $0x90] sm:$0xff]  ;;  %v3018_v41 = vld [vmem:[#allocation3 + $0x92] sm:$0xff] }
 0x232   : > { %817 = vrot.lane.b32.xlu1 %v12736_v0, %s12105_s25  ;;  %v794_v20 = vpop.permute.xlu0 %793  ;;  %s12111_s25 = smov 40  }
 0x233   : > { %9668 = vrot.lane.b32.xlu0 %v12853_v14, %s12101_s19  ;;  %873 = vst.msk [vmem:[#allocation2 + $0xe1] sm:$0xff] %vm426_vm0, %v794_v20 }
 0x234   : > { %v788_v17 = vpop.permute.xlu1 %787  ;;  %v995_v5 = vld [vmem:[#allocation2 + $0x98] sm:$0xff] }
 0x235   : > { %870 = vst.msk [vmem:[#allocation2 + $0xc1] sm:$0xff] %vm426_vm0, %v788_v17  ;;  %v12882_v15 = vpack.i.bf16 %v995_v5, %v994_v11  ;;  %v1027_v20 = vld [vmem:[#allocation2 + $0x99] sm:$0xff] }
 0x236   : > { %9528 = vrot.lane.b32.xlu1 %v12780_v56, %s12100_s18  ;;  %v2848_v51 = vpop.permute.xlu0 %2847  ;;  %v12890_v23 = vpack.i.bf16 %v1027_v20, %v1026_v32  ;;  %v1059_v63 = vld [vmem:[#allocation2 + $0x9a] sm:$0xff] }
 0x237   : > { %9688 = vrot.lane.b32.xlu0 %v12861_v33, %s12102_s20  ;;  %2927 = vst.msk [vmem:[#allocation3 + $0xfa] sm:$0xff] %vm426_vm0, %v2848_v51  ;;  %v923_v51 = vld [vmem:[#allocation2 + $0x21] sm:$0xff]  ;;  %v2988_v20 = vld [vmem:[#allocation3 + $0xa9] sm:$0xff] }
 0x238   : > { %v2842_v57 = vpop.permute.xlu1 %2841  ;;  %v12902_v11 = vld [vmem:[#allocation2 + $0x20] sm:$0xff] }
 0x239   : > { %2924 = vst.msk [vmem:[#allocation3 + $0xda] sm:$0xff] %vm426_vm0, %v2842_v57  ;;  %v12043_v57 = vld [vmem:[%s19360_s3] sm:$0xff]  }
 0x23a   : > { %9533 = vrot.lane.b32.xlu1 %v12789_v26, %s12101_s19  ;;  %9332 = vmatprep.subr.bf16.mxu1 %v12043_v57 }
 0x23b   : > { %9693 = vrot.lane.b32.xlu0 %v12869_v2, %s12103_s21  ;;  %9333 = vmatpush3.bf16.msra.mxu1 %v12043_v57 }
 0x23c   : > { %v784_v46 = vpop.permute.xlu1 %783 }
 0x23d   : > { %868 = vst.msk [vmem:[#allocation2 + $0xa9] sm:$0xff] %vm426_vm0, %v784_v46  ;;  %v922_v46 = vld [vmem:[#allocation2 + $0x19] sm:$0xff] }
 0x23e   : > { %9553 = vrot.lane.b32.xlu1 %v12771_v37, %s12102_s20  ;;  %v2860_v9 = vpop.permute.xlu0 %2859 }
 0x23f   : > { %9698 = vrot.lane.b32.xlu0 %v12853_v14, %s12104_s22  ;;  %2933 = vst.msk [vmem:[#allocation3 + $0x142] sm:$0xff] %vm426_vm0, %v2860_v9  ;;  %v9577_v9 = vpack.i.bf16 %v923_v51, %v922_v46 }
 0x240   : > { %v2838_v10 = vpop.permute.xlu1 %2837 }
 0x241   : > { %2922 = vst.msk [vmem:[#allocation3 + $0xc2] sm:$0xff] %vm426_vm0, %v2838_v10 }
 0x242   : > { %9558 = vrot.lane.b32.xlu1 %v12780_v56, %s12103_s21  ;;  %v2856_v17 = vpop.permute.xlu0 %2855  ;;  %v1058_v56 = vld [vmem:[#allocation2 + $0x92] sm:$0xff] }
 0x243   : > { %9723 = vrot.lane.b32.xlu0 %v12882_v15, %s12107_s27  ;;  %2931 = vst.msk [vmem:[#allocation3 + $0x12a] sm:$0xff] %vm426_vm0, %v2856_v17  ;;  %v12900_v10 = vpack.i.bf16 %v1059_v63, %v1058_v56  ;;  %v2989_v17 = vld [vmem:[#allocation3 + $0xb1] sm:$0xff]  ;;  %v12045_v56 = vld [vmem:[%s19360_s3 + $0x10] ss:$0 sps:$4 sm:$0x33]  }
 0x244   : > { %v790_v37 = vpop.permute.xlu1 %789  ;;  %v9752_v57 = vpack.i.bf16 %v2989_v17, %v2988_v20  ;;  %v3020_v63 = vld [vmem:[#allocation3 + $0xaa] sm:$0xff] }
 0x245   : > { %871 = vst.msk [vmem:[#allocation2 + $0xc9] sm:$0xff] %vm426_vm0, %v790_v37  ;;  %v12910_v37 = vld [vmem:[#allocation2 + $0x18] sm:$0xff]  ;;  %v9757_v20 = vpack.i.bf16 %v3021_v58, %v3020_v63  ;;  %v1088_v58 = vld [vmem:[#allocation2 + $0x80] sm:$0xff] }
 0x246   : > { %9563 = vrot.lane.b32.xlu1 %v12789_v26, %s12104_s22  ;;  %v12044_v26 = vld [vmem:[%s19360_s3 + $0x8] sm:$0xff]   ;;  %v9587_v51 = vpack.i.bf16 %v12902_v11, %v12910_v37  ;;  %v962_v17 = vld [vmem:[#allocation2 + $0x7a] sm:$0xff] }
 0x247   : > { %9728 = vrot.lane.b32.xlu0 %v12890_v23, %s12108_s28  ;;  %9334 = vmatprep.subr.bf16.mxu1 %v12044_v26 }
 0x248   : > { %v786_v5 = vpop.permute.xlu1 %785  ;;  %9335 = vmatpush3.bf16.msra.mxu1 %v12044_v26 }
 0x249   : > { %869 = vst.msk [vmem:[#allocation2 + $0xb1] sm:$0xff] %vm426_vm0, %v786_v5  ;;  %9451 = vmatprep.subr.msk.bf16.mxu1 %vm475_vm2, %v12045_v56  ;;  %v2557_v5 = vsel %vm475_vm2, %v12045_v56, 0  ;;  %v2978_v56 = vld [vmem:[#allocation3 + $0x31] sm:$0xff] }
 0x24a   : > { %9578 = vrot.lane.b32.xlu1 %v9577_v9, %s12100_s18  ;;  %v9602_v63 = vpack.i.bf16 %v2979_v7, %v2978_v56 }
 0x24b   : > { %9733 = vrot.lane.b32.xlu0 %v12900_v10, %s12109_s29 }
 0x24c   : > { %v796_v32 = vpop.permute.xlu1 %795  ;;  %9337 = vmatpush3.bf16.msra.mxu1 %v2557_v5  ;;  %v1087_v5 = vld [vmem:[#allocation2 + $0x78] sm:$0xff] }
 0x24d   : > { %874 = vst.msk [vmem:[#allocation2 + $0xf1] sm:$0xff] %vm426_vm0, %v796_v32  ;;  %v963_v32 = vld [vmem:[#allocation2 + $0x82] sm:$0xff] }
 0x24e   : > { %9588 = vrot.lane.b32.xlu1 %v9587_v51, %s12107_s27  ;;  %v2868_v46 = vpop.permute.xlu0 %2867 }
 0x24f   : > { %9753 = vrot.lane.b32.xlu0 %v9752_v57, %s12100_s18  ;;  %2937 = vst.msk [vmem:[#allocation3 + $0x172] sm:$0xff] %vm426_vm0, %v2868_v46  ;;  %v12928_v46 = vpack.i.bf16 %v963_v32, %v962_v17  ;;  %v1120_v17 = vld [vmem:[#allocation2 + $0x81] sm:$0xff]  ;;  %v3011_v32 = vld [vmem:[#allocation3 + $0x3a] sm:$0xff] }
 0x250   : > { %v2850_v26 = vpop.permute.xlu1 %2849 }
 0x251   : > { %2928 = vst.msk [vmem:[#allocation3 + $0x10a] sm:$0xff] %vm426_vm0, %v2850_v26  ;;  %v12935_v26 = vpack.i.bf16 %v1088_v58, %v1087_v5  ;;  %v999_v58 = vld [vmem:[#allocation2 + $0xc8] sm:$0xff]  ;;  %v998_v5 = vld [vmem:[#allocation2 + $0xc0] sm:$0xff] }
 0x252   : > { %9593 = vrot.lane.b32.xlu1 %v9577_v9, %s12108_s28  ;;  %v2864_v51 = vpop.permute.xlu0 %2863 }
 0x253   : > { %9758 = vrot.lane.b32.xlu0 %v9757_v20, %s12101_s19  ;;  %2935 = vst.msk [vmem:[#allocation3 + $0x15a] sm:$0xff] %vm426_vm0, %v2864_v51  ;;  %v3010_v20 = vld [vmem:[#allocation3 + $0x32] sm:$0xff] }
 0x254   : > { %v792_v57 = vpop.permute.xlu1 %791  ;;  %v9607_v51 = vpack.i.bf16 %v3011_v32, %v3010_v20  ;;  %v12954_v20 = vpack.i.bf16 %v999_v58, %v998_v5  ;;  %v1034_v59 = vld [vmem:[#allocation2 + $0xf1] sm:$0xff] }
 0x255   : > { %872 = vst.msk [vmem:[#allocation2 + $0xd9] sm:$0xff] %vm426_vm0, %v792_v57  ;;  %v1119_v57 = vld [vmem:[#allocation2 + $0x79] sm:$0xff] }
 0x256   : > { %9598 = vrot.lane.b32.xlu1 %v12808_v52, %s12109_s29  ;;  %v12941_v60 = vpack.i.bf16 %v1120_v17, %v1119_v57  ;;  %v1031_v17 = vld [vmem:[#allocation2 + $0xc9] sm:$0xff] }
 0x257   : > { %9768 = vrot.lane.b32.xlu0 %v12928_v46, %s12101_s19  ;;  %v1062_v57 = vld [vmem:[#allocation2 + $0xc2] sm:$0xff] }
 0x258   : > { %v2846_v9 = vpop.permute.xlu1 %2845 }
 0x259   : > { %2926 = vst.msk [vmem:[#allocation3 + $0xf2] sm:$0xff] %vm426_vm0, %v2846_v9 }
 0x25a   : > { %9603 = vrot.lane.b32.xlu1 %v9602_v63, %s12100_s18 }
 0x25b   : > { %9788 = vrot.lane.b32.xlu0 %v12935_v26, %s12102_s20 }
 0x25c   : > { %v798_v52 = vpop.permute.xlu1 %797  ;;  %v1096_v35 = vld [vmem:[#allocation2 + $0xe0] sm:$0xff] }
 0x25d   : > { %875 = vst.msk [vmem:[#allocation2 + $0xf9] sm:$0xff] %vm426_vm0, %v798_v52  ;;  %v1030_v52 = vld [vmem:[#allocation2 + $0xc1] sm:$0xff] }
 0x25e   : > { %9608 = vrot.lane.b32.xlu1 %v9607_v51, %s12101_s19  ;;  %v2876_v7 = vpop.permute.xlu0 %2875  ;;  %v12961_v51 = vpack.i.bf16 %v1031_v17, %v1030_v52  ;;  %v966_v17 = vld [vmem:[#allocation2 + $0xaa] sm:$0xff] }
 0x25f   : > { %9793 = vrot.lane.b32.xlu0 %v12941_v60, %s12103_s21  ;;  %2941 = vst.msk [vmem:[#allocation3 + $0x1a2] sm:$0xff] %vm426_vm0, %v2876_v7  ;;  %v1063_v7 = vld [vmem:[#allocation2 + $0xca] sm:$0xff] }
 0x260   : > { %v804_v56 = vpop.permute.xlu1 %803  ;;  %v12968_v58 = vpack.i.bf16 %v1063_v7, %v1062_v57  ;;  %v1092_v57 = vld [vmem:[#allocation2 + $0xb0] sm:$0xff] }
 0x261   : > { %878 = vst.msk [vmem:[#allocation2 + $0x121] sm:$0xff] %vm426_vm0, %v804_v56 }
 0x262   : > { %9613 = vrot.lane.b32.xlu1 %v12827_v13, %s12100_s18  ;;  %v2872_v9 = vpop.permute.xlu0 %2871 }
 0x263   : > { %9798 = vrot.lane.b32.xlu0 %v12928_v46, %s12104_s22  ;;  %2939 = vst.msk [vmem:[#allocation3 + $0x18a] sm:$0xff] %vm426_vm0, %v2872_v9  ;;  %v2992_v9 = vld [vmem:[#allocation3 + $0xd9] sm:$0xff] }
 0x264   : > { %v2858_v63 = vpop.permute.xlu1 %2857  ;;  %v1035_v48 = vld [vmem:[#allocation2 + $0xf9] sm:$0xff] }
 0x265   : > { %2932 = vst.msk [vmem:[#allocation3 + $0x13a] sm:$0xff] %vm426_vm0, %v2858_v63  ;;  %v2993_v63 = vld [vmem:[#allocation3 + $0xe1] sm:$0xff] }
 0x266   : > { %9618 = vrot.lane.b32.xlu1 %v12837_v47, %s12101_s19 }
 0x267   : > { %9823 = vrot.lane.b32.xlu0 %v12954_v20, %s12107_s27 }
 0x268   : > { %v800_v32 = vpop.permute.xlu1 %799  ;;  %v1038_v39 = vld [vmem:[#allocation2 + $0x121] sm:$0xff] }
 0x269   : > { %876 = vst.msk [vmem:[#allocation2 + $0x109] sm:$0xff] %vm426_vm0, %v800_v32  ;;  %v967_v32 = vld [vmem:[#allocation2 + $0xb2] sm:$0xff] }
 0x26a   : > { %9638 = vrot.lane.b32.xlu1 %v12817_v3, %s12102_s20  ;;  %v9852_v3 = vpack.i.bf16 %v2993_v63, %v2992_v9  ;;  %v1124_v63 = vld [vmem:[#allocation2 + $0xb1] sm:$0xff] }
 0x26b   : > { %9828 = vrot.lane.b32.xlu0 %v12961_v51, %s12108_s28 }
 0x26c   : > { %v2854_v56 = vpop.permute.xlu1 %2853 }
 0x26d   : > { %2930 = vst.msk [vmem:[#allocation3 + $0x122] sm:$0xff] %vm426_vm0, %v2854_v56  ;;  %v1091_v56 = vld [vmem:[#allocation2 + $0xa8] sm:$0xff] }
 0x26e   : > { %9643 = vrot.lane.b32.xlu1 %v12827_v13, %s12103_s21  ;;  %v12979_v13 = vpack.i.bf16 %v967_v32, %v966_v17  ;;  %v12988_v9 = vpack.i.bf16 %v1092_v57, %v1091_v56  ;;  %v2982_v57 = vld [vmem:[#allocation3 + $0x61] sm:$0xff] }
 0x26f   : > { %9833 = vrot.lane.b32.xlu0 %v12968_v58, %s12109_s29  ;;  %v1003_v56 = vld [vmem:[#allocation2 + $0xf8] sm:$0xff] }
 0x270   : > { %v806_v5 = vpop.permute.xlu1 %805  ;;  %v942_v1 = vld [vmem:[#allocation2 + $0x109] sm:$0xff] }
 0x271   : > { %879 = vst.msk [vmem:[#allocation2 + $0x129] sm:$0xff] %vm426_vm0, %v806_v5  ;;  %v1099_v18 = vld [vmem:[#allocation2 + $0x108] sm:$0xff] }
 0x272   : > { %9648 = vrot.lane.b32.xlu1 %v12837_v47, %s12104_s22 }
 0x273   : > { %9853 = vrot.lane.b32.xlu0 %v9852_v3, %s12100_s18  ;;  %v1123_v3 = vld [vmem:[#allocation2 + $0xa9] sm:$0xff] }
 0x274   : > { %v802_v52 = vpop.permute.xlu1 %801  ;;  %v12997_v32 = vpack.i.bf16 %v1124_v63, %v1123_v3 }
 0x275   : > { %877 = vst.msk [vmem:[#allocation2 + $0x111] sm:$0xff] %vm426_vm0, %v802_v52 }
 0x276   : > { %9663 = vrot.lane.b32.xlu1 %v12869_v2, %s12100_s18 }
 0x277   : > { %9863 = vrot.lane.b32.xlu0 %v12979_v13, %s12101_s19 }
 0x278   : > { %v812_v7 = vpop.permute.xlu1 %811 }
 0x279   : > { %882 = vst.msk [vmem:[#allocation2 + $0x151] sm:$0xff] %vm426_vm0, %v812_v7  ;;  %v12986_v47 = vpop.permute.xlu0 %9538  ;;  %v2983_v7 = vld [vmem:[#allocation3 + $0x69] sm:$0xff] }
 0x27a   : > { %9673 = vrot.lane.b32.xlu1 %v12861_v33, %s12107_s27 }
 0x27b   : > { %9883 = vrot.lane.b32.xlu0 %v12988_v9, %s12102_s20 }
 0x27c   : > { %v2866_v5 = vpop.permute.xlu1 %2865 }
 0x27d   : > { %2936 = vst.msk [vmem:[#allocation3 + $0x16a] sm:$0xff] %vm426_vm0, %v2866_v5  ;;  %v12995_v17 = vpop.permute.xlu0 %9543  ;;  %v9702_v5 = vpack.i.bf16 %v2983_v7, %v2982_v57  ;;  %v13021_v7 = vpack.i.bf16 %v1035_v48, %v1034_v59  ;;  %v2997_v48 = vld [vmem:[#allocation3 + $0x111] sm:$0xff] }
 0x27e   : > { %9678 = vrot.lane.b32.xlu1 %v12869_v2, %s12108_s28  ;;  %v1002_v2 = vld [vmem:[#allocation2 + $0xf0] sm:$0xff] }
 0x27f   : > { %9888 = vrot.lane.b32.xlu0 %v12997_v32, %s12103_s21  ;;  %v13013_v12 = vpack.i.bf16 %v1003_v56, %v1002_v2  ;;  %v1066_v56 = vld [vmem:[#allocation2 + $0xf2] sm:$0xff] }
 0x280   : > { %v808_v52 = vpop.permute.xlu1 %807 }
 0x281   : > { %880 = vst.msk [vmem:[#allocation2 + $0x139] sm:$0xff] %vm426_vm0, %v808_v52  ;;  %v13004_v33 = vpop.permute.xlu0 %9548  ;;  %v3014_v52 = vld [vmem:[#allocation3 + $0x62] sm:$0xff] }
 0x282   : > { %9683 = vrot.lane.b32.xlu1 %v12853_v14, %s12109_s29  ;;  %v3015_v14 = vld [vmem:[#allocation3 + $0x6a] sm:$0xff] }
 0x283   : > { %9893 = vrot.lane.b32.xlu0 %v12979_v13, %s12104_s22  ;;  %v9707_v49 = vpack.i.bf16 %v3015_v14, %v3014_v52 }
 0x284   : > { %v2862_v63 = vpop.permute.xlu1 %2861 }
 0x285   : > { %2934 = vst.msk [vmem:[#allocation3 + $0x152] sm:$0xff] %vm426_vm0, %v2862_v63  ;;  %v13011_v3 = vpop.permute.xlu0 %9568  ;;  %v1067_v63 = vld [vmem:[#allocation2 + $0xfa] sm:$0xff] }
 0x286   : > { %19849 = vst [vmem:[#allocation44_spill] sm:$0xff] %v13011_v3  ;;  %9703 = vrot.lane.b32.xlu1 %v9702_v5, %s12100_s18  ;;  %v13029_v52 = vpack.i.bf16 %v1067_v63, %v1066_v56  ;;  %v971_v63 = vld [vmem:[#allocation2 + $0xe2] sm:$0xff] }
 0x287   : > { %9918 = vrot.lane.b32.xlu0 %v13013_v12, %s12107_s27 }
 0x288   : > { %v814_v54 = vpop.permute.xlu1 %813 }
 0x289   : > { %883 = vst.msk [vmem:[#allocation2 + $0x159] sm:$0xff] %vm426_vm0, %v814_v54  ;;  %v13019_v57 = vpop.permute.xlu0 %9573  ;;  %v2996_v54 = vld [vmem:[#allocation3 + $0x109] sm:$0xff] }
 0x28a   : > { %19850 = vst [vmem:[#allocation45_spill] sm:$0xff] %v13019_v57  ;;  %9708 = vrot.lane.b32.xlu1 %v9707_v49, %s12101_s19  ;;  %v9947_v14 = vpack.i.bf16 %v2997_v48, %v2996_v54 }
 0x28b   : > { %9923 = vrot.lane.b32.xlu0 %v13021_v7, %s12108_s28 }
 0x28c   : > { %v810_v5 = vpop.permute.xlu1 %809 }
 0x28d   : > { %881 = vst.msk [vmem:[#allocation2 + $0x141] sm:$0xff] %vm426_vm0, %v810_v5  ;;  %v13027_v2 = vpop.permute.xlu0 %9583  ;;  %v970_v5 = vld [vmem:[#allocation2 + $0xda] sm:$0xff] }
 0x28e   : > { %9713 = vrot.lane.b32.xlu1 %v12890_v23, %s12100_s18  ;;  %v9957_v55 = vpack.i.bf16 %v971_v63, %v970_v5  ;;  %v9586_v6 = vunpack.i.h.bf16 %v13027_v2  ;;  %v9585_v42 = vunpack.i.l.bf16 %v13027_v2  ;;  %v9546_v2 = vunpack.i.h.bf16 %v12995_v17 }
 0x28f   : > { %9928 = vrot.lane.b32.xlu0 %v13029_v52, %s12109_s29 }
 0x290   : > { %v820_v49 = vpop.permute.xlu1 %819 }
 0x291   : > { %886 = vst.msk [vmem:[#allocation2 + $0x181] sm:$0xff] %vm426_vm0, %v820_v49  ;;  %v13036_v59 = vpop.permute.xlu0 %9623  ;;  %v1095_v49 = vld [vmem:[#allocation2 + $0xd8] sm:$0xff] }
 0x292   : > { %9718 = vrot.lane.b32.xlu1 %v12900_v10, %s12101_s19 }
 0x293   : > { %9948 = vrot.lane.b32.xlu0 %v9947_v14, %s12100_s18  ;;  %v13050_v14 = vpack.i.bf16 %v1096_v35, %v1095_v49  ;;  %v1007_v49 = vld [vmem:[#allocation2 + $0x128] sm:$0xff] }
 0x294   : > { %v2874_v56 = vpop.permute.xlu1 %2873 }
 0x295   : > { %2940 = vst.msk [vmem:[#allocation3 + $0x19a] sm:$0xff] %vm426_vm0, %v2874_v56  ;;  %v13042_v61 = vpop.permute.xlu0 %9628  ;;  %v1127_v56 = vld [vmem:[#allocation2 + $0xd9] sm:$0xff] }
 0x296   : > { %9738 = vrot.lane.b32.xlu1 %v12882_v15, %s12102_s20  ;;  %v1128_v15 = vld [vmem:[#allocation2 + $0xe1] sm:$0xff] }
 0x297   : > { %9958 = vrot.lane.b32.xlu0 %v9957_v55, %s12101_s19  ;;  %v13059_v0 = vpack.i.bf16 %v1128_v15, %v1127_v56  ;;  %v1006_v56 = vld [vmem:[#allocation2 + $0x120] sm:$0xff]  ;;  %v1039_v15 = vld [vmem:[#allocation2 + $0x129] sm:$0xff] }
 0x298   : > { %v816_v54 = vpop.permute.xlu1 %815  ;;  %v13081_v38 = vpack.i.bf16 %v1039_v15, %v1038_v39  ;;  %v3000_v39 = vld [vmem:[#allocation3 + $0x139] sm:$0xff]  ;;  %v3001_v15 = vld [vmem:[#allocation3 + $0x141] sm:$0xff] }
 0x299   : > { %884 = vst.msk [vmem:[#allocation2 + $0x169] sm:$0xff] %vm426_vm0, %v816_v54  ;;  %v13048_v48 = vpop.permute.xlu0 %9633  ;;  %v10037_v25 = vpack.i.bf16 %v3001_v15, %v3000_v39  ;;  %v9486_v39 = vunpack.i.h.bf16 %v12680_v21 }
 0x29a   : > { %9743 = vrot.lane.b32.xlu1 %v12890_v23, %s12103_s21 }
 0x29b   : > { %9978 = vrot.lane.b32.xlu0 %v13050_v14, %s12102_s20 }
 0x29c   : > { %v2870_v5 = vpop.permute.xlu1 %2869 }
 0x29d   : > { %2938 = vst.msk [vmem:[#allocation3 + $0x182] sm:$0xff] %vm426_vm0, %v2870_v5  ;;  %v13057_v63 = vpop.permute.xlu0 %9653 }
 0x29e   : > { %19851 = vst [vmem:[#allocation46_spill] sm:$0xff] %v13057_v63  ;;  %9748 = vrot.lane.b32.xlu1 %v12900_v10, %s12104_s22  ;;  %v10007_v10 = vpack.i.bf16 %v1007_v49, %v1006_v56  ;;  %v9635_v63 = vunpack.i.l.bf16 %v13048_v48 }
 0x29f   : > { %9983 = vrot.lane.b32.xlu0 %v13059_v0, %s12103_s21 }
 0x2a0   : > { %v822_v35 = vpop.permute.xlu1 %821 }
 0x2a1   : > { %887 = vst.msk [vmem:[#allocation2 + $0x189] sm:$0xff] %vm426_vm0, %v822_v35  ;;  %v13066_v23 = vpop.permute.xlu0 %9658 }
 0x2a2   : > { %19852 = vst [vmem:[#allocation47_spill] sm:$0xff] %v13066_v23  ;;  %9763 = vrot.lane.b32.xlu1 %v12941_v60, %s12100_s18 }
 0x2a3   : > { %9988 = vrot.lane.b32.xlu0 %v9957_v55, %s12104_s22  ;;  %v1070_v55 = vld [vmem:[#allocation2 + $0x122] sm:$0xff] }
 0x2a4   : > { %v818_v54 = vpop.permute.xlu1 %817 }
 0x2a5   : > { %885 = vst.msk [vmem:[#allocation2 + $0x171] sm:$0xff] %vm426_vm0, %v818_v54  ;;  %v13072_v5 = vpop.permute.xlu0 %9668  ;;  %v1071_v54 = vld [vmem:[#allocation2 + $0x12a] sm:$0xff] }
 0x2a6   : > { %9773 = vrot.lane.b32.xlu1 %v12935_v26, %s12107_s27  ;;  %v13091_v56 = vpack.i.bf16 %v1071_v54, %v1070_v55  ;;  %v943_v55 = vld [vmem:[#allocation2 + $0x111] sm:$0xff] }
 0x2a7   : > { %10008 = vrot.lane.b32.xlu0 %v10007_v10, %s12107_s27  ;;  %v2986_v10 = vld [vmem:[#allocation3 + $0x91] sm:$0xff]  ;;  %v3019_v54 = vld [vmem:[#allocation3 + $0x9a] sm:$0xff]  ;;  %v10042_v16 = vpack.i.bf16 %v943_v55, %v942_v1 }
 0x2a8   : > { %v13077_v35 = vpop.permute.xlu1 %9528  ;;  %v9802_v44 = vpack.i.bf16 %v2987_v34, %v2986_v10  ;;  %v974_v34 = vld [vmem:[#allocation2 + $0x10a] sm:$0xff]  ;;  %v975_v10 = vld [vmem:[#allocation2 + $0x112] sm:$0xff] }
 0x2a9   : > { %v13079_v31 = vpop.permute.xlu0 %9688  ;;  %v1100_v1 = vld [vmem:[#allocation2 + $0x110] sm:$0xff] }
 0x2aa   : > { %9778 = vrot.lane.b32.xlu1 %v12941_v60, %s12108_s28  ;;  %v13127_v30 = vpack.i.bf16 %v1100_v1, %v1099_v18 }
 0x2ab   : > { %10013 = vrot.lane.b32.xlu0 %v13081_v38, %s12108_s28 }
 0x2ac   : > { %v13087_v49 = vpop.permute.xlu1 %9533 }
 0x2ad   : > { %v13089_v26 = vpop.permute.xlu0 %9693 }
 0x2ae   : > { %9783 = vrot.lane.b32.xlu1 %v12928_v46, %s12109_s29  ;;  %v9807_v46 = vpack.i.bf16 %v3019_v54, %v3018_v41  ;;  %v13115_v41 = vpack.i.bf16 %v975_v10, %v974_v34 }
 0x2af   : > { %10018 = vrot.lane.b32.xlu0 %v13091_v56, %s12109_s29 }
 0x2b0   : > { %v13097_v60 = vpop.permute.xlu1 %9553 }
 0x2b1   : > { %v13099_v27 = vpop.permute.xlu0 %9698 }
 0x2b2   : > { %9803 = vrot.lane.b32.xlu1 %v9802_v44, %s12100_s18  ;;  %v9485_v44 = vunpack.i.l.bf16 %v12680_v21  ;;  %v9491_v21 = vunpack.i.h.bf16 %v12696_v36 }
 0x2b3   : > { %10038 = vrot.lane.b32.xlu0 %v10037_v25, %s12100_s18  ;;  %v889_v25 = vld [vmem:[#allocation2 + $0x8] sm:$0xff] }
 0x2b4   : > { %v13103_v22 = vpop.permute.xlu1 %9558  ;;  %v2202_v55 = vsel %vm426_vm0, %v889_v25, %v9486_v39  ;;  %v2201_v54 = vsel %vm426_vm0, %v888_v29, %v9485_v44  ;;  %v9541_v29 = vunpack.i.h.bf16 %v12986_v47  ;;  %v9540_v39 = vunpack.i.l.bf16 %v12986_v47 }
 0x2b5   : > { %v13105_v28 = vpop.permute.xlu0 %9723  ;;  %v9545_v44 = vunpack.i.l.bf16 %v12995_v17 }
 0x2b6   : > { %9808 = vrot.lane.b32.xlu1 %v9807_v46, %s12101_s19 }
 0x2b7   : > { %10043 = vrot.lane.b32.xlu0 %v10042_v16, %s12100_s18 }
 0x2b8   : > { %v13111_v15 = vpop.permute.xlu1 %9563 }
 0x2b9   : > { %v13113_v62 = vpop.permute.xlu0 %9728 }
 0x2ba   : > { %9813 = vrot.lane.b32.xlu1 %v12961_v51, %s12100_s18 }
 0x2bb   : > { %10048 = vrot.lane.b32.xlu0 %v13115_v41, %s12101_s19 }
 0x2bc   : > { %v9579_v46 = vpop.permute.xlu1 %9578 }
 0x2bd   : > { %v9581_v34 = vunpack.i.h.bf16 %v9579_v46  ;;  %v9580_v10 = vunpack.i.l.bf16 %v9579_v46  ;;  %v13125_v4 = vpop.permute.xlu0 %9733 }
 0x2be   : > { %9818 = vrot.lane.b32.xlu1 %v12968_v58, %s12101_s19 }
 0x2bf   : > { %v2204_v36 = vsel %vm426_vm0, %v12902_v11, %v9581_v34  ;;  %v2203_v18 = vsel %vm426_vm0, %v12910_v37, %v9580_v10  ;;  %10068 = vrot.lane.b32.xlu0 %v13127_v30, %s12102_s20  ;;  %v9551_v37 = vunpack.i.h.bf16 %v13004_v33  ;;  %v9550_v34 = vunpack.i.l.bf16 %v13004_v33 }
 0x2c0   : > { %v2236_v25 = vsel %vm2233_vm4, %v2203_v18, %v9585_v42  ;;  %v2237_v1 = vsel %vm2233_vm4, %v2204_v36, %v9586_v6  ;;  %v9589_v46 = vpop.permute.xlu1 %9588  ;;  %v2234_v6 = vsel %vm2233_vm4, %v2201_v54, %v9490_v8  ;;  %v2235_v42 = vsel %vm2233_vm4, %v2202_v55, %v9491_v21  ;;  %v1010_v55 = vld [vmem:[#allocation2 + $0x150] sm:$0xff] }
 0x2c1   : > { %v2269_v47 = vsel %vm2266_vm5, %v2236_v25, %v9540_v39  ;;  %v2270_v23 = vsel %vm2266_vm5, %v2237_v1, %v9541_v29  ;;  %v13147_v11 = vpop.permute.xlu0 %9753  ;;  %v1011_v29 = vld [vmem:[#allocation2 + $0x158] sm:$0xff]  ;;  %v9590_v8 = vunpack.i.l.bf16 %v9589_v46 }
 0x2c2   : > { %19853 = vst [vmem:[#allocation48_spill] sm:$0xff] %v13147_v11  ;;  %v2302_v10 = vsel %vm2299_vm6, %v2269_v47, %v9545_v44  ;;  %v2303_v17 = vsel %vm2299_vm6, %v2270_v23, %v9546_v2  ;;  %9838 = vrot.lane.b32.xlu1 %v12954_v20, %s12102_s20  ;;  %v1043_v39 = vld [vmem:[#allocation2 + $0x159] sm:$0xff]  ;;  %v9691_v23 = vunpack.i.h.bf16 %v13079_v31  ;;  %v9690_v20 = vunpack.i.l.bf16 %v13079_v31  ;;  %v1079_v11 = vld [vmem:[#allocation2 + $0x18a] sm:$0xff] }
 0x2c3   : > { %10073 = vrot.lane.b32.xlu0 %v10042_v16, %s12103_s21  ;;  %v2335_v33 = vsel %vm2332_vm7, %v2302_v10, %v9550_v34  ;;  %v2336_v18 = vsel %vm2332_vm7, %v2303_v17, %v9551_v37  ;;  %v9591_v2 = vunpack.i.h.bf16 %v9589_v46  ;;  %v1042_v16 = vld [vmem:[#allocation2 + $0x151] sm:$0xff]  ;;  %v10097_v25 = vpack.i.bf16 %v1011_v29, %v1010_v55 }
 0x2c4   : > { %v9594_v36 = vpop.permute.xlu1 %9593  ;;  %v13166_v1 = vpack.i.bf16 %v1043_v39, %v1042_v16  ;;  %v9696_v47 = vunpack.i.h.bf16 %v13089_v26  ;;  %v9695_v37 = vunpack.i.l.bf16 %v13089_v26  ;;  %v2368_v31 = vsel %vm2365_vm8, %v2335_v33, %v9690_v20 }
 0x2c5   : > { %v13162_v54 = vpop.permute.xlu0 %9758  ;;  %v9596_v21 = vunpack.i.h.bf16 %v9594_v36  ;;  %v9595_v44 = vunpack.i.l.bf16 %v9594_v36  ;;  %v2369_v46 = vsel %vm2365_vm8, %v2336_v18, %v9691_v23  ;;  %v9556_v34 = vunpack.i.h.bf16 %v13097_v60 }
 0x2c6   : > { %19854 = vst [vmem:[#allocation49_spill] sm:$0xff] %v13162_v54  ;;  %9843 = vrot.lane.b32.xlu1 %v12961_v51, %s12103_s21  ;;  %v9555_v10 = vunpack.i.l.bf16 %v13097_v60  ;;  %v9701_v51 = vunpack.i.h.bf16 %v13099_v27  ;;  %v9700_v17 = vunpack.i.l.bf16 %v13099_v27  ;;  %v2268_v39 = vsel %vm2266_vm5, %v2235_v42, %v9591_v2  ;;  %v1047_v54 = vld [vmem:[#allocation2 + $0x189] sm:$0xff] }
 0x2c7   : > { %10078 = vrot.lane.b32.xlu0 %v13115_v41, %s12104_s22  ;;  %v2267_v26 = vsel %vm2266_vm5, %v2234_v6, %v9590_v8  ;;  %v2301_v18 = vsel %vm2299_vm6, %v2268_v39, %v9596_v21  ;;  %v2401_v60 = vsel %vm2398_vm9, %v2368_v31, %v9695_v37  ;;  %v2402_v27 = vsel %vm2398_vm9, %v2369_v46, %v9696_v47  ;;  %v1074_v46 = vld [vmem:[#allocation2 + $0x152] sm:$0xff] }
 0x2c8   : > { %v9599_v29 = vpop.permute.xlu1 %9598  ;;  %v2300_v33 = vsel %vm2299_vm6, %v2267_v26, %v9595_v44  ;;  %v9561_v23 = vunpack.i.h.bf16 %v13103_v22  ;;  %v9560_v42 = vunpack.i.l.bf16 %v13103_v22  ;;  %v9566_v2 = vunpack.i.h.bf16 %v13111_v15  ;;  %v3004_v26 = vld [vmem:[#allocation3 + $0x169] sm:$0xff] }
 0x2c9   : > { %v9601_v36 = vunpack.i.h.bf16 %v9599_v29  ;;  %v9600_v55 = vunpack.i.l.bf16 %v9599_v29  ;;  %v13180_v41 = vpop.permute.xlu0 %9768  ;;  %v9565_v8 = vunpack.i.l.bf16 %v13111_v15  ;;  %v2434_v37 = vsel %vm2431_vm10, %v2401_v60, %v9700_v17  ;;  %v947_v60 = vld [vmem:[#allocation2 + $0x141] sm:$0xff] }
 0x2ca   : > { %9848 = vrot.lane.b32.xlu1 %v12968_v58, %s12104_s22 }
 0x2cb   : > { %v2333_v6 = vsel %vm2332_vm7, %v2300_v33, %v9600_v55  ;;  %v2334_v20 = vsel %vm2332_vm7, %v2301_v18, %v9601_v36  ;;  %10098 = vrot.lane.b32.xlu0 %v10097_v25, %s12107_s27  ;;  %v2435_v25 = vsel %vm2431_vm10, %v2402_v27, %v9701_v51  ;;  %v3005_v36 = vld [vmem:[#allocation3 + $0x171] sm:$0xff] }
 0x2cc   : > { %v13195_v16 = vpop.permute.xlu1 %9603  ;;  %v2366_v58 = vsel %vm2365_vm8, %v2333_v6, %v9555_v10  ;;  %v2367_v21 = vsel %vm2365_vm8, %v2334_v20, %v9556_v34  ;;  %v1075_v34 = vld [vmem:[#allocation2 + $0x15a] sm:$0xff]  ;;  %v2465_v39 = vpack.c.bf16 %v2435_v25, %v2434_v37  ;;  %v10127_v18 = vpack.i.bf16 %v3005_v36, %v3004_v26  ;;  %v2990_v6 = vld [vmem:[#allocation3 + $0xc1] sm:$0xff] }
 0x2cd   : > { %19855 = vst [vmem:[#allocation50_spill] sm:$0xff] %v13195_v16  ;;  %v13199_v44 = vpop.permute.xlu0 %9788  ;;  %v2399_v22 = vsel %vm2398_vm9, %v2366_v58, %v9560_v42  ;;  %v2400_v47 = vsel %vm2398_vm9, %v2367_v21, %v9561_v23  ;;  %v13216_v17 = vpack.i.bf16 %v1075_v34, %v1074_v46  ;;  %v2991_v20 = vld [vmem:[#allocation3 + $0xc9] sm:$0xff]  ;;  %v9626_v36 = vunpack.i.h.bf16 %v13036_v59 }
 0x2ce   : > { %9858 = vrot.lane.b32.xlu1 %v12997_v32, %s12100_s18  ;;  %v2432_v15 = vsel %vm2431_vm10, %v2399_v22, %v9565_v8  ;;  %v2433_v31 = vsel %vm2431_vm10, %v2400_v47, %v9566_v2  ;;  %v978_v2 = vld [vmem:[#allocation2 + $0x13a] sm:$0xff]  ;;  %v979_v8 = vld [vmem:[#allocation2 + $0x142] sm:$0xff]  ;;  %v3022_v47 = vld [vmem:[#allocation3 + $0xc2] sm:$0xff] }
 0x2cf   : > { %10103 = vrot.lane.b32.xlu0 %v13166_v1, %s12108_s28  ;;  %v2464_v10 = vpack.c.bf16 %v2433_v31, %v2432_v15  ;;  %v10137_v22 = vpack.i.bf16 %v979_v8, %v978_v2  ;;  %v1104_v37 = vld [vmem:[#allocation2 + $0x140] sm:$0xff]  ;;  %v1103_v31 = vld [vmem:[#allocation2 + $0x138] sm:$0xff]  ;;  %v9671_v2 = vunpack.i.h.bf16 %v13072_v5  ;;  %v9670_v8 = vunpack.i.l.bf16 %v13072_v5 }
 0x2d0   : > { %v13211_v29 = vpop.permute.xlu1 %9608  ;;  %v3023_v25 = vld [vmem:[#allocation3 + $0xca] sm:$0xff]  ;;  %v13247_v34 = vpack.i.bf16 %v1104_v37, %v1103_v31  ;;  %v9630_v37 = vunpack.i.l.bf16 %v13042_v61  ;;  %v9530_v5 = vunpack.i.l.bf16 %v13077_v35 }
 0x2d1   : > { %19856 = vst [vmem:[#allocation51_spill] sm:$0xff] %v13211_v29  ;;  %9338 = vmatprep.mubr.msk.bf16.mxu1 %vm2507_vm11, %v2464_v10  ;;  %v13214_v51 = vpop.permute.xlu0 %9793  ;;  %v1014_v31 = vld [vmem:[#allocation2 + $0x180] sm:$0xff] }
 0x2d2   : > { %9868 = vrot.lane.b32.xlu1 %v12988_v9, %s12107_s27  ;;  %9339 = vmatmul.mubr.msk.bf16.vlgmr.msra.gmra.mrb[0].mxu1 %vm2507_vm11, %v2465_v39  ;;  %v946_v9 = vld [vmem:[#allocation2 + $0x139] sm:$0xff] }
 0x2d3   : > { %10108 = vrot.lane.b32.xlu0 %v13216_v17, %s12109_s29  ;;  %v10132_v42 = vpack.i.bf16 %v947_v60, %v946_v9 }
 0x2d4   : > { %v13223_v55 = vpop.permute.xlu1 %9613 }
 0x2d5   : > { %v13225_v33 = vpop.permute.xlu0 %9798 }
 0x2d6   : > { %9873 = vrot.lane.b32.xlu1 %v12997_v32, %s12108_s28  ;;  %v9897_v32 = vpack.i.bf16 %v2991_v20, %v2990_v6  ;;  %v9625_v6 = vunpack.i.l.bf16 %v13036_v59  ;;  %v9631_v20 = vunpack.i.h.bf16 %v13042_v61  ;;  %v1078_v61 = vld [vmem:[#allocation2 + $0x182] sm:$0xff] }
 0x2d7   : > { %10128 = vrot.lane.b32.xlu0 %v10127_v18, %s12100_s18 }
 0x2d8   : > { %v13230_v27 = vpop.permute.xlu1 %9618 }
 0x2d9   : > { %v13232_v23 = vpop.permute.xlu0 %9823 }
 0x2da   : > { %9878 = vrot.lane.b32.xlu1 %v12979_v13, %s12109_s29  ;;  %v9902_v13 = vpack.i.bf16 %v3023_v25, %v3022_v47  ;;  %v895_v47 = vld [vmem:[#allocation2 + $0x50] sm:$0xff]  ;;  %v9531_v25 = vunpack.i.h.bf16 %v13077_v35  ;;  %v9536_v35 = vunpack.i.h.bf16 %v13087_v49 }
 0x2db   : > { %10133 = vrot.lane.b32.xlu0 %v10132_v42, %s12100_s18 }
 0x2dc   : > { %v13237_v58 = vpop.permute.xlu1 %9638 }
 0x2dd   : > { %v13239_v21 = vpop.permute.xlu0 %9828 }
 0x2de   : > { %9898 = vrot.lane.b32.xlu1 %v9897_v32, %s12100_s18  ;;  %v894_v32 = vld [vmem:[#allocation2 + $0x48] sm:$0xff] }
 0x2df   : > { %10138 = vrot.lane.b32.xlu0 %v10137_v22, %s12101_s19 }
 0x2e0   : > { %v13243_v15 = vpop.permute.xlu1 %9643 }
 0x2e1   : > { %v13245_v46 = vpop.permute.xlu0 %9833 }
 0x2e2   : > { %9903 = vrot.lane.b32.xlu1 %v9902_v13, %s12101_s19 }
 0x2e3   : > { %10158 = vrot.lane.b32.xlu0 %v13247_v34, %s12102_s20 }
 0x2e4   : > { %v13252_v10 = vpop.permute.xlu1 %9648 }
 0x2e5   : > { %v13254_v39 = vpop.permute.xlu0 %9853 }
 0x2e6   : > { %19857 = vst [vmem:[#allocation52_spill] sm:$0xff] %v13254_v39  ;;  %9908 = vrot.lane.b32.xlu1 %v13021_v7, %s12100_s18 }
 0x2e7   : > { %10163 = vrot.lane.b32.xlu0 %v10132_v42, %s12103_s21  ;;  %v1015_v42 = vld [vmem:[#allocation2 + $0x188] sm:$0xff] }
 0x2e8   : > { %v9664_v26 = vpop.permute.xlu1 %9663 }
 0x2e9   : > { %v9666_v18 = vunpack.i.h.bf16 %v9664_v26  ;;  %v9665_v60 = vunpack.i.l.bf16 %v9664_v26  ;;  %v13260_v9 = vpop.permute.xlu0 %9863  ;;  %v9636_v26 = vunpack.i.h.bf16 %v13048_v48  ;;  %v1046_v48 = vld [vmem:[#allocation2 + $0x181] sm:$0xff] }
 0x2ea   : > { %9913 = vrot.lane.b32.xlu1 %v13029_v52, %s12101_s19 }
 0x2eb   : > { %v2208_v13 = vsel %vm426_vm0, %v895_v47, %v9666_v18  ;;  %v2207_v59 = vsel %vm426_vm0, %v894_v32, %v9665_v60  ;;  %10168 = vrot.lane.b32.xlu0 %v10137_v22, %s12104_s22  ;;  %v13282_v32 = vpack.i.bf16 %v1015_v42, %v1014_v31  ;;  %v951_v47 = vld [vmem:[#allocation2 + $0x171] sm:$0xff]  ;;  %v950_v42 = vld [vmem:[#allocation2 + $0x169] sm:$0xff] }
 0x2ec   : > { %v2240_v39 = vsel %vm2233_vm4, %v2207_v59, %v9670_v8  ;;  %v2241_v29 = vsel %vm2233_vm4, %v2208_v13, %v9671_v2  ;;  %v9674_v16 = vpop.permute.xlu1 %9673  ;;  %v9535_v8 = vunpack.i.l.bf16 %v13087_v49  ;;  %v12054_v59 = vld [vmem:[#allocation2 + $0x30] sm:$0xff] }
 0x2ed   : > { %v2273_v18 = vsel %vm2266_vm5, %v2240_v39, %v9625_v6  ;;  %v2274_v60 = vsel %vm2266_vm5, %v2241_v29, %v9626_v36  ;;  %v13280_v22 = vpop.permute.xlu0 %9883  ;;  %v12053_v39 = vld [vmem:[#allocation2 + $0x38] sm:$0xff]  ;;  %v10182_v36 = vpack.i.bf16 %v1047_v54, %v1046_v48  ;;  %v10187_v6 = vpack.i.bf16 %v1079_v11, %v1078_v61 }
 0x2ee   : > { %v2306_v2 = vsel %vm2299_vm6, %v2273_v18, %v9630_v37  ;;  %v2307_v13 = vsel %vm2299_vm6, %v2274_v60, %v9631_v20  ;;  %9933 = vrot.lane.b32.xlu1 %v13013_v12, %s12102_s20  ;;  %v2206_v29 = vsel %vm426_vm0, %v12053_v39, %v9531_v25  ;;  %v2205_v49 = vsel %vm426_vm0, %v12054_v59, %v9530_v5 }
 0x2ef   : > { %10178 = vrot.lane.b32.xlu0 %v13282_v32, %s12107_s27  ;;  %v13294_v37 = vpack.i.bf16 %v951_v47, %v950_v42  ;;  %v2339_v20 = vsel %vm2332_vm7, %v2306_v2, %v9635_v63  ;;  %v2340_v12 = vsel %vm2332_vm7, %v2307_v13, %v9636_v26  ;;  %v9791_v18 = vunpack.i.h.bf16 %v13199_v44 }
 0x2f0   : > { %v9679_v31 = vpop.permute.xlu1 %9678  ;;  %v9790_v25 = vunpack.i.l.bf16 %v13199_v44  ;;  %v9676_v60 = vunpack.i.h.bf16 %v9674_v16  ;;  %v9675_v39 = vunpack.i.l.bf16 %v9674_v16  ;;  %v2238_v11 = vsel %vm2233_vm4, %v2205_v49, %v9535_v8 }
 0x2f1   : > { %v13300_v57 = vpop.permute.xlu0 %9888  ;;  %v2239_v54 = vsel %vm2233_vm4, %v2206_v29, %v9536_v35  ;;  %v9681_v5 = vunpack.i.h.bf16 %v9679_v31  ;;  %v9680_v61 = vunpack.i.l.bf16 %v9679_v31  ;;  %v9796_v63 = vunpack.i.h.bf16 %v13214_v51 }
 0x2f2   : > { %9938 = vrot.lane.b32.xlu1 %v13021_v7, %s12103_s21  ;;  %v9795_v26 = vunpack.i.l.bf16 %v13214_v51  ;;  %v2372_v44 = vsel %vm2365_vm8, %v2339_v20, %v9790_v25  ;;  %v2373_v16 = vsel %vm2365_vm8, %v2340_v12, %v9791_v18  ;;  %v9801_v47 = vunpack.i.h.bf16 %v13225_v33 }
 0x2f3   : > { %10183 = vrot.lane.b32.xlu0 %v10182_v36, %s12108_s28  ;;  %v9800_v8 = vunpack.i.l.bf16 %v13225_v33  ;;  %v9641_v35 = vunpack.i.h.bf16 %v13237_v58  ;;  %v9640_v2 = vunpack.i.l.bf16 %v13237_v58  ;;  %v2272_v7 = vsel %vm2266_vm5, %v2239_v54, %v9676_v60 }
 0x2f4   : > { %v9684_v13 = vpop.permute.xlu1 %9683  ;;  %v2271_v48 = vsel %vm2266_vm5, %v2238_v11, %v9675_v39  ;;  %v2305_v59 = vsel %vm2299_vm6, %v2272_v7, %v9681_v5  ;;  %v2405_v33 = vsel %vm2398_vm9, %v2372_v44, %v9795_v26  ;;  %v2406_v58 = vsel %vm2398_vm9, %v2373_v16, %v9796_v63  ;;  %v982_v63 = vld [vmem:[#allocation2 + $0x16a] sm:$0xff]  ;;  %v983_v26 = vld [vmem:[#allocation2 + $0x172] sm:$0xff] }
 0x2f5   : > { %v9686_v51 = vunpack.i.h.bf16 %v9684_v13  ;;  %v9685_v29 = vunpack.i.l.bf16 %v9684_v13  ;;  %v13317_v36 = vpop.permute.xlu0 %9893  ;;  %v2304_v42 = vsel %vm2299_vm6, %v2271_v48, %v9680_v61  ;;  %v9646_v49 = vunpack.i.h.bf16 %v13243_v15  ;;  %v1107_v7 = vld [vmem:[#allocation2 + $0x168] sm:$0xff] }
 0x2f6   : > { %9943 = vrot.lane.b32.xlu1 %v13029_v52, %s12104_s22  ;;  %v9645_v31 = vunpack.i.l.bf16 %v13243_v15  ;;  %v9651_v18 = vunpack.i.h.bf16 %v13252_v10  ;;  %v9650_v25 = vunpack.i.l.bf16 %v13252_v10  ;;  %v2438_v5 = vsel %vm2431_vm10, %v2405_v33, %v9800_v8  ;;  %v1108_v8 = vld [vmem:[#allocation2 + $0x170] sm:$0xff] }
 0x2f7   : > { %v2337_v20 = vsel %vm2332_vm7, %v2304_v42, %v9685_v29  ;;  %v2338_v12 = vsel %vm2332_vm7, %v2305_v59, %v9686_v51  ;;  %10188 = vrot.lane.b32.xlu0 %v10187_v6, %s12109_s29  ;;  %v2439_v6 = vsel %vm2431_vm10, %v2406_v58, %v9801_v47  ;;  %v13353_v47 = vpack.i.bf16 %v983_v26, %v982_v63  ;;  %v1064_v29 = vld [vmem:[#allocation2 + $0xda] sm:$0xff]  ;;  %v1134_v26 = vld [vmem:[#allocation2 + $0x129] sm:$0xff] }
 0x2f8   : > { %v2370_v52 = vsel %vm2365_vm8, %v2337_v20, %v9640_v2  ;;  %v2371_v60 = vsel %vm2365_vm8, %v2338_v12, %v9641_v35  ;;  %v13334_v39 = vpop.permute.xlu1 %9703  ;;  %v2467_v35 = vpack.c.bf16 %v2439_v6, %v2438_v5  ;;  %v13364_v51 = vpack.i.bf16 %v1108_v8, %v1107_v7  ;;  %v2994_v58 = vld [vmem:[#allocation3 + $0xf1] sm:$0xff]  ;;  %v3024_v12 = vld [vmem:[#allocation3 + $0xda] sm:$0xff] }
 0x2f9   : > { %19858 = vst [vmem:[#allocation53_spill] sm:$0xff] %v13334_v39  ;;  %v13336_v11 = vpop.permute.xlu0 %9918  ;;  %v2403_v15 = vsel %vm2398_vm9, %v2370_v52, %v9645_v31  ;;  %v2404_v54 = vsel %vm2398_vm9, %v2371_v60, %v9646_v49  ;;  %v2995_v49 = vld [vmem:[#allocation3 + $0xf9] sm:$0xff]  ;;  %v13395_v63 = vld [vmem:[#allocation3 + $0x4b] sm:$0xff]  ;;  %v3041_v39 = vld [vmem:[#allocation3 + $0x23] sm:$0xff] }
 0x2fa   : > { %9953 = vrot.lane.b32.xlu1 %v13059_v0, %s12100_s18  ;;  %v2436_v10 = vsel %vm2431_vm10, %v2403_v15, %v9650_v25  ;;  %v2437_v61 = vsel %vm2431_vm10, %v2404_v54, %v9651_v18  ;;  %v9992_v20 = vpack.i.bf16 %v2995_v49, %v2994_v58  ;;  %v3025_v25 = vld [vmem:[#allocation3 + $0xe2] sm:$0xff]  ;;  %v3029_v54 = vld [vmem:[#allocation3 + $0x112] sm:$0xff] }
 0x2fb   : > { %10208 = vrot.lane.b32.xlu0 %v13294_v37, %s12100_s18  ;;  %v2466_v44 = vpack.c.bf16 %v2437_v61, %v2436_v10  ;;  %v10247_v60 = vpack.i.bf16 %v3025_v25, %v3024_v12  ;;  %v1102_v10 = vld [vmem:[#allocation2 + $0x128] sm:$0xff] }
 0x2fc   : > { %v13348_v16 = vpop.permute.xlu1 %9708  ;;  %v3032_v61 = vld [vmem:[#allocation3 + $0x13a] sm:$0xff]  ;;  %v3037_v58 = vld [vmem:[#allocation3 + $0x172] sm:$0xff] }
 0x2fd   : > { %19859 = vst [vmem:[#allocation54_spill] sm:$0xff] %v13348_v16  ;;  %v13350_v2 = vpop.permute.xlu0 %9923  ;;  %9342 = vmatprep.mubr.msk.bf16.mxu1 %vm2507_vm11, %v2466_v44  ;;  %v3036_v44 = vld [vmem:[#allocation3 + $0x16a] sm:$0xff]  ;;  %v13400_v8 = vld [vmem:[#allocation3 + $0x53] sm:$0xff] }
 0x2fe   : > { %9963 = vrot.lane.b32.xlu1 %v13050_v14, %s12107_s27  ;;  %9343 = vmatmul.mubr.msk.bf16.gmra.mrb[4].mxu1 %vm2507_vm11, %v2467_v35  ;;  %v1065_v14 = vld [vmem:[#allocation2 + $0xe2] sm:$0xff]  ;;  %v3033_v35 = vld [vmem:[#allocation3 + $0x142] sm:$0xff] }
 0x2ff   : > { %10213 = vrot.lane.b32.xlu0 %v13353_v47, %s12101_s19  ;;  %v9972_v59 = vpack.i.bf16 %v1065_v14, %v1064_v29  ;;  %v10267_v14 = vpack.i.bf16 %v3033_v35, %v3032_v61  ;;  %v898_v61 = vld [vmem:[#allocation2 + $0x78] sm:$0xff]  ;;  %v9731_v35 = vunpack.i.h.bf16 %v13113_v62 }
 0x300   : > { %v13360_v13 = vpop.permute.xlu1 %9713 }
 0x301   : > { %v13362_v48 = vpop.permute.xlu0 %9928 }
 0x302   : > { %9968 = vrot.lane.b32.xlu1 %v13059_v0, %s12108_s28 }
 0x303   : > { %10233 = vrot.lane.b32.xlu0 %v13364_v51, %s12102_s20 }
 0x304   : > { %v13370_v42 = vpop.permute.xlu1 %9718 }
 0x305   : > { %v13372_v33 = vpop.permute.xlu0 %9948 }
 0x306   : > { %19860 = vst [vmem:[#allocation55_spill] sm:$0xff] %v13372_v33  ;;  %9973 = vrot.lane.b32.xlu1 %v9972_v59, %s12109_s29  ;;  %v1133_v59 = vld [vmem:[#allocation2 + $0x121] sm:$0xff] }
 0x307   : > { %10238 = vrot.lane.b32.xlu0 %v13294_v37, %s12103_s21  ;;  %v3028_v37 = vld [vmem:[#allocation3 + $0x10a] sm:$0xff] }
 0x308   : > { %v13377_v31 = vpop.permute.xlu1 %9738  ;;  %v10257_v6 = vpack.i.bf16 %v3029_v54, %v3028_v37  ;;  %v9726_v37 = vunpack.i.h.bf16 %v13105_v28  ;;  %v9725_v54 = vunpack.i.l.bf16 %v13105_v28  ;;  %v1166_v28 = vld [vmem:[#allocation2 + $0x12a] sm:$0xff] }
 0x309   : > { %v13379_v0 = vpop.permute.xlu0 %9958 }
 0x30a   : > { %9993 = vrot.lane.b32.xlu1 %v9992_v20, %s12100_s18 }
 0x30b   : > { %10243 = vrot.lane.b32.xlu0 %v13353_v47, %s12104_s22 }
 0x30c   : > { %v13384_v18 = vpop.permute.xlu1 %9743 }
 0x30d   : > { %v13386_v52 = vpop.permute.xlu0 %9978 }
 0x30e   : > { %9998 = vrot.lane.b32.xlu1 %v13081_v38, %s12100_s18  ;;  %v1101_v38 = vld [vmem:[#allocation2 + $0x120] sm:$0xff] }
 0x30f   : > { %10248 = vrot.lane.b32.xlu0 %v10247_v60, %s12101_s19  ;;  %v10022_v29 = vpack.i.bf16 %v1102_v10, %v1101_v38  ;;  %v10277_v60 = vpack.i.bf16 %v3037_v58, %v3036_v44  ;;  %v9770_v10 = vunpack.i.l.bf16 %v13180_v41  ;;  %v899_v38 = vld [vmem:[#allocation2 + $0x80] sm:$0xff]  ;;  %v9615_v58 = vunpack.i.l.bf16 %v13223_v55 }
 0x310   : > { %v13391_v15 = vpop.permute.xlu1 %9748  ;;  %v1165_v44 = vld [vmem:[#allocation2 + $0x122] sm:$0xff] }
 0x311   : > { %v13393_v5 = vpop.permute.xlu0 %9983 }
 0x312   : > { %10003 = vrot.lane.b32.xlu1 %v13091_v56, %s12101_s19  ;;  %v10027_v56 = vpack.i.bf16 %v1134_v26, %v1133_v59  ;;  %v13416_v59 = vld [vmem:[#allocation3 + $0x7b] sm:$0xff] }
 0x313   : > { %10258 = vrot.lane.b32.xlu0 %v10257_v6, %s12101_s19  ;;  %v9771_v6 = vunpack.i.h.bf16 %v13180_v41  ;;  %v9616_v41 = vunpack.i.h.bf16 %v13223_v55  ;;  %v9621_v55 = vunpack.i.h.bf16 %v13230_v27 }
 0x314   : > { %v9764_v7 = vpop.permute.xlu1 %9763 }
 0x315   : > { %v9766_v20 = vunpack.i.h.bf16 %v9764_v7  ;;  %v9765_v12 = vunpack.i.l.bf16 %v9764_v7  ;;  %v13404_v25 = vpop.permute.xlu0 %9988  ;;  %v9730_v7 = vunpack.i.l.bf16 %v13113_v62  ;;  %v3040_v62 = vld [vmem:[#allocation3 + $0x1b] sm:$0xff] }
 0x316   : > { %10023 = vrot.lane.b32.xlu1 %v10022_v29, %s12102_s20 }
 0x317   : > { %v2212_v49 = vsel %vm426_vm0, %v899_v38, %v9766_v20  ;;  %v2211_v26 = vsel %vm426_vm0, %v898_v61, %v9765_v12  ;;  %10268 = vrot.lane.b32.xlu0 %v10267_v14, %s12101_s19  ;;  %v13422_v20 = vld [vmem:[#allocation2 + $0x111] sm:$0xff]  ;;  %v9736_v12 = vunpack.i.h.bf16 %v13125_v4  ;;  %v9735_v14 = vunpack.i.l.bf16 %v13125_v4  ;;  %v896_v4 = vld [vmem:[#allocation2 + $0x60] sm:$0xff] }
 0x318   : > { %v2244_v29 = vsel %vm2233_vm4, %v2211_v26, %v9770_v10  ;;  %v2245_v33 = vsel %vm2233_vm4, %v2212_v49, %v9771_v6  ;;  %v9774_v16 = vpop.permute.xlu1 %9773  ;;  %v9620_v10 = vunpack.i.l.bf16 %v13230_v27  ;;  %v1036_v26 = vld [vmem:[#allocation2 + $0x109] sm:$0xff]  ;;  %v10307_v27 = vpack.i.bf16 %v13435_v53, %v13416_v59 }
 0x319   : > { %v2277_v61 = vsel %vm2266_vm5, %v2244_v29, %v9725_v54  ;;  %v2278_v38 = vsel %vm2266_vm5, %v2245_v33, %v9726_v37  ;;  %v13428_v3 = vpop.permute.xlu0 %10008  ;;  %v10032_v33 = vpack.i.bf16 %v1166_v28, %v1165_v44  ;;  %v10287_v37 = vpack.i.bf16 %v3041_v39, %v3040_v62 }
 0x31a   : > { %v2310_v49 = vsel %vm2299_vm6, %v2277_v61, %v9730_v7  ;;  %v2311_v6 = vsel %vm2299_vm6, %v2278_v38, %v9731_v35  ;;  %10028 = vrot.lane.b32.xlu1 %v10027_v56, %s12103_s21  ;;  %v10057_v54 = vpack.i.bf16 %v13422_v20, %v1036_v26  ;;  %v2210_v7 = vsel %vm426_vm0, %v897_v50, %v9616_v41 }
 0x31b   : > { %10278 = vrot.lane.b32.xlu0 %v10277_v60, %s12101_s19  ;;  %v2209_v35 = vsel %vm426_vm0, %v896_v4, %v9615_v58  ;;  %v2343_v56 = vsel %vm2332_vm7, %v2310_v49, %v9735_v14  ;;  %v2344_v61 = vsel %vm2332_vm7, %v2311_v6, %v9736_v12  ;;  %v9886_v38 = vunpack.i.h.bf16 %v13280_v22 }
 0x31c   : > { %v9779_v29 = vpop.permute.xlu1 %9778  ;;  %v9885_v60 = vunpack.i.l.bf16 %v13280_v22  ;;  %v9776_v44 = vunpack.i.h.bf16 %v9774_v16  ;;  %v9775_v39 = vunpack.i.l.bf16 %v9774_v16  ;;  %v2242_v62 = vsel %vm2233_vm4, %v2209_v35, %v9620_v10 }
 0x31d   : > { %v13447_v28 = vpop.permute.xlu0 %10013  ;;  %v2243_v53 = vsel %vm2233_vm4, %v2210_v7, %v9621_v55  ;;  %v9781_v50 = vunpack.i.h.bf16 %v9779_v29  ;;  %v9780_v59 = vunpack.i.l.bf16 %v9779_v29  ;;  %v9891_v41 = vunpack.i.h.bf16 %v13300_v57 }
 0x31e   : > { %10033 = vrot.lane.b32.xlu1 %v10032_v33, %s12104_s22  ;;  %v9890_v58 = vunpack.i.l.bf16 %v13300_v57  ;;  %v2376_v22 = vsel %vm2365_vm8, %v2343_v56, %v9885_v60  ;;  %v2377_v16 = vsel %vm2365_vm8, %v2344_v61, %v9886_v38  ;;  %v9896_v20 = vunpack.i.h.bf16 %v13317_v36 }
 0x31f   : > { %10288 = vrot.lane.b32.xlu0 %v10287_v37, %s12107_s27  ;;  %v9895_v12 = vunpack.i.l.bf16 %v13317_v36  ;;  %v9741_v14 = vunpack.i.h.bf16 %v13377_v31  ;;  %v9740_v55 = vunpack.i.l.bf16 %v13377_v31  ;;  %v2276_v49 = vsel %vm2266_vm5, %v2243_v53, %v9776_v44 }
 0x320   : > { %v9784_v10 = vpop.permute.xlu1 %9783  ;;  %v2275_v6 = vsel %vm2266_vm5, %v2242_v62, %v9775_v39  ;;  %v2309_v37 = vsel %vm2299_vm6, %v2276_v49, %v9781_v50  ;;  %v2409_v36 = vsel %vm2398_vm9, %v2376_v22, %v9890_v58  ;;  %v2410_v31 = vsel %vm2398_vm9, %v2377_v16, %v9891_v41  ;;  %v1068_v50 = vld [vmem:[#allocation2 + $0x10a] sm:$0xff]  ;;  %v3052_v58 = vld [vmem:[#allocation3 + $0xab] sm:$0xff] }
 0x321   : > { %v9786_v57 = vunpack.i.h.bf16 %v9784_v10  ;;  %v9785_v26 = vunpack.i.l.bf16 %v9784_v10  ;;  %v13463_v4 = vpop.permute.xlu0 %10018  ;;  %v2308_v33 = vsel %vm2299_vm6, %v2275_v6, %v9780_v59  ;;  %v9746_v7 = vunpack.i.h.bf16 %v13384_v18  ;;  %v1069_v59 = vld [vmem:[#allocation2 + $0x112] sm:$0xff]  ;;  %v3053_v10 = vld [vmem:[#allocation3 + $0xb3] sm:$0xff] }
 0x322   : > { %10053 = vrot.lane.b32.xlu1 %v13127_v30, %s12107_s27  ;;  %v9745_v35 = vunpack.i.l.bf16 %v13384_v18  ;;  %v19861_v61 = vpack.i.bf16 %v13400_v8, %v13395_v63  ;;  %v9751_v38 = vunpack.i.h.bf16 %v13391_v15  ;;  %v9750_v30 = vunpack.i.l.bf16 %v13391_v15  ;;  %v3056_v6 = vld [vmem:[#allocation3 + $0xdb] sm:$0xff] }
 0x323   : > { %v2341_v29 = vsel %vm2332_vm7, %v2308_v33, %v9785_v26  ;;  %v2342_v56 = vsel %vm2332_vm7, %v2309_v37, %v9786_v57  ;;  %v2442_v63 = vsel %vm2431_vm10, %v2409_v36, %v9895_v12  ;;  %v2443_v8 = vsel %vm2431_vm10, %v2410_v31, %v9896_v20  ;;  %v2998_v12 = vld [vmem:[#allocation3 + $0x121] sm:$0xff]  ;;  %v3060_v36 = vld [vmem:[#allocation3 + $0x10b] sm:$0xff] }
 0x324   : > { %10298 = vrot.lane.b32.xlu0 %v19861_v61, %s12107_s27  ;;  %v2374_v60 = vsel %vm2365_vm8, %v2341_v29, %v9740_v55  ;;  %v2375_v44 = vsel %vm2365_vm8, %v2342_v56, %v9741_v14  ;;  %v13483_v39 = vpop.permute.xlu1 %9803  ;;  %v10062_v14 = vpack.i.bf16 %v1069_v59, %v1068_v50  ;;  %v2469_v55 = vpack.c.bf16 %v2443_v8, %v2442_v63  ;;  %v3057_v26 = vld [vmem:[#allocation3 + $0xe3] sm:$0xff]  ;;  %v3064_v56 = vld [vmem:[#allocation3 + $0x13b] sm:$0xff]  ;;  %v3069_v59 = vld [vmem:[#allocation3 + $0x173] sm:$0xff] }
 0x325   : > { %19862 = vst [vmem:[#allocation56_spill] sm:$0xff] %v13483_v39  ;;  %v13485_v18 = vpop.permute.xlu0 %10038  ;;  %v2407_v62 = vsel %vm2398_vm9, %v2374_v60, %v9745_v35  ;;  %v2408_v53 = vsel %vm2398_vm9, %v2375_v44, %v9746_v7  ;;  %v10317_v20 = vpack.i.bf16 %v3053_v10, %v3052_v58  ;;  %v10327_v37 = vpack.i.bf16 %v3057_v26, %v3056_v6  ;;  %v3061_v7 = vld [vmem:[#allocation3 + $0x113] sm:$0xff]  ;;  %v1106_v44 = vld [vmem:[#allocation2 + $0x158] sm:$0xff]  ;;  %v3072_v63 = vld [vmem:[#allocation3 + $0x1c] sm:$0xff] }
 0x326   : > { %19863 = vst [vmem:[#allocation57_spill] sm:$0xff] %v13485_v18  ;;  %10058 = vrot.lane.b32.xlu1 %v10057_v54, %s12108_s28  ;;  %v2440_v15 = vsel %vm2431_vm10, %v2407_v62, %v9750_v30  ;;  %v2441_v41 = vsel %vm2431_vm10, %v2408_v53, %v9751_v38  ;;  %v2999_v54 = vld [vmem:[#allocation3 + $0x129] sm:$0xff]  ;;  %v10337_v29 = vpack.i.bf16 %v3061_v7, %v3060_v36  ;;  %v1105_v53 = vld [vmem:[#allocation2 + $0x150] sm:$0xff]  ;;  %v3077_v36 = vld [vmem:[#allocation3 + $0x54] sm:$0xff] }
 0x327   : > { %v2468_v22 = vpack.c.bf16 %v2441_v41, %v2440_v15  ;;  %v13505_v57 = vpack.i.bf16 %v2999_v54, %v2998_v12  ;;  %v3065_v38 = vld [vmem:[#allocation3 + $0x143] sm:$0xff]  ;;  %v3068_v62 = vld [vmem:[#allocation3 + $0x16b] sm:$0xff] }
 0x328   : > { %10308 = vrot.lane.b32.xlu0 %v10307_v27, %s12107_s27  ;;  %v13495_v16 = vpop.permute.xlu1 %9808  ;;  %v10347_v60 = vpack.i.bf16 %v3065_v38, %v3064_v56  ;;  %v3073_v8 = vld [vmem:[#allocation3 + $0x24] sm:$0xff]  ;;  %v10357_v41 = vpack.i.bf16 %v3069_v59, %v3068_v62  ;;  %v3076_v10 = vld [vmem:[#allocation3 + $0x4c] sm:$0xff]  ;;  %v13544_v38 = vld [vmem:[#allocation3 + $0xb4] sm:$0xff]  ;;  %v9826_v59 = vunpack.i.h.bf16 %v13232_v23 }
 0x329   : > { %19864 = vst [vmem:[#allocation58_spill] sm:$0xff] %v13495_v16  ;;  %v13497_v49 = vpop.permute.xlu0 %10043  ;;  %9346 = vmatprep.mubr.msk.bf16.mxu1 %vm2507_vm11, %v2468_v22  ;;  %v1138_v58 = vld [vmem:[#allocation2 + $0x159] sm:$0xff]  ;;  %v1137_v22 = vld [vmem:[#allocation2 + $0x151] sm:$0xff]  ;;  %v10377_v7 = vpack.i.bf16 %v3077_v36, %v3076_v10  ;;  %v9865_v10 = vunpack.i.l.bf16 %v13260_v9 }
 0x32a   : > { %10063 = vrot.lane.b32.xlu1 %v10062_v14, %s12109_s29  ;;  %9347 = vmatmul.mubr.msk.bf16.gmra.mrb[8].mxu1 %vm2507_vm11, %v2469_v55  ;;  %v10117_v55 = vpack.i.bf16 %v1138_v58, %v1137_v22  ;;  %v13534_v12 = vld [vmem:[#allocation3 + $0xac] sm:$0xff]  ;;  %v1169_v6 = vld [vmem:[#allocation2 + $0x152] sm:$0xff]  ;;  %v9831_v22 = vunpack.i.h.bf16 %v13239_v21 }
 0x32b   : > { %v1170_v26 = vld [vmem:[#allocation2 + $0x15a] sm:$0xff] }
 0x32c   : > { %10318 = vrot.lane.b32.xlu0 %v10317_v20, %s12107_s27  ;;  %v13503_v27 = vpop.permute.xlu1 %9813  ;;  %v3080_v20 = vld [vmem:[#allocation3 + $0x7c] sm:$0xff]  ;;  %v13542_v56 = vld [vmem:[#allocation2 + $0x139] sm:$0xff] }
 0x32d   : > { %v13507_v33 = vpop.permute.xlu0 %10048  ;;  %v9816_v39 = vunpack.i.h.bf16 %v13503_v27 }
 0x32e   : > { %10083 = vrot.lane.b32.xlu1 %v13505_v57, %s12100_s18 }
 0x330   : > { %10328 = vrot.lane.b32.xlu0 %v10327_v37, %s12107_s27  ;;  %v13512_v31 = vpop.permute.xlu1 %9818  ;;  %v13538_v37 = vld [vmem:[#allocation2 + $0x141] sm:$0xff] }
 0x331   : > { %v13514_v35 = vpop.permute.xlu0 %10068 }
 0x332   : > { %10088 = vrot.lane.b32.xlu1 %v13166_v1, %s12100_s18  ;;  %v10112_v1 = vpack.i.bf16 %v1106_v44, %v1105_v53  ;;  %v10122_v44 = vpack.i.bf16 %v1170_v26, %v1169_v6  ;;  %v10147_v53 = vpack.i.bf16 %v13538_v37, %v13542_v56  ;;  %v903_v6 = vld [vmem:[#allocation2 + $0xb0] sm:$0xff]  ;;  %v9836_v26 = vunpack.i.h.bf16 %v13245_v46 }
 0x334   : > { %10338 = vrot.lane.b32.xlu0 %v10337_v29, %s12107_s27  ;;  %v13519_v61 = vpop.permute.xlu1 %9838  ;;  %v3081_v29 = vld [vmem:[#allocation3 + $0x84] sm:$0xff] }
 0x335   : > { %v13521_v30 = vpop.permute.xlu0 %10073  ;;  %v10387_v62 = vpack.i.bf16 %v3081_v29, %v3080_v20  ;;  %v902_v20 = vld [vmem:[#allocation2 + $0xa8] sm:$0xff]  ;;  %v9715_v29 = vunpack.i.l.bf16 %v13360_v13 }
 0x336   : > { %10093 = vrot.lane.b32.xlu1 %v13216_v17, %s12101_s19  ;;  %v10367_v17 = vpack.i.bf16 %v3073_v8, %v3072_v63  ;;  %v9825_v63 = vunpack.i.l.bf16 %v13232_v23  ;;  %v9835_v23 = vunpack.i.l.bf16 %v13245_v46 }
 0x338   : > { %10348 = vrot.lane.b32.xlu0 %v10347_v60, %s12107_s27  ;;  %v13526_v50 = vpop.permute.xlu1 %9843 }
 0x339   : > { %v13528_v15 = vpop.permute.xlu0 %10078 }
 0x33a   : > { %10113 = vrot.lane.b32.xlu1 %v10112_v1, %s12102_s20  ;;  %v9720_v1 = vunpack.i.l.bf16 %v13370_v42 }
 0x33c   : > { %10358 = vrot.lane.b32.xlu0 %v10357_v41, %s12107_s27  ;;  %v13532_v14 = vpop.permute.xlu1 %9848 }
 0x33d   : > { %v13536_v54 = vpop.permute.xlu0 %10098 }
 0x33e   : > { %10118 = vrot.lane.b32.xlu1 %v10117_v55, %s12103_s21  ;;  %v9866_v55 = vunpack.i.h.bf16 %v13260_v9 }
 0x340   : > { %10368 = vrot.lane.b32.xlu0 %v10367_v17, %s12108_s28  ;;  %v9859_v60 = vpop.permute.xlu1 %9858  ;;  %v9830_v17 = vunpack.i.l.bf16 %v13239_v21  ;;  %v9716_v21 = vunpack.i.h.bf16 %v13360_v13 }
 0x341   : > { %v9861_v8 = vunpack.i.h.bf16 %v9859_v60  ;;  %v9860_v41 = vunpack.i.l.bf16 %v9859_v60  ;;  %v13552_v58 = vpop.permute.xlu0 %10103 }
 0x342   : > { %10123 = vrot.lane.b32.xlu1 %v10122_v44, %s12104_s22  ;;  %v9721_v44 = vunpack.i.h.bf16 %v13370_v42  ;;  %v9985_v42 = vunpack.i.l.bf16 %v13393_v5 }
 0x343   : > { %v2216_v37 = vsel %vm426_vm0, %v903_v6, %v9861_v8  ;;  %v2215_v36 = vsel %vm426_vm0, %v902_v20, %v9860_v41  ;;  %v9980_v20 = vunpack.i.l.bf16 %v13386_v52  ;;  %v9991_v6 = vunpack.i.h.bf16 %v13404_v25 }
 0x344   : > { %10378 = vrot.lane.b32.xlu0 %v10377_v7, %s12108_s28  ;;  %v2248_v9 = vsel %vm2233_vm4, %v2215_v36, %v9865_v10  ;;  %v2249_v56 = vsel %vm2233_vm4, %v2216_v37, %v9866_v55  ;;  %v9869_v60 = vpop.permute.xlu1 %9868  ;;  %v9981_v7 = vunpack.i.h.bf16 %v13386_v52  ;;  %v9986_v55 = vunpack.i.h.bf16 %v13393_v5  ;;  %v3088_v37 = vld [vmem:[#allocation3 + $0xdc] sm:$0xff] }
 0x345   : > { %v2281_v46 = vsel %vm2266_vm5, %v2248_v9, %v9825_v63  ;;  %v2282_v8 = vsel %vm2266_vm5, %v2249_v56, %v9826_v59  ;;  %v13572_v41 = vpop.permute.xlu0 %10108  ;;  %v9990_v52 = vunpack.i.l.bf16 %v13404_v25  ;;  %v9871_v9 = vunpack.i.h.bf16 %v9869_v60  ;;  %v901_v25 = vld [vmem:[#allocation2 + $0x98] sm:$0xff] }
 0x346   : > { %v2314_v13 = vsel %vm2299_vm6, %v2281_v46, %v9830_v17  ;;  %v2315_v10 = vsel %vm2299_vm6, %v2282_v8, %v9831_v22  ;;  %10143 = vrot.lane.b32.xlu1 %v13247_v34, %s12107_s27  ;;  %v3002_v22 = vld [vmem:[#allocation3 + $0x151] sm:$0xff]  ;;  %v9870_v56 = vunpack.i.l.bf16 %v9869_v60 }
 0x347   : > { %v2347_v59 = vsel %vm2332_vm7, %v2314_v13, %v9835_v23  ;;  %v2348_v63 = vsel %vm2332_vm7, %v2315_v10, %v9836_v26  ;;  %v1073_v46 = vld [vmem:[#allocation2 + $0x142] sm:$0xff]  ;;  %v900_v13 = vld [vmem:[#allocation2 + $0x90] sm:$0xff] }
 0x348   : > { %10388 = vrot.lane.b32.xlu0 %v10387_v62, %s12108_s28  ;;  %v9874_v17 = vpop.permute.xlu1 %9873  ;;  %v2380_v36 = vsel %vm2365_vm8, %v2347_v59, %v9980_v20  ;;  %v2381_v34 = vsel %vm2365_vm8, %v2348_v63, %v9981_v7  ;;  %v1072_v62 = vld [vmem:[#allocation2 + $0x13a] sm:$0xff]  ;;  %v3003_v23 = vld [vmem:[#allocation3 + $0x159] sm:$0xff]  ;;  %v2214_v59 = vsel %vm426_vm0, %v901_v25, %v9716_v21  ;;  %v2213_v63 = vsel %vm426_vm0, %v900_v13, %v9715_v29 }
 0x349   : > { %v13589_v5 = vpop.permute.xlu0 %10128  ;;  %v2413_v26 = vsel %vm2398_vm9, %v2380_v36, %v9985_v42  ;;  %v2414_v8 = vsel %vm2398_vm9, %v2381_v34, %v9986_v55  ;;  %v9876_v10 = vunpack.i.h.bf16 %v9874_v17  ;;  %v9875_v16 = vunpack.i.l.bf16 %v9874_v17  ;;  %v3089_v20 = vld [vmem:[#allocation3 + $0xe4] sm:$0xff]  ;;  %v3093_v13 = vld [vmem:[#allocation3 + $0x114] sm:$0xff] }
 0x34a   : > { %19865 = vst [vmem:[#allocation59_spill] sm:$0xff] %v13589_v5  ;;  %10148 = vrot.lane.b32.xlu1 %v10147_v53, %s12108_s28  ;;  %v2446_v7 = vsel %vm2431_vm10, %v2413_v26, %v9990_v52  ;;  %v2447_v60 = vsel %vm2431_vm10, %v2414_v8, %v9991_v6  ;;  %v19866_v42 = vpack.i.bf16 %v13544_v38, %v13534_v12  ;;  %v9841_v12 = vunpack.i.h.bf16 %v13519_v61 }
 0x34b   : > { %v10407_v55 = vpack.i.bf16 %v3089_v20, %v3088_v37  ;;  %v2471_v36 = vpack.c.bf16 %v2447_v60, %v2446_v7  ;;  %v2246_v17 = vsel %vm2233_vm4, %v2213_v63, %v9720_v1  ;;  %v2247_v53 = vsel %vm2233_vm4, %v2214_v59, %v9721_v44  ;;  %v3092_v37 = vld [vmem:[#allocation3 + $0x10c] sm:$0xff]  ;;  %v3096_v60 = vld [vmem:[#allocation3 + $0x13c] sm:$0xff] }
 0x34c   : > { %10398 = vrot.lane.b32.xlu0 %v19866_v42, %s12108_s28  ;;  %v9879_v34 = vpop.permute.xlu1 %9878  ;;  %v10152_v5 = vpack.i.bf16 %v1073_v46, %v1072_v62  ;;  %v13604_v52 = vpack.i.bf16 %v3003_v23, %v3002_v22  ;;  %v2280_v6 = vsel %vm2266_vm5, %v2247_v53, %v9871_v9  ;;  %v2279_v21 = vsel %vm2266_vm5, %v2246_v17, %v9870_v56  ;;  %v3097_v42 = vld [vmem:[#allocation3 + $0x144] sm:$0xff]  ;;  %v1142_v53 = vld [vmem:[#allocation2 + $0x189] sm:$0xff] }
 0x34d   : > { %v9881_v29 = vunpack.i.h.bf16 %v9879_v34  ;;  %v9880_v26 = vunpack.i.l.bf16 %v9879_v34  ;;  %v13608_v8 = vpop.permute.xlu0 %10133  ;;  %v9840_v38 = vunpack.i.l.bf16 %v13519_v61  ;;  %v2312_v1 = vsel %vm2299_vm6, %v2279_v21, %v9875_v16  ;;  %v3100_v34 = vld [vmem:[#allocation3 + $0x16c] sm:$0xff] }
 0x34e   : > { %v2313_v44 = vsel %vm2299_vm6, %v2280_v6, %v9876_v10  ;;  %10153 = vrot.lane.b32.xlu1 %v10152_v5, %s12109_s29  ;;  %v9846_v22 = vunpack.i.h.bf16 %v13526_v50  ;;  %v9845_v9 = vunpack.i.l.bf16 %v13526_v50  ;;  %v9851_v46 = vunpack.i.h.bf16 %v13532_v14  ;;  %v1141_v6 = vld [vmem:[#allocation2 + $0x181] sm:$0xff] }
 0x34f   : > { %v2345_v56 = vsel %vm2332_vm7, %v2312_v1, %v9880_v26  ;;  %v2346_v62 = vsel %vm2332_vm7, %v2313_v44, %v9881_v29  ;;  %v9850_v61 = vunpack.i.l.bf16 %v13532_v14  ;;  %v10417_v50 = vpack.i.bf16 %v3093_v13, %v3092_v37  ;;  %v3101_v26 = vld [vmem:[#allocation3 + $0x174] sm:$0xff]  ;;  %v1045_v13 = vld [vmem:[#allocation2 + $0x171] sm:$0xff] }
 0x350   : > { %10408 = vrot.lane.b32.xlu0 %v10407_v55, %s12108_s28  ;;  %v2378_v16 = vsel %vm2365_vm8, %v2345_v56, %v9840_v38  ;;  %v2379_v23 = vsel %vm2365_vm8, %v2346_v62, %v9841_v12  ;;  %v13624_v5 = vpop.permute.xlu1 %9898  ;;  %v10427_v17 = vpack.i.bf16 %v3097_v42, %v3096_v60  ;;  %v10197_v29 = vpack.i.bf16 %v1142_v53, %v1141_v6  ;;  %v1173_v1 = vld [vmem:[#allocation2 + $0x182] sm:$0xff]  ;;  %v1174_v44 = vld [vmem:[#allocation2 + $0x18a] sm:$0xff] }
 0x351   : > { %19867 = vst [vmem:[#allocation60_spill] sm:$0xff] %v13624_v5  ;;  %v13626_v25 = vpop.permute.xlu0 %10138  ;;  %v2411_v10 = vsel %vm2398_vm9, %v2378_v16, %v9845_v9  ;;  %v2412_v20 = vsel %vm2398_vm9, %v2379_v23, %v9846_v22  ;;  %v10437_v38 = vpack.i.bf16 %v3101_v26, %v3100_v34  ;;  %v3105_v37 = vld [vmem:[#allocation3 + $0x30] sm:$0xff]  ;;  %v3106_v22 = vld [vmem:[#allocation3 + $0x38] sm:$0xff]  ;;  %v3109_v62 = vld [vmem:[#allocation3 + $0x60] sm:$0xff]  ;;  %v9815_v5 = vunpack.i.l.bf16 %v13503_v27 }
 0x352   : > { %10173 = vrot.lane.b32.xlu1 %v13604_v52, %s12100_s18  ;;  %v2444_v7 = vsel %vm2431_vm10, %v2411_v10, %v9850_v61  ;;  %v2445_v14 = vsel %vm2431_vm10, %v2412_v20, %v9851_v46  ;;  %v10447_v56 = vpack.i.bf16 %v3106_v22, %v3105_v37  ;;  %v3110_v46 = vld [vmem:[#allocation3 + $0x68] sm:$0xff]  ;;  %v2955_v10 = vld [vmem:[#allocation3 + $0x98] sm:$0xff]  ;;  %v2958_v42 = vld [vmem:[#allocation3 + $0xc0] sm:$0xff] }
 0x353   : > { %v2470_v59 = vpack.c.bf16 %v2445_v14, %v2444_v7  ;;  %v10457_v23 = vpack.i.bf16 %v3110_v46, %v3109_v62  ;;  %v1044_v20 = vld [vmem:[#allocation2 + $0x169] sm:$0xff]  ;;  %v3121_v6 = vld [vmem:[#allocation3 + $0xf0] sm:$0xff]  ;;  %v3030_v26 = vld [vmem:[#allocation3 + $0x122] sm:$0xff] }
 0x354   : > { %10418 = vrot.lane.b32.xlu0 %v10417_v50, %s12108_s28  ;;  %v13635_v63 = vpop.permute.xlu1 %9903  ;;  %v2954_v50 = vld [vmem:[#allocation3 + $0x90] sm:$0xff]  ;;  %v10222_v14 = vpack.i.bf16 %v1045_v13, %v1044_v20  ;;  %v3027_v62 = vld [vmem:[#allocation3 + $0xfa] sm:$0xff] }
 0x355   : > { %19868 = vst [vmem:[#allocation61_spill] sm:$0xff] %v13635_v63  ;;  %v13637_v55 = vpop.permute.xlu0 %10158  ;;  %9350 = vmatprep.mubr.msk.bf16.mxu1 %vm2507_vm11, %v2470_v59  ;;  %v10467_v59 = vpack.i.bf16 %v2955_v10, %v2954_v50  ;;  %v3042_v53 = vld [vmem:[#allocation3 + $0x33] sm:$0xff]  ;;  %v3043_v46 = vld [vmem:[#allocation3 + $0x3b] sm:$0xff]  ;;  %v3031_v50 = vld [vmem:[#allocation3 + $0x12a] sm:$0xff] }
 0x356   : > { %10193 = vrot.lane.b32.xlu1 %v13282_v32, %s12102_s20  ;;  %9351 = vmatmul.mubr.msk.bf16.gmra.mrb[12].mxu1 %vm2507_vm11, %v2471_v36  ;;  %v10202_v36 = vpack.i.bf16 %v1174_v44, %v1173_v1  ;;  %v3026_v34 = vld [vmem:[#allocation3 + $0xf2] sm:$0xff]  ;;  %v3126_v1 = vld [vmem:[#allocation3 + $0x128] sm:$0xff]  ;;  %v3035_v10 = vld [vmem:[#allocation3 + $0x15a] sm:$0xff]  ;;  %v13684_v20 = vpack.i.bf16 %v3043_v46, %v3042_v53 }
 0x357   : > { %v3034_v22 = vld [vmem:[#allocation3 + $0x152] sm:$0xff]  ;;  %v906_v46 = vld [vmem:[#allocation2 + $0xd8] sm:$0xff] }
 0x358   : > { %10428 = vrot.lane.b32.xlu0 %v10427_v17, %s12108_s28  ;;  %v13644_v21 = vpop.permute.xlu1 %9908  ;;  %v2959_v17 = vld [vmem:[#allocation3 + $0xc8] sm:$0xff] }
 0x359   : > { %v13646_v12 = vpop.permute.xlu0 %10163  ;;  %v10477_v37 = vpack.i.bf16 %v2959_v17, %v2958_v42  ;;  %v13689_v17 = vpack.i.bf16 %v3035_v10, %v3034_v22  ;;  %v9961_v22 = vunpack.i.h.bf16 %v13379_v0  ;;  %v9925_v10 = vunpack.i.l.bf16 %v13350_v2  ;;  %v13714_v63 = vld [vmem:[#allocation3 + $0x188] sm:$0xff] }
 0x35a   : > { %10198 = vrot.lane.b32.xlu1 %v10197_v29, %s12103_s21  ;;  %v3122_v29 = vld [vmem:[#allocation3 + $0xf8] sm:$0xff] }
 0x35b   : > { %v10487_v13 = vpack.i.bf16 %v3122_v29, %v3121_v6  ;;  %v9921_v6 = vunpack.i.h.bf16 %v13336_v11 }
 0x35c   : > { %10438 = vrot.lane.b32.xlu0 %v10437_v38, %s12108_s28  ;;  %v13650_v32 = vpop.permute.xlu1 %9913  ;;  %v13671_v38 = vld [vmem:[#allocation3 + $0x120] sm:$0xff] }
 0x35d   : > { %v13652_v9 = vpop.permute.xlu0 %10168  ;;  %v10497_v42 = vpack.i.bf16 %v3126_v1, %v13671_v38  ;;  %v9920_v38 = vunpack.i.l.bf16 %v13336_v11  ;;  %v9926_v1 = vunpack.i.h.bf16 %v13350_v2 }
 0x35e   : > { %10203 = vrot.lane.b32.xlu1 %v10202_v36, %s12104_s22  ;;  %v13675_v36 = vld [vmem:[#allocation3 + $0x150] sm:$0xff] }
 0x360   : > { %10448 = vrot.lane.b32.xlu0 %v10447_v56, %s12109_s29  ;;  %v13656_v61 = vpop.permute.xlu1 %9933  ;;  %v13677_v56 = vld [vmem:[#allocation3 + $0x158] sm:$0xff] }
 0x361   : > { %v13658_v16 = vpop.permute.xlu0 %10178 }
 0x362   : > { %19869 = vst [vmem:[#allocation62_spill] sm:$0xff] %v13658_v16  ;;  %10218 = vrot.lane.b32.xlu1 %v13364_v51, %s12107_s27 }
 0x364   : > { %10458 = vrot.lane.b32.xlu0 %v10457_v23, %s12109_s29  ;;  %v13663_v7 = vpop.permute.xlu1 %9938  ;;  %v13682_v23 = vpack.i.bf16 %v3027_v62, %v3026_v34  ;;  %v8560_v34 = vld [vmem:[%s19364_s7] sm:$0x3]  ;;  %v9960_v62 = vunpack.i.l.bf16 %v13379_v0  ;;  %v9930_v0 = vunpack.i.l.bf16 %v13362_v48 }
 0x365   : > { %v13665_v60 = vpop.permute.xlu0 %10183  ;;  %9453 = vmatprep.subr.msk.bf16.mxu1 %vm475_vm2, %v8560_v34 }
 0x366   : > { %19870 = vst [vmem:[#allocation63_spill] sm:$0xff] %v13665_v60  ;;  %10223 = vrot.lane.b32.xlu1 %v10222_v14, %s12108_s28  ;;  %v13889_v60 = vld [vmem:[#allocation3 + $0x62] sm:$0xff] }
 0x368   : > { %10468 = vrot.lane.b32.xlu0 %v10467_v59, %s12109_s29  ;;  %v13669_v51 = vpop.permute.xlu1 %9943  ;;  %v13686_v59 = vpack.i.bf16 %v3031_v50, %v3030_v26  ;;  %v8617_v26 = vsel %vm475_vm2, %v8560_v34, 0  ;;  %v907_v50 = vld [vmem:[#allocation2 + $0xe0] sm:$0xff] }
 0x369   : > { %v13673_v44 = vpop.permute.xlu0 %10188  ;;  %9417 = vmatpush3.bf16.msra.mxu1 %v8617_v26 }
 0x36a   : > { %19871 = vst [vmem:[#allocation64_spill] sm:$0xff] %v13673_v44  ;;  %10228 = vrot.lane.b32.xlu1 %v13353_v47, %s12109_s29  ;;  %v13712_v47 = vld [vmem:[#allocation3 + $0x180] sm:$0xff] }
 0x36b   : > { %v10517_v27 = vpack.i.bf16 %v13714_v63, %v13712_v47 }
 0x36c   : > { %10478 = vrot.lane.b32.xlu0 %v10477_v37, %s12109_s29  ;;  %v9954_v14 = vpop.permute.xlu1 %9953 }
 0x36d   : > { %v9956_v29 = vunpack.i.h.bf16 %v9954_v14  ;;  %v9955_v37 = vunpack.i.l.bf16 %v9954_v14  ;;  %v13697_v53 = vpop.permute.xlu0 %10208  ;;  %v9931_v14 = vunpack.i.h.bf16 %v13362_v48  ;;  %v9821_v48 = vunpack.i.h.bf16 %v13512_v31 }
 0x36e   : > { %19872 = vst [vmem:[#allocation65_spill] sm:$0xff] %v13697_v53  ;;  %10253 = vrot.lane.b32.xlu1 %v13682_v23, %s12101_s19 }
 0x36f   : > { %v2219_v34 = vsel %vm426_vm0, %v906_v46, %v9955_v37  ;;  %v2220_v11 = vsel %vm426_vm0, %v907_v50, %v9956_v29  ;;  %v9820_v37 = vunpack.i.l.bf16 %v13512_v31  ;;  %v3038_v50 = vld [vmem:[#allocation3 + $0x3] sm:$0xff] }
 0x370   : > { %10488 = vrot.lane.b32.xlu0 %v10487_v13, %s12109_s29  ;;  %v2252_v26 = vsel %vm2233_vm4, %v2219_v34, %v9960_v62  ;;  %v2253_v2 = vsel %vm2233_vm4, %v2220_v11, %v9961_v22  ;;  %v9964_v18 = vpop.permute.xlu1 %9963  ;;  %v904_v22 = vld [vmem:[#allocation2 + $0xc0] sm:$0xff] }
 0x371   : > { %v2285_v29 = vsel %vm2266_vm5, %v2252_v26, %v9920_v38  ;;  %v2286_v13 = vsel %vm2266_vm5, %v2253_v2, %v9921_v6  ;;  %v13724_v46 = vpop.permute.xlu0 %10213  ;;  %v10071_v38 = vunpack.i.h.bf16 %v13514_v35  ;;  %v10070_v6 = vunpack.i.l.bf16 %v13514_v35 }
 0x372   : > { %19873 = vst [vmem:[#allocation66_spill] sm:$0xff] %v13724_v46  ;;  %v2318_v43 = vsel %vm2299_vm6, %v2285_v29, %v9925_v10  ;;  %v2319_v62 = vsel %vm2299_vm6, %v2286_v13, %v9926_v1  ;;  %10263 = vrot.lane.b32.xlu1 %v13686_v59, %s12101_s19  ;;  %v905_v10 = vld [vmem:[#allocation2 + $0xc8] sm:$0xff]  ;;  %v2217_v1 = vsel %vm426_vm0, %v904_v22, %v9815_v5  ;;  %v9966_v11 = vunpack.i.h.bf16 %v9964_v18  ;;  %v909_v46 = vld [vmem:[#allocation2 + $0xf8] sm:$0xff] }
 0x373   : > { %v2351_v34 = vsel %vm2332_vm7, %v2318_v43, %v9930_v0  ;;  %v2352_v31 = vsel %vm2332_vm7, %v2319_v62, %v9931_v14  ;;  %v9965_v26 = vunpack.i.l.bf16 %v9964_v18  ;;  %v10282_v29 = vpack.i.bf16 %v3039_v45, %v3038_v50 }
 0x374   : > { %10498 = vrot.lane.b32.xlu0 %v10497_v42, %s12109_s29  ;;  %v9969_v2 = vpop.permute.xlu1 %9968  ;;  %v2218_v63 = vsel %vm426_vm0, %v905_v10, %v9816_v39  ;;  %v2250_v47 = vsel %vm2233_vm4, %v2217_v1, %v9820_v37  ;;  %v2384_v35 = vsel %vm2365_vm8, %v2351_v34, %v10070_v6  ;;  %v2385_v42 = vsel %vm2365_vm8, %v2352_v31, %v10071_v38 }
 0x375   : > { %v13741_v13 = vpop.permute.xlu0 %10233  ;;  %v10076_v43 = vunpack.i.h.bf16 %v13521_v30  ;;  %v10075_v14 = vunpack.i.l.bf16 %v13521_v30  ;;  %v9971_v0 = vunpack.i.h.bf16 %v9969_v2  ;;  %v9970_v5 = vunpack.i.l.bf16 %v9969_v2 }
 0x376   : > { %10273 = vrot.lane.b32.xlu1 %v13689_v17, %s12101_s19  ;;  %v2251_v45 = vsel %vm2233_vm4, %v2218_v63, %v9821_v48  ;;  %v10081_v39 = vunpack.i.h.bf16 %v13528_v15  ;;  %v10080_v18 = vunpack.i.l.bf16 %v13528_v15  ;;  %v9936_v37 = vunpack.i.h.bf16 %v13656_v61 }
 0x377   : > { %v19874_v50 = vpack.i.bf16 %v13677_v56, %v13675_v36  ;;  %v2284_v30 = vsel %vm2266_vm5, %v2251_v45, %v9966_v11  ;;  %v2283_v62 = vsel %vm2266_vm5, %v2250_v47, %v9965_v26  ;;  %v2417_v38 = vsel %vm2398_vm9, %v2384_v35, %v10075_v14  ;;  %v3137_v11 = vld [vmem:[#allocation3 + $0x31] sm:$0xff]  ;;  %v3138_v26 = vld [vmem:[#allocation3 + $0x39] sm:$0xff] }
 0x378   : > { %v9974_v22 = vpop.permute.xlu1 %9973  ;;  %v2418_v48 = vsel %vm2398_vm9, %v2385_v42, %v10076_v43  ;;  %v2450_v15 = vsel %vm2431_vm10, %v2417_v38, %v10080_v18  ;;  %v9935_v36 = vunpack.i.l.bf16 %v13656_v61  ;;  %v2316_v56 = vsel %vm2299_vm6, %v2283_v62, %v9970_v5  ;;  %v3046_v18 = vld [vmem:[#allocation3 + $0x63] sm:$0xff]  ;;  %v3047_v62 = vld [vmem:[#allocation3 + $0x6b] sm:$0xff] }
 0x379   : > { %10508 = vrot.lane.b32.xlu0 %v19874_v50, %s12109_s29  ;;  %v9976_v6 = vunpack.i.h.bf16 %v9974_v22  ;;  %v9975_v34 = vunpack.i.l.bf16 %v9974_v22  ;;  %v13761_v31 = vpop.permute.xlu0 %10238  ;;  %v2451_v10 = vsel %vm2431_vm10, %v2418_v48, %v10081_v39  ;;  %v2317_v1 = vsel %vm2299_vm6, %v2284_v30, %v9971_v0  ;;  %v3141_v50 = vld [vmem:[#allocation3 + $0x61] sm:$0xff]  ;;  %v3142_v30 = vld [vmem:[#allocation3 + $0x69] sm:$0xff] }
 0x37a   : > { %10283 = vrot.lane.b32.xlu1 %v10282_v29, %s12107_s27  ;;  %v2473_v2 = vpack.c.bf16 %v2451_v10, %v2450_v15  ;;  %v9941_v63 = vunpack.i.h.bf16 %v13663_v7  ;;  %v9940_v47 = vunpack.i.l.bf16 %v13663_v7  ;;  %v9946_v61 = vunpack.i.h.bf16 %v13669_v51  ;;  %v3145_v15 = vld [vmem:[#allocation3 + $0x91] sm:$0xff]  ;;  %v3146_v10 = vld [vmem:[#allocation3 + $0x99] sm:$0xff] }
 0x37b   : > { %v2349_v35 = vsel %vm2332_vm7, %v2316_v56, %v9975_v34  ;;  %v2350_v42 = vsel %vm2332_vm7, %v2317_v1, %v9976_v6  ;;  %v9945_v43 = vunpack.i.l.bf16 %v13669_v51  ;;  %v10527_v45 = vpack.i.bf16 %v3138_v26, %v3137_v11  ;;  %v3050_v34 = vld [vmem:[#allocation3 + $0x93] sm:$0xff]  ;;  %v7999_v56 = vld [vmem:[#allocation4] sm:$0xff] }
 0x37c   : > { %v2382_v14 = vsel %vm2365_vm8, %v2349_v35, %v9935_v36  ;;  %v2383_v29 = vsel %vm2365_vm8, %v2350_v42, %v9936_v37  ;;  %v13778_v0 = vpop.permute.xlu1 %9993  ;;  %v13791_v38 = vpack.i.bf16 %v3047_v62, %v3046_v18  ;;  %v10537_v6 = vpack.i.bf16 %v3142_v30, %v3141_v50  ;;  %v3051_v36 = vld [vmem:[#allocation3 + $0x9b] sm:$0xff]  ;;  %v3054_v35 = vld [vmem:[#allocation3 + $0xc3] sm:$0xff]  ;;  %v3153_v50 = vld [vmem:[#allocation3 + $0xf1] sm:$0xff] }
 0x37d   : > { %10518 = vrot.lane.b32.xlu0 %v10517_v27, %s12109_s29  ;;  %19875 = vst [vmem:[#allocation67_spill] sm:$0xff] %v13778_v0  ;;  %v13780_v5 = vpop.permute.xlu0 %10243  ;;  %v2415_v7 = vsel %vm2398_vm9, %v2382_v14, %v9940_v47  ;;  %v2416_v39 = vsel %vm2398_vm9, %v2383_v29, %v9941_v63  ;;  %v8031_v1 = vld [vmem:[#allocation4 + $0x1] sm:$0xff]  ;;  %v13802_v26 = vpack.i.bf16 %v3051_v36, %v3050_v34  ;;  %v3055_v14 = vld [vmem:[#allocation3 + $0xcb] sm:$0xff]  ;;  %v3154_v30 = vld [vmem:[#allocation3 + $0xf9] sm:$0xff]  ;;  %v10045_v34 = vunpack.i.l.bf16 %v13497_v49 }
 0x37e   : > { %10293 = vrot.lane.b32.xlu1 %v13684_v20, %s12107_s27  ;;  %v2448_v27 = vsel %vm2431_vm10, %v2415_v7, %v9945_v43  ;;  %v2449_v51 = vsel %vm2431_vm10, %v2416_v39, %v9946_v61  ;;  %v10547_v47 = vpack.i.bf16 %v3146_v10, %v3145_v15  ;;  %v3149_v42 = vld [vmem:[#allocation3 + $0xc1] sm:$0xff]  ;;  %v8063_v61 = vmax.f32 %v7999_v56, %v8031_v1  ;;  %v8096_v10 = vld [vmem:[#allocation4 + $0xa] sm:$0xff]  ;;  %v8159_v36 = vld [vmem:[#allocation4 + $0x18] sm:$0xff] }
 0x37f   : > { %v2472_v37 = vpack.c.bf16 %v2449_v51, %v2448_v27  ;;  %v8095_v43 = vld [vmem:[#allocation4 + $0x2] sm:$0xff]  ;;  %v13811_v39 = vpack.i.bf16 %v3055_v14, %v3054_v35  ;;  %v3058_v51 = vld [vmem:[#allocation3 + $0xf3] sm:$0xff]  ;;  %v10051_v56 = vunpack.i.h.bf16 %v13507_v33  ;;  %v10050_v1 = vunpack.i.l.bf16 %v13507_v33 }
 0x380   : > { %v13789_v22 = vpop.permute.xlu1 %9998  ;;  %v8000_v29 = vld [vmem:[#allocation4 + $0x8] sm:$0xff]  ;;  %v8127_v62 = vmax.f32 %v8063_v61, %v8095_v43  ;;  %v3059_v15 = vld [vmem:[#allocation3 + $0xfb] sm:$0xff] }
 0x381   : > { %10528 = vrot.lane.b32.xlu0 %v10527_v45, %s12102_s20  ;;  %v13793_v48 = vpop.permute.xlu0 %10248  ;;  %9354 = vmatprep.mubr.msk.bf16.mxu1 %vm2507_vm11, %v2472_v37  ;;  %v8032_v45 = vld [vmem:[#allocation4 + $0x9] sm:$0xff]  ;;  %19878 = vst [vmem:[#allocation70_spill] sm:$0xff] %v13811_v39  ;;  %v13824_v35 = vpack.i.bf16 %v3059_v15, %v3058_v51  ;;  %v8223_v14 = vld [vmem:[#allocation4 + $0x19] sm:$0xff] }
 0x382   : > { %19876 = vst [vmem:[#allocation68_spill] sm:$0xff] %v13793_v48  ;;  %10303 = vrot.lane.b32.xlu1 %v13791_v38, %s12107_s27  ;;  %9355 = vmatmul.mubr.msk.bf16.gmra.mrb[16].mxu1 %vm2507_vm11, %v2473_v2  ;;  %v3150_v2 = vld [vmem:[#allocation3 + $0xc9] sm:$0xff]  ;;  %v8064_v37 = vmax.f32 %v8000_v29, %v8032_v45  ;;  %v910_v29 = vld [vmem:[#allocation2 + $0x108] sm:$0xff]  ;;  %v911_v45 = vld [vmem:[#allocation2 + $0x110] sm:$0xff]  ;;  %v8191_v33 = vmax.f32 %v8127_v62, %v8159_v36 }
 0x383   : > { %v10557_v27 = vpack.i.bf16 %v3150_v2, %v3149_v42  ;;  %19880 = vst [vmem:[#allocation72_spill] sm:$0xff] %v13824_v35  ;;  %v13826_v42 = vld [vmem:[#allocation4 + $0x20] sm:$0xff]  ;;  %v2223_v15 = vsel %vm426_vm0, %v910_v29, %v10045_v34  ;;  %v3074_v62 = vld [vmem:[#allocation3 + $0x34] sm:$0xff]  ;;  %v8065_v34 = vmax.f32 %v8159_v36, %v8223_v14 }
 0x384   : > { %v13800_v11 = vpop.permute.xlu1 %10003  ;;  %v13828_v2 = vld [vmem:[#allocation4 + $0x21] sm:$0xff]  ;;  %v13861_v36 = vmax.f32 %v8191_v33, %v8223_v14  ;;  %v10016_v14 = vunpack.i.h.bf16 %v13447_v28  ;;  %v10015_v33 = vunpack.i.l.bf16 %v13447_v28  ;;  %v10161_v28 = vunpack.i.h.bf16 %v13637_v55 }
 0x385   : > { %10538 = vrot.lane.b32.xlu0 %v10537_v6, %s12102_s20  ;;  %v13804_v63 = vpop.permute.xlu0 %10258  ;;  %v10046_v6 = vunpack.i.h.bf16 %v13497_v49  ;;  %v10567_v49 = vpack.i.bf16 %v3154_v30, %v3153_v50  ;;  %v3062_v43 = vld [vmem:[#allocation3 + $0x123] sm:$0xff]  ;;  %v8066_v50 = vmax.f32 %v13826_v42, %v13828_v2  ;;  %v2256_v30 = vsel %vm2233_vm4, %v2223_v15, %v10050_v1 }
 0x386   : > { %19877 = vst [vmem:[#allocation69_spill] sm:$0xff] %v13804_v63  ;;  %10313 = vrot.lane.b32.xlu1 %v13802_v26, %s12107_s27  ;;  %v13839_v63 = vld [vmem:[#allocation4 + $0x1a] sm:$0xff]  ;;  %v3078_v1 = vld [vmem:[#allocation3 + $0x64] sm:$0xff] }
 0x387   : > { %v2224_v51 = vsel %vm426_vm0, %v911_v45, %v10046_v6  ;;  %v13849_v6 = vld [vmem:[#allocation4 + $0x22] sm:$0xff]  ;;  %v3066_v45 = vld [vmem:[#allocation3 + $0x153] sm:$0xff] }
 0x388   : > { %v13809_v7 = vpop.permute.xlu1 %10023  ;;  %v3075_v0 = vld [vmem:[#allocation3 + $0x3c] sm:$0xff]  ;;  %v13875_v44 = vmax.f32 %v8066_v50, %v13849_v6 }
 0x389   : > { %10548 = vrot.lane.b32.xlu0 %v10547_v47, %s12102_s20  ;;  %v13813_v18 = vpop.permute.xlu0 %10268  ;;  %v13870_v24 = vpack.i.bf16 %v3075_v0, %v3074_v62  ;;  %v10020_v0 = vunpack.i.l.bf16 %v13463_v4  ;;  %v3165_v50 = vld [vmem:[#allocation3 + $0x181] sm:$0xff] }
 0x38a   : > { %19879 = vst [vmem:[#allocation71_spill] sm:$0xff] %v13813_v18  ;;  %10323 = vrot.lane.b32.xlu1 %v13811_v39, %s12107_s27  ;;  %v3063_v18 = vld [vmem:[#allocation3 + $0x12b] sm:$0xff]  ;;  %v908_v39 = vld [vmem:[#allocation2 + $0xf0] sm:$0xff] }
 0x38c   : > { %v13822_v47 = vpop.permute.xlu1 %10028 }
 0x38d   : > { %10558 = vrot.lane.b32.xlu0 %v10557_v27, %s12102_s20  ;;  %v13830_v61 = vpop.permute.xlu0 %10278  ;;  %v13834_v27 = vmax.f32 %v8064_v37, %v8096_v10  ;;  %v13847_v37 = vpack.i.bf16 %v3063_v18, %v3062_v43  ;;  %v10011_v10 = vunpack.i.h.bf16 %v13428_v3  ;;  %v3071_v18 = vld [vmem:[#allocation3 + $0xc] sm:$0xff] }
 0x38e   : > { %19881 = vst [vmem:[#allocation73_spill] sm:$0xff] %v13830_v61  ;;  %10333 = vrot.lane.b32.xlu1 %v13824_v35, %s12107_s27  ;;  %v2257_v61 = vsel %vm2233_vm4, %v2224_v51, %v10051_v56  ;;  %v3070_v56 = vld [vmem:[#allocation3 + $0x4] sm:$0xff]  ;;  %v13864_v51 = vmax.f32 %v8065_v34, %v13839_v63 }
 0x38f   : > { %19882 = vst [vmem:[#allocation74_spill] sm:$0xff] %v13847_v37  ;;  %v2290_v15 = vsel %vm2266_vm5, %v2257_v61, %v10011_v10  ;;  %v10362_v10 = vpack.i.bf16 %v3071_v18, %v3070_v56  ;;  %v9910_v56 = vunpack.i.l.bf16 %v13644_v21  ;;  %v10166_v18 = vunpack.i.h.bf16 %v13646_v12 }
 0x390   : > { %v13845_v48 = vpop.permute.xlu1 %10033  ;;  %v2323_v61 = vsel %vm2299_vm6, %v2290_v15, %v10016_v14 }
 0x391   : > { %10568 = vrot.lane.b32.xlu0 %v10567_v49, %s12102_s20  ;;  %v10010_v49 = vunpack.i.l.bf16 %v13428_v3  ;;  %v13853_v29 = vpop.permute.xlu0 %10288 }
 0x392   : > { %19883 = vst [vmem:[#allocation75_spill] sm:$0xff] %v13853_v29  ;;  %10343 = vrot.lane.b32.xlu1 %v13847_v37, %s12107_s27  ;;  %v3067_v29 = vld [vmem:[#allocation3 + $0x15b] sm:$0xff] }
 0x393   : > { %v2289_v3 = vsel %vm2266_vm5, %v2256_v30, %v10010_v49  ;;  %v13879_v43 = vpack.i.bf16 %v3067_v29, %v3066_v45  ;;  %v3079_v30 = vld [vmem:[#allocation3 + $0x6c] sm:$0xff]  ;;  %v10160_v29 = vunpack.i.l.bf16 %v13637_v55  ;;  %v9916_v55 = vunpack.i.h.bf16 %v13650_v32 }
 0x394   : > { %v10054_v34 = vpop.permute.xlu1 %10053  ;;  %v3166_v49 = vld [vmem:[#allocation3 + $0x189] sm:$0xff]  ;;  %v13887_v37 = vpack.i.bf16 %v3079_v30, %v3078_v1  ;;  %v2322_v45 = vsel %vm2299_vm6, %v2289_v3, %v10015_v33  ;;  %v10165_v1 = vunpack.i.l.bf16 %v13646_v12  ;;  %v9915_v3 = vunpack.i.l.bf16 %v13650_v32 }
 0x395   : > { %10578 = vrot.lane.b32.xlu0 %v13505_v57, %s12102_s20  ;;  %19884 = vst [vmem:[#allocation76_spill] sm:$0xff] %v13879_v43  ;;  %v10021_v57 = vunpack.i.h.bf16 %v13463_v4  ;;  %v9911_v4 = vunpack.i.h.bf16 %v13644_v21  ;;  %v13903_v30 = vld [vmem:[#allocation3 + $0x6a] sm:$0xff]  ;;  %v10597_v14 = vpack.i.bf16 %v3166_v49, %v3165_v50  ;;  %v2355_v21 = vsel %vm2332_vm7, %v2322_v45, %v10020_v0 }
 0x396   : > { %v13885_v62 = vpop.permute.xlu0 %10298  ;;  %10353 = vrot.lane.b32.xlu1 %v13879_v43, %s12107_s27  ;;  %v10617_v33 = vpack.i.bf16 %v13903_v30, %v13889_v60  ;;  %v10056_v43 = vunpack.i.h.bf16 %v10054_v34  ;;  %v10055_v12 = vunpack.i.l.bf16 %v10054_v34  ;;  %v2221_v0 = vsel %vm426_vm0, %v908_v39, %v9910_v56 }
 0x397   : > { %19885 = vst [vmem:[#allocation77_spill] sm:$0xff] %v13885_v62  ;;  %v2356_v62 = vsel %vm2332_vm7, %v2323_v61, %v10021_v57  ;;  %v2222_v60 = vsel %vm426_vm0, %v909_v46, %v9911_v4  ;;  %v2254_v57 = vsel %vm2233_vm4, %v2221_v0, %v9915_v3  ;;  %v10171_v50 = vunpack.i.h.bf16 %v13652_v9  ;;  %v13947_v3 = vld [vmem:[#allocation4 + $0x31] sm:$0xff] }
 0x398   : > { %v10059_v15 = vpop.permute.xlu1 %10058  ;;  %v2389_v16 = vsel %vm2365_vm8, %v2356_v62, %v10161_v28  ;;  %v2255_v62 = vsel %vm2233_vm4, %v2222_v60, %v9916_v55  ;;  %v10170_v49 = vunpack.i.l.bf16 %v13652_v9  ;;  %v2287_v46 = vsel %vm2266_vm5, %v2254_v57, %v10055_v12  ;;  %v13935_v9 = vld [vmem:[#allocation4 + $0x30] sm:$0xff] }
 0x399   : > { %10588 = vrot.lane.b32.xlu0 %v13604_v52, %s12102_s20  ;;  %v2388_v52 = vsel %vm2365_vm8, %v2355_v21, %v10160_v29  ;;  %v10061_v32 = vunpack.i.h.bf16 %v10059_v15  ;;  %v10060_v53 = vunpack.i.l.bf16 %v10059_v15  ;;  %v2422_v34 = vsel %vm2398_vm9, %v2389_v16, %v10166_v18  ;;  %v13949_v15 = vld [vmem:[#allocation4 + $0x39] sm:$0xff] }
 0x39a   : > { %v13911_v35 = vpop.permute.xlu0 %10308  ;;  %10363 = vrot.lane.b32.xlu1 %v10362_v10, %s12108_s28  ;;  %v2421_v61 = vsel %vm2398_vm9, %v2388_v52, %v10165_v1  ;;  %v2288_v10 = vsel %vm2266_vm5, %v2255_v62, %v10056_v43  ;;  %v10026_v16 = vunpack.i.h.bf16 %v13809_v7  ;;  %v10025_v4 = vunpack.i.l.bf16 %v13809_v7  ;;  %v3082_v57 = vld [vmem:[#allocation3 + $0x94] sm:$0xff] }
 0x39b   : > { %19886 = vst [vmem:[#allocation78_spill] sm:$0xff] %v13911_v35  ;;  %v2320_v56 = vsel %vm2299_vm6, %v2287_v46, %v10060_v53  ;;  %v2321_v18 = vsel %vm2299_vm6, %v2288_v10, %v10061_v32  ;;  %v10031_v43 = vunpack.i.h.bf16 %v13822_v47  ;;  %v10030_v1 = vunpack.i.l.bf16 %v13822_v47  ;;  %v13945_v53 = vld [vmem:[#allocation4 + $0x38] sm:$0xff] }
 0x39c   : > { %v10064_v28 = vpop.permute.xlu1 %10063  ;;  %v19888_v7 = vpack.i.bf16 %v13872_v19, %v13855_v40  ;;  %v10035_v21 = vunpack.i.l.bf16 %v13845_v48  ;;  %v2454_v32 = vsel %vm2431_vm10, %v2421_v61, %v10170_v49  ;;  %v2455_v19 = vsel %vm2431_vm10, %v2422_v34, %v10171_v50  ;;  %v13963_v62 = vld [vmem:[#allocation4 + $0x32] sm:$0xff]  ;;  %v13969_v61 = vld [vmem:[#allocation4 + $0x48] sm:$0xff] }
 0x39d   : > { %10598 = vrot.lane.b32.xlu0 %v10597_v14, %s12102_s20  ;;  %v10066_v39 = vunpack.i.h.bf16 %v10064_v28  ;;  %v10065_v29 = vunpack.i.l.bf16 %v10064_v28  ;;  %v10036_v14 = vunpack.i.h.bf16 %v13845_v48  ;;  %v3177_v10 = vld [vmem:[#allocation3 + $0x92] sm:$0xff]  ;;  %v13971_v34 = vld [vmem:[#allocation4 + $0x49] sm:$0xff]  ;;  %v8067_v50 = vmax.f32 %v13935_v9, %v13947_v3 }
 0x39e   : > { %v13927_v45 = vpop.permute.xlu0 %10318  ;;  %10373 = vrot.lane.b32.xlu1 %v13870_v24, %s12108_s28  ;;  %v8068_v49 = vmax.f32 %v13945_v53, %v13949_v15 }
 0x39f   : > { %19887 = vst [vmem:[#allocation79_spill] sm:$0xff] %v13927_v45  ;;  %v2353_v30 = vsel %vm2332_vm7, %v2320_v56, %v10065_v29  ;;  %v2354_v55 = vsel %vm2332_vm7, %v2321_v18, %v10066_v39  ;;  %v3083_v39 = vld [vmem:[#allocation3 + $0x9c] sm:$0xff]  ;;  %v19891_v29 = vmax.f32 %v13834_v27, %v13826_v42  ;;  %v8069_v56 = vmax.f32 %v13969_v61, %v13971_v34  ;;  %v3086_v27 = vld [vmem:[#allocation3 + $0xc4] sm:$0xff] }
 0x3a0   : > { %v2386_v47 = vsel %vm2365_vm8, %v2353_v30, %v10025_v4  ;;  %v2387_v12 = vsel %vm2365_vm8, %v2354_v55, %v10026_v16  ;;  %v13955_v52 = vpop.permute.xlu1 %10083  ;;  %v8193_v4 = vmax.f32 %v13864_v51, %v13935_v9  ;;  %v3178_v30 = vld [vmem:[#allocation3 + $0x9a] sm:$0xff]  ;;  %v8131_v55 = vmax.f32 %v8067_v50, %v13963_v62 }
 0x3a1   : > { %10608 = vrot.lane.b32.xlu0 %v19888_v7, %s12103_s21  ;;  %19889 = vst [vmem:[#allocation80_spill] sm:$0xff] %v13955_v52  ;;  %v2419_v60 = vsel %vm2398_vm9, %v2386_v47, %v10030_v1  ;;  %v2420_v0 = vsel %vm2398_vm9, %v2387_v12, %v10031_v43  ;;  %v8256_v16 = vmax.f32 %v19891_v29, %v13828_v2  ;;  %v13998_v51 = vld [vmem:[#allocation4 + $0x3a] sm:$0xff]  ;;  %v14005_v47 = vld [vmem:[#allocation4 + $0x4a] sm:$0xff] }
 0x3a2   : > { %v13959_v40 = vpop.permute.xlu0 %10328  ;;  %10383 = vrot.lane.b32.xlu1 %v13887_v37, %s12108_s28  ;;  %v2452_v48 = vsel %vm2431_vm10, %v2419_v60, %v10035_v21  ;;  %v2453_v28 = vsel %vm2431_vm10, %v2420_v0, %v10036_v14  ;;  %v13988_v43 = vpack.i.bf16 %v3083_v39, %v3082_v57  ;;  %v2475_v1 = vpack.c.bf16 %v2455_v19, %v2454_v32  ;;  %v8355_v14 = vld [vmem:[#allocation4 + $0x50] sm:$0xff]  ;;  %v913_v52 = vld [vmem:[#allocation2 + $0x128] sm:$0xff] }
 0x3a3   : > { %19890 = vst [vmem:[#allocation81_spill] sm:$0xff] %v13959_v40  ;;  %v2474_v46 = vpack.c.bf16 %v2453_v28, %v2452_v48  ;;  %v10627_v2 = vpack.i.bf16 %v3178_v30, %v3177_v10  ;;  %v8132_v12 = vmax.f32 %v8068_v49, %v13998_v51  ;;  %v8195_v32 = vmax.f32 %v8131_v55, %v13969_v61  ;;  %v3087_v60 = vld [vmem:[#allocation3 + $0xcc] sm:$0xff] }
 0x3a4   : > { %v13986_v18 = vpop.permute.xlu1 %10088  ;;  %v8319_v0 = vmax.f32 %v13861_v36, %v13839_v63  ;;  %v8320_v57 = vmax.f32 %v8256_v16, %v13849_v6  ;;  %v8257_v48 = vmax.f32 %v8193_v4, %v13947_v3  ;;  %v8133_v28 = vmax.f32 %v8069_v56, %v14005_v47  ;;  %v3090_v63 = vld [vmem:[#allocation3 + $0xf4] sm:$0xff]  ;;  %v14033_v56 = vld [vmem:[#allocation4 + $0x60] sm:$0xff] }
 0x3a5   : > { %10618 = vrot.lane.b32.xlu0 %v10617_v33, %s12103_s21  ;;  %v8194_v33 = vmax.f32 %v13875_v44, %v13945_v53  ;;  %v13995_v42 = vpop.f32.mrb[0].mxu1  ;;  %9358 = vmatprep.mubr.msk.bf16.mxu1 %vm2507_vm11, %v2474_v46  ;;  %v3181_v44 = vld [vmem:[#allocation3 + $0xc2] sm:$0xff]  ;;  %v14021_v49 = vpack.i.bf16 %v3087_v60, %v3086_v27  ;;  %v3182_v46 = vld [vmem:[#allocation3 + $0xca] sm:$0xff]  ;;  %v8196_v29 = vmax.f32 %v8132_v12, %v8355_v14 }
 0x3a6   : > { %v13993_v7 = vpop.permute.xlu0 %10338  ;;  %19893 = vst [vmem:[#allocation83_spill] sm:$0xff] %v13995_v42  ;;  %10393 = vrot.lane.b32.xlu1 %v13988_v43, %s12108_s28  ;;  %v14002_v21 = vpop.f32.mrb[1].mxu1  ;;  %9359 = vmatmul.mubr.msk.bf16.gmra.mrb[20].mxu1 %vm2507_vm11, %v2475_v1  ;;  %v10637_v30 = vpack.i.bf16 %v3182_v46, %v3181_v44  ;;  %v8384_v6 = vmax.f32 %v8319_v0, %v13935_v9  ;;  %v14028_v16 = vld [vmem:[#allocation4 + $0x51] sm:$0xff]  ;;  %v3094_v60 = vld [vmem:[#allocation3 + $0x124] sm:$0xff] }
 0x3a7   : > { %19892 = vst [vmem:[#allocation82_spill] sm:$0xff] %v13993_v7  ;;  %19894 = vst [vmem:[#allocation84_spill] sm:$0xff] %v14002_v21  ;;  %v14010_v19 = vpop.f32.mrb[2].mxu1  ;;  %v8258_v39 = vmax.f32 %v8194_v33, %v13949_v15  ;;  %v8385_v36 = vmax.f32 %v8320_v57, %v13945_v53  ;;  %v8259_v4 = vmax.f32 %v8195_v32, %v13971_v34  ;;  %v3091_v33 = vld [vmem:[#allocation3 + $0xfc] sm:$0xff]  ;;  %v8483_v46 = vld [vmem:[#allocation4 + $0x52] sm:$0xff]  ;;  %v10236_v21 = vunpack.i.h.bf16 %v13741_v13 }
 0x3a8   : > { %19895 = vst [vmem:[#allocation85_spill] sm:$0xff] %v14010_v19  ;;  %v14017_v10 = vpop.permute.xlu1 %10093  ;;  %v14019_v50 = vpop.f32.mrb[3].mxu1  ;;  %19897 = vst [vmem:[#allocation87_spill] sm:$0xff] %v14021_v49  ;;  %v8321_v55 = vmax.f32 %v8257_v48, %v13963_v62  ;;  %v8197_v9 = vmax.f32 %v8133_v28, %v14033_v56  ;;  %v14041_v53 = vpack.i.bf16 %v3091_v33, %v3090_v63  ;;  %v14053_v63 = vld [vmem:[#allocation4 + $0x61] sm:$0xff]  ;;  %v912_v40 = vld [vmem:[#allocation2 + $0x120] sm:$0xff] }
 0x3a9   : > { %10628 = vrot.lane.b32.xlu0 %v10627_v2, %s12103_s21  ;;  %19896 = vst [vmem:[#allocation86_spill] sm:$0xff] %v14019_v50  ;;  %v8070_v2 = vmax.f32 %v8355_v14, %v14028_v16  ;;  %v8322_v44 = vmax.f32 %v8258_v39, %v13998_v51  ;;  %v8260_v12 = vmax.f32 %v8196_v29, %v14028_v16  ;;  %v10136_v39 = vunpack.i.h.bf16 %v13608_v8  ;;  %v14144_v19 = vld [vmem:[#allocation3 + $0xa8] sm:$0xff] }
 0x3aa   : > { %v14024_v1 = vpop.permute.xlu0 %10348  ;;  %10403 = vrot.lane.b32.xlu1 %v14021_v49, %s12108_s28  ;;  %19899 = vst [vmem:[#allocation89_spill] sm:$0xff] %v14041_v53  ;;  %v8448_v0 = vmax.f32 %v8384_v6, %v13947_v3  ;;  %v8449_v57 = vmax.f32 %v8385_v36, %v13949_v15  ;;  %v8386_v48 = vmax.f32 %v8321_v55, %v13969_v61  ;;  %v10135_v29 = vunpack.i.l.bf16 %v13608_v8  ;;  %v3095_v3 = vld [vmem:[#allocation3 + $0x12c] sm:$0xff]  ;;  %v3098_v8 = vld [vmem:[#allocation3 + $0x154] sm:$0xff] }
 0x3ab   : > { %19898 = vst [vmem:[#allocation88_spill] sm:$0xff] %v14024_v1  ;;  %v8387_v28 = vmax.f32 %v8322_v44, %v8355_v14  ;;  %v8357_v15 = vld [vmem:[#allocation4 + $0x68] sm:$0xff]  ;;  %v8134_v6 = vmax.f32 %v8070_v2, %v8483_v46  ;;  %v8261_v61 = vmax.f32 %v8197_v9, %v14053_v63  ;;  %v10141_v36 = vunpack.i.h.bf16 %v13626_v25  ;;  %v19941_v49 = vld [vmem:[#allocation29_spill] sm:$0xff] }
 0x3ac   : > { %v14039_v27 = vpop.permute.xlu1 %10113  ;;  %v10140_v14 = vunpack.i.l.bf16 %v13626_v25  ;;  %v8324_v55 = vmax.f32 %v8260_v12, %v8483_v46  ;;  %v8450_v2 = vmax.f32 %v8386_v48, %v13971_v34  ;;  %v3103_v48 = vld [vmem:[#allocation3 + $0x18] sm:$0xff] }
 0x3ad   : > { %10638 = vrot.lane.b32.xlu0 %v10637_v30, %s12103_s21  ;;  %v8323_v30 = vmax.f32 %v8259_v4, %v14005_v47  ;;  %v14064_v4 = vpack.i.bf16 %v3095_v3, %v3094_v60  ;;  %v8451_v25 = vmax.f32 %v8387_v28, %v14028_v16  ;;  %v14083_v60 = vld [vmem:[#allocation4 + $0x69] sm:$0xff]  ;;  %v3099_v16 = vld [vmem:[#allocation3 + $0x15c] sm:$0xff] }
 0x3ae   : > { %v14045_v32 = vpop.permute.xlu0 %10358  ;;  %10413 = vrot.lane.b32.xlu1 %v14041_v53, %s12108_s28  ;;  %v14081_v12 = vmax.f32 %v8324_v55, %v8357_v15  ;;  %v14085_v3 = vld [vmem:[#allocation4 + $0x62] sm:$0xff]  ;;  %v14098_v50 = vpack.i.bf16 %v3099_v16, %v3098_v8 }
 0x3af   : > { %19900 = vst [vmem:[#allocation90_spill] sm:$0xff] %v14045_v32  ;;  %19901 = vst [vmem:[#allocation91_spill] sm:$0xff] %v14064_v4  ;;  %v14069_v32 = vmax.f32 %v8448_v0, %v13963_v62  ;;  %v14079_v9 = vmax.f32 %v8323_v30, %v14033_v56  ;;  %v8071_v62 = vmax.f32 %v14033_v56, %v14053_v63  ;;  %v12056_v0 = vld [vmem:[#allocation2 + $0x138] sm:$0xff]  ;;  %v3104_v28 = vld [vmem:[#allocation3 + $0x20] sm:$0xff] }
 0x3b0   : > { %v14062_v33 = vpop.permute.xlu1 %10118  ;;  %v8198_v30 = vmax.f32 %v8134_v6, %v8357_v15  ;;  %v8325_v55 = vmax.f32 %v8261_v61, %v14085_v3  ;;  %19903 = vst [vmem:[#allocation93_spill] sm:$0xff] %v14098_v50  ;;  %v14108_v61 = vmax.f32 %v8450_v2, %v14005_v47  ;;  %v3197_v8 = vld [vmem:[#allocation3 + $0x182] sm:$0xff]  ;;  %v3198_v6 = vld [vmem:[#allocation3 + $0x18a] sm:$0xff] }
 0x3b1   : > { %10648 = vrot.lane.b32.xlu0 %v13682_v23, %s12103_s21  ;;  %v14072_v23 = vmax.f32 %v8449_v57, %v13998_v51  ;;  %v12055_v51 = vld [vmem:[#allocation2 + $0x140] sm:$0xff]  ;;  %v2227_v57 = vsel %vm426_vm0, %v12056_v0, %v10135_v29  ;;  %v10101_v29 = vunpack.i.h.bf16 %v13536_v54  ;;  %v14114_v0 = vmax.f32 %v8451_v25, %v8483_v46 }
 0x3b2   : > { %v14066_v44 = vpop.permute.xlu0 %10368  ;;  %10423 = vrot.lane.b32.xlu1 %v14064_v4, %s12108_s28  ;;  %v2228_v34 = vsel %vm426_vm0, %v12055_v51, %v10136_v39  ;;  %v8072_v39 = vmax.f32 %v8357_v15, %v14083_v60  ;;  %19905 = vst [vmem:[#allocation95_spill] sm:$0xff] %v14108_v61  ;;  %v3107_v15 = vld [vmem:[#allocation3 + $0x48] sm:$0xff]  ;;  %v14130_v46 = vmax.f32 %v8198_v30, %v14083_v60  ;;  %v10106_v25 = vunpack.i.h.bf16 %v13552_v58  ;;  %v19938_v4 = vld [vmem:[#allocation26_spill] sm:$0xff] }
 0x3b3   : > { %19902 = vst [vmem:[#allocation92_spill] sm:$0xff] %v14066_v44  ;;  %v2260_v44 = vsel %vm2233_vm4, %v2227_v57, %v10140_v14  ;;  %v2261_v1 = vsel %vm2233_vm4, %v2228_v34, %v10141_v36  ;;  %v14110_v14 = vld [vmem:[#allocation4 + $0x78] sm:$0xff]  ;;  %v10442_v36 = vpack.i.bf16 %v3104_v28, %v3103_v48  ;;  %v3108_v34 = vld [vmem:[#allocation3 + $0x50] sm:$0xff]  ;;  %19906 = vst [vmem:[#allocation96_spill] sm:$0xff] %v14114_v0 }
 0x3b4   : > { %v14096_v56 = vpop.permute.xlu1 %10123  ;;  %v14119_v57 = vmax.f32 %v8071_v62, %v14085_v3  ;;  %v2294_v2 = vsel %vm2266_vm5, %v2261_v1, %v10101_v29  ;;  %v14127_v48 = vld [vmem:[#allocation4 + $0x6a] sm:$0xff]  ;;  %v10105_v62 = vunpack.i.l.bf16 %v13552_v58  ;;  %v14135_v1 = vmax.f32 %v8325_v55, %v14110_v14 }
 0x3b5   : > { %10658 = vrot.lane.b32.xlu0 %v13686_v59, %s12103_s21  ;;  %v10100_v59 = vunpack.i.l.bf16 %v13536_v54  ;;  %v10111_v29 = vunpack.i.h.bf16 %v13572_v41  ;;  %v10677_v30 = vpack.i.bf16 %v3198_v6, %v3197_v8  ;;  %v10452_v16 = vpack.i.bf16 %v3108_v34, %v3107_v15  ;;  %v14146_v58 = vld [vmem:[#allocation3 + $0xb0] sm:$0xff] }
 0x3b6   : > { %v14103_v51 = vpop.permute.xlu0 %10378  ;;  %10433 = vrot.lane.b32.xlu1 %v14098_v50, %s12108_s28  ;;  %v10235_v55 = vunpack.i.l.bf16 %v13741_v13  ;;  %v2327_v42 = vsel %vm2299_vm6, %v2294_v2, %v10106_v25  ;;  %v10240_v6 = vunpack.i.l.bf16 %v13761_v31  ;;  %v10001_v8 = vunpack.i.h.bf16 %v13789_v22  ;;  %v3139_v53 = vld [vmem:[#allocation3 + $0x49] sm:$0xff] }
 0x3b7   : > { %19904 = vst [vmem:[#allocation94_spill] sm:$0xff] %v14103_v51  ;;  %v2293_v47 = vsel %vm2266_vm5, %v2260_v44, %v10100_v59  ;;  %v3111_v44 = vld [vmem:[#allocation3 + $0x78] sm:$0xff]  ;;  %v10110_v59 = vunpack.i.l.bf16 %v13572_v41  ;;  %v3112_v51 = vld [vmem:[#allocation3 + $0x80] sm:$0xff]  ;;  %v10241_v41 = vunpack.i.h.bf16 %v13761_v31  ;;  %v10000_v15 = vunpack.i.l.bf16 %v13789_v22 }
 0x3b8   : > { %v10144_v28 = vpop.permute.xlu1 %10143  ;;  %v10006_v34 = vunpack.i.h.bf16 %v13800_v11  ;;  %v10005_v13 = vunpack.i.l.bf16 %v13800_v11  ;;  %v10472_v2 = vpack.i.bf16 %v14146_v58, %v14144_v19  ;;  %v2360_v25 = vsel %vm2332_vm7, %v2327_v42, %v10111_v29 }
 0x3b9   : > { %10668 = vrot.lane.b32.xlu0 %v13689_v17, %s12103_s21  ;;  %v14138_v17 = vmax.f32 %v8072_v39, %v14127_v48  ;;  %v2326_v39 = vsel %vm2299_vm6, %v2293_v47, %v10105_v62  ;;  %v10462_v47 = vpack.i.bf16 %v3112_v51, %v3111_v44  ;;  %v10146_v31 = vunpack.i.h.bf16 %v10144_v28 }
 0x3ba   : > { %v14142_v54 = vpop.permute.xlu0 %10388  ;;  %10443 = vrot.lane.b32.xlu1 %v10442_v36, %s12109_s29  ;;  %v2359_v36 = vsel %vm2332_vm7, %v2326_v39, %v10110_v59  ;;  %v10145_v62 = vunpack.i.l.bf16 %v10144_v28  ;;  %v2226_v42 = vsel %vm426_vm0, %v913_v52, %v10001_v8  ;;  %v2225_v28 = vsel %vm426_vm0, %v912_v40, %v10000_v15 }
 0x3bb   : > { %19907 = vst [vmem:[#allocation97_spill] sm:$0xff] %v14142_v54  ;;  %v2392_v22 = vsel %vm2365_vm8, %v2359_v36, %v10235_v55  ;;  %v10246_v44 = vunpack.i.h.bf16 %v13780_v5  ;;  %v2258_v29 = vsel %vm2233_vm4, %v2225_v28, %v10005_v13  ;;  %v10116_v40 = vunpack.i.h.bf16 %v14039_v27 }
 0x3bc   : > { %v10149_v54 = vpop.permute.xlu1 %10148  ;;  %v2425_v19 = vsel %vm2398_vm9, %v2392_v22, %v10240_v6  ;;  %v2291_v58 = vsel %vm2266_vm5, %v2258_v29, %v10145_v62  ;;  %v10121_v6 = vunpack.i.h.bf16 %v14062_v33  ;;  %v10120_v8 = vunpack.i.l.bf16 %v14062_v33 }
 0x3bd   : > { %10678 = vrot.lane.b32.xlu0 %v10677_v30, %s12103_s21  ;;  %v2393_v30 = vsel %vm2365_vm8, %v2360_v25, %v10236_v21  ;;  %v10151_v11 = vunpack.i.h.bf16 %v10149_v54  ;;  %v10150_v45 = vunpack.i.l.bf16 %v10149_v54  ;;  %v10245_v21 = vunpack.i.l.bf16 %v13780_v5  ;;  %v14200_v25 = vld [vmem:[#allocation4 + $0x80] sm:$0xff] }
 0x3be   : > { %v14164_v7 = vpop.permute.xlu0 %10398  ;;  %10453 = vrot.lane.b32.xlu1 %v10452_v16, %s12109_s29  ;;  %v2426_v51 = vsel %vm2398_vm9, %v2393_v30, %v10241_v41  ;;  %v2259_v54 = vsel %vm2233_vm4, %v2226_v42, %v10006_v34  ;;  %v10126_v13 = vunpack.i.h.bf16 %v14096_v56  ;;  %v3119_v30 = vld [vmem:[#allocation3 + $0xd8] sm:$0xff] }
 0x3bf   : > { %19908 = vst [vmem:[#allocation98_spill] sm:$0xff] %v14164_v7  ;;  %v2292_v59 = vsel %vm2266_vm5, %v2259_v54, %v10146_v31  ;;  %v2324_v41 = vsel %vm2299_vm6, %v2291_v58, %v10150_v45  ;;  %v2458_v33 = vsel %vm2431_vm10, %v2425_v19, %v10245_v21  ;;  %v2459_v31 = vsel %vm2431_vm10, %v2426_v51, %v10246_v44 }
 0x3c0   : > { %v10154_v16 = vpop.permute.xlu1 %10153  ;;  %v2325_v5 = vsel %vm2299_vm6, %v2292_v59, %v10151_v11  ;;  %v8422_v11 = vld [vmem:[#allocation4 + $0x79] sm:$0xff]  ;;  %v8199_v19 = vmax.f32 %v14119_v57, %v14110_v14  ;;  %v8200_v54 = vmax.f32 %v14138_v17, %v14200_v25  ;;  %v2477_v58 = vpack.c.bf16 %v2459_v31, %v2458_v33  ;;  %v3123_v17 = vld [vmem:[#allocation3 + $0x108] sm:$0xff] }
 0x3c1   : > { %10688 = vrot.lane.b32.xlu0 %v13684_v20, %s12104_s22  ;;  %v10156_v55 = vunpack.i.h.bf16 %v10154_v16  ;;  %v10155_v52 = vunpack.i.l.bf16 %v10154_v16  ;;  %v10115_v20 = vunpack.i.l.bf16 %v14039_v27  ;;  %v10125_v27 = vunpack.i.l.bf16 %v14096_v56  ;;  %v3120_v56 = vld [vmem:[#allocation3 + $0xe0] sm:$0xff]  ;;  %v19914_v16 = vld [vmem:[#allocation65_spill] sm:$0xff] }
 0x3c2   : > { %v14181_v39 = vpop.permute.xlu0 %10408  ;;  %10463 = vrot.lane.b32.xlu1 %v10462_v47, %s12109_s29  ;;  %v8073_v51 = vmax.f32 %v14110_v14, %v8422_v11  ;;  %v10211_v57 = vunpack.i.h.bf16 %v19914_v16  ;;  %v10210_v14 = vunpack.i.l.bf16 %v19914_v16 }
 0x3c3   : > { %19909 = vst [vmem:[#allocation99_spill] sm:$0xff] %v14181_v39  ;;  %v2357_v15 = vsel %vm2332_vm7, %v2324_v41, %v10155_v52  ;;  %v2358_v34 = vsel %vm2332_vm7, %v2325_v5, %v10156_v55  ;;  %v14230_v55 = vld [vmem:[#allocation4 + $0x81] sm:$0xff]  ;;  %v3124_v41 = vld [vmem:[#allocation3 + $0x110] sm:$0xff]  ;;  %v19917_v5 = vmax.f32 %v14079_v9, %v14053_v63  ;;  %v918_v9 = vld [vmem:[#allocation2 + $0x168] sm:$0xff] }
 0x3c4   : > { %v2390_v45 = vsel %vm2365_vm8, %v2357_v15, %v10115_v20  ;;  %v2391_v36 = vsel %vm2365_vm8, %v2358_v34, %v10116_v40  ;;  %v14198_v47 = vpop.permute.xlu1 %10173  ;;  %v14232_v52 = vld [vmem:[#allocation4 + $0x7a] sm:$0xff]  ;;  %v14246_v15 = vld [vmem:[#allocation4 + $0x90] sm:$0xff]  ;;  %v8326_v34 = vmax.f32 %v14130_v46, %v14127_v48  ;;  %v8264_v33 = vmax.f32 %v8200_v54, %v14230_v55 }
 0x3c5   : > { %10698 = vrot.lane.b32.xlu0 %v13791_v38, %s12104_s22  ;;  %19910 = vst [vmem:[#allocation100_spill] sm:$0xff] %v14198_v47  ;;  %v2423_v38 = vsel %vm2398_vm9, %v2390_v45, %v10120_v8  ;;  %v2424_v22 = vsel %vm2398_vm9, %v2391_v36, %v10121_v6  ;;  %v19915_v40 = vld [vmem:[#allocation66_spill] sm:$0xff]  ;;  %v14243_v6 = vmax.f32 %v19917_v5, %v14085_v3  ;;  %v919_v3 = vld [vmem:[#allocation2 + $0x170] sm:$0xff]  ;;  %v14301_v5 = vld [vmem:[#allocation4 + $0xa8] sm:$0xff] }
 0x3c6   : > { %v14204_v62 = vpop.permute.xlu0 %10418  ;;  %10473 = vrot.lane.b32.xlu1 %v10472_v2, %s12109_s29  ;;  %v2456_v42 = vsel %vm2431_vm10, %v2423_v38, %v10125_v27  ;;  %v2457_v28 = vsel %vm2431_vm10, %v2424_v22, %v10126_v13  ;;  %v19912_v2 = vmax.f32 %v14081_v12, %v14083_v60  ;;  %v10216_v20 = vunpack.i.h.bf16 %v19915_v40  ;;  %v14252_v27 = vld [vmem:[#allocation4 + $0x98] sm:$0xff]  ;;  %v14371_v47 = vld [vmem:[#allocation4 + $0xc9] sm:$0xff] }
 0x3c7   : > { %19911 = vst [vmem:[#allocation101_spill] sm:$0xff] %v14204_v62  ;;  %v2476_v44 = vpack.c.bf16 %v2457_v28, %v2456_v42  ;;  %v10215_v12 = vunpack.i.l.bf16 %v19915_v40  ;;  %19918 = vst [vmem:[#allocation66_spill] sm:$0xff] %v14243_v6  ;;  %v8454_v8 = vmax.f32 %v14135_v1, %v8422_v11  ;;  %v8263_v13 = vmax.f32 %v8199_v19, %v8422_v11  ;;  %v14254_v45 = vld [vmem:[#allocation4 + $0x91] sm:$0xff]  ;;  %v14256_v36 = vld [vmem:[#allocation4 + $0x99] sm:$0xff] }
 0x3c8   : > { %v14222_v29 = vmax.f32 %v19912_v2, %v14127_v48  ;;  %v14228_v59 = vpop.permute.xlu1 %10193  ;;  %v8137_v63 = vmax.f32 %v8073_v51, %v14232_v52  ;;  %v19919_v1 = vld [vmem:[#allocation70_spill] sm:$0xff]  ;;  %v8074_v31 = vmax.f32 %v14200_v25, %v14230_v55  ;;  %v8075_v48 = vmax.f32 %v14246_v15, %v14254_v45  ;;  %v14274_v42 = vld [vmem:[#allocation4 + $0x82] sm:$0xff] }
 0x3c9   : > { %10708 = vrot.lane.b32.xlu0 %v13802_v26, %s12104_s22  ;;  %v10482_v26 = vpack.i.bf16 %v3120_v56, %v3119_v30  ;;  %9362 = vmatprep.mubr.msk.bf16.mxu1 %vm2507_vm11, %v2476_v44  ;;  %v8076_v46 = vmax.f32 %v14252_v27, %v14256_v36  ;;  %v2232_v38 = vsel %vm426_vm0, %v919_v3, %v10211_v57  ;;  %v3127_v44 = vld [vmem:[#allocation3 + $0x138] sm:$0xff]  ;;  %v3128_v2 = vld [vmem:[#allocation3 + $0x140] sm:$0xff]  ;;  %v10091_v6 = vunpack.i.h.bf16 %v13986_v18 }
 0x3ca   : > { %19913 = vst [vmem:[#allocation102_spill] sm:$0xff] %v14222_v29  ;;  %v14236_v60 = vpop.permute.xlu0 %10428  ;;  %9363 = vmatmul.mubr.msk.bf16.gmra.mrb[24].mxu1 %vm2507_vm11, %v2477_v58  ;;  %v2231_v22 = vsel %vm426_vm0, %v918_v9, %v10210_v14  ;;  %v10492_v56 = vpack.i.bf16 %v3124_v41, %v3123_v17  ;;  %v2265_v19 = vsel %vm2233_vm4, %v2232_v38, %v10216_v20  ;;  %v19922_v57 = vld [vmem:[#allocation62_spill] sm:$0xff]  ;;  %v14321_v38 = vld [vmem:[#allocation4 + $0xc1] sm:$0xff]  ;;  %v3230_v29 = vld [vmem:[#allocation3 + $0x18b] sm:$0xff] }
 0x3cb   : > { %19916 = vst [vmem:[#allocation65_spill] sm:$0xff] %v14236_v60  ;;  %10483 = vrot.lane.b32.xlu1 %v10482_v26, %s12109_s29  ;;  %v2264_v28 = vsel %vm2233_vm4, %v2231_v22, %v10215_v12  ;;  %v14281_v54 = vmax.f32 %v8326_v34, %v14200_v25  ;;  %v14284_v16 = vmax.f32 %v8454_v8, %v14232_v52  ;;  %v10181_v14 = vunpack.i.h.bf16 %v19922_v57  ;;  %v14290_v40 = vld [vmem:[#allocation4 + $0x92] sm:$0xff]  ;;  %v14292_v20 = vld [vmem:[#allocation4 + $0x9a] sm:$0xff]  ;;  %v19923_v25 = vld [vmem:[#allocation72_spill] sm:$0xff] }
 0x3cc   : > { %v14270_v30 = vpop.permute.xlu1 %10198  ;;  %v10180_v26 = vunpack.i.l.bf16 %v19922_v57  ;;  %v8327_v58 = vmax.f32 %v8263_v13, %v14232_v52  ;;  %v8201_v12 = vmax.f32 %v8137_v63, %v14246_v15  ;;  %v8328_v17 = vmax.f32 %v8264_v33, %v14274_v42  ;;  %v14303_v8 = vld [vmem:[#allocation4 + $0xb0] sm:$0xff]  ;;  %19924 = vst [vmem:[#allocation62_spill] sm:$0xff] %v14321_v38  ;;  %v19925_v22 = vld [vmem:[#allocation63_spill] sm:$0xff]  ;;  %v19933_v60 = vld [vmem:[#allocation64_spill] sm:$0xff] }
 0x3cd   : > { %10718 = vrot.lane.b32.xlu0 %v19919_v1, %s12104_s22  ;;  %19921 = vst [vmem:[#allocation103_spill] sm:$0xff] %v14284_v16  ;;  %v14299_v41 = vmax.f32 %v8074_v31, %v14274_v42  ;;  %v14305_v34 = vld [vmem:[#allocation4 + $0xa9] sm:$0xff]  ;;  %v14308_v52 = vmax.f32 %v8075_v48, %v14290_v40  ;;  %v14311_v13 = vmax.f32 %v8076_v46, %v14292_v20  ;;  %v14317_v33 = vld [vmem:[#allocation4 + $0xb1] sm:$0xff]  ;;  %v14319_v31 = vld [vmem:[#allocation4 + $0xc0] sm:$0xff]  ;;  %v10185_v46 = vunpack.i.l.bf16 %v19925_v22 }
 0x3ce   : > { %v14278_v51 = vpop.permute.xlu0 %10438  ;;  %v2297_v63 = vsel %vm2266_vm5, %v2264_v28, %v10180_v26  ;;  %v2298_v9 = vsel %vm2266_vm5, %v2265_v19, %v10181_v14  ;;  %v10502_v1 = vpack.i.bf16 %v3128_v2, %v3127_v44  ;;  %v8077_v48 = vmax.f32 %v14301_v5, %v14305_v34  ;;  %v3131_v19 = vld [vmem:[#allocation3 + $0x168] sm:$0xff]  ;;  %v3132_v14 = vld [vmem:[#allocation3 + $0x170] sm:$0xff] }
 0x3cf   : > { %19920 = vst [vmem:[#allocation70_spill] sm:$0xff] %v14278_v51  ;;  %10493 = vrot.lane.b32.xlu1 %v10492_v56, %s12109_s29  ;;  %v10186_v56 = vunpack.i.h.bf16 %v19925_v22  ;;  %v8078_v44 = vmax.f32 %v14303_v8, %v14317_v33  ;;  %v8079_v2 = vmax.f32 %v14319_v31, %v14321_v38  ;;  %v14341_v22 = vmax.f32 %v8327_v58, %v14246_v15  ;;  %v3136_v15 = vld [vmem:[#allocation3 + $0x21] sm:$0xff] }
 0x3d0   : > { %v14315_v3 = vpop.permute.xlu1 %10203  ;;  %v14344_v11 = vmax.f32 %v8328_v17, %v14252_v27  ;;  %v14347_v21 = vmax.f32 %v8201_v12, %v14254_v45  ;;  %v14359_v17 = vld [vmem:[#allocation4 + $0xb2] sm:$0xff]  ;;  %v10191_v62 = vunpack.i.h.bf16 %v19933_v60  ;;  %v14373_v58 = vld [vmem:[#allocation4 + $0xc2] sm:$0xff]  ;;  %v9506_v16 = vunpack.i.h.bf16 %v19941_v49 }
 0x3d1   : > { %10728 = vrot.lane.b32.xlu0 %v19923_v25, %s12104_s22  ;;  %v14329_v28 = vpop.f32.mrb[4].mxu1  ;;  %v3135_v25 = vld [vmem:[#allocation3 + $0x19] sm:$0xff]  ;;  %19932 = vst [vmem:[#allocation106_spill] sm:$0xff] %v14359_v17  ;;  %19935 = vst [vmem:[#allocation107_spill] sm:$0xff] %v14373_v58  ;;  %v3229_v12 = vld [vmem:[#allocation3 + $0x183] sm:$0xff] }
 0x3d2   : > { %v14327_v57 = vpop.permute.xlu0 %10448  ;;  %19927 = vst [vmem:[#allocation63_spill] sm:$0xff] %v14329_v28  ;;  %v14336_v26 = vpop.f32.mrb[5].mxu1  ;;  %19929 = vst [vmem:[#allocation105_spill] sm:$0xff] %v14344_v11  ;;  %v14349_v28 = vld [vmem:[#allocation4 + $0xaa] sm:$0xff]  ;;  %v916_v38 = vld [vmem:[#allocation2 + $0x150] sm:$0xff] }
 0x3d3   : > { %19926 = vst [vmem:[#allocation72_spill] sm:$0xff] %v14327_v57  ;;  %10503 = vrot.lane.b32.xlu1 %v10502_v1, %s12109_s29  ;;  %19928 = vst [vmem:[#allocation104_spill] sm:$0xff] %v14336_v26  ;;  %v2330_v57 = vsel %vm2299_vm6, %v2297_v63, %v10185_v46  ;;  %v2331_v1 = vsel %vm2299_vm6, %v2298_v9, %v10186_v56  ;;  %v19930_v26 = vld [vmem:[#allocation74_spill] sm:$0xff]  ;;  %v14355_v51 = vpop.f32.mrb[6].mxu1  ;;  %v10190_v63 = vunpack.i.l.bf16 %v19933_v60 }
 0x3d4   : > { %19931 = vst [vmem:[#allocation74_spill] sm:$0xff] %v14355_v51  ;;  %v10219_v9 = vpop.permute.xlu1 %10218  ;;  %v14365_v56 = vpop.f32.mrb[7].mxu1  ;;  %v10512_v46 = vpack.i.bf16 %v3132_v14, %v3131_v19  ;;  %v14369_v51 = vld [vmem:[#allocation4 + $0xc8] sm:$0xff]  ;;  %v14378_v7 = vmax.f32 %v8077_v48, %v14349_v28  ;;  %v14381_v60 = vmax.f32 %v8078_v44, %v14359_v17  ;;  %v14386_v14 = vmax.f32 %v8079_v2, %v14373_v58 }
 0x3d5   : > { %10738 = vrot.lane.b32.xlu0 %v19930_v26, %s12104_s22  ;;  %19934 = vst [vmem:[#allocation64_spill] sm:$0xff] %v14365_v56  ;;  %v19937_v26 = vld [vmem:[#allocation25_spill] sm:$0xff]  ;;  %v2363_v35 = vsel %vm2332_vm7, %v2330_v57, %v10190_v63  ;;  %v2364_v50 = vsel %vm2332_vm7, %v2331_v1, %v10191_v62  ;;  %v9501_v44 = vunpack.i.h.bf16 %v19938_v4  ;;  %v10090_v19 = vunpack.i.l.bf16 %v13986_v18  ;;  %v19939_v2 = vld [vmem:[#allocation76_spill] sm:$0xff] }
 0x3d6   : > { %v14375_v39 = vpop.permute.xlu0 %10458  ;;  %v9496_v56 = vunpack.i.h.bf16 %v19937_v26  ;;  %v9495_v48 = vunpack.i.l.bf16 %v19937_v26  ;;  %v9500_v57 = vunpack.i.l.bf16 %v19938_v4  ;;  %v10096_v62 = vunpack.i.h.bf16 %v14017_v10  ;;  %v3140_v63 = vld [vmem:[#allocation3 + $0x51] sm:$0xff]  ;;  %v3144_v26 = vld [vmem:[#allocation3 + $0x81] sm:$0xff] }
 0x3d7   : > { %19936 = vst [vmem:[#allocation108_spill] sm:$0xff] %v14375_v39  ;;  %10513 = vrot.lane.b32.xlu1 %v10512_v46, %s12109_s29  ;;  %v10522_v39 = vpack.i.bf16 %v3136_v15, %v3135_v25  ;;  %v10095_v1 = vunpack.i.l.bf16 %v14017_v10  ;;  %v10757_v15 = vpack.i.bf16 %v3230_v29, %v3229_v12  ;;  %v3143_v46 = vld [vmem:[#allocation3 + $0x79] sm:$0xff]  ;;  %v10221_v61 = vunpack.i.h.bf16 %v10219_v9  ;;  %v917_v17 = vld [vmem:[#allocation2 + $0x158] sm:$0xff] }
 0x3d8   : > { %v10224_v25 = vpop.permute.xlu1 %10223  ;;  %v10220_v0 = vunpack.i.l.bf16 %v10219_v9  ;;  %v2396_v18 = vsel %vm2365_vm8, %v2363_v35, %v9495_v48  ;;  %v9505_v4 = vunpack.i.l.bf16 %v19941_v49  ;;  %v2230_v29 = vsel %vm426_vm0, %v917_v17, %v10091_v6 }
 0x3d9   : > { %10748 = vrot.lane.b32.xlu0 %v19939_v2, %s12104_s22  ;;  %v2397_v2 = vsel %vm2365_vm8, %v2364_v50, %v9496_v56  ;;  %v10226_v10 = vunpack.i.h.bf16 %v10224_v25  ;;  %v10225_v11 = vunpack.i.l.bf16 %v10224_v25  ;;  %v2229_v12 = vsel %vm426_vm0, %v916_v38, %v10090_v19 }
 0x3da   : > { %v14401_v58 = vpop.permute.xlu0 %10468  ;;  %v10532_v9 = vpack.i.bf16 %v3140_v63, %v3139_v53  ;;  %v10542_v35 = vpack.i.bf16 %v3144_v26, %v3143_v46  ;;  %v2262_v50 = vsel %vm2233_vm4, %v2229_v12, %v10095_v1  ;;  %v2263_v56 = vsel %vm2233_vm4, %v2230_v29, %v10096_v62 }
 0x3db   : > { %19940 = vst [vmem:[#allocation25_spill] sm:$0xff] %v14401_v58  ;;  %10523 = vrot.lane.b32.xlu1 %v10522_v39, %s12102_s20  ;;  %v2429_v49 = vsel %vm2398_vm9, %v2396_v18, %v9500_v57  ;;  %v2430_v58 = vsel %vm2398_vm9, %v2397_v2, %v9501_v44  ;;  %v2296_v25 = vsel %vm2266_vm5, %v2263_v56, %v10221_v61  ;;  %v10196_v53 = vunpack.i.h.bf16 %v14228_v59  ;;  %v3147_v2 = vld [vmem:[#allocation3 + $0xa9] sm:$0xff] }
 0x3dc   : > { %v10229_v48 = vpop.permute.xlu1 %10228  ;;  %v2295_v39 = vsel %vm2266_vm5, %v2262_v50, %v10220_v0  ;;  %v10195_v19 = vunpack.i.l.bf16 %v14228_v59  ;;  %v2329_v62 = vsel %vm2299_vm6, %v2296_v25, %v10226_v10  ;;  %v10201_v44 = vunpack.i.h.bf16 %v14270_v30  ;;  %v3148_v10 = vld [vmem:[#allocation3 + $0xb1] sm:$0xff] }
 0x3dd   : > { %10758 = vrot.lane.b32.xlu0 %v10757_v15, %s12104_s22  ;;  %v10231_v6 = vunpack.i.h.bf16 %v10229_v48  ;;  %v10230_v17 = vunpack.i.l.bf16 %v10229_v48  ;;  %v2328_v1 = vsel %vm2299_vm6, %v2295_v39, %v10225_v11  ;;  %v10200_v61 = vunpack.i.l.bf16 %v14270_v30  ;;  %v14453_v25 = vld [vmem:[#allocation4 + $0xca] sm:$0xff] }
 0x3de   : > { %v14417_v38 = vpop.permute.xlu0 %10478  ;;  %v10206_v59 = vunpack.i.h.bf16 %v14315_v3  ;;  %v10205_v11 = vunpack.i.l.bf16 %v14315_v3  ;;  %v2463_v29 = vsel %vm2431_vm10, %v2430_v58, %v9506_v16  ;;  %v19946_v56 = vmax.f32 %v14308_v52, %v14301_v5  ;;  %v14467_v52 = vld [vmem:[#allocation4 + $0xd9] sm:$0xff] }
 0x3df   : > { %19942 = vst [vmem:[#allocation26_spill] sm:$0xff] %v14417_v38  ;;  %10533 = vrot.lane.b32.xlu1 %v10532_v9, %s12102_s20  ;;  %v2361_v0 = vsel %vm2332_vm7, %v2328_v1, %v10230_v17  ;;  %v2362_v57 = vsel %vm2332_vm7, %v2329_v62, %v10231_v6  ;;  %v19945_v9 = vmax.f32 %v14299_v41, %v14252_v27  ;;  %v14465_v41 = vld [vmem:[#allocation4 + $0xe0] sm:$0xff]  ;;  %v15922_v38 = vld [vmem:[#allocation3 + $0xf3] sm:$0xff] }
 0x3e0   : > { %v2394_v15 = vsel %vm2365_vm8, %v2361_v0, %v10195_v19  ;;  %v2395_v63 = vsel %vm2365_vm8, %v2362_v57, %v10196_v53  ;;  %v14434_v46 = vpop.permute.xlu1 %10253  ;;  %v8267_v48 = vmax.f32 %v19946_v56, %v14305_v34  ;;  %v19947_v58 = vmax.f32 %v14311_v13, %v14303_v8  ;;  %v3151_v1 = vld [vmem:[#allocation3 + $0xd9] sm:$0xff]  ;;  %v3152_v62 = vld [vmem:[#allocation3 + $0xe1] sm:$0xff]  ;;  %20267 = vst [vmem:[#allocation375_spill] sm:$0xff] %v15922_v38 }
 0x3e1   : > { %10768 = vrot.lane.b32.xlu0 %v13870_v24, %s12110_s24  ;;  %19943 = vst [vmem:[#allocation76_spill] sm:$0xff] %v14434_v46  ;;  %v2427_v30 = vsel %vm2398_vm9, %v2394_v15, %v10200_v61  ;;  %v2428_v18 = vsel %vm2398_vm9, %v2395_v63, %v10201_v44  ;;  %v2462_v24 = vsel %vm2431_vm10, %v2429_v49, %v9505_v4  ;;  %v14455_v4 = vld [vmem:[#allocation4 + $0xd8] sm:$0xff]  ;;  %v14469_v49 = vld [vmem:[#allocation4 + $0xe1] sm:$0xff]  ;;  %v15916_v46 = vld [vmem:[#allocation3 + $0x6b] sm:$0xff] }
 0x3e2   : > { %v14436_v26 = vpop.permute.xlu0 %10488  ;;  %v2460_v3 = vsel %vm2431_vm10, %v2427_v30, %v10205_v11  ;;  %v2461_v12 = vsel %vm2431_vm10, %v2428_v18, %v10206_v59  ;;  %v8266_v50 = vmax.f32 %v19945_v9, %v14256_v36  ;;  %v8205_v27 = vmax.f32 %v14378_v7, %v14319_v31  ;;  %v14511_v63 = vld [vmem:[#allocation4 + $0xda] sm:$0xff]  ;;  %20264 = vst [vmem:[#allocation372_spill] sm:$0xff] %v15916_v46  ;;  %v16061_v46 = vld [vmem:[#allocation3 + $0x183] sm:$0xff] }
 0x3e3   : > { %19944 = vst [vmem:[#allocation29_spill] sm:$0xff] %v14436_v26  ;;  %10543 = vrot.lane.b32.xlu1 %v10542_v35, %s12102_s20  ;;  %v2478_v16 = vpack.c.bf16 %v2461_v12, %v2460_v3  ;;  %v8268_v35 = vmax.f32 %v19947_v58, %v14317_v33  ;;  %v19948_v39 = vmax.f32 %v14369_v51, %v14371_v47  ;;  %v3155_v3 = vld [vmem:[#allocation3 + $0x109] sm:$0xff]  ;;  %v3156_v12 = vld [vmem:[#allocation3 + $0x111] sm:$0xff]  ;;  %v19958_v58 = vld [vmem:[#allocation103_spill] sm:$0xff] }
 0x3e4   : > { %v14475_v6 = vpop.permute.xlu1 %10263  ;;  %v10552_v17 = vpack.i.bf16 %v3148_v10, %v3147_v2  ;;  %v2479_v53 = vpack.c.bf16 %v2463_v29, %v2462_v24  ;;  %v8081_v13 = vmax.f32 %v14455_v4, %v14467_v52  ;;  %v8082_v7 = vmax.f32 %v14465_v41, %v14469_v49  ;;  %v8368_v10 = vld [vmem:[#allocation4 + $0xf0] sm:$0xff] }
 0x3e5   : > { %10778 = vrot.lane.b32.xlu0 %v13887_v37, %s12110_s24  ;;  %v8144_v37 = vmax.f32 %v19948_v39, %v14453_v25  ;;  %19949 = vst [vmem:[#allocation109_spill] sm:$0xff] %v14475_v6  ;;  %9366 = vmatprep.mubr.msk.bf16.mxu1 %vm2507_vm11, %v2478_v16  ;;  %v19951_v44 = vmax.f32 %v14281_v54, %v14230_v55  ;;  %v19953_v54 = vld [vmem:[#allocation105_spill] sm:$0xff]  ;;  %v15893_v6 = vld [vmem:[#allocation3 + $0x9a] sm:$0xff] }
 0x3e6   : > { %v14481_v19 = vpop.permute.xlu0 %10498  ;;  %v8329_v0 = vmax.f32 %v14347_v21, %v14290_v40  ;;  %v8206_v57 = vmax.f32 %v14381_v60, %v14369_v51  ;;  %v8207_v59 = vmax.f32 %v14386_v14, %v14455_v4  ;;  %9367 = vmatmul.mubr.msk.bf16.gmra.mrb[28].mxu1 %vm2507_vm11, %v2479_v53  ;;  %v8456_v11 = vmax.f32 %v14341_v22, %v14254_v45  ;;  %v19954_v14 = vld [vmem:[#allocation106_spill] sm:$0xff]  ;;  %v14513_v45 = vld [vmem:[#allocation4 + $0xe2] sm:$0xff] }
 0x3e7   : > { %19950 = vst [vmem:[#allocation110_spill] sm:$0xff] %v14481_v19  ;;  %v14488_v61 = vmax.f32 %v19951_v44, %v14274_v42  ;;  %10553 = vrot.lane.b32.xlu1 %v10552_v17, %s12102_s20  ;;  %v8330_v55 = vmax.f32 %v8266_v50, %v14292_v20  ;;  %v8331_v42 = vmax.f32 %v8267_v48, %v14349_v28  ;;  %v14530_v48 = vld [vmem:[#allocation4 + $0xf9] sm:$0xff]  ;;  %20257 = vst [vmem:[#allocation365_spill] sm:$0xff] %v15893_v6  ;;  %v15975_v6 = vld [vmem:[#allocation3 + $0x123] sm:$0xff] }
 0x3e8   : > { %v19952_v21 = vpack.c.bf16 %v14072_v23, %v14069_v32  ;;  %v8457_v60 = vmax.f32 %v19953_v54, %v14256_v36  ;;  %v8332_v15 = vmax.f32 %v8268_v35, %v19954_v14  ;;  %v8208_v22 = vmax.f32 %v8144_v37, %v14465_v41  ;;  %v14516_v30 = vpop.permute.xlu1 %10273  ;;  %v14519_v32 = vld [vmem:[#allocation4 + $0xf8] sm:$0xff]  ;;  %v19959_v37 = vld [vmem:[#allocation87_spill] sm:$0xff]  ;;  %v19963_v54 = vld [vmem:[#allocation96_spill] sm:$0xff]  ;;  %20282 = vst [vmem:[#allocation388_spill] sm:$0xff] %v15975_v6 }
 0x3e9   : > { %10788 = vrot.lane.b32.xlu0 %v13988_v43, %s12110_s24  ;;  %19955 = vst [vmem:[#allocation105_spill] sm:$0xff] %v14516_v30  ;;  %v10562_v18 = vpack.i.bf16 %v3152_v62, %v3151_v1  ;;  %v19956_v43 = vld [vmem:[#allocation62_spill] sm:$0xff]  ;;  %v8145_v36 = vmax.f32 %v8081_v13, %v14511_v63  ;;  %v8146_v24 = vmax.f32 %v8082_v7, %v14513_v45  ;;  %v16047_v6 = vld [vmem:[#allocation3 + $0x182] sm:$0xff] }
 0x3ea   : > { %9418 = vmatprep.mubr.msk.bf16.mxu1 %vm426_vm0, %v19952_v21  ;;  %v8269_v2 = vmax.f32 %v8205_v27, %v19956_v43  ;;  %v14521_v23 = vld [vmem:[#allocation4 + $0xf1] sm:$0xff]  ;;  %v8394_v9 = vmax.f32 %v8329_v0, %v14301_v5  ;;  %v8270_v50 = vmax.f32 %v8206_v57, %v14371_v47  ;;  %v8271_v56 = vmax.f32 %v8207_v59, %v14467_v52 }
 0x3eb   : > { %v14525_v29 = vpop.permute.xlu0 %10508  ;;  %v8083_v16 = vmax.f32 %v8368_v10, %v14521_v23  ;;  %10563 = vrot.lane.b32.xlu1 %v10562_v18, %s12102_s20  ;;  %v8547_v35 = vpack.c.bf16 %v14488_v61, %v19958_v58  ;;  %v8395_v27 = vmax.f32 %v8330_v55, %v14303_v8  ;;  %v8396_v39 = vmax.f32 %v8331_v42, %v14319_v31  ;;  %v19961_v31 = vld [vmem:[#allocation107_spill] sm:$0xff]  ;;  %v14553_v44 = vld [vmem:[#allocation4 + $0xf2] sm:$0xff] }
 0x3ec   : > { %19957 = vst [vmem:[#allocation106_spill] sm:$0xff] %v14525_v29  ;;  %v8084_v5 = vmax.f32 %v14519_v32, %v14530_v48  ;;  %v14543_v17 = vmax.f32 %v8456_v11, %v14290_v40  ;;  %v14546_v53 = vmax.f32 %v8457_v60, %v14292_v20  ;;  %v8397_v13 = vmax.f32 %v8332_v15, %v14369_v51  ;;  %v14550_v1 = vpop.permute.xlu1 %10283  ;;  %v3159_v40 = vld [vmem:[#allocation3 + $0x139] sm:$0xff]  ;;  %v3160_v11 = vld [vmem:[#allocation3 + $0x141] sm:$0xff] }
 0x3ed   : > { %10798 = vrot.lane.b32.xlu0 %v19959_v37, %s12110_s24  ;;  %v8272_v7 = vmax.f32 %v8208_v22, %v14469_v49  ;;  %19960 = vst [vmem:[#allocation62_spill] sm:$0xff] %v14550_v1  ;;  %v10572_v8 = vpack.i.bf16 %v3156_v12, %v3155_v3  ;;  %v8333_v62 = vmax.f32 %v8269_v2, %v19961_v31  ;;  %v14561_v42 = vld [vmem:[#allocation4 + $0xfa] sm:$0xff]  ;;  %v19966_v2 = vld [vmem:[#allocation89_spill] sm:$0xff]  ;;  %v20245_v1 = vld [vmem:[#allocation48_spill] sm:$0xff] }
 0x3ee   : > { %v8209_v0 = vmax.f32 %v8145_v36, %v8368_v10  ;;  %v8210_v57 = vmax.f32 %v8146_v24, %v14519_v32  ;;  %v8458_v20 = vmax.f32 %v8394_v9, %v14305_v34  ;;  %v8334_v51 = vmax.f32 %v8270_v50, %v14453_v25  ;;  %v19964_v60 = vld [vmem:[#allocation95_spill] sm:$0xff]  ;;  %v19967_v36 = vld [vmem:[#allocation102_spill] sm:$0xff]  ;;  %20295 = vst [vmem:[#allocation398_spill] sm:$0xff] %v16047_v6  ;;  %v20385_v6 = vld [vmem:[#allocation104_spill] sm:$0xff] }
 0x3ef   : > { %v14556_v59 = vpop.permute.xlu0 %10518  ;;  %v8335_v55 = vmax.f32 %v8271_v56, %v14511_v63  ;;  %v8147_v21 = vmax.f32 %v8083_v16, %v14553_v44  ;;  %10573 = vrot.lane.b32.xlu1 %v10572_v8, %s12102_s20  ;;  %v19965_v15 = vpack.c.bf16 %v19963_v54, %v19964_v60  ;;  %v8459_v22 = vmax.f32 %v8395_v27, %v14317_v33  ;;  %v19968_v24 = vld [vmem:[#allocation66_spill] sm:$0xff] }
 0x3f0   : > { %19962 = vst [vmem:[#allocation103_spill] sm:$0xff] %v14556_v59  ;;  %v8460_v18 = vmax.f32 %v8396_v39, %v19956_v43  ;;  %v8148_v34 = vmax.f32 %v8084_v5, %v14561_v42  ;;  %v19969_v3 = vpack.c.bf16 %v19967_v36, %v19968_v24  ;;  %v8548_v12 = vpack.c.bf16 %v14546_v53, %v14543_v17  ;;  %v14582_v33 = vpop.permute.xlu1 %10293  ;;  %v8370_v39 = vld [vmem:[#allocation4 + $0x108] sm:$0xff]  ;;  %v3164_v53 = vld [vmem:[#allocation3 + $0x171] sm:$0xff] }
 0x3f1   : > { %9419 = vmatmul.mubr.msk.bf16.vlgmr.msra.gmra.mrb[32].mxu1 %vm426_vm0, %v19965_v15  ;;  %10808 = vrot.lane.b32.xlu0 %v19966_v2, %s12110_s24  ;;  %v8461_v9 = vmax.f32 %v8397_v13, %v14371_v47  ;;  %v8336_v50 = vmax.f32 %v8272_v7, %v14513_v45  ;;  %19970 = vst [vmem:[#allocation87_spill] sm:$0xff] %v14582_v33  ;;  %v14589_v5 = vld [vmem:[#allocation4 + $0x109] sm:$0xff]  ;;  %v3680_v33 = vld [vmem:[#allocation3 + $0x1d2] sm:$0xff] }
 0x3f2   : > { %9422 = vmatprep.mubr.msk.bf16.mxu1 %vm426_vm0, %v19969_v3  ;;  %v10582_v43 = vpack.i.bf16 %v3160_v11, %v3159_v40  ;;  %v14585_v56 = vmax.f32 %v8333_v62, %v14455_v4  ;;  %v8273_v16 = vmax.f32 %v8209_v0, %v14521_v23  ;;  %v8274_v27 = vmax.f32 %v8210_v57, %v14530_v48  ;;  %v3163_v17 = vld [vmem:[#allocation3 + $0x169] sm:$0xff]  ;;  %v14606_v57 = vld [vmem:[#allocation4 + $0x111] sm:$0xff]  ;;  %v14608_v11 = vld [vmem:[#allocation4 + $0x120] sm:$0xff] }
 0x3f3   : > { %v14591_v37 = vpop.permute.xlu0 %10528  ;;  %v14594_v47 = vmax.f32 %v8458_v20, %v14349_v28  ;;  %v8399_v13 = vmax.f32 %v8334_v51, %v14465_v41  ;;  %v14597_v7 = vmax.f32 %v8335_v55, %v8368_v10  ;;  %v8371_v4 = vld [vmem:[#allocation4 + $0x110] sm:$0xff]  ;;  %v8211_v8 = vmax.f32 %v8147_v21, %v8370_v39  ;;  %v14610_v28 = vld [vmem:[#allocation4 + $0x121] sm:$0xff] }
 0x3f4   : > { %19971 = vst [vmem:[#allocation107_spill] sm:$0xff] %v14591_v37  ;;  %10583 = vrot.lane.b32.xlu1 %v10582_v43, %s12102_s20  ;;  %v14601_v62 = vmax.f32 %v8459_v22, %v19954_v14  ;;  %v14604_v0 = vmax.f32 %v8460_v18, %v19961_v31  ;;  %v8212_v40 = vmax.f32 %v8148_v34, %v8371_v4  ;;  %v19972_v10 = vld [vmem:[#allocation91_spill] sm:$0xff]  ;;  %v14622_v54 = vpop.permute.xlu1 %10303  ;;  %v14628_v34 = vld [vmem:[#allocation4 + $0x128] sm:$0xff]  ;;  %v15878_v19 = vld [vmem:[#allocation3 + $0x92] sm:$0xff] }
 0x3f5   : > { %v8085_v41 = vmax.f32 %v8370_v39, %v14589_v5  ;;  %10818 = vrot.lane.b32.xlu0 %v19972_v10, %s12110_s24  ;;  %v3167_v20 = vld [vmem:[#allocation3 + $0x1a] sm:$0xff]  ;;  %v3168_v51 = vld [vmem:[#allocation3 + $0x22] sm:$0xff]  ;;  %v14616_v14 = vmax.f32 %v8461_v9, %v14453_v25  ;;  %v8401_v31 = vmax.f32 %v8336_v50, %v14519_v32  ;;  %v8086_v55 = vmax.f32 %v8371_v4, %v14606_v57  ;;  %v14637_v24 = vld [vmem:[#allocation4 + $0x10a] sm:$0xff] }
 0x3f6   : > { %v8087_v21 = vmax.f32 %v14608_v11, %v14610_v28  ;;  %19973 = vst [vmem:[#allocation96_spill] sm:$0xff] %v14622_v54  ;;  %v10592_v60 = vpack.i.bf16 %v3164_v53, %v3163_v17  ;;  %v8462_v15 = vmax.f32 %v14585_v56, %v14467_v52  ;;  %v8337_v22 = vmax.f32 %v8273_v16, %v14553_v44  ;;  %v14630_v25 = vld [vmem:[#allocation4 + $0x129] sm:$0xff]  ;;  %v14649_v50 = vld [vmem:[#allocation4 + $0x112] sm:$0xff]  ;;  %v3585_v54 = vld [vmem:[#allocation3 + $0x60] sm:$0xff] }
 0x3f7   : > { %v8338_v18 = vmax.f32 %v8274_v27, %v14561_v42  ;;  %v14632_v32 = vpop.permute.xlu0 %10538  ;;  %v8463_v2 = vmax.f32 %v8399_v13, %v14469_v49  ;;  %v8464_v36 = vmax.f32 %v14597_v7, %v14521_v23  ;;  %v14640_v3 = vmax.f32 %v8211_v8, %v14589_v5  ;;  %v3261_v49 = vld [vmem:[#allocation3 + $0x184] sm:$0xff]  ;;  %v19975_v16 = vld [vmem:[#allocation93_spill] sm:$0xff]  ;;  %20255 = vst [vmem:[#allocation363_spill] sm:$0xff] %v15878_v19  ;;  %v15973_v19 = vld [vmem:[#allocation3 + $0xfc] sm:$0xff] }
 0x3f8   : > { %19974 = vst [vmem:[#allocation95_spill] sm:$0xff] %v14632_v32  ;;  %v8088_v52 = vmax.f32 %v14628_v34, %v14630_v25  ;;  %10593 = vrot.lane.b32.xlu1 %v10592_v60, %s12102_s20  ;;  %v10602_v9 = vpack.i.bf16 %v3168_v51, %v3167_v20  ;;  %v8276_v23 = vmax.f32 %v8212_v40, %v14606_v57  ;;  %v14652_v43 = vld [vmem:[#allocation4 + $0x122] sm:$0xff]  ;;  %v3262_v17 = vld [vmem:[#allocation3 + $0x18c] sm:$0xff]  ;;  %20281 = vst [vmem:[#allocation387_spill] sm:$0xff] %v15973_v19 }
 0x3f9   : > { %9423 = vmatmul.mubr.msk.bf16.gmra.mrb[36].mxu1 %vm426_vm0, %v8547_v35  ;;  %v8149_v56 = vmax.f32 %v8085_v41, %v14637_v24  ;;  %10828 = vrot.lane.b32.xlu0 %v19975_v16, %s12110_s24  ;;  %v8465_v27 = vmax.f32 %v8401_v31, %v14530_v48  ;;  %v14660_v61 = vmax.f32 %v8086_v55, %v14649_v50  ;;  %v14665_v35 = vpop.permute.xlu1 %10313  ;;  %v14675_v48 = vld [vmem:[#allocation4 + $0x12a] sm:$0xff]  ;;  %v14698_v31 = vld [vmem:[#allocation4 + $0x140] sm:$0xff]  ;;  %v3172_v55 = vld [vmem:[#allocation3 + $0x52] sm:$0xff] }
 0x3fa   : > { %9426 = vmatprep.mubr.msk.bf16.mxu1 %vm426_vm0, %v8548_v12  ;;  %v14663_v58 = vmax.f32 %v8087_v21, %v14652_v43  ;;  %19976 = vst [vmem:[#allocation89_spill] sm:$0xff] %v14665_v35  ;;  %v8549_v53 = vpack.c.bf16 %v14601_v62, %v14594_v47  ;;  %v8550_v13 = vpack.c.bf16 %v14616_v14, %v14604_v0  ;;  %v3171_v41 = vld [vmem:[#allocation3 + $0x4a] sm:$0xff]  ;;  %v14685_v47 = vld [vmem:[#allocation4 + $0x138] sm:$0xff] }
 0x3fb   : > { %v14671_v7 = vmax.f32 %v8337_v22, %v8370_v39  ;;  %v14673_v12 = vmax.f32 %v8338_v18, %v8371_v4  ;;  %v14677_v8 = vpop.permute.xlu0 %10548  ;;  %v10837_v40 = vpack.i.bf16 %v3262_v17, %v3261_v49  ;;  %v14680_v10 = vmax.f32 %v8462_v15, %v14511_v63  ;;  %v14687_v62 = vld [vmem:[#allocation4 + $0x139] sm:$0xff]  ;;  %v3265_v4 = vld [vmem:[#allocation3 + $0x48] sm:$0xff]  ;;  %v3266_v0 = vld [vmem:[#allocation3 + $0x50] sm:$0xff] }
 0x3fc   : > { %19977 = vst [vmem:[#allocation102_spill] sm:$0xff] %v14677_v8  ;;  %v14683_v20 = vmax.f32 %v8463_v2, %v14513_v45  ;;  %v8152_v39 = vmax.f32 %v8088_v52, %v14675_v48  ;;  %10603 = vrot.lane.b32.xlu1 %v10602_v9, %s12103_s21  ;;  %v14692_v51 = vmax.f32 %v8464_v36, %v14553_v44  ;;  %v14706_v44 = vld [vmem:[#allocation4 + $0x141] sm:$0xff]  ;;  %v14710_v22 = vld [vmem:[#allocation4 + $0x150] sm:$0xff]  ;;  %v14720_v52 = vld [vmem:[#allocation4 + $0x158] sm:$0xff] }
 0x3fd   : > { %v8339_v63 = vmax.f32 %v14640_v3, %v14637_v24  ;;  %v8340_v14 = vmax.f32 %v8276_v23, %v14649_v50  ;;  %v8213_v45 = vmax.f32 %v8149_v56, %v14608_v11  ;;  %10838 = vrot.lane.b32.xlu0 %v10837_v40, %s12110_s24  ;;  %v14702_v21 = vmax.f32 %v8465_v27, %v14561_v42  ;;  %v14714_v2 = vpop.permute.xlu1 %10323  ;;  %v14722_v9 = vld [vmem:[#allocation4 + $0x151] sm:$0xff]  ;;  %v14724_v49 = vld [vmem:[#allocation4 + $0x159] sm:$0xff]  ;;  %v14730_v16 = vpop.f32.mrb[8].mxu1  ;;  %v15783_v8 = vld [vmem:[#allocation3 + $0xc1] sm:$0xff] }
 0x3fe   : > { %v8214_v60 = vmax.f32 %v14660_v61, %v14628_v34  ;;  %v8215_v15 = vmax.f32 %v14663_v58, %v14685_v47  ;;  %v8089_v18 = vmax.f32 %v14685_v47, %v14687_v62  ;;  %19978 = vst [vmem:[#allocation66_spill] sm:$0xff] %v14714_v2  ;;  %v10612_v36 = vpack.i.bf16 %v3172_v55, %v3171_v41  ;;  %v3175_v61 = vld [vmem:[#allocation3 + $0x7a] sm:$0xff]  ;;  %v14738_v17 = vpop.f32.mrb[9].mxu1  ;;  %v3176_v55 = vld [vmem:[#allocation3 + $0x82] sm:$0xff]  ;;  %v15787_v32 = vld [vmem:[#allocation3 + $0xf1] sm:$0xff] }
 0x3ff   : > { %v8466_v42 = vmax.f32 %v14671_v7, %v14589_v5  ;;  %v8467_v3 = vmax.f32 %v14673_v12, %v14606_v57  ;;  %v8090_v23 = vmax.f32 %v14698_v31, %v14706_v44  ;;  %v14728_v56 = vpop.permute.xlu0 %10558  ;;  %19980 = vst [vmem:[#allocation93_spill] sm:$0xff] %v14730_v16  ;;  %v10847_v27 = vpack.i.bf16 %v3266_v0, %v3265_v4  ;;  %v3269_v7 = vld [vmem:[#allocation3 + $0x78] sm:$0xff]  ;;  %v3270_v12 = vld [vmem:[#allocation3 + $0x80] sm:$0xff]  ;;  %v14747_v0 = vpop.f32.mrb[10].mxu1  ;;  %v3179_v16 = vld [vmem:[#allocation3 + $0xaa] sm:$0xff] }
 0x400   : > { %19979 = vst [vmem:[#allocation91_spill] sm:$0xff] %v14728_v56  ;;  %v8216_v5 = vmax.f32 %v8152_v39, %v14698_v31  ;;  %v8091_v57 = vmax.f32 %v14710_v22, %v14722_v9  ;;  %v8092_v58 = vmax.f32 %v14720_v52, %v14724_v49  ;;  %10613 = vrot.lane.b32.xlu1 %v10612_v36, %s12103_s21  ;;  %19981 = vst [vmem:[#allocation111_spill] sm:$0xff] %v14738_v17  ;;  %v14744_v4 = vld [vmem:[#allocation4 + $0x13a] sm:$0xff]  ;;  %v14751_v36 = vld [vmem:[#allocation4 + $0x142] sm:$0xff] }
 0x401   : > { %9427 = vmatmul.mubr.msk.bf16.gmra.mrb[40].mxu1 %vm426_vm0, %v8549_v53  ;;  %v8404_v40 = vmax.f32 %v8339_v63, %v14608_v11  ;;  %v8405_v41 = vmax.f32 %v8340_v14, %v14628_v34  ;;  %v8277_v39 = vmax.f32 %v8213_v45, %v14610_v28  ;;  %10848 = vrot.lane.b32.xlu0 %v10847_v27, %s12111_s25  ;;  %v14755_v63 = vpop.permute.xlu1 %10333  ;;  %v14757_v14 = vpop.f32.mrb[11].mxu1  ;;  %v15781_v2 = vld [vmem:[#allocation3 + $0x99] sm:$0xff]  ;;  %v15785_v35 = vld [vmem:[#allocation3 + $0xc9] sm:$0xff] }
 0x402   : > { %19982 = vst [vmem:[#allocation112_spill] sm:$0xff] %v14747_v0  ;;  %9430 = vmatprep.mubr.msk.bf16.mxu1 %vm426_vm0, %v8550_v13  ;;  %v8278_v53 = vmax.f32 %v8214_v60, %v14630_v25  ;;  %v8279_v11 = vmax.f32 %v8215_v15, %v14687_v62  ;;  %v8153_v34 = vmax.f32 %v8089_v18, %v14744_v4  ;;  %19983 = vst [vmem:[#allocation113_spill] sm:$0xff] %v14755_v63  ;;  %v14763_v0 = vld [vmem:[#allocation4 + $0x152] sm:$0xff]  ;;  %v14765_v60 = vld [vmem:[#allocation4 + $0x15a] sm:$0xff] }
 0x403   : > { %19984 = vst [vmem:[#allocation114_spill] sm:$0xff] %v14757_v14  ;;  %v10622_v45 = vpack.i.bf16 %v3176_v55, %v3175_v61  ;;  %v8551_v27 = vpack.c.bf16 %v14683_v20, %v14680_v10  ;;  %v8552_v13 = vpack.c.bf16 %v14702_v21, %v14692_v51  ;;  %v8154_v17 = vmax.f32 %v8090_v23, %v14751_v36  ;;  %v14768_v15 = vpop.permute.xlu0 %10568  ;;  %v14771_v14 = vld [vmem:[#allocation4 + $0x168] sm:$0xff]  ;;  %v3274_v51 = vld [vmem:[#allocation3 + $0xb0] sm:$0xff] }
 0x404   : > { %19985 = vst [vmem:[#allocation115_spill] sm:$0xff] %v14768_v15  ;;  %v10857_v18 = vpack.i.bf16 %v3270_v12, %v3269_v7  ;;  %v8280_v63 = vmax.f32 %v8216_v5, %v14706_v44  ;;  %v8155_v61 = vmax.f32 %v8091_v57, %v14763_v0  ;;  %v8156_v10 = vmax.f32 %v8092_v58, %v14765_v60  ;;  %v3273_v20 = vld [vmem:[#allocation3 + $0xa8] sm:$0xff]  ;;  %v3180_v57 = vld [vmem:[#allocation3 + $0xb2] sm:$0xff] }
 0x405   : > { %10623 = vrot.lane.b32.xlu1 %v10622_v45, %s12103_s21  ;;  %v14777_v21 = vmax.f32 %v8466_v42, %v14637_v24  ;;  %v8468_v23 = vmax.f32 %v8404_v40, %v14610_v28  ;;  %v8469_v7 = vmax.f32 %v8405_v41, %v14630_v25  ;;  %v8341_v12 = vmax.f32 %v8277_v39, %v14652_v43  ;;  %v14782_v5 = vld [vmem:[#allocation4 + $0x169] sm:$0xff]  ;;  %v14793_v28 = vld [vmem:[#allocation4 + $0x171] sm:$0xff]  ;;  %v14795_v25 = vpop.permute.xlu1 %10343 }
 0x406   : > { %10858 = vrot.lane.b32.xlu0 %v10857_v18, %s12111_s25  ;;  %v14786_v58 = vmax.f32 %v8467_v3, %v14649_v50  ;;  %v8342_v55 = vmax.f32 %v8278_v53, %v14675_v48  ;;  %v8343_v45 = vmax.f32 %v8279_v11, %v14744_v4  ;;  %v8217_v24 = vmax.f32 %v8153_v34, %v14710_v22  ;;  %v14791_v42 = vld [vmem:[#allocation4 + $0x170] sm:$0xff]  ;;  %v3183_v11 = vld [vmem:[#allocation3 + $0xda] sm:$0xff] }
 0x407   : > { %19986 = vst [vmem:[#allocation116_spill] sm:$0xff] %v14795_v25  ;;  %v10632_v40 = vpack.i.bf16 %v3180_v57, %v3179_v16  ;;  %v8218_v41 = vmax.f32 %v8154_v17, %v14720_v52  ;;  %v8093_v39 = vmax.f32 %v14771_v14, %v14782_v5  ;;  %v8094_v50 = vmax.f32 %v14791_v42, %v14793_v28  ;;  %v14802_v3 = vpop.permute.xlu0 %10578  ;;  %v3277_v16 = vld [vmem:[#allocation3 + $0xd8] sm:$0xff]  ;;  %v3278_v17 = vld [vmem:[#allocation3 + $0xe0] sm:$0xff]  ;;  %v3679_v37 = vld [vmem:[#allocation3 + $0x1ca] sm:$0xff] }
 0x408   : > { %19987 = vst [vmem:[#allocation117_spill] sm:$0xff] %v14802_v3  ;;  %v10867_v53 = vpack.i.bf16 %v3274_v51, %v3273_v20  ;;  %v8344_v34 = vmax.f32 %v8280_v63, %v14751_v36  ;;  %v8219_v18 = vmax.f32 %v8155_v61, %v14771_v14  ;;  %v8220_v15 = vmax.f32 %v8156_v10, %v14791_v42  ;;  %v3184_v63 = vld [vmem:[#allocation3 + $0xe2] sm:$0xff]  ;;  %v14819_v51 = vld [vmem:[#allocation4 + $0x172] sm:$0xff] }
 0x409   : > { %10633 = vrot.lane.b32.xlu1 %v10632_v40, %s12103_s21  ;;  %9431 = vmatmul.mubr.msk.bf16.gmra.mrb[44].mxu1 %vm426_vm0, %v8551_v27  ;;  %v8532_v57 = vmax.f32 %v8468_v23, %v14652_v43  ;;  %v8533_v25 = vmax.f32 %v8469_v7, %v14675_v48  ;;  %v8406_v3 = vmax.f32 %v8341_v12, %v14685_v47  ;;  %v14817_v27 = vld [vmem:[#allocation4 + $0x16a] sm:$0xff]  ;;  %v14821_v43 = vpop.permute.xlu1 %10353  ;;  %v15895_v26 = vld [vmem:[#allocation3 + $0xf2] sm:$0xff] }
 0x40a   : > { %10868 = vrot.lane.b32.xlu0 %v10867_v53, %s12111_s25  ;;  %9434 = vmatprep.mubr.msk.bf16.mxu1 %vm426_vm0, %v8552_v13  ;;  %v8407_v61 = vmax.f32 %v8342_v55, %v14698_v31  ;;  %v8408_v10 = vmax.f32 %v8343_v45, %v14710_v22  ;;  %v8281_v20 = vmax.f32 %v8217_v24, %v14722_v9  ;;  %v3187_v12 = vld [vmem:[#allocation3 + $0x10a] sm:$0xff] }
 0x40b   : > { %19988 = vst [vmem:[#allocation118_spill] sm:$0xff] %v14821_v43  ;;  %v10642_v48 = vpack.i.bf16 %v3184_v63, %v3183_v11  ;;  %v8282_v47 = vmax.f32 %v8218_v41, %v14724_v49  ;;  %v8157_v23 = vmax.f32 %v8093_v39, %v14817_v27  ;;  %v8158_v13 = vmax.f32 %v8094_v50, %v14819_v51  ;;  %v14826_v7 = vpop.permute.xlu0 %10588  ;;  %v3281_v40 = vld [vmem:[#allocation3 + $0x108] sm:$0xff]  ;;  %v3282_v41 = vld [vmem:[#allocation3 + $0x110] sm:$0xff]  ;;  %v20234_v43 = vld [vmem:[#allocation46_spill] sm:$0xff] }
 0x40c   : > { %19989 = vst [vmem:[#allocation119_spill] sm:$0xff] %v14826_v7  ;;  %v10877_v31 = vpack.i.bf16 %v3278_v17, %v3277_v16  ;;  %v8409_v22 = vmax.f32 %v8344_v34, %v14720_v52  ;;  %v8283_v55 = vmax.f32 %v8219_v18, %v14782_v5  ;;  %v8284_v45 = vmax.f32 %v8220_v15, %v14793_v28  ;;  %v3188_v50 = vld [vmem:[#allocation3 + $0x112] sm:$0xff]  ;;  %v8380_v15 = vld [vmem:[#allocation4 + $0x180] sm:$0xff]  ;;  %v8381_v18 = vld [vmem:[#allocation4 + $0x188] sm:$0xff] }
 0x40d   : > { %10643 = vrot.lane.b32.xlu1 %v10642_v48, %s12103_s21  ;;  %v8553_v24 = vpack.c.bf16 %v14786_v58, %v14777_v21  ;;  %v8470_v39 = vmax.f32 %v8406_v3, %v14687_v62  ;;  %v8554_v53 = vpack.c.bf16 %v8533_v25, %v8532_v57  ;;  %v8471_v11 = vmax.f32 %v8407_v61, %v14706_v44  ;;  %v14839_v16 = vpop.permute.xlu1 %10363  ;;  %v3191_v48 = vld [vmem:[#allocation3 + $0x13a] sm:$0xff]  ;;  %v2949_v7 = vld [vmem:[#allocation3 + $0x50] sm:$0xff] }
 0x40e   : > { %10878 = vrot.lane.b32.xlu0 %v10877_v31, %s12111_s25  ;;  %v8472_v52 = vmax.f32 %v8408_v10, %v14722_v9  ;;  %v8345_v34 = vmax.f32 %v8281_v20, %v14763_v0  ;;  %19990 = vst [vmem:[#allocation120_spill] sm:$0xff] %v14839_v16  ;;  %v10652_v17 = vpack.i.bf16 %v3188_v50, %v3187_v12  ;;  %v3285_v57 = vld [vmem:[#allocation3 + $0x138] sm:$0xff]  ;;  %v3286_v61 = vld [vmem:[#allocation3 + $0x140] sm:$0xff]  ;;  %v8445_v31 = vld [vmem:[#allocation4 + $0x189] sm:$0xff] }
 0x40f   : > { %v8346_v21 = vmax.f32 %v8282_v47, %v14765_v60  ;;  %v8221_v58 = vmax.f32 %v8157_v23, %v8380_v15  ;;  %v8222_v63 = vmax.f32 %v8158_v13, %v8381_v18  ;;  %v14842_v62 = vpop.permute.xlu0 %10598  ;;  %v10887_v3 = vpack.i.bf16 %v3282_v41, %v3281_v40  ;;  %v3192_v20 = vld [vmem:[#allocation3 + $0x142] sm:$0xff]  ;;  %v3195_v41 = vld [vmem:[#allocation3 + $0x16a] sm:$0xff]  ;;  %20238 = vst [vmem:[#allocation352_spill] sm:$0xff] %v15781_v2 }
 0x410   : > { %19991 = vst [vmem:[#allocation121_spill] sm:$0xff] %v14842_v62  ;;  %v8473_v25 = vmax.f32 %v8409_v22, %v14724_v49  ;;  %v8347_v44 = vmax.f32 %v8283_v55, %v14817_v27  ;;  %v8348_v9 = vmax.f32 %v8284_v45, %v14819_v51  ;;  %v8534_v10 = vmax.f32 %v8470_v39, %v14744_v4  ;;  %v8444_v13 = vld [vmem:[#allocation4 + $0x181] sm:$0xff] }
 0x411   : > { %10653 = vrot.lane.b32.xlu1 %v10652_v17, %s12103_s21  ;;  %9435 = vmatmul.mubr.msk.bf16.gmra.mrb[48].mxu1 %vm426_vm0, %v8553_v24  ;;  %v8535_v47 = vmax.f32 %v8471_v11, %v14751_v36  ;;  %v8536_v49 = vmax.f32 %v8472_v52, %v14763_v0  ;;  %v8410_v23 = vmax.f32 %v8345_v34, %v14771_v14  ;;  %v14855_v12 = vpop.permute.xlu1 %10373  ;;  %v8508_v50 = vld [vmem:[#allocation4 + $0x182] sm:$0xff]  ;;  %v8509_v11 = vld [vmem:[#allocation4 + $0x18a] sm:$0xff] }
 0x412   : > { %10888 = vrot.lane.b32.xlu0 %v10887_v3, %s12111_s25  ;;  %9438 = vmatprep.mubr.msk.bf16.mxu1 %vm426_vm0, %v8554_v53  ;;  %19992 = vst [vmem:[#allocation122_spill] sm:$0xff] %v14855_v12  ;;  %v14857_v22 = vpack.i.bf16 %v3192_v20, %v3191_v48  ;;  %v8411_v55 = vmax.f32 %v8346_v21, %v14791_v42  ;;  %v3289_v14 = vld [vmem:[#allocation3 + $0x168] sm:$0xff]  ;;  %v3290_v53 = vld [vmem:[#allocation3 + $0x170] sm:$0xff]  ;;  %v3199_v34 = vld [vmem:[#allocation3 + $0x1b] sm:$0xff] }
 0x413   : > { %v8285_v4 = vmax.f32 %v8221_v58, %v8444_v13  ;;  %v8286_v45 = vmax.f32 %v8222_v63, %v8445_v31  ;;  %v14860_v24 = vpop.permute.xlu0 %10608  ;;  %v10897_v40 = vpack.i.bf16 %v3286_v61, %v3285_v57  ;;  %v8537_v36 = vmax.f32 %v8473_v25, %v14765_v60  ;;  %v3196_v42 = vld [vmem:[#allocation3 + $0x172] sm:$0xff]  ;;  %v3200_v17 = vld [vmem:[#allocation3 + $0x23] sm:$0xff]  ;;  %20239 = vst [vmem:[#allocation353_spill] sm:$0xff] %v15783_v8 }
 0x414   : > { %19993 = vst [vmem:[#allocation123_spill] sm:$0xff] %v14860_v24  ;;  %v8412_v39 = vmax.f32 %v8347_v44, %v8380_v15  ;;  %v8413_v0 = vmax.f32 %v8348_v9, %v8381_v18  ;;  %v8555_v52 = vpack.c.bf16 %v8535_v47, %v8534_v10  ;;  %v8474_v21 = vmax.f32 %v8410_v23, %v14782_v5  ;;  %v8382_v57 = vld [vmem:[#allocation4 + $0x198] sm:$0xff]  ;;  %v8383_v61 = vld [vmem:[#allocation4 + $0x1a0] sm:$0xff] }
 0x415   : > { %10663 = vrot.lane.b32.xlu1 %v14857_v22, %s12103_s21  ;;  %v14867_v58 = vpop.permute.xlu1 %10383  ;;  %v14869_v60 = vpack.i.bf16 %v3196_v42, %v3195_v41  ;;  %v8475_v15 = vmax.f32 %v8411_v55, %v14793_v28  ;;  %v8349_v18 = vmax.f32 %v8285_v4, %v8508_v50  ;;  %v8350_v63 = vmax.f32 %v8286_v45, %v8509_v11  ;;  %v3293_v10 = vld [vmem:[#allocation3 + $0x198] sm:$0xff]  ;;  %v3294_v20 = vld [vmem:[#allocation3 + $0x1a0] sm:$0xff]  ;;  %v3203_v4 = vld [vmem:[#allocation3 + $0x4b] sm:$0xff] }
 0x416   : > { %10898 = vrot.lane.b32.xlu0 %v10897_v40, %s12111_s25  ;;  %19994 = vst [vmem:[#allocation124_spill] sm:$0xff] %v14867_v58  ;;  %v10907_v48 = vpack.i.bf16 %v3290_v53, %v3289_v14  ;;  %v8556_v25 = vpack.c.bf16 %v8537_v36, %v8536_v49  ;;  %v8476_v44 = vmax.f32 %v8412_v39, %v8444_v13  ;;  %v8446_v41 = vld [vmem:[#allocation4 + $0x199] sm:$0xff]  ;;  %v8447_v36 = vld [vmem:[#allocation4 + $0x1a1] sm:$0xff]  ;;  %v3297_v39 = vld [vmem:[#allocation3 + $0x49] sm:$0xff] }
 0x417   : > { %v14872_v3 = vpop.permute.xlu0 %10618  ;;  %v8477_v9 = vmax.f32 %v8413_v0, %v8445_v31  ;;  %v10682_v5 = vpack.i.bf16 %v3200_v17, %v3199_v34  ;;  %v8538_v47 = vmax.f32 %v8474_v21, %v14817_v27  ;;  %v8539_v49 = vmax.f32 %v8475_v15, %v14819_v51  ;;  %v3298_v0 = vld [vmem:[#allocation3 + $0x51] sm:$0xff]  ;;  %v3207_v17 = vld [vmem:[#allocation3 + $0x7b] sm:$0xff]  ;;  %20240 = vst [vmem:[#allocation354_spill] sm:$0xff] %v15785_v35 }
 0x418   : > { %19995 = vst [vmem:[#allocation125_spill] sm:$0xff] %v14872_v3  ;;  %v8414_v23 = vmax.f32 %v8349_v18, %v8382_v57  ;;  %v8415_v13 = vmax.f32 %v8350_v63, %v8383_v61  ;;  %v10917_v55 = vpack.i.bf16 %v3294_v20, %v3293_v10  ;;  %v8540_v45 = vmax.f32 %v8476_v44, %v8508_v50  ;;  %v3204_v14 = vld [vmem:[#allocation3 + $0x53] sm:$0xff]  ;;  %v8511_v15 = vld [vmem:[#allocation4 + $0x1a2] sm:$0xff]  ;;  %v3211_v10 = vld [vmem:[#allocation3 + $0xab] sm:$0xff] }
 0x419   : > { %10673 = vrot.lane.b32.xlu1 %v14869_v60, %s12103_s21  ;;  %9439 = vmatmul.mubr.msk.bf16.gmra.mrb[52].mxu1 %vm426_vm0, %v8555_v52  ;;  %v14879_v28 = vpop.permute.xlu1 %10393  ;;  %v8541_v40 = vmax.f32 %v8477_v9, %v8509_v11  ;;  %v14889_v51 = vpack.i.bf16 %v3204_v14, %v3203_v4  ;;  %v8557_v53 = vpack.c.bf16 %v8539_v49, %v8538_v47  ;;  %v8510_v21 = vld [vmem:[#allocation4 + $0x19a] sm:$0xff]  ;;  %v3305_v20 = vld [vmem:[#allocation3 + $0xa9] sm:$0xff]  ;;  %v3306_v47 = vld [vmem:[#allocation3 + $0xb1] sm:$0xff] }
 0x41a   : > { %10908 = vrot.lane.b32.xlu0 %v10907_v48, %s12111_s25  ;;  %9442 = vmatprep.mubr.msk.bf16.mxu1 %vm426_vm0, %v8556_v25  ;;  %19996 = vst [vmem:[#allocation126_spill] sm:$0xff] %v14879_v28  ;;  %v8478_v42 = vmax.f32 %v8414_v23, %v8446_v41  ;;  %v8479_v52 = vmax.f32 %v8415_v13, %v8447_v36  ;;  %v3301_v18 = vld [vmem:[#allocation3 + $0x79] sm:$0xff]  ;;  %v3302_v63 = vld [vmem:[#allocation3 + $0x81] sm:$0xff]  ;;  %20241 = vst [vmem:[#allocation355_spill] sm:$0xff] %v15787_v32 }
 0x41b   : > { %v14883_v31 = vpop.permute.xlu0 %10628  ;;  %v10927_v50 = vpack.i.bf16 %v3298_v0, %v3297_v39  ;;  %v8558_v11 = vpack.c.bf16 %v8541_v40, %v8540_v45  ;;  %v3208_v48 = vld [vmem:[#allocation3 + $0x83] sm:$0xff]  ;;  %v3212_v49 = vld [vmem:[#allocation3 + $0xb3] sm:$0xff]  ;;  %v10947_v45 = vpack.i.bf16 %v3306_v47, %v3305_v20  ;;  %v3215_v40 = vld [vmem:[#allocation3 + $0xdb] sm:$0xff]  ;;  %20258 = vst [vmem:[#allocation366_spill] sm:$0xff] %v15895_v26 }
 0x41c   : > { %19997 = vst [vmem:[#allocation127_spill] sm:$0xff] %v14883_v31  ;;  %v14900_v44 = vpack.i.bf16 %v3208_v48, %v3207_v17  ;;  %v8542_v9 = vmax.f32 %v8478_v42, %v8510_v21  ;;  %v8543_v57 = vmax.f32 %v8479_v52, %v8511_v15  ;;  %v14909_v13 = vpack.i.bf16 %v3212_v49, %v3211_v10  ;;  %v3309_v41 = vld [vmem:[#allocation3 + $0xd9] sm:$0xff]  ;;  %v3310_v36 = vld [vmem:[#allocation3 + $0xe1] sm:$0xff]  ;;  %v3313_v17 = vld [vmem:[#allocation3 + $0x109] sm:$0xff] }
 0x41d   : > { %10683 = vrot.lane.b32.xlu1 %v10682_v5, %s12104_s22  ;;  %v14887_v27 = vpop.permute.xlu1 %10403  ;;  %v10937_v5 = vpack.i.bf16 %v3302_v63, %v3301_v18  ;;  %v3216_v39 = vld [vmem:[#allocation3 + $0xe3] sm:$0xff]  ;;  %v10957_v52 = vpack.i.bf16 %v3310_v36, %v3309_v41  ;;  %v3314_v21 = vld [vmem:[#allocation3 + $0x111] sm:$0xff]  ;;  %v3223_v10 = vld [vmem:[#allocation3 + $0x13b] sm:$0xff] }
 0x41e   : > { %10918 = vrot.lane.b32.xlu0 %v10917_v55, %s12111_s25  ;;  %19998 = vst [vmem:[#allocation128_spill] sm:$0xff] %v14887_v27  ;;  %v8559_v55 = vpack.c.bf16 %v8543_v57, %v8542_v9  ;;  %v14919_v14 = vpack.i.bf16 %v3216_v39, %v3215_v40  ;;  %v3220_v18 = vld [vmem:[#allocation3 + $0x113] sm:$0xff]  ;;  %v3318_v47 = vld [vmem:[#allocation3 + $0x141] sm:$0xff]  ;;  %v3227_v36 = vld [vmem:[#allocation3 + $0x16b] sm:$0xff] }
 0x41f   : > { %v14891_v34 = vpop.permute.xlu0 %10638  ;;  %v3317_v20 = vld [vmem:[#allocation3 + $0x139] sm:$0xff]  ;;  %v3224_v49 = vld [vmem:[#allocation3 + $0x143] sm:$0xff]  ;;  %v15935_v32 = vld [vmem:[#allocation3 + $0xcb] sm:$0xff] }
 0x420   : > { %19999 = vst [vmem:[#allocation129_spill] sm:$0xff] %v14891_v34  ;;  %v10977_v41 = vpack.i.bf16 %v3318_v47, %v3317_v20  ;;  %v3321_v39 = vld [vmem:[#allocation3 + $0x169] sm:$0xff]  ;;  %v3325_v47 = vld [vmem:[#allocation3 + $0x199] sm:$0xff]  ;;  %20271 = vst [vmem:[#allocation377_spill] sm:$0xff] %v15935_v32 }
 0x421   : > { %10693 = vrot.lane.b32.xlu1 %v14889_v51, %s12104_s22  ;;  %9443 = vmatmul.mubr.msk.bf16.gmra.mrb[56].mxu1 %vm426_vm0, %v8557_v53  ;;  %v14898_v25 = vpop.permute.xlu1 %10413  ;;  %v3576_v34 = vld [vmem:[#allocation3 + $0x16c] sm:$0xff]  ;;  %v2945_v28 = vld [vmem:[#allocation3 + $0x20] sm:$0xff]  ;;  %v15956_v35 = vld [vmem:[#allocation3 + $0xb4] sm:$0xff] }
 0x422   : > { %10928 = vrot.lane.b32.xlu0 %v10927_v50, %s12112_s26  ;;  %9446 = vmatprep.mubr.msk.bf16.mxu1 %vm426_vm0, %v8558_v11  ;;  %20000 = vst [vmem:[#allocation130_spill] sm:$0xff] %v14898_v25  ;;  %v3219_v50 = vld [vmem:[#allocation3 + $0x10b] sm:$0xff]  ;;  %v15948_v8 = vld [vmem:[#allocation3 + $0x159] sm:$0xff]  ;;  %20277 = vst [vmem:[#allocation383_spill] sm:$0xff] %v15956_v35 }
 0x423   : > { %v14902_v61 = vpop.permute.xlu0 %10648  ;;  %v14936_v9 = vpack.i.bf16 %v3220_v18, %v3219_v50  ;;  %v3228_v50 = vld [vmem:[#allocation3 + $0x173] sm:$0xff]  ;;  %v16031_v35 = vld [vmem:[#allocation3 + $0x15c] sm:$0xff] }
 0x424   : > { %20001 = vst [vmem:[#allocation131_spill] sm:$0xff] %v14902_v61  ;;  %v15998_v26 = vld [vmem:[#allocation3 + $0x12c] sm:$0xff]  ;;  %20293 = vst [vmem:[#allocation397_spill] sm:$0xff] %v16031_v35 }
 0x425   : > { %10703 = vrot.lane.b32.xlu1 %v14900_v44, %s12104_s22  ;;  %v14907_v23 = vpop.permute.xlu1 %10423 }
 0x426   : > { %10938 = vrot.lane.b32.xlu0 %v10937_v5, %s12112_s26  ;;  %20002 = vst [vmem:[#allocation132_spill] sm:$0xff] %v14907_v23  ;;  %v10967_v5 = vpack.i.bf16 %v3314_v21, %v3313_v17  ;;  %v3231_v17 = vld [vmem:[#allocation3 + $0x1c] sm:$0xff]  ;;  %v3232_v21 = vld [vmem:[#allocation3 + $0x24] sm:$0xff] }
 0x427   : > { %v14911_v4 = vpop.permute.xlu0 %10658  ;;  %v10762_v20 = vpack.i.bf16 %v3232_v21, %v3231_v17  ;;  %v3330_v17 = vld [vmem:[#allocation3 + $0x52] sm:$0xff] }
 0x428   : > { %20003 = vst [vmem:[#allocation133_spill] sm:$0xff] %v14911_v4  ;;  %v3647_v4 = vld [vmem:[#allocation3 + $0x1c9] sm:$0xff] }
 0x429   : > { %10713 = vrot.lane.b32.xlu1 %v14909_v13, %s12104_s22  ;;  %9447 = vmatmul.mubr.msk.bf16.gmra.mrb[60].mxu1 %vm426_vm0, %v8559_v55  ;;  %v14917_v0 = vpop.permute.xlu1 %10433  ;;  %v14923_v42 = vpop.f32.mrb[12].mxu1 }
 0x42a   : > { %10948 = vrot.lane.b32.xlu0 %v10947_v45, %s12112_s26  ;;  %20004 = vst [vmem:[#allocation134_spill] sm:$0xff] %v14917_v0  ;;  %20006 = vst [vmem:[#allocation136_spill] sm:$0xff] %v14923_v42  ;;  %v14927_v11 = vpop.f32.mrb[13].mxu1  ;;  %v14945_v45 = vpack.i.bf16 %v3224_v49, %v3223_v10 }
 0x42b   : > { %v14921_v53 = vpop.permute.xlu0 %10668  ;;  %20007 = vst [vmem:[#allocation137_spill] sm:$0xff] %v14927_v11  ;;  %v14930_v15 = vpop.f32.mrb[14].mxu1  ;;  %v3235_v11 = vld [vmem:[#allocation3 + $0x4c] sm:$0xff] }
 0x42c   : > { %20005 = vst [vmem:[#allocation135_spill] sm:$0xff] %v14921_v53  ;;  %20008 = vst [vmem:[#allocation138_spill] sm:$0xff] %v14930_v15  ;;  %v14934_v48 = vpop.f32.mrb[15].mxu1  ;;  %v3326_v15 = vld [vmem:[#allocation3 + $0x1a1] sm:$0xff] }
 0x42d   : > { %10723 = vrot.lane.b32.xlu1 %v14919_v14, %s12104_s22  ;;  %v14932_v63 = vpop.permute.xlu1 %10443  ;;  %20010 = vst [vmem:[#allocation140_spill] sm:$0xff] %v14934_v48  ;;  %v10997_v48 = vpack.i.bf16 %v3326_v15, %v3325_v47  ;;  %v3333_v15 = vld [vmem:[#allocation3 + $0x7a] sm:$0xff] }
 0x42e   : > { %10958 = vrot.lane.b32.xlu0 %v10957_v52, %s12112_s26  ;;  %20009 = vst [vmem:[#allocation139_spill] sm:$0xff] %v14932_v63  ;;  %v3322_v52 = vld [vmem:[#allocation3 + $0x171] sm:$0xff] }
 0x42f   : > { %v14938_v57 = vpop.permute.xlu0 %10678  ;;  %v10987_v49 = vpack.i.bf16 %v3322_v52, %v3321_v39  ;;  %v3236_v39 = vld [vmem:[#allocation3 + $0x54] sm:$0xff] }
 0x430   : > { %20011 = vst [vmem:[#allocation141_spill] sm:$0xff] %v14938_v57  ;;  %v3268_v57 = vld [vmem:[#allocation3 + $0x68] sm:$0xff]  ;;  %v3272_v63 = vld [vmem:[#allocation3 + $0x98] sm:$0xff] }
 0x431   : > { %10733 = vrot.lane.b32.xlu1 %v14936_v9, %s12104_s22  ;;  %v14943_v55 = vpop.permute.xlu1 %10453 }
 0x432   : > { %10968 = vrot.lane.b32.xlu0 %v10967_v5, %s12112_s26  ;;  %20012 = vst [vmem:[#allocation142_spill] sm:$0xff] %v14943_v55  ;;  %v14954_v5 = vpack.i.bf16 %v3228_v50, %v3227_v36  ;;  %v3329_v36 = vld [vmem:[#allocation3 + $0x4a] sm:$0xff]  ;;  %v14969_v50 = vpack.i.bf16 %v3236_v39, %v3235_v11  ;;  %v3267_v55 = vld [vmem:[#allocation3 + $0x60] sm:$0xff] }
 0x433   : > { %v14947_v40 = vpop.permute.xlu0 %10688 }
 0x434   : > { %20013 = vst [vmem:[#allocation143_spill] sm:$0xff] %v14947_v40  ;;  %v3346_v40 = vld [vmem:[#allocation3 + $0x112] sm:$0xff] }
 0x435   : > { %10743 = vrot.lane.b32.xlu1 %v14945_v45, %s12104_s22  ;;  %v14952_v18 = vpop.permute.xlu1 %10463 }
 0x436   : > { %10978 = vrot.lane.b32.xlu0 %v10977_v41, %s12112_s26  ;;  %20014 = vst [vmem:[#allocation144_spill] sm:$0xff] %v14952_v18  ;;  %v3342_v18 = vld [vmem:[#allocation3 + $0xe2] sm:$0xff] }
 0x437   : > { %v14956_v10 = vpop.permute.xlu0 %10698 }
 0x438   : > { %20015 = vst [vmem:[#allocation145_spill] sm:$0xff] %v14956_v10  ;;  %v3239_v10 = vld [vmem:[#allocation3 + $0x7c] sm:$0xff] }
 0x439   : > { %10753 = vrot.lane.b32.xlu1 %v14954_v5, %s12104_s22  ;;  %v14961_v42 = vpop.permute.xlu1 %10473 }
 0x43a   : > { %10988 = vrot.lane.b32.xlu0 %v10987_v49, %s12112_s26  ;;  %20016 = vst [vmem:[#allocation146_spill] sm:$0xff] %v14961_v42  ;;  %v11007_v49 = vpack.i.bf16 %v3330_v17, %v3329_v36  ;;  %v3337_v36 = vld [vmem:[#allocation3 + $0xaa] sm:$0xff]  ;;  %v3244_v17 = vld [vmem:[#allocation3 + $0xb4] sm:$0xff] }
 0x43b   : > { %v14963_v41 = vpop.permute.xlu0 %10708  ;;  %v3338_v42 = vld [vmem:[#allocation3 + $0xb2] sm:$0xff] }
 0x43c   : > { %20017 = vst [vmem:[#allocation147_spill] sm:$0xff] %v14963_v41  ;;  %v3243_v41 = vld [vmem:[#allocation3 + $0xac] sm:$0xff] }
 0x43d   : > { %10763 = vrot.lane.b32.xlu1 %v10762_v20, %s12110_s24  ;;  %v14967_v52 = vpop.permute.xlu1 %10483  ;;  %v3240_v20 = vld [vmem:[#allocation3 + $0x84] sm:$0xff] }
 0x43e   : > { %10998 = vrot.lane.b32.xlu0 %v10997_v48, %s12112_s26  ;;  %20018 = vst [vmem:[#allocation148_spill] sm:$0xff] %v14967_v52  ;;  %v14978_v48 = vpack.i.bf16 %v3240_v20, %v3239_v10  ;;  %v3334_v52 = vld [vmem:[#allocation3 + $0x82] sm:$0xff]  ;;  %v11027_v10 = vpack.i.bf16 %v3338_v42, %v3337_v36  ;;  %v3345_v42 = vld [vmem:[#allocation3 + $0x10a] sm:$0xff]  ;;  %v3252_v36 = vld [vmem:[#allocation3 + $0x114] sm:$0xff] }
 0x43f   : > { %v14971_v21 = vpop.permute.xlu0 %10718  ;;  %v11017_v39 = vpack.i.bf16 %v3334_v52, %v3333_v15  ;;  %v3247_v20 = vld [vmem:[#allocation3 + $0xdc] sm:$0xff]  ;;  %v3248_v15 = vld [vmem:[#allocation3 + $0xe4] sm:$0xff] }
 0x440   : > { %20019 = vst [vmem:[#allocation149_spill] sm:$0xff] %v14971_v21  ;;  %v3341_v52 = vld [vmem:[#allocation3 + $0xda] sm:$0xff] }
 0x441   : > { %10773 = vrot.lane.b32.xlu1 %v14969_v50, %s12110_s24  ;;  %v14976_v47 = vpop.permute.xlu1 %10493 }
 0x442   : > { %11008 = vrot.lane.b32.xlu0 %v11007_v49, %s12113_s11  ;;  %20020 = vst [vmem:[#allocation150_spill] sm:$0xff] %v14976_v47  ;;  %v14987_v49 = vpack.i.bf16 %v3244_v17, %v3243_v41  ;;  %v11037_v41 = vpack.i.bf16 %v3342_v18, %v3341_v52  ;;  %v3251_v17 = vld [vmem:[#allocation3 + $0x10c] sm:$0xff]  ;;  %v3256_v18 = vld [vmem:[#allocation3 + $0x144] sm:$0xff] }
 0x443   : > { %v14980_v11 = vpop.permute.xlu0 %10728 }
 0x444   : > { %20021 = vst [vmem:[#allocation151_spill] sm:$0xff] %v14980_v11 }
 0x445   : > { %10783 = vrot.lane.b32.xlu1 %v14978_v48, %s12110_s24  ;;  %v14985_v21 = vpop.permute.xlu1 %10503 }
 0x446   : > { %11018 = vrot.lane.b32.xlu0 %v11017_v39, %s12113_s11  ;;  %20022 = vst [vmem:[#allocation152_spill] sm:$0xff] %v14985_v21  ;;  %v14996_v39 = vpack.i.bf16 %v3248_v15, %v3247_v20  ;;  %v11047_v20 = vpack.i.bf16 %v3346_v40, %v3345_v42  ;;  %v3255_v15 = vld [vmem:[#allocation3 + $0x13c] sm:$0xff]  ;;  %v3260_v40 = vld [vmem:[#allocation3 + $0x174] sm:$0xff] }
 0x447   : > { %v14989_v47 = vpop.permute.xlu0 %10738 }
 0x448   : > { %20023 = vst [vmem:[#allocation153_spill] sm:$0xff] %v14989_v47 }
 0x449   : > { %10793 = vrot.lane.b32.xlu1 %v14987_v49, %s12110_s24  ;;  %v14994_v11 = vpop.permute.xlu1 %10513 }
 0x44a   : > { %11028 = vrot.lane.b32.xlu0 %v11027_v10, %s12113_s11  ;;  %20024 = vst [vmem:[#allocation154_spill] sm:$0xff] %v14994_v11  ;;  %v15005_v10 = vpack.i.bf16 %v3252_v36, %v3251_v17 }
 0x44b   : > { %v14998_v21 = vpop.permute.xlu0 %10748 }
 0x44c   : > { %20025 = vst [vmem:[#allocation155_spill] sm:$0xff] %v14998_v21  ;;  %v15014_v21 = vpack.i.bf16 %v3256_v18, %v3255_v15  ;;  %v3263_v15 = vld [vmem:[#allocation3 + $0x30] sm:$0xff]  ;;  %v3264_v18 = vld [vmem:[#allocation3 + $0x38] sm:$0xff] }
 0x44d   : > { %10803 = vrot.lane.b32.xlu1 %v14996_v39, %s12110_s24  ;;  %v15003_v47 = vpop.permute.xlu1 %10523 }
 0x44e   : > { %11038 = vrot.lane.b32.xlu0 %v11037_v41, %s12113_s11  ;;  %20026 = vst [vmem:[#allocation156_spill] sm:$0xff] %v15003_v47  ;;  %v3259_v47 = vld [vmem:[#allocation3 + $0x16c] sm:$0xff] }
 0x44f   : > { %v15007_v11 = vpop.permute.xlu0 %10758  ;;  %v15024_v42 = vpack.i.bf16 %v3260_v40, %v3259_v47  ;;  %v10842_v40 = vpack.i.bf16 %v3264_v18, %v3263_v15  ;;  %v3275_v15 = vld [vmem:[#allocation3 + $0xc0] sm:$0xff] }
 0x450   : > { %20027 = vst [vmem:[#allocation157_spill] sm:$0xff] %v15007_v11 }
 0x451   : > { %10813 = vrot.lane.b32.xlu1 %v15005_v10, %s12110_s24  ;;  %v15012_v52 = vpop.permute.xlu1 %10533 }
 0x452   : > { %11048 = vrot.lane.b32.xlu0 %v11047_v20, %s12113_s11  ;;  %20028 = vst [vmem:[#allocation158_spill] sm:$0xff] %v15012_v52  ;;  %v3357_v52 = vld [vmem:[#allocation3 + $0x19a] sm:$0xff] }
 0x453   : > { %v15016_v41 = vpop.permute.xlu0 %10768 }
 0x454   : > { %20029 = vst [vmem:[#allocation159_spill] sm:$0xff] %v15016_v41 }
 0x455   : > { %10823 = vrot.lane.b32.xlu1 %v15014_v21, %s12110_s24  ;;  %v15022_v17 = vpop.permute.xlu1 %10543  ;;  %v15028_v20 = vpop.f32.mrb[16].mxu1 }
 0x456   : > { %11058 = vrot.lane.b32.xlu0 %v14857_v22, %s12113_s11  ;;  %20030 = vst [vmem:[#allocation160_spill] sm:$0xff] %v15022_v17  ;;  %20032 = vst [vmem:[#allocation162_spill] sm:$0xff] %v15028_v20  ;;  %v15032_v41 = vpop.f32.mrb[17].mxu1 }
 0x457   : > { %v15026_v36 = vpop.permute.xlu0 %10778  ;;  %20033 = vst [vmem:[#allocation163_spill] sm:$0xff] %v15032_v41  ;;  %v15036_v22 = vpop.f32.mrb[18].mxu1 }
 0x458   : > { %20031 = vst [vmem:[#allocation161_spill] sm:$0xff] %v15026_v36  ;;  %20034 = vst [vmem:[#allocation164_spill] sm:$0xff] %v15036_v22  ;;  %v15040_v47 = vpop.f32.mrb[19].mxu1  ;;  %v3358_v36 = vld [vmem:[#allocation3 + $0x1a2] sm:$0xff] }
 0x459   : > { %10833 = vrot.lane.b32.xlu1 %v15024_v42, %s12110_s24  ;;  %v15038_v17 = vpop.permute.xlu1 %10553  ;;  %20036 = vst [vmem:[#allocation166_spill] sm:$0xff] %v15040_v47  ;;  %v11077_v11 = vpack.i.bf16 %v3358_v36, %v3357_v52 }
 0x45a   : > { %11068 = vrot.lane.b32.xlu0 %v14869_v60, %s12113_s11  ;;  %20035 = vst [vmem:[#allocation165_spill] sm:$0xff] %v15038_v17  ;;  %v15048_v60 = vpack.i.bf16 %v3268_v57, %v3267_v55  ;;  %v3271_v17 = vld [vmem:[#allocation3 + $0x90] sm:$0xff]  ;;  %v3276_v57 = vld [vmem:[#allocation3 + $0xc8] sm:$0xff] }
 0x45b   : > { %v15042_v20 = vpop.permute.xlu0 %10788  ;;  %v15058_v36 = vpack.i.bf16 %v3272_v63, %v3271_v17  ;;  %v15068_v18 = vpack.i.bf16 %v3276_v57, %v3275_v15 }
 0x45c   : > { %20037 = vst [vmem:[#allocation167_spill] sm:$0xff] %v15042_v20 }
 0x45d   : > { %10843 = vrot.lane.b32.xlu1 %v10842_v40, %s12111_s25  ;;  %v15046_v41 = vpop.permute.xlu1 %10563 }
 0x45e   : > { %11078 = vrot.lane.b32.xlu0 %v11077_v11, %s12113_s11  ;;  %20038 = vst [vmem:[#allocation168_spill] sm:$0xff] %v15046_v41 }
 0x45f   : > { %v15050_v22 = vpop.permute.xlu0 %10798 }
 0x460   : > { %20039 = vst [vmem:[#allocation169_spill] sm:$0xff] %v15050_v22  ;;  %v3390_v22 = vld [vmem:[#allocation3 + $0x1a3] sm:$0xff] }
 0x461   : > { %10853 = vrot.lane.b32.xlu1 %v15048_v60, %s12111_s25  ;;  %v15056_v52 = vpop.permute.xlu1 %10573 }
 0x462   : > { %11088 = vrot.lane.b32.xlu0 %v14889_v51, %s12114_s12  ;;  %20040 = vst [vmem:[#allocation170_spill] sm:$0xff] %v15056_v52  ;;  %v3279_v51 = vld [vmem:[#allocation3 + $0xf0] sm:$0xff]  ;;  %v3280_v52 = vld [vmem:[#allocation3 + $0xf8] sm:$0xff] }
 0x463   : > { %v15060_v11 = vpop.permute.xlu0 %10808  ;;  %v15078_v17 = vpack.i.bf16 %v3280_v52, %v3279_v51 }
 0x464   : > { %20041 = vst [vmem:[#allocation171_spill] sm:$0xff] %v15060_v11 }
 0x465   : > { %10863 = vrot.lane.b32.xlu1 %v15058_v36, %s12111_s25 }
 0x466   : > { %11098 = vrot.lane.b32.xlu0 %v14900_v44, %s12114_s12  ;;  %v15066_v55 = vpop.permute.xlu1 %10583  ;;  %v3283_v44 = vld [vmem:[#allocation3 + $0x120] sm:$0xff] }
 0x467   : > { %20042 = vst [vmem:[#allocation172_spill] sm:$0xff] %v15066_v55  ;;  %v15070_v40 = vpop.permute.xlu0 %10818  ;;  %v3284_v55 = vld [vmem:[#allocation3 + $0x128] sm:$0xff] }
 0x468   : > { %20043 = vst [vmem:[#allocation173_spill] sm:$0xff] %v15070_v40  ;;  %v15088_v57 = vpack.i.bf16 %v3284_v55, %v3283_v44 }
 0x469   : > { %10873 = vrot.lane.b32.xlu1 %v15068_v18, %s12111_s25 }
 0x46a   : > { %11108 = vrot.lane.b32.xlu0 %v14909_v13, %s12114_s12  ;;  %v15076_v63 = vpop.permute.xlu1 %10593  ;;  %v3287_v13 = vld [vmem:[#allocation3 + $0x150] sm:$0xff] }
 0x46b   : > { %20044 = vst [vmem:[#allocation174_spill] sm:$0xff] %v15076_v63  ;;  %v15080_v11 = vpop.permute.xlu0 %10828  ;;  %v3288_v63 = vld [vmem:[#allocation3 + $0x158] sm:$0xff] }
 0x46c   : > { %20045 = vst [vmem:[#allocation175_spill] sm:$0xff] %v15080_v11  ;;  %v15098_v51 = vpack.i.bf16 %v3288_v63, %v3287_v13  ;;  %v3389_v63 = vld [vmem:[#allocation3 + $0x19b] sm:$0xff] }
 0x46d   : > { %10883 = vrot.lane.b32.xlu1 %v15078_v17, %s12111_s25 }
 0x46e   : > { %11118 = vrot.lane.b32.xlu0 %v14919_v14, %s12114_s12  ;;  %v15086_v15 = vpop.permute.xlu1 %10603  ;;  %v3291_v14 = vld [vmem:[#allocation3 + $0x180] sm:$0xff] }
 0x46f   : > { %20046 = vst [vmem:[#allocation176_spill] sm:$0xff] %v15086_v15  ;;  %v15090_v40 = vpop.permute.xlu0 %10838  ;;  %v3292_v15 = vld [vmem:[#allocation3 + $0x188] sm:$0xff] }
 0x470   : > { %20047 = vst [vmem:[#allocation177_spill] sm:$0xff] %v15090_v40  ;;  %v15108_v44 = vpack.i.bf16 %v3292_v15, %v3291_v14  ;;  %v11157_v15 = vpack.i.bf16 %v3390_v22, %v3389_v63  ;;  %v3299_v14 = vld [vmem:[#allocation3 + $0x61] sm:$0xff] }
 0x471   : > { %10893 = vrot.lane.b32.xlu1 %v15088_v57, %s12111_s25 }
 0x472   : > { %11128 = vrot.lane.b32.xlu0 %v14936_v9, %s12114_s12  ;;  %v15096_v52 = vpop.permute.xlu1 %10613  ;;  %v3295_v9 = vld [vmem:[#allocation3 + $0x31] sm:$0xff] }
 0x473   : > { %20048 = vst [vmem:[#allocation178_spill] sm:$0xff] %v15096_v52  ;;  %v15100_v11 = vpop.permute.xlu0 %10848  ;;  %v3296_v52 = vld [vmem:[#allocation3 + $0x39] sm:$0xff] }
 0x474   : > { %20049 = vst [vmem:[#allocation179_spill] sm:$0xff] %v15100_v11  ;;  %v10922_v11 = vpack.i.bf16 %v3296_v52, %v3295_v9 }
 0x475   : > { %10903 = vrot.lane.b32.xlu1 %v15098_v51, %s12111_s25 }
 0x476   : > { %11138 = vrot.lane.b32.xlu0 %v14945_v45, %s12114_s12 }
 0x477   : > { %v15106_v55 = vpop.permute.xlu1 %10623 }
 0x478   : > { %20050 = vst [vmem:[#allocation180_spill] sm:$0xff] %v15106_v55  ;;  %v15110_v40 = vpop.permute.xlu0 %10858 }
 0x479   : > { %20051 = vst [vmem:[#allocation181_spill] sm:$0xff] %v15110_v40  ;;  %10913 = vrot.lane.b32.xlu1 %v15108_v44, %s12111_s25  ;;  %v15120_v55 = vpop.f32.mrb[20].mxu1  ;;  %v3300_v40 = vld [vmem:[#allocation3 + $0x69] sm:$0xff] }
 0x47a   : > { %11148 = vrot.lane.b32.xlu0 %v14954_v5, %s12114_s12  ;;  %20054 = vst [vmem:[#allocation184_spill] sm:$0xff] %v15120_v55  ;;  %v15123_v41 = vpop.f32.mrb[21].mxu1  ;;  %v10932_v52 = vpack.i.bf16 %v3300_v40, %v3299_v14  ;;  %v3304_v55 = vld [vmem:[#allocation3 + $0x99] sm:$0xff] }
 0x47b   : > { %v15116_v13 = vpop.permute.xlu1 %10633  ;;  %20055 = vst [vmem:[#allocation185_spill] sm:$0xff] %v15123_v41  ;;  %v15126_v20 = vpop.f32.mrb[22].mxu1 }
 0x47c   : > { %20052 = vst [vmem:[#allocation182_spill] sm:$0xff] %v15116_v13  ;;  %v15118_v45 = vpop.permute.xlu0 %10868  ;;  %20056 = vst [vmem:[#allocation186_spill] sm:$0xff] %v15126_v20  ;;  %v15130_v13 = vpop.f32.mrb[23].mxu1  ;;  %v3308_v20 = vld [vmem:[#allocation3 + $0xc9] sm:$0xff] }
 0x47d   : > { %20053 = vst [vmem:[#allocation183_spill] sm:$0xff] %v15118_v45  ;;  %10923 = vrot.lane.b32.xlu1 %v10922_v11, %s12112_s26  ;;  %20058 = vst [vmem:[#allocation188_spill] sm:$0xff] %v15130_v13  ;;  %v3303_v45 = vld [vmem:[#allocation3 + $0x91] sm:$0xff]  ;;  %v3312_v13 = vld [vmem:[#allocation3 + $0xf9] sm:$0xff] }
 0x47e   : > { %11158 = vrot.lane.b32.xlu0 %v11157_v15, %s12114_s12  ;;  %v10942_v11 = vpack.i.bf16 %v3304_v55, %v3303_v45  ;;  %v3307_v15 = vld [vmem:[#allocation3 + $0xc1] sm:$0xff] }
 0x47f   : > { %v15128_v5 = vpop.permute.xlu1 %10643  ;;  %v10952_v14 = vpack.i.bf16 %v3308_v20, %v3307_v15 }
 0x480   : > { %20057 = vst [vmem:[#allocation187_spill] sm:$0xff] %v15128_v5  ;;  %v15132_v9 = vpop.permute.xlu0 %10878 }
 0x481   : > { %20059 = vst [vmem:[#allocation189_spill] sm:$0xff] %v15132_v9  ;;  %10933 = vrot.lane.b32.xlu1 %v10932_v52, %s12112_s26  ;;  %v3311_v9 = vld [vmem:[#allocation3 + $0xf1] sm:$0xff] }
 0x482   : > { %11168 = vrot.lane.b32.xlu0 %v14969_v50, %s12115_s13  ;;  %v10962_v55 = vpack.i.bf16 %v3312_v13, %v3311_v9 }
 0x483   : > { %v15137_v22 = vpop.permute.xlu1 %10653 }
 0x484   : > { %20060 = vst [vmem:[#allocation190_spill] sm:$0xff] %v15137_v22  ;;  %v15139_v63 = vpop.permute.xlu0 %10888 }
 0x485   : > { %20061 = vst [vmem:[#allocation191_spill] sm:$0xff] %v15139_v63  ;;  %10943 = vrot.lane.b32.xlu1 %v10942_v11, %s12112_s26  ;;  %v3315_v11 = vld [vmem:[#allocation3 + $0x121] sm:$0xff]  ;;  %v3316_v63 = vld [vmem:[#allocation3 + $0x129] sm:$0xff] }
 0x486   : > { %11178 = vrot.lane.b32.xlu0 %v14978_v48, %s12115_s13  ;;  %v10972_v20 = vpack.i.bf16 %v3316_v63, %v3315_v11 }
 0x487   : > { %v15144_v40 = vpop.permute.xlu1 %10663 }
 0x488   : > { %20062 = vst [vmem:[#allocation192_spill] sm:$0xff] %v15144_v40  ;;  %v15146_v52 = vpop.permute.xlu0 %10898 }
 0x489   : > { %20063 = vst [vmem:[#allocation193_spill] sm:$0xff] %v15146_v52  ;;  %10953 = vrot.lane.b32.xlu1 %v10952_v14, %s12112_s26  ;;  %v3319_v14 = vld [vmem:[#allocation3 + $0x151] sm:$0xff]  ;;  %v3320_v52 = vld [vmem:[#allocation3 + $0x159] sm:$0xff] }
 0x48a   : > { %11188 = vrot.lane.b32.xlu0 %v14987_v49, %s12115_s13  ;;  %v10982_v13 = vpack.i.bf16 %v3320_v52, %v3319_v14  ;;  %v3328_v52 = vld [vmem:[#allocation3 + $0x3a] sm:$0xff] }
 0x48b   : > { %v15151_v50 = vpop.permute.xlu1 %10673 }
 0x48c   : > { %20064 = vst [vmem:[#allocation194_spill] sm:$0xff] %v15151_v50  ;;  %v15153_v45 = vpop.permute.xlu0 %10908 }
 0x48d   : > { %20065 = vst [vmem:[#allocation195_spill] sm:$0xff] %v15153_v45  ;;  %10963 = vrot.lane.b32.xlu1 %v10962_v55, %s12112_s26  ;;  %v3323_v55 = vld [vmem:[#allocation3 + $0x181] sm:$0xff]  ;;  %v3324_v45 = vld [vmem:[#allocation3 + $0x189] sm:$0xff] }
 0x48e   : > { %11198 = vrot.lane.b32.xlu0 %v14996_v39, %s12115_s13  ;;  %v10992_v63 = vpack.i.bf16 %v3324_v45, %v3323_v55  ;;  %v3332_v45 = vld [vmem:[#allocation3 + $0x6a] sm:$0xff] }
 0x48f   : > { %v15158_v48 = vpop.permute.xlu1 %10683 }
 0x490   : > { %20066 = vst [vmem:[#allocation196_spill] sm:$0xff] %v15158_v48  ;;  %v15160_v15 = vpop.permute.xlu0 %10918 }
 0x491   : > { %20067 = vst [vmem:[#allocation197_spill] sm:$0xff] %v15160_v15  ;;  %10973 = vrot.lane.b32.xlu1 %v10972_v20, %s12112_s26  ;;  %v3327_v20 = vld [vmem:[#allocation3 + $0x32] sm:$0xff]  ;;  %v3331_v15 = vld [vmem:[#allocation3 + $0x62] sm:$0xff] }
 0x492   : > { %11208 = vrot.lane.b32.xlu0 %v15005_v10, %s12115_s13  ;;  %v3421_v10 = vld [vmem:[#allocation3 + $0x19c] sm:$0xff] }
 0x493   : > { %v15165_v49 = vpop.permute.xlu1 %10693 }
 0x494   : > { %20068 = vst [vmem:[#allocation198_spill] sm:$0xff] %v15165_v49  ;;  %v15167_v9 = vpop.permute.xlu0 %10928 }
 0x495   : > { %20069 = vst [vmem:[#allocation199_spill] sm:$0xff] %v15167_v9  ;;  %10983 = vrot.lane.b32.xlu1 %v10982_v13, %s12112_s26  ;;  %v11002_v9 = vpack.i.bf16 %v3328_v52, %v3327_v20  ;;  %v3422_v13 = vld [vmem:[#allocation3 + $0x1a4] sm:$0xff] }
 0x496   : > { %11218 = vrot.lane.b32.xlu0 %v15014_v21, %s12115_s13  ;;  %v11237_v21 = vpack.i.bf16 %v3422_v13, %v3421_v10  ;;  %v3336_v10 = vld [vmem:[#allocation3 + $0x9a] sm:$0xff] }
 0x497   : > { %v15172_v39 = vpop.permute.xlu1 %10703 }
 0x498   : > { %20070 = vst [vmem:[#allocation200_spill] sm:$0xff] %v15172_v39  ;;  %v15174_v11 = vpop.permute.xlu0 %10938 }
 0x499   : > { %20071 = vst [vmem:[#allocation201_spill] sm:$0xff] %v15174_v11  ;;  %10993 = vrot.lane.b32.xlu1 %v10992_v63, %s12112_s26  ;;  %v15187_v63 = vpack.i.bf16 %v3332_v45, %v3331_v15  ;;  %v3339_v45 = vld [vmem:[#allocation3 + $0xc2] sm:$0xff] }
 0x49a   : > { %11228 = vrot.lane.b32.xlu0 %v15024_v42, %s12115_s13 }
 0x49b   : > { %v15179_v14 = vpop.permute.xlu1 %10713 }
 0x49c   : > { %20072 = vst [vmem:[#allocation202_spill] sm:$0xff] %v15179_v14  ;;  %v15181_v49 = vpop.permute.xlu0 %10948  ;;  %v3335_v14 = vld [vmem:[#allocation3 + $0x92] sm:$0xff] }
 0x49d   : > { %20073 = vst [vmem:[#allocation203_spill] sm:$0xff] %v15181_v49  ;;  %11003 = vrot.lane.b32.xlu1 %v11002_v9, %s12113_s11  ;;  %v15191_v42 = vpop.f32.mrb[24].mxu1  ;;  %v15205_v13 = vpack.i.bf16 %v3336_v10, %v3335_v14  ;;  %v3344_v14 = vld [vmem:[#allocation3 + $0xfa] sm:$0xff]  ;;  %v3364_v49 = vld [vmem:[#allocation3 + $0x6b] sm:$0xff] }
 0x49e   : > { %11238 = vrot.lane.b32.xlu0 %v11237_v21, %s12115_s13  ;;  %20076 = vst [vmem:[#allocation206_spill] sm:$0xff] %v15191_v42  ;;  %v15195_v20 = vpop.f32.mrb[25].mxu1  ;;  %v3340_v42 = vld [vmem:[#allocation3 + $0xca] sm:$0xff] }
 0x49f   : > { %v15185_v55 = vpop.permute.xlu1 %10723  ;;  %20077 = vst [vmem:[#allocation207_spill] sm:$0xff] %v15195_v20  ;;  %v15199_v9 = vpop.f32.mrb[26].mxu1 }
 0x4a0   : > { %20074 = vst [vmem:[#allocation204_spill] sm:$0xff] %v15185_v55  ;;  %v15189_v11 = vpop.permute.xlu0 %10958  ;;  %20078 = vst [vmem:[#allocation208_spill] sm:$0xff] %v15199_v9  ;;  %v15203_v15 = vpop.f32.mrb[27].mxu1  ;;  %v15215_v9 = vpack.i.bf16 %v3340_v42, %v3339_v45  ;;  %v3348_v42 = vld [vmem:[#allocation3 + $0x12a] sm:$0xff] }
 0x4a1   : > { %20075 = vst [vmem:[#allocation205_spill] sm:$0xff] %v15189_v11  ;;  %11013 = vrot.lane.b32.xlu1 %v15187_v63, %s12113_s11  ;;  %20080 = vst [vmem:[#allocation210_spill] sm:$0xff] %v15203_v15 }
 0x4a2   : > { %11248 = vrot.lane.b32.xlu0 %v15048_v60, %s12116_s14 }
 0x4a3   : > { %v15201_v52 = vpop.permute.xlu1 %10733 }
 0x4a4   : > { %20079 = vst [vmem:[#allocation209_spill] sm:$0xff] %v15201_v52  ;;  %v15207_v21 = vpop.permute.xlu0 %10968  ;;  %v3343_v52 = vld [vmem:[#allocation3 + $0xf2] sm:$0xff] }
 0x4a5   : > { %20081 = vst [vmem:[#allocation211_spill] sm:$0xff] %v15207_v21  ;;  %11023 = vrot.lane.b32.xlu1 %v15205_v13, %s12113_s11  ;;  %v15225_v15 = vpack.i.bf16 %v3344_v14, %v3343_v52  ;;  %v3347_v21 = vld [vmem:[#allocation3 + $0x122] sm:$0xff]  ;;  %v3352_v52 = vld [vmem:[#allocation3 + $0x15a] sm:$0xff] }
 0x4a6   : > { %11258 = vrot.lane.b32.xlu0 %v15058_v36, %s12116_s14 }
 0x4a7   : > { %v15213_v60 = vpop.permute.xlu1 %10743 }
 0x4a8   : > { %20082 = vst [vmem:[#allocation212_spill] sm:$0xff] %v15213_v60  ;;  %v15217_v20 = vpop.permute.xlu0 %10978  ;;  %v3351_v60 = vld [vmem:[#allocation3 + $0x152] sm:$0xff] }
 0x4a9   : > { %20083 = vst [vmem:[#allocation213_spill] sm:$0xff] %v15217_v20  ;;  %11033 = vrot.lane.b32.xlu1 %v15215_v9, %s12113_s11  ;;  %v15235_v20 = vpack.i.bf16 %v3348_v42, %v3347_v21  ;;  %v3356_v21 = vld [vmem:[#allocation3 + $0x18a] sm:$0xff] }
 0x4aa   : > { %11268 = vrot.lane.b32.xlu0 %v15068_v18, %s12116_s14 }
 0x4ab   : > { %v15223_v10 = vpop.permute.xlu1 %10753 }
 0x4ac   : > { %20084 = vst [vmem:[#allocation214_spill] sm:$0xff] %v15223_v10  ;;  %v15227_v36 = vpop.permute.xlu0 %10988  ;;  %v3355_v10 = vld [vmem:[#allocation3 + $0x182] sm:$0xff] }
 0x4ad   : > { %20085 = vst [vmem:[#allocation215_spill] sm:$0xff] %v15227_v36  ;;  %11043 = vrot.lane.b32.xlu1 %v15225_v15, %s12113_s11  ;;  %v15245_v36 = vpack.i.bf16 %v3352_v52, %v3351_v60  ;;  %v3359_v60 = vld [vmem:[#allocation3 + $0x33] sm:$0xff]  ;;  %v3360_v52 = vld [vmem:[#allocation3 + $0x3b] sm:$0xff] }
 0x4ae   : > { %11278 = vrot.lane.b32.xlu0 %v15078_v17, %s12116_s14 }
 0x4af   : > { %v15233_v45 = vpop.permute.xlu1 %10763 }
 0x4b0   : > { %20086 = vst [vmem:[#allocation216_spill] sm:$0xff] %v15233_v45  ;;  %v15237_v18 = vpop.permute.xlu0 %10998  ;;  %v3455_v45 = vld [vmem:[#allocation3 + $0x1b8] sm:$0xff] }
 0x4b1   : > { %20087 = vst [vmem:[#allocation217_spill] sm:$0xff] %v15237_v18  ;;  %11053 = vrot.lane.b32.xlu1 %v15235_v20, %s12113_s11  ;;  %v15255_v18 = vpack.i.bf16 %v3356_v21, %v3355_v10  ;;  %v3363_v21 = vld [vmem:[#allocation3 + $0x63] sm:$0xff] }
 0x4b2   : > { %11288 = vrot.lane.b32.xlu0 %v15088_v57, %s12116_s14  ;;  %v3454_v57 = vld [vmem:[#allocation3 + $0x1b0] sm:$0xff] }
 0x4b3   : > { %v15243_v14 = vpop.permute.xlu1 %10773 }
 0x4b4   : > { %20088 = vst [vmem:[#allocation218_spill] sm:$0xff] %v15243_v14  ;;  %v15247_v17 = vpop.permute.xlu0 %11008 }
 0x4b5   : > { %20089 = vst [vmem:[#allocation219_spill] sm:$0xff] %v15247_v17  ;;  %11063 = vrot.lane.b32.xlu1 %v15245_v36, %s12113_s11  ;;  %v11317_v17 = vpack.i.bf16 %v3455_v45, %v3454_v57  ;;  %v15279_v57 = vpack.i.bf16 %v3364_v49, %v3363_v21  ;;  %v3371_v49 = vld [vmem:[#allocation3 + $0xc3] sm:$0xff] }
 0x4b6   : > { %11298 = vrot.lane.b32.xlu0 %v15098_v51, %s12116_s14  ;;  %v11082_v51 = vpack.i.bf16 %v3360_v52, %v3359_v60  ;;  %v3367_v52 = vld [vmem:[#allocation3 + $0x93] sm:$0xff] }
 0x4b7   : > { %v15253_v42 = vpop.permute.xlu1 %10783 }
 0x4b8   : > { %20090 = vst [vmem:[#allocation220_spill] sm:$0xff] %v15253_v42  ;;  %v15257_v11 = vpop.permute.xlu0 %11018 }
 0x4b9   : > { %20091 = vst [vmem:[#allocation221_spill] sm:$0xff] %v15257_v11  ;;  %11073 = vrot.lane.b32.xlu1 %v15255_v18, %s12113_s11  ;;  %v15267_v10 = vpop.f32.mrb[28].mxu1 }
 0x4ba   : > { %11308 = vrot.lane.b32.xlu0 %v15108_v44, %s12116_s14  ;;  %20094 = vst [vmem:[#allocation224_spill] sm:$0xff] %v15267_v10  ;;  %v15270_v11 = vpop.f32.mrb[29].mxu1 }
 0x4bb   : > { %v15263_v14 = vpop.permute.xlu1 %10793  ;;  %20095 = vst [vmem:[#allocation225_spill] sm:$0xff] %v15270_v11  ;;  %v15273_v42 = vpop.f32.mrb[30].mxu1 }
 0x4bc   : > { %20092 = vst [vmem:[#allocation222_spill] sm:$0xff] %v15263_v14  ;;  %v15265_v55 = vpop.permute.xlu0 %11028  ;;  %20096 = vst [vmem:[#allocation226_spill] sm:$0xff] %v15273_v42  ;;  %v15277_v45 = vpop.f32.mrb[31].mxu1  ;;  %v3396_v14 = vld [vmem:[#allocation3 + $0x6c] sm:$0xff] }
 0x4bd   : > { %20093 = vst [vmem:[#allocation223_spill] sm:$0xff] %v15265_v55  ;;  %11083 = vrot.lane.b32.xlu1 %v11082_v51, %s12114_s12  ;;  %20098 = vst [vmem:[#allocation228_spill] sm:$0xff] %v15277_v45  ;;  %v3368_v51 = vld [vmem:[#allocation3 + $0x9b] sm:$0xff] }
 0x4be   : > { %11318 = vrot.lane.b32.xlu0 %v11317_v17, %s12116_s14  ;;  %v15289_v42 = vpack.i.bf16 %v3368_v51, %v3367_v52 }
 0x4bf   : > { %v15275_v44 = vpop.permute.xlu1 %10803 }
 0x4c0   : > { %20097 = vst [vmem:[#allocation227_spill] sm:$0xff] %v15275_v44  ;;  %v15281_v60 = vpop.permute.xlu0 %11038  ;;  %v3391_v44 = vld [vmem:[#allocation3 + $0x34] sm:$0xff] }
 0x4c1   : > { %20099 = vst [vmem:[#allocation229_spill] sm:$0xff] %v15281_v60  ;;  %11093 = vrot.lane.b32.xlu1 %v15279_v57, %s12114_s12 }
 0x4c2   : > { %11328 = vrot.lane.b32.xlu0 %v15187_v63, %s12100_s18  ;;  %v3372_v63 = vld [vmem:[#allocation3 + $0xcb] sm:$0xff] }
 0x4c3   : > { %v15287_v17 = vpop.permute.xlu1 %10813  ;;  %v15307_v51 = vpack.i.bf16 %v3372_v63, %v3371_v49  ;;  %v3379_v49 = vld [vmem:[#allocation3 + $0x123] sm:$0xff] }
 0x4c4   : > { %20100 = vst [vmem:[#allocation230_spill] sm:$0xff] %v15287_v17  ;;  %v15291_v10 = vpop.permute.xlu0 %11048  ;;  %v15293_v11 = vpop.f32.mrb[32].mxu1 }
 0x4c5   : > { %20101 = vst [vmem:[#allocation231_spill] sm:$0xff] %v15291_v10  ;;  %20102 = vst [vmem:[#allocation232_spill] sm:$0xff] %v15293_v11  ;;  %11103 = vrot.lane.b32.xlu1 %v15289_v42, %s12114_s12  ;;  %v15297_v21 = vpop.f32.mrb[33].mxu1  ;;  %v3375_v11 = vld [vmem:[#allocation3 + $0xf3] sm:$0xff] }
 0x4c6   : > { %20103 = vst [vmem:[#allocation233_spill] sm:$0xff] %v15297_v21  ;;  %11338 = vrot.lane.b32.xlu0 %v15205_v13, %s12100_s18  ;;  %v15301_v45 = vpop.f32.mrb[34].mxu1  ;;  %v3376_v21 = vld [vmem:[#allocation3 + $0xfb] sm:$0xff] }
 0x4c7   : > { %20104 = vst [vmem:[#allocation234_spill] sm:$0xff] %v15301_v45  ;;  %v15303_v60 = vpop.permute.xlu1 %10823  ;;  %v15305_v52 = vpop.f32.mrb[35].mxu1  ;;  %v15317_v45 = vpack.i.bf16 %v3376_v21, %v3375_v11 }
 0x4c8   : > { %20105 = vst [vmem:[#allocation235_spill] sm:$0xff] %v15303_v60  ;;  %20106 = vst [vmem:[#allocation236_spill] sm:$0xff] %v15305_v52  ;;  %v15309_v10 = vpop.permute.xlu0 %11058 }
 0x4c9   : > { %20107 = vst [vmem:[#allocation237_spill] sm:$0xff] %v15309_v10  ;;  %11113 = vrot.lane.b32.xlu1 %v15307_v51, %s12114_s12 }
 0x4ca   : > { %11348 = vrot.lane.b32.xlu0 %v15215_v9, %s12100_s18  ;;  %v3380_v9 = vld [vmem:[#allocation3 + $0x12b] sm:$0xff] }
 0x4cb   : > { %v15315_v13 = vpop.permute.xlu1 %10833  ;;  %v15335_v21 = vpack.i.bf16 %v3380_v9, %v3379_v49  ;;  %v3387_v49 = vld [vmem:[#allocation3 + $0x183] sm:$0xff] }
 0x4cc   : > { %20108 = vst [vmem:[#allocation238_spill] sm:$0xff] %v15315_v13  ;;  %v15319_v17 = vpop.permute.xlu0 %11068  ;;  %v15321_v60 = vpop.f32.mrb[36].mxu1 }
 0x4cd   : > { %20109 = vst [vmem:[#allocation239_spill] sm:$0xff] %v15319_v17  ;;  %20110 = vst [vmem:[#allocation240_spill] sm:$0xff] %v15321_v60  ;;  %11123 = vrot.lane.b32.xlu1 %v15317_v45, %s12114_s12  ;;  %v15325_v63 = vpop.f32.mrb[37].mxu1  ;;  %v3383_v60 = vld [vmem:[#allocation3 + $0x153] sm:$0xff] }
 0x4ce   : > { %20111 = vst [vmem:[#allocation241_spill] sm:$0xff] %v15325_v63  ;;  %11358 = vrot.lane.b32.xlu0 %v15225_v15, %s12100_s18  ;;  %v15329_v52 = vpop.f32.mrb[38].mxu1  ;;  %v3384_v63 = vld [vmem:[#allocation3 + $0x15b] sm:$0xff] }
 0x4cf   : > { %20112 = vst [vmem:[#allocation242_spill] sm:$0xff] %v15329_v52  ;;  %v15331_v10 = vpop.permute.xlu1 %10843  ;;  %v15333_v11 = vpop.f32.mrb[39].mxu1  ;;  %v15345_v52 = vpack.i.bf16 %v3384_v63, %v3383_v60 }
 0x4d0   : > { %20113 = vst [vmem:[#allocation243_spill] sm:$0xff] %v15331_v10  ;;  %20114 = vst [vmem:[#allocation244_spill] sm:$0xff] %v15333_v11  ;;  %v15337_v17 = vpop.permute.xlu0 %11078 }
 0x4d1   : > { %20115 = vst [vmem:[#allocation245_spill] sm:$0xff] %v15337_v17  ;;  %11133 = vrot.lane.b32.xlu1 %v15335_v21, %s12114_s12 }
 0x4d2   : > { %11368 = vrot.lane.b32.xlu0 %v15235_v20, %s12100_s18  ;;  %v3388_v20 = vld [vmem:[#allocation3 + $0x18b] sm:$0xff] }
 0x4d3   : > { %v15343_v15 = vpop.permute.xlu1 %10853  ;;  %v15363_v63 = vpack.i.bf16 %v3388_v20, %v3387_v49  ;;  %v3395_v20 = vld [vmem:[#allocation3 + $0x64] sm:$0xff] }
 0x4d4   : > { %20116 = vst [vmem:[#allocation246_spill] sm:$0xff] %v15343_v15  ;;  %v15347_v13 = vpop.permute.xlu0 %11088  ;;  %v15349_v10 = vpop.f32.mrb[40].mxu1 }
 0x4d5   : > { %20117 = vst [vmem:[#allocation247_spill] sm:$0xff] %v15347_v13  ;;  %20118 = vst [vmem:[#allocation248_spill] sm:$0xff] %v15349_v10  ;;  %11143 = vrot.lane.b32.xlu1 %v15345_v52, %s12114_s12  ;;  %v15353_v9 = vpop.f32.mrb[41].mxu1  ;;  %v3518_v13 = vld [vmem:[#allocation3 + $0x1b2] sm:$0xff]  ;;  %v3519_v10 = vld [vmem:[#allocation3 + $0x1ba] sm:$0xff] }
 0x4d6   : > { %20119 = vst [vmem:[#allocation249_spill] sm:$0xff] %v15353_v9  ;;  %11378 = vrot.lane.b32.xlu0 %v15245_v36, %s12100_s18  ;;  %v15357_v11 = vpop.f32.mrb[42].mxu1  ;;  %v3392_v36 = vld [vmem:[#allocation3 + $0x3c] sm:$0xff] }
 0x4d7   : > { %20120 = vst [vmem:[#allocation250_spill] sm:$0xff] %v15357_v11  ;;  %v15359_v17 = vpop.permute.xlu1 %10863  ;;  %v15361_v60 = vpop.f32.mrb[43].mxu1  ;;  %v11397_v11 = vpack.i.bf16 %v3519_v10, %v3518_v13  ;;  %v15387_v13 = vpack.i.bf16 %v3396_v14, %v3395_v20  ;;  %v3403_v14 = vld [vmem:[#allocation3 + $0xc4] sm:$0xff] }
 0x4d8   : > { %20121 = vst [vmem:[#allocation251_spill] sm:$0xff] %v15359_v17  ;;  %20122 = vst [vmem:[#allocation252_spill] sm:$0xff] %v15361_v60  ;;  %v15365_v15 = vpop.permute.xlu0 %11098  ;;  %v11162_v17 = vpack.i.bf16 %v3392_v36, %v3391_v44  ;;  %v3399_v36 = vld [vmem:[#allocation3 + $0x94] sm:$0xff] }
 0x4d9   : > { %20123 = vst [vmem:[#allocation253_spill] sm:$0xff] %v15365_v15  ;;  %11153 = vrot.lane.b32.xlu1 %v15363_v63, %s12114_s12 }
 0x4da   : > { %11388 = vrot.lane.b32.xlu0 %v15255_v18, %s12100_s18 }
 0x4db   : > { %v15371_v9 = vpop.permute.xlu1 %10873 }
 0x4dc   : > { %20124 = vst [vmem:[#allocation254_spill] sm:$0xff] %v15371_v9  ;;  %v15373_v55 = vpop.permute.xlu0 %11108  ;;  %v15375_v49 = vpop.f32.mrb[44].mxu1 }
 0x4dd   : > { %20125 = vst [vmem:[#allocation255_spill] sm:$0xff] %v15373_v55  ;;  %20126 = vst [vmem:[#allocation256_spill] sm:$0xff] %v15375_v49  ;;  %11163 = vrot.lane.b32.xlu1 %v11162_v17, %s12115_s13  ;;  %v15378_v60 = vpop.f32.mrb[45].mxu1  ;;  %v3400_v17 = vld [vmem:[#allocation3 + $0x9c] sm:$0xff] }
 0x4de   : > { %20127 = vst [vmem:[#allocation257_spill] sm:$0xff] %v15378_v60  ;;  %11398 = vrot.lane.b32.xlu0 %v11397_v11, %s12100_s18  ;;  %v15381_v15 = vpop.f32.mrb[46].mxu1 }
 0x4df   : > { %20128 = vst [vmem:[#allocation258_spill] sm:$0xff] %v15381_v15  ;;  %v15383_v18 = vpop.permute.xlu1 %10883  ;;  %v15385_v10 = vpop.f32.mrb[47].mxu1  ;;  %v15397_v15 = vpack.i.bf16 %v3400_v17, %v3399_v36 }
 0x4e0   : > { %20129 = vst [vmem:[#allocation259_spill] sm:$0xff] %v15383_v18  ;;  %20130 = vst [vmem:[#allocation260_spill] sm:$0xff] %v15385_v10  ;;  %v15389_v44 = vpop.permute.xlu0 %11118 }
 0x4e1   : > { %20131 = vst [vmem:[#allocation261_spill] sm:$0xff] %v15389_v44  ;;  %11173 = vrot.lane.b32.xlu1 %v15387_v13, %s12115_s13 }
 0x4e2   : > { %11408 = vrot.lane.b32.xlu0 %v15279_v57, %s12101_s19  ;;  %v3404_v57 = vld [vmem:[#allocation3 + $0xcc] sm:$0xff] }
 0x4e3   : > { %v15395_v11 = vpop.permute.xlu1 %10893  ;;  %v15415_v17 = vpack.i.bf16 %v3404_v57, %v3403_v14  ;;  %v3411_v14 = vld [vmem:[#allocation3 + $0x124] sm:$0xff] }
 0x4e4   : > { %20132 = vst [vmem:[#allocation262_spill] sm:$0xff] %v15395_v11  ;;  %v15399_v49 = vpop.permute.xlu0 %11128  ;;  %v15401_v60 = vpop.f32.mrb[48].mxu1 }
 0x4e5   : > { %20133 = vst [vmem:[#allocation263_spill] sm:$0xff] %v15399_v49  ;;  %20134 = vst [vmem:[#allocation264_spill] sm:$0xff] %v15401_v60  ;;  %11183 = vrot.lane.b32.xlu1 %v15397_v15, %s12115_s13  ;;  %v15405_v20 = vpop.f32.mrb[49].mxu1  ;;  %v3407_v60 = vld [vmem:[#allocation3 + $0xf4] sm:$0xff] }
 0x4e6   : > { %20135 = vst [vmem:[#allocation265_spill] sm:$0xff] %v15405_v20  ;;  %11418 = vrot.lane.b32.xlu0 %v15289_v42, %s12101_s19  ;;  %v15409_v10 = vpop.f32.mrb[50].mxu1  ;;  %v3408_v20 = vld [vmem:[#allocation3 + $0xfc] sm:$0xff] }
 0x4e7   : > { %20136 = vst [vmem:[#allocation266_spill] sm:$0xff] %v15409_v10  ;;  %v15411_v44 = vpop.permute.xlu1 %10903  ;;  %v15413_v36 = vpop.f32.mrb[51].mxu1  ;;  %v15425_v10 = vpack.i.bf16 %v3408_v20, %v3407_v60 }
 0x4e8   : > { %20137 = vst [vmem:[#allocation267_spill] sm:$0xff] %v15411_v44  ;;  %20138 = vst [vmem:[#allocation268_spill] sm:$0xff] %v15413_v36  ;;  %v15417_v49 = vpop.permute.xlu0 %11138 }
 0x4e9   : > { %20139 = vst [vmem:[#allocation269_spill] sm:$0xff] %v15417_v49  ;;  %11193 = vrot.lane.b32.xlu1 %v15415_v17, %s12115_s13 }
 0x4ea   : > { %11428 = vrot.lane.b32.xlu0 %v15307_v51, %s12101_s19  ;;  %v3412_v51 = vld [vmem:[#allocation3 + $0x12c] sm:$0xff] }
 0x4eb   : > { %v15423_v42 = vpop.permute.xlu1 %10913  ;;  %v15443_v20 = vpack.i.bf16 %v3412_v51, %v3411_v14 }
 0x4ec   : > { %20140 = vst [vmem:[#allocation270_spill] sm:$0xff] %v15423_v42  ;;  %v15427_v11 = vpop.permute.xlu0 %11148  ;;  %v15429_v44 = vpop.f32.mrb[52].mxu1 }
 0x4ed   : > { %20141 = vst [vmem:[#allocation271_spill] sm:$0xff] %v15427_v11  ;;  %20142 = vst [vmem:[#allocation272_spill] sm:$0xff] %v15429_v44  ;;  %11203 = vrot.lane.b32.xlu1 %v15425_v10, %s12115_s13  ;;  %v15433_v57 = vpop.f32.mrb[53].mxu1  ;;  %v3415_v44 = vld [vmem:[#allocation3 + $0x154] sm:$0xff] }
 0x4ee   : > { %20143 = vst [vmem:[#allocation273_spill] sm:$0xff] %v15433_v57  ;;  %11438 = vrot.lane.b32.xlu0 %v15317_v45, %s12101_s19  ;;  %v15437_v36 = vpop.f32.mrb[54].mxu1  ;;  %v3416_v57 = vld [vmem:[#allocation3 + $0x15c] sm:$0xff] }
 0x4ef   : > { %20144 = vst [vmem:[#allocation274_spill] sm:$0xff] %v15437_v36  ;;  %v15439_v49 = vpop.permute.xlu1 %10923  ;;  %v15441_v60 = vpop.f32.mrb[55].mxu1  ;;  %v15453_v36 = vpack.i.bf16 %v3416_v57, %v3415_v44  ;;  %v3420_v57 = vld [vmem:[#allocation3 + $0x18c] sm:$0xff] }
 0x4f0   : > { %20145 = vst [vmem:[#allocation275_spill] sm:$0xff] %v15439_v49  ;;  %20146 = vst [vmem:[#allocation276_spill] sm:$0xff] %v15441_v60  ;;  %v15445_v11 = vpop.permute.xlu0 %11158  ;;  %v9201_v60 = vld [vmem:[%s19365_s8] ss:$0 sm:$0xff] }
 0x4f1   : > { %20147 = vst [vmem:[#allocation277_spill] sm:$0xff] %v15445_v11  ;;  %11213 = vrot.lane.b32.xlu1 %v15443_v20, %s12115_s13  ;;  %v3419_v11 = vld [vmem:[#allocation3 + $0x184] sm:$0xff] }
 0x4f2   : > { %11448 = vrot.lane.b32.xlu0 %v15335_v21, %s12101_s19  ;;  %v15472_v55 = vpack.i.bf16 %v3420_v57, %v3419_v11 }
 0x4f3   : > { %v15451_v45 = vpop.permute.xlu1 %10933 }
 0x4f4   : > { %20148 = vst [vmem:[#allocation278_spill] sm:$0xff] %v15451_v45  ;;  %v15458_v14 = vpop.permute.xlu0 %11168  ;;  %v9444_v51 = vpop.f32.mrb[56].mxu1 }
 0x4f5   : > { %20149 = vst [vmem:[#allocation279_spill] sm:$0xff] %v15458_v14  ;;  %v15460_v49 = vadd.f32 %v9444_v51, %v9201_v60  ;;  %11223 = vrot.lane.b32.xlu1 %v15453_v36, %s12115_s13  ;;  %v8749_v42 = vpop.f32.mrb[57].mxu1  ;;  %v3550_v51 = vld [vmem:[#allocation3 + $0x1b3] sm:$0xff] }
 0x4f6   : > { %v15464_v21 = vadd.f32 %v9201_v60, %v8749_v42  ;;  %11458 = vrot.lane.b32.xlu0 %v15345_v52, %s12101_s19  ;;  %v9445_v44 = vpop.f32.mrb[58].mxu1  ;;  %v3424_v42 = vld [vmem:[#allocation3 + $0x48] sm:$0xff] }
 0x4f7   : > { %20150 = vst [vmem:[#allocation280_spill] sm:$0xff] %v15460_v49  ;;  %v15468_v45 = vadd.f32 %v9445_v44, %v9201_v60  ;;  %v15470_v18 = vpop.permute.xlu1 %10943  ;;  %v8752_v14 = vpop.f32.mrb[59].mxu1  ;;  %v3551_v49 = vld [vmem:[#allocation3 + $0x1bb] sm:$0xff] }
 0x4f8   : > { %20151 = vst [vmem:[#allocation281_spill] sm:$0xff] %v15464_v21  ;;  %20153 = vst [vmem:[#allocation283_spill] sm:$0xff] %v15470_v18  ;;  %v15474_v9 = vadd.f32 %v9201_v60, %v8752_v14  ;;  %v15476_v39 = vpop.permute.xlu0 %11178  ;;  %v3425_v21 = vld [vmem:[#allocation3 + $0x50] sm:$0xff]  ;;  %v11477_v52 = vpack.i.bf16 %v3551_v49, %v3550_v51  ;;  %v3428_v18 = vld [vmem:[#allocation3 + $0x78] sm:$0xff] }
 0x4f9   : > { %20152 = vst [vmem:[#allocation282_spill] sm:$0xff] %v15468_v45  ;;  %20155 = vst [vmem:[#allocation285_spill] sm:$0xff] %v15476_v39  ;;  %11233 = vrot.lane.b32.xlu1 %v15472_v55, %s12115_s13  ;;  %v11242_v45 = vpack.i.bf16 %v3425_v21, %v3424_v42  ;;  %v3429_v14 = vld [vmem:[#allocation3 + $0x80] sm:$0xff] }
 0x4fa   : > { %20154 = vst [vmem:[#allocation284_spill] sm:$0xff] %v15474_v9  ;;  %11468 = vrot.lane.b32.xlu0 %v15363_v63, %s12101_s19  ;;  %v15496_v51 = vpack.i.bf16 %v3429_v14, %v3428_v18  ;;  %v3437_v18 = vld [vmem:[#allocation3 + $0xe0] sm:$0xff] }
 0x4fb   : > { %v15482_v44 = vpop.permute.xlu1 %10953 }
 0x4fc   : > { %20156 = vst [vmem:[#allocation286_spill] sm:$0xff] %v15482_v44  ;;  %v15484_v11 = vpop.permute.xlu0 %11188  ;;  %v9448_v57 = vpop.f32.mrb[60].mxu1  ;;  %v3525_v44 = vld [vmem:[#allocation3 + $0x83] sm:$0xff] }
 0x4fd   : > { %20157 = vst [vmem:[#allocation287_spill] sm:$0xff] %v15484_v11  ;;  %v15486_v9 = vadd.f32 %v9448_v57, %v9201_v60  ;;  %11243 = vrot.lane.b32.xlu1 %v11242_v45, %s12116_s14  ;;  %v8765_v39 = vpop.f32.mrb[61].mxu1  ;;  %v3432_v57 = vld [vmem:[#allocation3 + $0xa8] sm:$0xff] }
 0x4fe   : > { %v15489_v48 = vadd.f32 %v9201_v60, %v8765_v39  ;;  %11478 = vrot.lane.b32.xlu0 %v11477_v52, %s12101_s19  ;;  %v9449_v50 = vpop.f32.mrb[62].mxu1  ;;  %v3436_v52 = vld [vmem:[#allocation3 + $0xd8] sm:$0xff] }
 0x4ff   : > { %20158 = vst [vmem:[#allocation288_spill] sm:$0xff] %v15486_v9  ;;  %v15492_v63 = vadd.f32 %v9449_v50, %v9201_v60  ;;  %v15494_v49 = vpop.permute.xlu1 %10963  ;;  %v8768_v21 = vpop.f32.mrb[63].mxu1  ;;  %v3433_v9 = vld [vmem:[#allocation3 + $0xb0] sm:$0xff]  ;;  %v11272_v14 = vpack.i.bf16 %v3437_v18, %v3436_v52 }
 0x500   : > { %20159 = vst [vmem:[#allocation289_spill] sm:$0xff] %v15489_v48  ;;  %20161 = vst [vmem:[#allocation291_spill] sm:$0xff] %v15494_v49  ;;  %v15498_v42 = vadd.f32 %v9201_v60, %v8768_v21  ;;  %v15500_v11 = vpop.permute.xlu0 %11198  ;;  %v11262_v50 = vpack.i.bf16 %v3433_v9, %v3432_v57  ;;  %v3444_v48 = vld [vmem:[#allocation3 + $0x138] sm:$0xff] }
 0x501   : > { %20160 = vst [vmem:[#allocation290_spill] sm:$0xff] %v15492_v63  ;;  %20163 = vst [vmem:[#allocation293_spill] sm:$0xff] %v15500_v11  ;;  %11253 = vrot.lane.b32.xlu1 %v15496_v51, %s12116_s14  ;;  %v3440_v63 = vld [vmem:[#allocation3 + $0x108] sm:$0xff] }
 0x502   : > { %20162 = vst [vmem:[#allocation292_spill] sm:$0xff] %v15498_v42  ;;  %11488 = vrot.lane.b32.xlu0 %v15387_v13, %s12107_s27  ;;  %v3441_v42 = vld [vmem:[#allocation3 + $0x110] sm:$0xff] }
 0x503   : > { %v15506_v39 = vpop.permute.xlu1 %10973  ;;  %v11282_v13 = vpack.i.bf16 %v3441_v42, %v3440_v63 }
 0x504   : > { %20164 = vst [vmem:[#allocation294_spill] sm:$0xff] %v15506_v39  ;;  %v15508_v45 = vpop.permute.xlu0 %11208 }
 0x505   : > { %20165 = vst [vmem:[#allocation295_spill] sm:$0xff] %v15508_v45  ;;  %11263 = vrot.lane.b32.xlu1 %v11262_v50, %s12116_s14  ;;  %v3445_v45 = vld [vmem:[#allocation3 + $0x140] sm:$0xff] }
 0x506   : > { %11498 = vrot.lane.b32.xlu0 %v15397_v15, %s12107_s27  ;;  %v11292_v52 = vpack.i.bf16 %v3445_v45, %v3444_v48  ;;  %v3582_v45 = vld [vmem:[#allocation3 + $0x1b4] sm:$0xff] }
 0x507   : > { %v15513_v60 = vpop.permute.xlu1 %10983 }
 0x508   : > { %20166 = vst [vmem:[#allocation296_spill] sm:$0xff] %v15513_v60  ;;  %v15515_v21 = vpop.permute.xlu0 %11218  ;;  %v3449_v60 = vld [vmem:[#allocation3 + $0x170] sm:$0xff] }
 0x509   : > { %20167 = vst [vmem:[#allocation297_spill] sm:$0xff] %v15515_v21  ;;  %11273 = vrot.lane.b32.xlu1 %v11272_v14, %s12116_s14  ;;  %v3448_v21 = vld [vmem:[#allocation3 + $0x168] sm:$0xff] }
 0x50a   : > { %11508 = vrot.lane.b32.xlu0 %v15415_v17, %s12107_s27  ;;  %v11302_v63 = vpack.i.bf16 %v3449_v60, %v3448_v21  ;;  %v3489_v60 = vld [vmem:[#allocation3 + $0x52] sm:$0xff] }
 0x50b   : > { %v15520_v9 = vpop.permute.xlu1 %10993 }
 0x50c   : > { %20168 = vst [vmem:[#allocation298_spill] sm:$0xff] %v15520_v9  ;;  %v15522_v57 = vpop.permute.xlu0 %11228  ;;  %v3453_v9 = vld [vmem:[#allocation3 + $0x1a0] sm:$0xff] }
 0x50d   : > { %20169 = vst [vmem:[#allocation299_spill] sm:$0xff] %v15522_v57  ;;  %11283 = vrot.lane.b32.xlu1 %v11282_v13, %s12116_s14  ;;  %v3452_v57 = vld [vmem:[#allocation3 + $0x198] sm:$0xff] }
 0x50e   : > { %11518 = vrot.lane.b32.xlu0 %v15425_v10, %s12107_s27  ;;  %v15543_v10 = vpack.i.bf16 %v3453_v9, %v3452_v57  ;;  %v3492_v9 = vld [vmem:[#allocation3 + $0x7a] sm:$0xff]  ;;  %v3493_v57 = vld [vmem:[#allocation3 + $0x82] sm:$0xff] }
 0x50f   : > { %v15527_v15 = vpop.permute.xlu1 %11003 }
 0x510   : > { %20170 = vst [vmem:[#allocation300_spill] sm:$0xff] %v15527_v15  ;;  %v15529_v18 = vpop.permute.xlu0 %11238 }
 0x511   : > { %20171 = vst [vmem:[#allocation301_spill] sm:$0xff] %v15529_v18  ;;  %11293 = vrot.lane.b32.xlu1 %v11292_v52, %s12116_s14  ;;  %v3583_v18 = vld [vmem:[#allocation3 + $0x1bc] sm:$0xff] }
 0x512   : > { %11528 = vrot.lane.b32.xlu0 %v15443_v20, %s12107_s27  ;;  %v3488_v20 = vld [vmem:[#allocation3 + $0x4a] sm:$0xff]  ;;  %v11557_v21 = vpack.i.bf16 %v3583_v18, %v3582_v45  ;;  %v3497_v18 = vld [vmem:[#allocation3 + $0xb2] sm:$0xff] }
 0x513   : > { %v15534_v17 = vpop.permute.xlu1 %11013 }
 0x514   : > { %20172 = vst [vmem:[#allocation302_spill] sm:$0xff] %v15534_v17  ;;  %v15536_v42 = vpop.permute.xlu0 %11248 }
 0x515   : > { %20173 = vst [vmem:[#allocation303_spill] sm:$0xff] %v15536_v42  ;;  %11303 = vrot.lane.b32.xlu1 %v11302_v63, %s12116_s14 }
 0x516   : > { %11538 = vrot.lane.b32.xlu0 %v15453_v36, %s12107_s27  ;;  %v11322_v36 = vpack.i.bf16 %v3489_v60, %v3488_v20 }
 0x517   : > { %v15541_v48 = vpop.permute.xlu1 %11023 }
 0x518   : > { %20174 = vst [vmem:[#allocation304_spill] sm:$0xff] %v15541_v48  ;;  %v15545_v39 = vpop.permute.xlu0 %11258  ;;  %v15559_v48 = vpack.i.bf16 %v3493_v57, %v3492_v9 }
 0x519   : > { %20175 = vst [vmem:[#allocation305_spill] sm:$0xff] %v15545_v39  ;;  %11313 = vrot.lane.b32.xlu1 %v15543_v10, %s12116_s14 }
 0x51a   : > { %11548 = vrot.lane.b32.xlu0 %v15472_v55, %s12107_s27  ;;  %v3496_v55 = vld [vmem:[#allocation3 + $0xaa] sm:$0xff] }
 0x51b   : > { %v15551_v42 = vpop.permute.xlu1 %11033  ;;  %v15569_v20 = vpack.i.bf16 %v3497_v18, %v3496_v55  ;;  %v3505_v55 = vld [vmem:[#allocation3 + $0x112] sm:$0xff] }
 0x51c   : > { %20176 = vst [vmem:[#allocation306_spill] sm:$0xff] %v15551_v42  ;;  %v15553_v17 = vpop.permute.xlu0 %11268  ;;  %v3520_v42 = vld [vmem:[#allocation3 + $0x4b] sm:$0xff] }
 0x51d   : > { %20177 = vst [vmem:[#allocation307_spill] sm:$0xff] %v15553_v17  ;;  %11323 = vrot.lane.b32.xlu1 %v11322_v36, %s12100_s18  ;;  %v3501_v36 = vld [vmem:[#allocation3 + $0xe2] sm:$0xff] }
 0x51e   : > { %11558 = vrot.lane.b32.xlu0 %v11557_v21, %s12107_s27  ;;  %v3500_v21 = vld [vmem:[#allocation3 + $0xda] sm:$0xff] }
 0x51f   : > { %v15557_v39 = vpop.permute.xlu1 %11043  ;;  %v15578_v57 = vpack.i.bf16 %v3501_v36, %v3500_v21  ;;  %v3509_v21 = vld [vmem:[#allocation3 + $0x142] sm:$0xff] }
 0x520   : > { %20178 = vst [vmem:[#allocation308_spill] sm:$0xff] %v15557_v39  ;;  %v15561_v11 = vpop.permute.xlu0 %11278  ;;  %v3615_v39 = vld [vmem:[#allocation3 + $0x1c8] sm:$0xff] }
 0x521   : > { %20179 = vst [vmem:[#allocation309_spill] sm:$0xff] %v15561_v11  ;;  %11333 = vrot.lane.b32.xlu1 %v15559_v48, %s12100_s18 }
 0x522   : > { %11568 = vrot.lane.b32.xlu0 %v15496_v51, %s12108_s28  ;;  %v3504_v51 = vld [vmem:[#allocation3 + $0x10a] sm:$0xff] }
 0x523   : > { %v15567_v45 = vpop.permute.xlu1 %11053 }
 0x524   : > { %20180 = vst [vmem:[#allocation310_spill] sm:$0xff] %v15567_v45  ;;  %v15571_v60 = vpop.permute.xlu0 %11288 }
 0x525   : > { %20181 = vst [vmem:[#allocation311_spill] sm:$0xff] %v15571_v60  ;;  %11343 = vrot.lane.b32.xlu1 %v15569_v20, %s12100_s18  ;;  %v15587_v60 = vpack.i.bf16 %v3505_v55, %v3504_v51  ;;  %v3513_v51 = vld [vmem:[#allocation3 + $0x172] sm:$0xff] }
 0x526   : > { %11578 = vrot.lane.b32.xlu0 %v11262_v50, %s12108_s28  ;;  %v3508_v50 = vld [vmem:[#allocation3 + $0x13a] sm:$0xff] }
 0x527   : > { %v15576_v9 = vpop.permute.xlu1 %11063 }
 0x528   : > { %20182 = vst [vmem:[#allocation312_spill] sm:$0xff] %v15576_v9  ;;  %v15580_v11 = vpop.permute.xlu0 %11298 }
 0x529   : > { %20183 = vst [vmem:[#allocation313_spill] sm:$0xff] %v15580_v11  ;;  %11353 = vrot.lane.b32.xlu1 %v15578_v57, %s12100_s18  ;;  %v15596_v11 = vpack.i.bf16 %v3509_v21, %v3508_v50  ;;  %v3517_v50 = vld [vmem:[#allocation3 + $0x1a2] sm:$0xff] }
 0x52a   : > { %11588 = vrot.lane.b32.xlu0 %v11272_v14, %s12108_s28  ;;  %v3512_v14 = vld [vmem:[#allocation3 + $0x16a] sm:$0xff] }
 0x52b   : > { %v15585_v18 = vpop.permute.xlu1 %11073 }
 0x52c   : > { %20184 = vst [vmem:[#allocation314_spill] sm:$0xff] %v15585_v18  ;;  %v15589_v45 = vpop.permute.xlu0 %11308 }
 0x52d   : > { %20185 = vst [vmem:[#allocation315_spill] sm:$0xff] %v15589_v45  ;;  %11363 = vrot.lane.b32.xlu1 %v15587_v60, %s12100_s18  ;;  %v15605_v45 = vpack.i.bf16 %v3513_v51, %v3512_v14  ;;  %v3521_v14 = vld [vmem:[#allocation3 + $0x53] sm:$0xff] }
 0x52e   : > { %11598 = vrot.lane.b32.xlu0 %v11282_v13, %s12108_s28  ;;  %v3516_v13 = vld [vmem:[#allocation3 + $0x19a] sm:$0xff] }
 0x52f   : > { %v15594_v36 = vpop.permute.xlu1 %11083 }
 0x530   : > { %20186 = vst [vmem:[#allocation316_spill] sm:$0xff] %v15594_v36  ;;  %v15598_v9 = vpop.permute.xlu0 %11318 }
 0x531   : > { %20187 = vst [vmem:[#allocation317_spill] sm:$0xff] %v15598_v9  ;;  %11373 = vrot.lane.b32.xlu1 %v15596_v11, %s12100_s18  ;;  %v15614_v9 = vpack.i.bf16 %v3517_v50, %v3516_v13  ;;  %v3524_v13 = vld [vmem:[#allocation3 + $0x7b] sm:$0xff] }
 0x532   : > { %11608 = vrot.lane.b32.xlu0 %v11292_v52, %s12108_s28  ;;  %v3616_v52 = vld [vmem:[#allocation3 + $0x1d0] sm:$0xff]  ;;  %v3619_v50 = vld [vmem:[#allocation3 + $0x79] sm:$0xff]  ;;  %v15630_v15 = vpack.i.bf16 %v3525_v44, %v3524_v13 }
 0x533   : > { %v15603_v55 = vpop.permute.xlu1 %11093  ;;  %v11637_v51 = vpack.i.bf16 %v3616_v52, %v3615_v39  ;;  %v3528_v52 = vld [vmem:[#allocation3 + $0xab] sm:$0xff]  ;;  %v3532_v13 = vld [vmem:[#allocation3 + $0xdb] sm:$0xff] }
 0x534   : > { %20188 = vst [vmem:[#allocation318_spill] sm:$0xff] %v15603_v55  ;;  %v15607_v18 = vpop.permute.xlu0 %11328 }
 0x535   : > { %20189 = vst [vmem:[#allocation319_spill] sm:$0xff] %v15607_v18  ;;  %11383 = vrot.lane.b32.xlu1 %v15605_v45, %s12100_s18 }
 0x536   : > { %11618 = vrot.lane.b32.xlu0 %v11302_v63, %s12108_s28  ;;  %v11402_v63 = vpack.i.bf16 %v3521_v14, %v3520_v42  ;;  %v3623_v42 = vld [vmem:[#allocation3 + $0xa9] sm:$0xff]  ;;  %v3624_v14 = vld [vmem:[#allocation3 + $0xb1] sm:$0xff] }
 0x537   : > { %v15612_v21 = vpop.permute.xlu1 %11103  ;;  %v11657_v44 = vpack.i.bf16 %v3624_v14, %v3623_v42  ;;  %v3631_v42 = vld [vmem:[#allocation3 + $0x109] sm:$0xff]  ;;  %v3632_v14 = vld [vmem:[#allocation3 + $0x111] sm:$0xff] }
 0x538   : > { %20190 = vst [vmem:[#allocation320_spill] sm:$0xff] %v15612_v21  ;;  %v15616_v17 = vpop.permute.xlu0 %11338  ;;  %v3620_v21 = vld [vmem:[#allocation3 + $0x81] sm:$0xff] }
 0x539   : > { %20191 = vst [vmem:[#allocation321_spill] sm:$0xff] %v15616_v17  ;;  %11393 = vrot.lane.b32.xlu1 %v15614_v9, %s12100_s18  ;;  %v11647_v39 = vpack.i.bf16 %v3620_v21, %v3619_v50  ;;  %v3627_v21 = vld [vmem:[#allocation3 + $0xd9] sm:$0xff]  ;;  %v3628_v50 = vld [vmem:[#allocation3 + $0xe1] sm:$0xff] }
 0x53a   : > { %11628 = vrot.lane.b32.xlu0 %v15543_v10, %s12108_s28 }
 0x53b   : > { %v15622_v55 = vpop.permute.xlu1 %11113 }
 0x53c   : > { %20192 = vst [vmem:[#allocation322_spill] sm:$0xff] %v15622_v55  ;;  %v15624_v49 = vpop.permute.xlu0 %11348 }
 0x53d   : > { %20193 = vst [vmem:[#allocation323_spill] sm:$0xff] %v15624_v49  ;;  %11403 = vrot.lane.b32.xlu1 %v11402_v63, %s12101_s19  ;;  %v3529_v63 = vld [vmem:[#allocation3 + $0xb3] sm:$0xff] }
 0x53e   : > { %11638 = vrot.lane.b32.xlu0 %v11637_v51, %s12108_s28  ;;  %v15639_v51 = vpack.i.bf16 %v3529_v63, %v3528_v52  ;;  %v11667_v52 = vpack.i.bf16 %v3628_v50, %v3627_v21  ;;  %v3536_v63 = vld [vmem:[#allocation3 + $0x10b] sm:$0xff]  ;;  %v3635_v21 = vld [vmem:[#allocation3 + $0x139] sm:$0xff]  ;;  %v3636_v50 = vld [vmem:[#allocation3 + $0x141] sm:$0xff] }
 0x53f   : > { %v15628_v36 = vpop.permute.xlu1 %11123 }
 0x540   : > { %20194 = vst [vmem:[#allocation324_spill] sm:$0xff] %v15628_v36  ;;  %v15632_v10 = vpop.permute.xlu0 %11358  ;;  %v3533_v36 = vld [vmem:[#allocation3 + $0xe3] sm:$0xff] }
 0x541   : > { %20195 = vst [vmem:[#allocation325_spill] sm:$0xff] %v15632_v10  ;;  %11413 = vrot.lane.b32.xlu1 %v15630_v15, %s12101_s19 }
 0x542   : > { %11648 = vrot.lane.b32.xlu0 %v11647_v39, %s12109_s29  ;;  %v15648_v39 = vpack.i.bf16 %v3533_v36, %v3532_v13  ;;  %v11677_v36 = vpack.i.bf16 %v3632_v14, %v3631_v42  ;;  %v3540_v13 = vld [vmem:[#allocation3 + $0x13b] sm:$0xff]  ;;  %v3639_v42 = vld [vmem:[#allocation3 + $0x169] sm:$0xff]  ;;  %v3640_v14 = vld [vmem:[#allocation3 + $0x171] sm:$0xff] }
 0x543   : > { %v15637_v55 = vpop.permute.xlu1 %11133 }
 0x544   : > { %20196 = vst [vmem:[#allocation326_spill] sm:$0xff] %v15637_v55  ;;  %v15641_v40 = vpop.permute.xlu0 %11368  ;;  %v3537_v55 = vld [vmem:[#allocation3 + $0x113] sm:$0xff] }
 0x545   : > { %20197 = vst [vmem:[#allocation327_spill] sm:$0xff] %v15641_v40  ;;  %11423 = vrot.lane.b32.xlu1 %v15639_v51, %s12101_s19  ;;  %v15864_v40 = vld [vmem:[#allocation3 + $0x62] sm:$0xff] }
 0x546   : > { %11658 = vrot.lane.b32.xlu0 %v11657_v44, %s12109_s29  ;;  %v15657_v44 = vpack.i.bf16 %v3537_v55, %v3536_v63  ;;  %v11687_v55 = vpack.i.bf16 %v3636_v50, %v3635_v21  ;;  %v3544_v63 = vld [vmem:[#allocation3 + $0x16b] sm:$0xff]  ;;  %v3643_v21 = vld [vmem:[#allocation3 + $0x199] sm:$0xff]  ;;  %v3644_v50 = vld [vmem:[#allocation3 + $0x1a1] sm:$0xff]  ;;  %20251 = vst [vmem:[#allocation361_spill] sm:$0xff] %v15864_v40 }
 0x547   : > { %v15646_v22 = vpop.permute.xlu1 %11143  ;;  %v15971_v40 = vld [vmem:[#allocation3 + $0xe4] sm:$0xff] }
 0x548   : > { %20198 = vst [vmem:[#allocation328_spill] sm:$0xff] %v15646_v22  ;;  %v15650_v5 = vpop.permute.xlu0 %11378  ;;  %v3541_v22 = vld [vmem:[#allocation3 + $0x143] sm:$0xff]  ;;  %20280 = vst [vmem:[#allocation386_spill] sm:$0xff] %v15971_v40 }
 0x549   : > { %20199 = vst [vmem:[#allocation329_spill] sm:$0xff] %v15650_v5  ;;  %11433 = vrot.lane.b32.xlu1 %v15648_v39, %s12101_s19 }
 0x54a   : > { %11668 = vrot.lane.b32.xlu0 %v11667_v52, %s12109_s29  ;;  %v15666_v52 = vpack.i.bf16 %v3541_v22, %v3540_v13  ;;  %v11697_v22 = vpack.i.bf16 %v3640_v14, %v3639_v42  ;;  %v3548_v13 = vld [vmem:[#allocation3 + $0x19b] sm:$0xff] }
 0x54b   : > { %v15655_v41 = vpop.permute.xlu1 %11153  ;;  %v3553_v42 = vld [vmem:[#allocation3 + $0x54] sm:$0xff] }
 0x54c   : > { %20200 = vst [vmem:[#allocation330_spill] sm:$0xff] %v15655_v41  ;;  %v15659_v49 = vpop.permute.xlu0 %11388  ;;  %20203 = vst [vmem:[#allocation333_spill] sm:$0xff] %v15666_v52  ;;  %v3545_v41 = vld [vmem:[#allocation3 + $0x173] sm:$0xff] }
 0x54d   : > { %20201 = vst [vmem:[#allocation331_spill] sm:$0xff] %v15659_v49  ;;  %11443 = vrot.lane.b32.xlu1 %v15657_v44, %s12101_s19  ;;  %v15832_v49 = vld [vmem:[#allocation3 + $0xf8] sm:$0xff] }
 0x54e   : > { %11678 = vrot.lane.b32.xlu0 %v11677_v36, %s12109_s29  ;;  %v15675_v36 = vpack.i.bf16 %v3545_v41, %v3544_v63  ;;  %v11707_v63 = vpack.i.bf16 %v3644_v50, %v3643_v21 }
 0x54f   : > { %v15664_v17 = vpop.permute.xlu1 %11163 }
 0x550   : > { %20202 = vst [vmem:[#allocation332_spill] sm:$0xff] %v15664_v17  ;;  %v15668_v18 = vpop.permute.xlu0 %11398  ;;  %20206 = vst [vmem:[#allocation336_spill] sm:$0xff] %v15675_v36  ;;  %v3549_v17 = vld [vmem:[#allocation3 + $0x1a3] sm:$0xff] }
 0x551   : > { %20204 = vst [vmem:[#allocation334_spill] sm:$0xff] %v15668_v18  ;;  %11453 = vrot.lane.b32.xlu1 %v15666_v52, %s12101_s19  ;;  %v15958_v52 = vld [vmem:[#allocation3 + $0xdc] sm:$0xff] }
 0x552   : > { %11688 = vrot.lane.b32.xlu0 %v11687_v55, %s12109_s29  ;;  %v15684_v55 = vpack.i.bf16 %v3549_v17, %v3548_v13  ;;  %v3556_v17 = vld [vmem:[#allocation3 + $0x7c] sm:$0xff]  ;;  %v3557_v13 = vld [vmem:[#allocation3 + $0x84] sm:$0xff]  ;;  %20278 = vst [vmem:[#allocation384_spill] sm:$0xff] %v15958_v52 }
 0x553   : > { %v15673_v47 = vpop.permute.xlu1 %11173  ;;  %v11492_v50 = vpack.i.bf16 %v3557_v13, %v3556_v17 }
 0x554   : > { %20205 = vst [vmem:[#allocation335_spill] sm:$0xff] %v15673_v47  ;;  %v15677_v53 = vpop.permute.xlu0 %11408  ;;  %20209 = vst [vmem:[#allocation339_spill] sm:$0xff] %v15684_v55  ;;  %v3648_v47 = vld [vmem:[#allocation3 + $0x1d1] sm:$0xff] }
 0x555   : > { %20207 = vst [vmem:[#allocation337_spill] sm:$0xff] %v15677_v53  ;;  %11463 = vrot.lane.b32.xlu1 %v15675_v36, %s12101_s19  ;;  %v3552_v53 = vld [vmem:[#allocation3 + $0x4c] sm:$0xff]  ;;  %v11717_v14 = vpack.i.bf16 %v3648_v47, %v3647_v4  ;;  %v3561_v4 = vld [vmem:[#allocation3 + $0xb4] sm:$0xff] }
 0x556   : > { %11698 = vrot.lane.b32.xlu0 %v11697_v22, %s12109_s29  ;;  %v11482_v22 = vpack.i.bf16 %v3553_v42, %v3552_v53  ;;  %v3564_v42 = vld [vmem:[#allocation3 + $0xdc] sm:$0xff] }
 0x557   : > { %v15682_v0 = vpop.permute.xlu1 %11183  ;;  %v15933_v36 = vld [vmem:[#allocation3 + $0x9b] sm:$0xff] }
 0x558   : > { %20208 = vst [vmem:[#allocation338_spill] sm:$0xff] %v15682_v0  ;;  %v15686_v41 = vpop.permute.xlu0 %11418  ;;  %20270 = vst [vmem:[#allocation376_spill] sm:$0xff] %v15933_v36 }
 0x559   : > { %20210 = vst [vmem:[#allocation340_spill] sm:$0xff] %v15686_v41  ;;  %11473 = vrot.lane.b32.xlu1 %v15684_v55, %s12101_s19  ;;  %v3560_v41 = vld [vmem:[#allocation3 + $0xac] sm:$0xff]  ;;  %v15897_v55 = vld [vmem:[#allocation3 + $0x122] sm:$0xff] }
 0x55a   : > { %11708 = vrot.lane.b32.xlu0 %v11707_v63, %s12109_s29  ;;  %v11502_v47 = vpack.i.bf16 %v3561_v4, %v3560_v41  ;;  %20259 = vst [vmem:[#allocation367_spill] sm:$0xff] %v15897_v55  ;;  %v16010_v55 = vld [vmem:[#allocation3 + $0x153] sm:$0xff] }
 0x55b   : > { %v15691_v23 = vpop.permute.xlu1 %11193  ;;  %20289 = vst [vmem:[#allocation393_spill] sm:$0xff] %v16010_v55 }
 0x55c   : > { %20211 = vst [vmem:[#allocation341_spill] sm:$0xff] %v15691_v23  ;;  %v15693_v61 = vpop.permute.xlu0 %11428 }
 0x55d   : > { %20212 = vst [vmem:[#allocation342_spill] sm:$0xff] %v15693_v61  ;;  %11483 = vrot.lane.b32.xlu1 %v11482_v22, %s12107_s27 }
 0x55e   : > { %11718 = vrot.lane.b32.xlu0 %v11717_v14, %s12109_s29  ;;  %v3565_v14 = vld [vmem:[#allocation3 + $0xe4] sm:$0xff] }
 0x55f   : > { %v15697_v21 = vpop.permute.xlu1 %11203  ;;  %v11512_v17 = vpack.i.bf16 %v3565_v14, %v3564_v42  ;;  %v2943_v42 = vld [vmem:[#allocation3 + $0x8] sm:$0xff] }
 0x560   : > { %20213 = vst [vmem:[#allocation343_spill] sm:$0xff] %v15697_v21  ;;  %v15699_v0 = vpop.permute.xlu0 %11438 }
 0x561   : > { %20214 = vst [vmem:[#allocation344_spill] sm:$0xff] %v15699_v0  ;;  %11493 = vrot.lane.b32.xlu1 %v11492_v50, %s12107_s27  ;;  %v3568_v50 = vld [vmem:[#allocation3 + $0x10c] sm:$0xff]  ;;  %v15846_v0 = vld [vmem:[#allocation3 + $0x64] sm:$0xff] }
 0x562   : > { %11728 = vrot.lane.b32.xlu0 %v15559_v48, %s12102_s20  ;;  %v3569_v48 = vld [vmem:[#allocation3 + $0x114] sm:$0xff] }
 0x563   : > { %v15704_v53 = vpop.permute.xlu1 %11213  ;;  %v15720_v4 = vpack.i.bf16 %v3569_v48, %v3568_v50  ;;  %v2944_v50 = vld [vmem:[#allocation3 + $0x18] sm:$0xff] }
 0x564   : > { %20215 = vst [vmem:[#allocation345_spill] sm:$0xff] %v15704_v53  ;;  %v15706_v63 = vpop.permute.xlu0 %11448  ;;  %v20221_v53 = vld [vmem:[#allocation32_spill] sm:$0xff] }
 0x565   : > { %20216 = vst [vmem:[#allocation346_spill] sm:$0xff] %v15706_v63  ;;  %11503 = vrot.lane.b32.xlu1 %v11502_v47, %s12107_s27  ;;  %v9511_v21 = vunpack.i.h.bf16 %v20221_v53  ;;  %v9510_v14 = vunpack.i.l.bf16 %v20221_v53  ;;  %v20226_v53 = vld [vmem:[#allocation34_spill] sm:$0xff]  ;;  %v15830_v63 = vld [vmem:[#allocation3 + $0xf0] sm:$0xff] }
 0x566   : > { %11738 = vrot.lane.b32.xlu0 %v15569_v20, %s12102_s20  ;;  %v3572_v20 = vld [vmem:[#allocation3 + $0x13c] sm:$0xff]  ;;  %v9520_v31 = vunpack.i.l.bf16 %v20226_v53  ;;  %v9521_v3 = vunpack.i.h.bf16 %v20226_v53 }
 0x567   : > { %v15711_v22 = vpop.permute.xlu1 %11223  ;;  %v5666_v27 = vsel %vm426_vm0, %v2943_v42, %v9511_v21  ;;  %v20228_v42 = vld [vmem:[#allocation44_spill] sm:$0xff] }
 0x568   : > { %20217 = vst [vmem:[#allocation347_spill] sm:$0xff] %v15711_v22  ;;  %v15713_v13 = vpop.permute.xlu0 %11458  ;;  %v9571_v58 = vunpack.i.h.bf16 %v20228_v42  ;;  %v9570_v24 = vunpack.i.l.bf16 %v20228_v42  ;;  %v9656_v42 = vunpack.i.h.bf16 %v20234_v43 }
 0x569   : > { %20218 = vst [vmem:[#allocation348_spill] sm:$0xff] %v15713_v13  ;;  %11513 = vrot.lane.b32.xlu1 %v11512_v17, %s12107_s27  ;;  %v20222_v17 = vld [vmem:[#allocation33_spill] sm:$0xff]  ;;  %v15826_v13 = vld [vmem:[#allocation3 + $0xc0] sm:$0xff] }
 0x56a   : > { %11748 = vrot.lane.b32.xlu0 %v15578_v57, %s12102_s20  ;;  %v9515_v22 = vunpack.i.l.bf16 %v20222_v17  ;;  %v3573_v57 = vld [vmem:[#allocation3 + $0x144] sm:$0xff]  ;;  %v9516_v61 = vunpack.i.h.bf16 %v20222_v17  ;;  %v3577_v17 = vld [vmem:[#allocation3 + $0x174] sm:$0xff] }
 0x56b   : > { %v15718_v41 = vpop.permute.xlu1 %11233  ;;  %v15733_v23 = vpack.i.bf16 %v3573_v57, %v3572_v20  ;;  %v20227_v57 = vld [vmem:[#allocation35_spill] sm:$0xff]  ;;  %v15753_v62 = vpack.i.bf16 %v3577_v17, %v3576_v34  ;;  %v15767_v17 = vld [vmem:[#allocation3 + $0x69] sm:$0xff] }
 0x56c   : > { %20219 = vst [vmem:[#allocation349_spill] sm:$0xff] %v15718_v41  ;;  %v15722_v47 = vpop.permute.xlu0 %11468  ;;  %v2942_v41 = vld [vmem:[#allocation3] sm:$0xff]  ;;  %v5667_v20 = vsel %vm426_vm0, %v2944_v50, %v9515_v22  ;;  %v9526_v21 = vunpack.i.h.bf16 %v20227_v57  ;;  %v20231_v22 = vld [vmem:[#allocation45_spill] sm:$0xff] }
 0x56d   : > { %20220 = vst [vmem:[#allocation350_spill] sm:$0xff] %v15722_v47  ;;  %11523 = vrot.lane.b32.xlu1 %v15720_v4, %s12107_s27  ;;  %20224 = vst [vmem:[#allocation33_spill] sm:$0xff] %v15733_v23  ;;  %v9576_v50 = vunpack.i.h.bf16 %v20231_v22  ;;  %v9575_v53 = vunpack.i.l.bf16 %v20231_v22  ;;  %v15765_v34 = vld [vmem:[#allocation3 + $0x61] sm:$0xff] }
 0x56e   : > { %11758 = vrot.lane.b32.xlu0 %v15587_v60, %s12102_s20  ;;  %v5665_v60 = vsel %vm426_vm0, %v2942_v41, %v9510_v14  ;;  %20230 = vst [vmem:[#allocation35_spill] sm:$0xff] %v15753_v62  ;;  %v5668_v41 = vsel %vm426_vm0, %v2945_v28, %v9516_v61  ;;  %v2948_v14 = vld [vmem:[#allocation3 + $0x48] sm:$0xff]  ;;  %v15772_v28 = vsel %vm2233_vm4, %v5666_v27, %v9521_v3  ;;  %v20236_v22 = vld [vmem:[#allocation47_spill] sm:$0xff] }
 0x56f   : > { %v15731_v48 = vpop.permute.xlu1 %11243  ;;  %20235 = vst [vmem:[#allocation46_spill] sm:$0xff] %v15772_v28  ;;  %v9660_v56 = vunpack.i.l.bf16 %v20236_v22  ;;  %v15789_v3 = vld [vmem:[#allocation3 + $0xf9] sm:$0xff]  ;;  %v3581_v27 = vld [vmem:[#allocation3 + $0x1a4] sm:$0xff] }
 0x570   : > { %20223 = vst [vmem:[#allocation32_spill] sm:$0xff] %v15731_v48  ;;  %v15736_v25 = vpop.permute.xlu0 %11478  ;;  %v9525_v48 = vunpack.i.l.bf16 %v20227_v57  ;;  %v15761_v57 = vsel %vm2233_vm4, %v5665_v60, %v9520_v31  ;;  %v2952_v31 = vld [vmem:[#allocation3 + $0x78] sm:$0xff]  ;;  %v2953_v60 = vld [vmem:[#allocation3 + $0x80] sm:$0xff]  ;;  %20242 = vst [vmem:[#allocation356_spill] sm:$0xff] %v15789_v3 }
 0x571   : > { %20225 = vst [vmem:[#allocation351_spill] sm:$0xff] %v15736_v25  ;;  %11533 = vrot.lane.b32.xlu1 %v15733_v23, %s12107_s27  ;;  %20233 = vst [vmem:[#allocation45_spill] sm:$0xff] %v15761_v57  ;;  %v15937_v3 = vld [vmem:[#allocation3 + $0xfb] sm:$0xff]  ;;  %v15941_v23 = vld [vmem:[#allocation3 + $0xac] sm:$0xff] }
 0x572   : > { %11768 = vrot.lane.b32.xlu0 %v15596_v11, %s12102_s20  ;;  %v3580_v11 = vld [vmem:[#allocation3 + $0x19c] sm:$0xff]  ;;  %v15775_v61 = vsel %vm2233_vm4, %v5667_v20, %v9525_v48  ;;  %v15794_v48 = vsel %vm2233_vm4, %v5668_v41, %v9526_v21  ;;  %v5672_v20 = vsel %vm426_vm0, %v2949_v7, %v9571_v58  ;;  %v9756_v21 = vunpack.i.h.bf16 %v20245_v1  ;;  %20272 = vst [vmem:[#allocation378_spill] sm:$0xff] %v15937_v3  ;;  %v20307_v3 = vld [vmem:[#allocation57_spill] sm:$0xff] }
 0x573   : > { %v15751_v12 = vpop.permute.xlu1 %11253  ;;  %v15800_v28 = vpack.i.bf16 %v3581_v27, %v3580_v11  ;;  %v9755_v41 = vunpack.i.l.bf16 %v20245_v1  ;;  %v15810_v7 = vld [vmem:[#allocation3 + $0x121] sm:$0xff]  ;;  %v15816_v11 = vld [vmem:[#allocation3 + $0x90] sm:$0xff]  ;;  %v15818_v27 = vld [vmem:[#allocation3 + $0x98] sm:$0xff]  ;;  %20274 = vst [vmem:[#allocation380_spill] sm:$0xff] %v15941_v23  ;;  %v10041_v32 = vunpack.i.h.bf16 %v20307_v3 }
 0x574   : > { %20229 = vst [vmem:[#allocation34_spill] sm:$0xff] %v15751_v12  ;;  %v15758_v16 = vpop.permute.xlu0 %11488  ;;  %v9655_v12 = vunpack.i.l.bf16 %v20234_v43  ;;  %v15779_v43 = vld [vmem:[#allocation3 + $0x91] sm:$0xff]  ;;  %20246 = vst [vmem:[#allocation48_spill] sm:$0xff] %v15810_v7  ;;  %v15939_v25 = vld [vmem:[#allocation3 + $0x7c] sm:$0xff] }
 0x575   : > { %20232 = vst [vmem:[#allocation44_spill] sm:$0xff] %v15758_v16  ;;  %11543 = vrot.lane.b32.xlu1 %v15753_v62, %s12107_s27  ;;  %v9661_v16 = vunpack.i.h.bf16 %v20236_v22  ;;  %20237 = vst [vmem:[#allocation47_spill] sm:$0xff] %v15779_v43  ;;  %v5671_v22 = vsel %vm426_vm0, %v2948_v14, %v9570_v24  ;;  %v15812_v24 = vld [vmem:[#allocation3 + $0x129] sm:$0xff]  ;;  %v15946_v7 = vld [vmem:[#allocation3 + $0x151] sm:$0xff] }
 0x576   : > { %11778 = vrot.lane.b32.xlu0 %v15605_v45, %s12102_s20  ;;  %20244 = vst [vmem:[#allocation358_spill] sm:$0xff] %v15800_v28  ;;  %v15803_v59 = vsel %vm2233_vm4, %v5671_v22, %v9575_v53  ;;  %v15806_v45 = vsel %vm2233_vm4, %v5672_v20, %v9576_v50  ;;  %20247 = vst [vmem:[#allocation359_spill] sm:$0xff] %v15812_v24  ;;  %v3586_v14 = vld [vmem:[#allocation3 + $0x68] sm:$0xff]  ;;  %v5676_v53 = vsel %vm426_vm0, %v2953_v60, %v9656_v42  ;;  %v2957_v22 = vld [vmem:[#allocation3 + $0xb0] sm:$0xff] }
 0x577   : > { %v15798_v57 = vpop.permute.xlu1 %11263  ;;  %v5675_v50 = vsel %vm426_vm0, %v2952_v31, %v9655_v12  ;;  %v2956_v20 = vld [vmem:[#allocation3 + $0xa8] sm:$0xff]  ;;  %v15838_v12 = vsel %vm2233_vm4, %v5676_v53, %v9661_v16  ;;  %v15842_v31 = vld [vmem:[#allocation3 + $0x120] sm:$0xff]  ;;  %v15854_v16 = vld [vmem:[#allocation3 + $0x94] sm:$0xff]  ;;  %v5680_v29 = vsel %vm426_vm0, %v2957_v22, %v9756_v21  ;;  %20273 = vst [vmem:[#allocation379_spill] sm:$0xff] %v15939_v25 }
 0x578   : > { %20243 = vst [vmem:[#allocation357_spill] sm:$0xff] %v15798_v57  ;;  %v15814_v58 = vpop.permute.xlu0 %11498  ;;  %v20249_v57 = vld [vmem:[#allocation49_spill] sm:$0xff]  ;;  %v15835_v42 = vsel %vm2233_vm4, %v5675_v50, %v9660_v56  ;;  %v15844_v60 = vld [vmem:[#allocation3 + $0x128] sm:$0xff]  ;;  %v11562_v56 = vpack.i.bf16 %v3586_v14, %v3585_v54  ;;  %v5679_v54 = vsel %vm426_vm0, %v2956_v20, %v9755_v41  ;;  %v20252_v14 = vld [vmem:[#allocation50_spill] sm:$0xff] }
 0x579   : > { %20248 = vst [vmem:[#allocation360_spill] sm:$0xff] %v15814_v58  ;;  %v9761_v47 = vunpack.i.h.bf16 %v20249_v57  ;;  %v9760_v1 = vunpack.i.l.bf16 %v20249_v57  ;;  %11553 = vrot.lane.b32.xlu1 %v15800_v28, %s12107_s27  ;;  %v15828_v58 = vld [vmem:[#allocation3 + $0xc8] sm:$0xff]  ;;  %v11797_v57 = vpack.i.bf16 %v3680_v33, %v3679_v37  ;;  %v9605_v10 = vunpack.i.l.bf16 %v20252_v14  ;;  %v15872_v28 = vld [vmem:[#allocation3 + $0x9c] sm:$0xff]  ;;  %v2946_v20 = vld [vmem:[#allocation3 + $0x30] sm:$0xff] }
 0x57a   : > { %11788 = vrot.lane.b32.xlu0 %v15614_v9, %s12102_s20  ;;  %v15852_v50 = vld [vmem:[#allocation3 + $0x6c] sm:$0xff]  ;;  %v15856_v53 = vld [vmem:[#allocation3 + $0xc4] sm:$0xff]  ;;  %v2947_v22 = vld [vmem:[#allocation3 + $0x38] sm:$0xff] }
 0x57b   : > { %v15850_v5 = vpop.permute.xlu1 %11273  ;;  %v15874_v33 = vld [vmem:[#allocation3 + $0xcc] sm:$0xff]  ;;  %v15880_v9 = vld [vmem:[#allocation3 + $0xc2] sm:$0xff]  ;;  %v15883_v21 = vsel %vm2233_vm4, %v5679_v54, %v9760_v1  ;;  %v15886_v41 = vsel %vm2233_vm4, %v5680_v29, %v9761_v47  ;;  %v15912_v54 = vld [vmem:[#allocation3 + $0xfa] sm:$0xff] }
 0x57c   : > { %20250 = vst [vmem:[#allocation49_spill] sm:$0xff] %v15850_v5  ;;  %v9606_v5 = vunpack.i.h.bf16 %v20252_v14  ;;  %v15870_v30 = vpop.permute.xlu0 %11508  ;;  %v15876_v37 = vld [vmem:[#allocation3 + $0x6a] sm:$0xff]  ;;  %20256 = vst [vmem:[#allocation364_spill] sm:$0xff] %v15880_v9  ;;  %v11572_v14 = vpack.i.bf16 %v15818_v27, %v15816_v11  ;;  %v20268_v47 = vld [vmem:[#allocation51_spill] sm:$0xff] }
 0x57d   : > { %20253 = vst [vmem:[#allocation50_spill] sm:$0xff] %v15870_v30  ;;  %20254 = vst [vmem:[#allocation362_spill] sm:$0xff] %v15876_v37  ;;  %11563 = vrot.lane.b32.xlu1 %v11562_v56, %s12108_s28  ;;  %v15899_v1 = vld [vmem:[#allocation3 + $0x63] sm:$0xff]  ;;  %v9610_v62 = vunpack.i.l.bf16 %v20268_v47  ;;  %v9611_v18 = vunpack.i.h.bf16 %v20268_v47  ;;  %v15988_v47 = vld [vmem:[#allocation3 + $0x152] sm:$0xff] }
 0x57e   : > { %20260 = vst [vmem:[#allocation368_spill] sm:$0xff] %v15899_v1  ;;  %11798 = vrot.lane.b32.xlu0 %v11797_v57, %s12102_s20  ;;  %v15910_v56 = vld [vmem:[#allocation3 + $0xca] sm:$0xff]  ;;  %20262 = vst [vmem:[#allocation370_spill] sm:$0xff] %v15912_v54  ;;  %v15918_v57 = vld [vmem:[#allocation3 + $0x93] sm:$0xff]  ;;  %v5670_v27 = vsel %vm426_vm0, %v2947_v22, %v9606_v5 }
 0x57f   : > { %20261 = vst [vmem:[#allocation369_spill] sm:$0xff] %v15910_v56  ;;  %v15914_v30 = vld [vmem:[#allocation3 + $0x12a] sm:$0xff]  ;;  %20265 = vst [vmem:[#allocation373_spill] sm:$0xff] %v15918_v57  ;;  %v15925_v11 = vpop.permute.xlu1 %11283  ;;  %v15986_v22 = vld [vmem:[#allocation3 + $0x158] sm:$0xff] }
 0x580   : > { %20263 = vst [vmem:[#allocation371_spill] sm:$0xff] %v15914_v30  ;;  %v15920_v29 = vld [vmem:[#allocation3 + $0xc3] sm:$0xff]  ;;  %20269 = vst [vmem:[#allocation51_spill] sm:$0xff] %v15925_v11  ;;  %v5669_v11 = vsel %vm426_vm0, %v2946_v20, %v9605_v10  ;;  %v15950_v24 = vpop.permute.xlu0 %11518  ;;  %v15960_v10 = vld [vmem:[#allocation3 + $0xf4] sm:$0xff] }
 0x581   : > { %20266 = vst [vmem:[#allocation374_spill] sm:$0xff] %v15920_v29  ;;  %20275 = vst [vmem:[#allocation381_spill] sm:$0xff] %v15950_v24  ;;  %v15954_v37 = vld [vmem:[#allocation3 + $0x84] sm:$0xff]  ;;  %11573 = vrot.lane.b32.xlu1 %v11572_v14, %s12108_s28  ;;  %v15984_v20 = vld [vmem:[#allocation3 + $0x150] sm:$0xff] }
 0x582   : > { %20276 = vst [vmem:[#allocation382_spill] sm:$0xff] %v15954_v37  ;;  %20279 = vst [vmem:[#allocation385_spill] sm:$0xff] %v15960_v10  ;;  %v15977_v24 = vld [vmem:[#allocation3 + $0x12b] sm:$0xff]  ;;  %11808 = vrot.lane.b32.xlu0 %v15630_v15, %s12103_s21  ;;  %v15990_v1 = vld [vmem:[#allocation3 + $0x15a] sm:$0xff]  ;;  %v16001_v15 = vsel %vm2233_vm4, %v5669_v11, %v9610_v62  ;;  %v16017_v62 = vsel %vm2233_vm4, %v5670_v27, %v9611_v18  ;;  %v20294_v27 = vpack.i.bf16 %v15828_v58, %v15826_v13 }
 0x583   : > { %20283 = vst [vmem:[#allocation389_spill] sm:$0xff] %v15977_v24  ;;  %v15979_v14 = vld [vmem:[#allocation3 + $0x124] sm:$0xff]  ;;  %20287 = vst [vmem:[#allocation391_spill] sm:$0xff] %v16001_v15  ;;  %v16004_v43 = vpop.permute.xlu1 %11293  ;;  %v16012_v29 = vld [vmem:[#allocation3 + $0x15b] sm:$0xff] }
 0x584   : > { %20284 = vst [vmem:[#allocation390_spill] sm:$0xff] %v15979_v14  ;;  %v20285_v5 = vld [vmem:[#allocation52_spill] sm:$0xff]  ;;  %v2961_v54 = vld [vmem:[#allocation3 + $0xe0] sm:$0xff]  ;;  %20288 = vst [vmem:[#allocation392_spill] sm:$0xff] %v16004_v43  ;;  %v16019_v11 = vpop.permute.xlu0 %11528 }
 0x585   : > { %v9856_v9 = vunpack.i.h.bf16 %v20285_v5  ;;  %20286 = vst [vmem:[#allocation52_spill] sm:$0xff] %v15998_v26  ;;  %v9855_v56 = vunpack.i.l.bf16 %v20285_v5  ;;  %20290 = vst [vmem:[#allocation394_spill] sm:$0xff] %v16012_v29  ;;  %v16014_v30 = vld [vmem:[#allocation3 + $0x154] sm:$0xff]  ;;  %v16021_v5 = vld [vmem:[#allocation3 + $0x180] sm:$0xff]  ;;  %11583 = vrot.lane.b32.xlu1 %v20294_v27, %s12108_s28 }
 0x586   : > { %20291 = vst [vmem:[#allocation395_spill] sm:$0xff] %v16014_v30  ;;  %20292 = vst [vmem:[#allocation396_spill] sm:$0xff] %v16017_v62  ;;  %v16023_v43 = vld [vmem:[#allocation3 + $0x188] sm:$0xff]  ;;  %v2960_v10 = vld [vmem:[#allocation3 + $0xd8] sm:$0xff]  ;;  %11818 = vrot.lane.b32.xlu0 %v15639_v51, %s12103_s21 }
 0x587   : > { %v16033_v25 = vld [vmem:[#allocation3 + $0x181] sm:$0xff]  ;;  %v16035_v18 = vld [vmem:[#allocation3 + $0x189] sm:$0xff]  ;;  %v16052_v19 = vsel %vm426_vm0, %v2961_v54, %v9856_v9  ;;  %v16064_v2 = vsel %vm426_vm0, %v2960_v10, %v9855_v56  ;;  %v20298_v9 = vld [vmem:[#allocation54_spill] sm:$0xff]  ;;  %v16068_v14 = vpop.permute.xlu1 %11303 }
 0x588   : > { %v20296_v13 = vld [vmem:[#allocation53_spill] sm:$0xff]  ;;  %v9710_v54 = vunpack.i.l.bf16 %v20298_v9  ;;  %20299 = vst [vmem:[#allocation54_spill] sm:$0xff] %v16068_v14  ;;  %v16074_v27 = vld [vmem:[#allocation3 + $0x184] sm:$0xff]  ;;  %v9711_v23 = vunpack.i.h.bf16 %v20298_v9  ;;  %v16078_v55 = vpop.permute.xlu0 %11538  ;;  %v20305_v9 = vpack.i.bf16 %v15832_v49, %v15830_v63  ;;  %v20309_v56 = vld [vmem:[#allocation58_spill] sm:$0xff] }
 0x589   : > { %v9705_v58 = vunpack.i.l.bf16 %v20296_v13  ;;  %20297 = vst [vmem:[#allocation53_spill] sm:$0xff] %v16061_v46  ;;  %v9706_v24 = vunpack.i.h.bf16 %v20296_v13  ;;  %v16072_v26 = vld [vmem:[#allocation3 + $0x18a] sm:$0xff]  ;;  %20301 = vst [vmem:[#allocation400_spill] sm:$0xff] %v16074_v27  ;;  %v20302_v30 = vld [vmem:[#allocation55_spill] sm:$0xff]  ;;  %v9811_v46 = vunpack.i.h.bf16 %v20309_v56 }
 0x58a   : > { %20300 = vst [vmem:[#allocation399_spill] sm:$0xff] %v16072_v26  ;;  %v9951_v35 = vunpack.i.h.bf16 %v20302_v30  ;;  %v16084_v13 = vld [vmem:[#allocation3 + $0x18b] sm:$0xff]  ;;  %v2950_v14 = vld [vmem:[#allocation3 + $0x60] sm:$0xff]  ;;  %v9950_v51 = vunpack.i.l.bf16 %v20302_v30  ;;  %11593 = vrot.lane.b32.xlu1 %v20305_v9, %s12108_s28  ;;  %v10040_v30 = vunpack.i.l.bf16 %v20307_v3  ;;  %11828 = vrot.lane.b32.xlu0 %v15648_v39, %s12103_s21 }
 0x58b   : > { %20303 = vst [vmem:[#allocation55_spill] sm:$0xff] %v16084_v13  ;;  %v20304_v29 = vld [vmem:[#allocation56_spill] sm:$0xff]  ;;  %v5673_v38 = vsel %vm426_vm0, %v2950_v14, %v9705_v58  ;;  %v2965_v9 = vld [vmem:[#allocation3 + $0x110] sm:$0xff]  ;;  %v9810_v14 = vunpack.i.l.bf16 %v20309_v56  ;;  %v16110_v58 = vpop.permute.xlu1 %11313  ;;  %v20312_v57 = vld [vmem:[#allocation59_spill] sm:$0xff] }
 0x58c   : > { %v9806_v52 = vunpack.i.h.bf16 %v20304_v29  ;;  %v9805_v40 = vunpack.i.l.bf16 %v20304_v29  ;;  %v16095_v37 = vld [vmem:[#allocation3 + $0x18c] sm:$0xff]  ;;  %v16106_v63 = vsel %vm2233_vm4, %v5673_v38, %v9710_v54  ;;  %20310 = vst [vmem:[#allocation58_spill] sm:$0xff] %v16110_v58  ;;  %v5688_v39 = vsel %vm426_vm0, %v2965_v9, %v9951_v35  ;;  %v12058_v56 = vld [vmem:[#allocation3 + $0x98] sm:$0xff] }
 0x58d   : > { %20306 = vst [vmem:[#allocation56_spill] sm:$0xff] %v16095_v37  ;;  %v2951_v10 = vld [vmem:[#allocation3 + $0x68] sm:$0xff]  ;;  %20308 = vst [vmem:[#allocation57_spill] sm:$0xff] %v16106_v63  ;;  %v10131_v29 = vunpack.i.h.bf16 %v20312_v57  ;;  %v12057_v54 = vld [vmem:[#allocation3 + $0x90] sm:$0xff]  ;;  %v20314_v35 = vpack.i.bf16 %v15844_v60, %v15842_v31 }
 0x58e   : > { %v5674_v49 = vsel %vm426_vm0, %v2951_v10, %v9706_v24  ;;  %v2964_v13 = vld [vmem:[#allocation3 + $0x108] sm:$0xff]  ;;  %v10130_v24 = vunpack.i.l.bf16 %v20312_v57  ;;  %v16118_v10 = vpop.permute.xlu0 %11548  ;;  %v5677_v27 = vsel %vm426_vm0, %v12057_v54, %v9805_v40  ;;  %v5678_v58 = vsel %vm426_vm0, %v12058_v56, %v9806_v52  ;;  %v2968_v37 = vld [vmem:[#allocation3 + $0x138] sm:$0xff]  ;;  %v2973_v60 = vld [vmem:[#allocation3 + $0x170] sm:$0xff] }
 0x58f   : > { %v16113_v3 = vsel %vm2233_vm4, %v5674_v49, %v9711_v23  ;;  %v5687_v38 = vsel %vm426_vm0, %v2964_v13, %v9950_v51  ;;  %v2969_v23 = vld [vmem:[#allocation3 + $0x140] sm:$0xff]  ;;  %v20313_v49 = vld [vmem:[#allocation60_spill] sm:$0xff]  ;;  %11603 = vrot.lane.b32.xlu1 %v20314_v35, %s12108_s28  ;;  %v5691_v9 = vsel %vm426_vm0, %v2968_v37, %v10040_v30  ;;  %v20315_v13 = vld [vmem:[#allocation61_spill] sm:$0xff]  ;;  %v20316_v52 = vpack.i.bf16 %v15852_v50, %v15846_v0 }
 0x590   : > { %20311 = vst [vmem:[#allocation401_spill] sm:$0xff] %v16113_v3  ;;  %v9900_v36 = vunpack.i.l.bf16 %v20313_v49  ;;  %v5692_v57 = vsel %vm426_vm0, %v2969_v23, %v10041_v32  ;;  %v9901_v51 = vunpack.i.h.bf16 %v20313_v49  ;;  %v9905_v40 = vunpack.i.l.bf16 %v20315_v13  ;;  %v2972_v31 = vld [vmem:[#allocation3 + $0x168] sm:$0xff]  ;;  %v20319_v37 = vld [vmem:[#allocation67_spill] sm:$0xff]  ;;  %v16144_v23 = vpop.permute.xlu1 %11323 }
 0x591   : > { %11838 = vrot.lane.b32.xlu0 %v20316_v52, %s12104_s22  ;;  %v16137_v54 = vsel %vm2233_vm4, %v5677_v27, %v9810_v14  ;;  %v16140_v56 = vsel %vm2233_vm4, %v5678_v58, %v9811_v46  ;;  %v9906_v32 = vunpack.i.h.bf16 %v20315_v13  ;;  %v9995_v30 = vunpack.i.l.bf16 %v20319_v37  ;;  %20320 = vst [vmem:[#allocation61_spill] sm:$0xff] %v16144_v23  ;;  %v20321_v50 = vld [vmem:[#allocation68_spill] sm:$0xff]  ;;  %v12059_v46 = vld [vmem:[#allocation3 + $0xc0] sm:$0xff]  ;;  %v20322_v13 = vld [vmem:[#allocation69_spill] sm:$0xff] }
 0x592   : > { %20317 = vst [vmem:[#allocation59_spill] sm:$0xff] %v16137_v54  ;;  %20318 = vst [vmem:[#allocation60_spill] sm:$0xff] %v16140_v56  ;;  %v5696_v49 = vsel %vm426_vm0, %v2973_v60, %v10131_v29  ;;  %v5695_v35 = vsel %vm426_vm0, %v2972_v31, %v10130_v24  ;;  %v9996_v0 = vunpack.i.h.bf16 %v20319_v37  ;;  %v10250_v27 = vunpack.i.l.bf16 %v20321_v50  ;;  %v16150_v14 = vpop.permute.xlu0 %11558  ;;  %v12060_v24 = vld [vmem:[#allocation3 + $0xc8] sm:$0xff]  ;;  %v20325_v37 = vld [vmem:[#allocation71_spill] sm:$0xff] }
 0x593   : > { %v5681_v58 = vsel %vm426_vm0, %v12059_v46, %v9900_v36  ;;  %v10251_v52 = vunpack.i.h.bf16 %v20321_v50  ;;  %v10261_v54 = vunpack.i.h.bf16 %v20322_v13  ;;  %v10260_v56 = vunpack.i.l.bf16 %v20322_v13  ;;  %v3613_v46 = vld [vmem:[#allocation3 + $0x1b0] sm:$0xff]  ;;  %v3614_v13 = vld [vmem:[#allocation3 + $0x1b8] sm:$0xff]  ;;  %v20383_v63 = vld [vmem:[#allocation63_spill] sm:$0xff] }
 0x594   : > { %v20323_v29 = vpack.i.bf16 %v15986_v22, %v15984_v20  ;;  %v5682_v31 = vsel %vm426_vm0, %v12060_v24, %v9901_v51  ;;  %v16162_v60 = vsel %vm2233_vm4, %v5681_v58, %v9905_v40  ;;  %v10271_v23 = vunpack.i.h.bf16 %v20325_v37  ;;  %v12061_v22 = vld [vmem:[#allocation3 + $0xf0] sm:$0xff]  ;;  %v16178_v24 = vpop.permute.xlu1 %11333 }
 0x595   : > { %20324 = vst [vmem:[#allocation67_spill] sm:$0xff] %v16162_v60  ;;  %v10270_v36 = vunpack.i.l.bf16 %v20325_v37  ;;  %v20326_v50 = vpack.i.bf16 %v15872_v28, %v15854_v16  ;;  %v16171_v20 = vsel %vm2233_vm4, %v5682_v31, %v9906_v32  ;;  %v16174_v51 = vsel %vm426_vm0, %v12061_v22, %v9995_v30  ;;  %v20328_v40 = vld [vmem:[#allocation73_spill] sm:$0xff]  ;;  %20329 = vst [vmem:[#allocation69_spill] sm:$0xff] %v16178_v24  ;;  %v12062_v37 = vld [vmem:[#allocation3 + $0xf8] sm:$0xff] }
 0x596   : > { %11613 = vrot.lane.b32.xlu1 %v20323_v29, %s12108_s28  ;;  %20327 = vst [vmem:[#allocation68_spill] sm:$0xff] %v16171_v20  ;;  %v10281_v58 = vunpack.i.h.bf16 %v20328_v40  ;;  %v10280_v29 = vunpack.i.l.bf16 %v20328_v40  ;;  %v16181_v60 = vsel %vm426_vm0, %v12062_v37, %v9996_v0  ;;  %v5715_v28 = vsel %vm2233_vm4, %v16064_v2, %v10250_v27  ;;  %v20330_v16 = vld [vmem:[#allocation75_spill] sm:$0xff] }
 0x597   : > { %11848 = vrot.lane.b32.xlu0 %v20326_v50, %s12104_s22  ;;  %v10291_v32 = vunpack.i.h.bf16 %v20330_v16  ;;  %v10290_v31 = vunpack.i.l.bf16 %v20330_v16  ;;  %v16187_v50 = vpop.permute.xlu0 %11568  ;;  %v5716_v30 = vsel %vm2233_vm4, %v16052_v19, %v10251_v52  ;;  %v5719_v22 = vsel %vm2233_vm4, %v5687_v38, %v10260_v56  ;;  %v20333_v16 = vld [vmem:[#allocation77_spill] sm:$0xff]  ;;  %v20377_v24 = vld [vmem:[#allocation351_spill] sm:$0xff] }
 0x598   : > { %20331 = vst [vmem:[#allocation71_spill] sm:$0xff] %v16187_v50  ;;  %v5720_v40 = vsel %vm2233_vm4, %v5688_v39, %v10261_v54  ;;  %v20332_v0 = vpack.i.bf16 %v16023_v43, %v16021_v5  ;;  %v11632_v37 = vpack.i.bf16 %v3614_v13, %v3613_v46  ;;  %v16198_v2 = vsel %vm2233_vm4, %v5691_v9, %v10270_v36  ;;  %v20335_v5 = vld [vmem:[#allocation78_spill] sm:$0xff]  ;;  %v16217_v54 = vpop.permute.xlu1 %11343  ;;  %v20340_v36 = vld [vmem:[#allocation80_spill] sm:$0xff]  ;;  %v20341_v13 = vld [vmem:[#allocation81_spill] sm:$0xff] }
 0x599   : > { %v16201_v27 = vsel %vm2233_vm4, %v5692_v57, %v10271_v23  ;;  %v10301_v50 = vunpack.i.h.bf16 %v20333_v16  ;;  %v10300_v19 = vunpack.i.l.bf16 %v20333_v16  ;;  %v20334_v39 = vpack.i.bf16 %v15874_v33, %v15856_v53  ;;  %20336 = vst [vmem:[#allocation73_spill] sm:$0xff] %v16217_v54  ;;  %v20337_v33 = vld [vmem:[#allocation79_spill] sm:$0xff] }
 0x59a   : > { %11623 = vrot.lane.b32.xlu1 %v20332_v0, %s12108_s28  ;;  %v16210_v38 = vsel %vm2233_vm4, %v5695_v35, %v10280_v29  ;;  %v16213_v43 = vsel %vm2233_vm4, %v5696_v49, %v10281_v58  ;;  %v10311_v9 = vunpack.i.h.bf16 %v20335_v5  ;;  %v10310_v57 = vunpack.i.l.bf16 %v20335_v5  ;;  %v16232_v49 = vld [vmem:[%s19361_s4] ss:$0 sm:$0xff] }
 0x59b   : > { %11858 = vrot.lane.b32.xlu0 %v20334_v39, %s12104_s22  ;;  %v16221_v56 = vsel %vm2266_vm5, %v15775_v61, %v10290_v31  ;;  %v16225_v53 = vsel %vm2266_vm5, %v15794_v48, %v10291_v32  ;;  %v10321_v23 = vunpack.i.h.bf16 %v20337_v33  ;;  %v10320_v35 = vunpack.i.l.bf16 %v20337_v33  ;;  %20338 = vst [vmem:[#allocation75_spill] sm:$0xff] %v16232_v49  ;;  %v16234_v52 = vpop.permute.xlu0 %11578  ;;  %v20342_v31 = vld [vmem:[#allocation82_spill] sm:$0xff] }
 0x59c   : > { %20339 = vst [vmem:[#allocation77_spill] sm:$0xff] %v16234_v52  ;;  %v10086_v46 = vunpack.i.h.bf16 %v20340_v36  ;;  %v10085_v61 = vunpack.i.l.bf16 %v20340_v36  ;;  %v10331_v58 = vunpack.i.h.bf16 %v20341_v13  ;;  %v10330_v48 = vunpack.i.l.bf16 %v20341_v13  ;;  %v12063_v13 = vld [vmem:[#allocation3 + $0x120] sm:$0xff] }
 0x59d   : > { %v5735_v29 = vsel %vm2266_vm5, %v15803_v59, %v10300_v19  ;;  %v5736_v32 = vsel %vm2266_vm5, %v15806_v45, %v10301_v50  ;;  %v10341_v0 = vunpack.i.h.bf16 %v20342_v31  ;;  %v10340_v16 = vunpack.i.l.bf16 %v20342_v31  ;;  %v20345_v59 = vld [vmem:[#allocation84_spill] sm:$0xff]  ;;  %v16261_v50 = vpop.permute.xlu1 %11353 }
 0x59e   : > { %11633 = vrot.lane.b32.xlu1 %v11632_v37, %s12108_s28  ;;  %v5739_v39 = vsel %vm2266_vm5, %v15835_v42, %v10310_v57  ;;  %v5740_v5 = vsel %vm2266_vm5, %v15838_v12, %v10311_v9  ;;  %v20343_v37 = vld [vmem:[#allocation83_spill] sm:$0xff]  ;;  %v16259_v45 = vadd.f32 %v16232_v49, %v20345_v59  ;;  %20347 = vst [vmem:[#allocation80_spill] sm:$0xff] %v16261_v50  ;;  %v20348_v42 = vld [vmem:[#allocation85_spill] sm:$0xff]  ;;  %v20350_v12 = vld [vmem:[#allocation86_spill] sm:$0xff]  ;;  %v11560_v3 = vunpack.i.l.bf16 %v16150_v14 }
 0x59f   : > { %11868 = vrot.lane.b32.xlu0 %v15657_v44, %s12103_s21  ;;  %v16255_v33 = vadd.f32 %v20343_v37, %v16232_v49  ;;  %v5743_v19 = vsel %vm2266_vm5, %v15883_v21, %v10320_v35  ;;  %v5744_v44 = vsel %vm2266_vm5, %v15886_v41, %v10321_v23  ;;  %v16269_v57 = vadd.f32 %v20348_v42, %v16232_v49  ;;  %v16275_v36 = vpop.permute.xlu0 %11588  ;;  %v12064_v37 = vld [vmem:[#allocation3 + $0x128] sm:$0xff] }
 0x5a0   : > { %20346 = vst [vmem:[#allocation79_spill] sm:$0xff] %v16259_v45  ;;  %v16273_v9 = vadd.f32 %v16232_v49, %v20350_v12  ;;  %20352 = vst [vmem:[#allocation83_spill] sm:$0xff] %v16275_v36  ;;  %v16278_v31 = vsel %vm426_vm0, %v12063_v13, %v10085_v61  ;;  %v16281_v21 = vsel %vm426_vm0, %v12064_v37, %v10086_v46  ;;  %v20354_v61 = vld [vmem:[#allocation88_spill] sm:$0xff]  ;;  %v20361_v45 = vld [vmem:[#allocation47_spill] sm:$0xff] }
 0x5a1   : > { %20344 = vst [vmem:[#allocation78_spill] sm:$0xff] %v16255_v33  ;;  %20349 = vst [vmem:[#allocation81_spill] sm:$0xff] %v16269_v57  ;;  %v5747_v41 = vsel %vm2266_vm5, %v5715_v28, %v10330_v48  ;;  %v5748_v23 = vsel %vm2266_vm5, %v5716_v30, %v10331_v58  ;;  %v20353_v35 = vpack.i.bf16 %v15767_v17, %v15765_v34  ;;  %v10351_v12 = vunpack.i.h.bf16 %v20354_v61  ;;  %v20355_v58 = vld [vmem:[#allocation90_spill] sm:$0xff]  ;;  %v20359_v28 = vld [vmem:[#allocation97_spill] sm:$0xff] }
 0x5a2   : > { %20351 = vst [vmem:[#allocation82_spill] sm:$0xff] %v16273_v9  ;;  %v16290_v59 = vsel %vm2266_vm5, %v5719_v22, %v10340_v16  ;;  %v16293_v42 = vsel %vm2266_vm5, %v5720_v40, %v10341_v0  ;;  %v10350_v46 = vunpack.i.l.bf16 %v20354_v61  ;;  %v10361_v34 = vunpack.i.h.bf16 %v20355_v58  ;;  %v16303_v22 = vpop.permute.xlu1 %11363  ;;  %v20357_v0 = vld [vmem:[#allocation92_spill] sm:$0xff]  ;;  %v20363_v57 = vld [vmem:[#allocation98_spill] sm:$0xff] }
 0x5a3   : > { %11643 = vrot.lane.b32.xlu1 %v20353_v35, %s12109_s29  ;;  %11878 = vrot.lane.b32.xlu0 %v15720_v4, %s12104_s22  ;;  %v10360_v17 = vunpack.i.l.bf16 %v20355_v58  ;;  %20356 = vst [vmem:[#allocation84_spill] sm:$0xff] %v16303_v22  ;;  %v10371_v16 = vunpack.i.h.bf16 %v20357_v0  ;;  %v10370_v13 = vunpack.i.l.bf16 %v20357_v0  ;;  %v16309_v37 = vpop.permute.xlu0 %11598  ;;  %v20358_v4 = vld [vmem:[#allocation94_spill] sm:$0xff]  ;;  %v10391_v30 = vunpack.i.h.bf16 %v20359_v28  ;;  %v20360_v33 = vld [vmem:[#allocation352_spill] sm:$0xff] }
 0x5a4   : > { %v10381_v35 = vunpack.i.h.bf16 %v20358_v4  ;;  %v10380_v61 = vunpack.i.l.bf16 %v20358_v4  ;;  %v10390_v58 = vunpack.i.l.bf16 %v20359_v28  ;;  %v20362_v40 = vpack.i.bf16 %v20360_v33, %v20361_v45  ;;  %v20364_v4 = vld [vmem:[#allocation333_spill] sm:$0xff]  ;;  %v20365_v45 = vld [vmem:[#allocation99_spill] sm:$0xff] }
 0x5a5   : > { %v5755_v48 = vsel %vm2266_vm5, %v16198_v2, %v10350_v46  ;;  %v5756_v0 = vsel %vm2266_vm5, %v16201_v27, %v10351_v12  ;;  %v10401_v9 = vunpack.i.h.bf16 %v20363_v57  ;;  %v10400_v36 = vunpack.i.l.bf16 %v20363_v57  ;;  %v20367_v12 = vld [vmem:[#allocation100_spill] sm:$0xff] }
 0x5a6   : > { %v5759_v28 = vsel %vm2266_vm5, %v16210_v38, %v10360_v17  ;;  %v5760_v33 = vsel %vm2266_vm5, %v16213_v43, %v10361_v34  ;;  %v10410_v2 = vunpack.i.l.bf16 %v20365_v45  ;;  %v16333_v46 = vpop.permute.xlu1 %11373  ;;  %v5763_v27 = vsel %vm2299_vm6, %v16221_v56, %v10370_v13 }
 0x5a7   : > { %11653 = vrot.lane.b32.xlu1 %v20362_v40, %s12109_s29  ;;  %11888 = vrot.lane.b32.xlu0 %v20364_v4, %s12103_s21  ;;  %v10411_v40 = vunpack.i.h.bf16 %v20365_v45  ;;  %20366 = vst [vmem:[#allocation85_spill] sm:$0xff] %v16333_v46  ;;  %v5764_v57 = vsel %vm2299_vm6, %v16225_v53, %v10371_v16  ;;  %v10176_v4 = vunpack.i.h.bf16 %v20367_v12  ;;  %v10175_v52 = vunpack.i.l.bf16 %v20367_v12  ;;  %v16341_v38 = vpop.permute.xlu0 %11608  ;;  %v20368_v53 = vld [vmem:[#allocation354_spill] sm:$0xff]  ;;  %v20369_v16 = vld [vmem:[#allocation353_spill] sm:$0xff] }
 0x5a8   : > { %v16344_v43 = vsel %vm2299_vm6, %v5735_v29, %v10380_v61  ;;  %v16347_v34 = vsel %vm2299_vm6, %v5736_v32, %v10381_v35  ;;  %v16350_v17 = vsel %vm2299_vm6, %v5739_v39, %v10390_v58  ;;  %v16353_v56 = vsel %vm2299_vm6, %v5740_v5, %v10391_v30  ;;  %v20371_v61 = vld [vmem:[#allocation334_spill] sm:$0xff]  ;;  %v20372_v39 = vld [vmem:[#allocation33_spill] sm:$0xff] }
 0x5a9   : > { %v20370_v13 = vpack.i.bf16 %v20368_v53, %v20369_v16  ;;  %v16360_v45 = vsel %vm2299_vm6, %v5743_v19, %v10400_v36  ;;  %v16363_v29 = vsel %vm2299_vm6, %v5744_v44, %v10401_v9  ;;  %v11401_v32 = vunpack.i.h.bf16 %v20371_v61  ;;  %v20373_v58 = vld [vmem:[#allocation101_spill] sm:$0xff]  ;;  %v16379_v44 = vld [vmem:[#allocation3 + $0x1b9] sm:$0xff] }
 0x5aa   : > { %v11400_v35 = vunpack.i.l.bf16 %v20371_v61  ;;  %v16370_v5 = vsel %vm2299_vm6, %v5747_v41, %v10410_v2  ;;  %v16373_v30 = vsel %vm2299_vm6, %v5748_v23, %v10411_v40  ;;  %v10421_v12 = vunpack.i.h.bf16 %v20373_v58  ;;  %v16377_v36 = vld [vmem:[#allocation3 + $0x1b1] sm:$0xff]  ;;  %v16381_v9 = vpop.permute.xlu1 %11383 }
 0x5ab   : > { %11663 = vrot.lane.b32.xlu1 %v20370_v13, %s12109_s29  ;;  %11898 = vrot.lane.b32.xlu0 %v20372_v39, %s12104_s22  ;;  %v10420_v19 = vunpack.i.l.bf16 %v20373_v58  ;;  %20374 = vst [vmem:[#allocation86_spill] sm:$0xff] %v16381_v9  ;;  %v12065_v53 = vld [vmem:[#allocation3 + $0x150] sm:$0xff]  ;;  %v12066_v13 = vld [vmem:[#allocation3 + $0x158] sm:$0xff]  ;;  %v16391_v61 = vpop.permute.xlu0 %11618  ;;  %v11481_v9 = vunpack.i.h.bf16 %v20377_v24  ;;  %v11480_v46 = vunpack.i.l.bf16 %v20377_v24 }
 0x5ac   : > { %v16384_v16 = vsel %vm426_vm0, %v12065_v53, %v10175_v52  ;;  %v16387_v41 = vsel %vm426_vm0, %v12066_v13, %v10176_v4  ;;  %v20375_v23 = vld [vmem:[#allocation65_spill] sm:$0xff]  ;;  %v20376_v39 = vld [vmem:[#allocation70_spill] sm:$0xff]  ;;  %v20378_v52 = vld [vmem:[#allocation356_spill] sm:$0xff]  ;;  %v7205_v20 = vsel %vm426_vm0, %v16377_v36, %v11400_v35 }
 0x5ad   : > { %v10431_v40 = vunpack.i.h.bf16 %v20375_v23  ;;  %v10430_v2 = vunpack.i.l.bf16 %v20375_v23  ;;  %v10441_v58 = vunpack.i.h.bf16 %v20376_v39  ;;  %v10440_v54 = vunpack.i.l.bf16 %v20376_v39  ;;  %v20379_v53 = vld [vmem:[#allocation355_spill] sm:$0xff]  ;;  %v20381_v4 = vld [vmem:[#allocation72_spill] sm:$0xff] }
 0x5ae   : > { %v20380_v22 = vpack.i.bf16 %v20378_v52, %v20379_v53  ;;  %v10451_v13 = vunpack.i.h.bf16 %v20381_v4  ;;  %v10450_v50 = vunpack.i.l.bf16 %v20381_v4  ;;  %v7206_v23 = vsel %vm426_vm0, %v16379_v44, %v11401_v32  ;;  %v20382_v39 = vld [vmem:[#allocation336_spill] sm:$0xff]  ;;  %v20387_v32 = vld [vmem:[#allocation74_spill] sm:$0xff]  ;;  %v16425_v35 = vpop.permute.xlu1 %11393 }
 0x5af   : > { %11908 = vrot.lane.b32.xlu0 %v20382_v39, %s12103_s21  ;;  %v16411_v24 = vsel %vm2299_vm6, %v16290_v59, %v10420_v19  ;;  %v16419_v4 = vadd.f32 %v16232_v49, %v20385_v6  ;;  %v16423_v26 = vadd.f32 %v20387_v32, %v16232_v49  ;;  %20389 = vst [vmem:[#allocation94_spill] sm:$0xff] %v16425_v35  ;;  %v20390_v59 = vld [vmem:[#allocation64_spill] sm:$0xff]  ;;  %v16437_v6 = vpop.permute.xlu0 %11628 }
 0x5b0   : > { %11673 = vrot.lane.b32.xlu1 %v20380_v22, %s12109_s29  ;;  %v16415_v22 = vadd.f32 %v20383_v63, %v16232_v49  ;;  %v16429_v39 = vsel %vm2299_vm6, %v16293_v42, %v10421_v12  ;;  %v16433_v19 = vadd.f32 %v16232_v49, %v20390_v59  ;;  %v11561_v63 = vunpack.i.h.bf16 %v16150_v14  ;;  %v20392_v12 = vld [vmem:[#allocation359_spill] sm:$0xff]  ;;  %v20393_v59 = vld [vmem:[#allocation48_spill] sm:$0xff] }
 0x5b1   : > { %20386 = vst [vmem:[#allocation90_spill] sm:$0xff] %v16419_v4  ;;  %20388 = vst [vmem:[#allocation92_spill] sm:$0xff] %v16423_v26  ;;  %v16440_v15 = vsel %vm2299_vm6, %v5755_v48, %v10430_v2  ;;  %v16443_v32 = vsel %vm2299_vm6, %v5756_v0, %v10431_v40  ;;  %v7237_v35 = vsel %vm2233_vm4, %v7205_v20, %v11480_v46  ;;  %v20398_v20 = vld [vmem:[#allocation35_spill] sm:$0xff]  ;;  %v20404_v26 = vld [vmem:[#allocation76_spill] sm:$0xff] }
 0x5b2   : > { %20384 = vst [vmem:[#allocation88_spill] sm:$0xff] %v16415_v22  ;;  %20391 = vst [vmem:[#allocation97_spill] sm:$0xff] %v16433_v19  ;;  %v7238_v42 = vsel %vm2233_vm4, %v7206_v23, %v11481_v9  ;;  %v20394_v49 = vpack.i.bf16 %v20392_v12, %v20393_v59  ;;  %v16452_v62 = vsel %vm2299_vm6, %v5759_v28, %v10440_v54  ;;  %v20399_v54 = vld [vmem:[#allocation108_spill] sm:$0xff]  ;;  %v16469_v40 = vpop.permute.xlu1 %11403  ;;  %v20403_v9 = vld [vmem:[#allocation26_spill] sm:$0xff] }
 0x5b3   : > { %v16455_v14 = vsel %vm2299_vm6, %v5760_v33, %v10441_v58  ;;  %v16458_v48 = vsel %vm2332_vm7, %v5763_v27, %v10450_v50  ;;  %v16461_v0 = vsel %vm2332_vm7, %v5764_v57, %v10451_v13  ;;  %11918 = vrot.lane.b32.xlu0 %v20398_v20, %s12104_s22  ;;  %v10461_v28 = vunpack.i.h.bf16 %v20399_v54  ;;  %20400 = vst [vmem:[#allocation333_spill] sm:$0xff] %v16469_v40  ;;  %v11639_v2 = vpop.permute.xlu0 %11638  ;;  %v20401_v58 = vld [vmem:[#allocation25_spill] sm:$0xff] }
 0x5b4   : > { %11683 = vrot.lane.b32.xlu1 %v20394_v49, %s12109_s29  ;;  %20395 = vst [vmem:[#allocation352_spill] sm:$0xff] %v16455_v14  ;;  %20396 = vst [vmem:[#allocation47_spill] sm:$0xff] %v16458_v48  ;;  %v10460_v50 = vunpack.i.l.bf16 %v20399_v54  ;;  %v7269_v27 = vsel %vm2266_vm5, %v7237_v35, %v11560_v3  ;;  %v7270_v57 = vsel %vm2266_vm5, %v7238_v42, %v11561_v63  ;;  %v10471_v13 = vunpack.i.h.bf16 %v20401_v58  ;;  %v20405_v63 = vld [vmem:[#allocation339_spill] sm:$0xff]  ;;  %v20406_v42 = vld [vmem:[#allocation29_spill] sm:$0xff] }
 0x5b5   : > { %20397 = vst [vmem:[#allocation98_spill] sm:$0xff] %v16461_v0  ;;  %v10470_v23 = vunpack.i.l.bf16 %v20401_v58  ;;  %v11641_v20 = vunpack.i.h.bf16 %v11639_v2  ;;  %v11640_v46 = vunpack.i.l.bf16 %v11639_v2  ;;  %v20402_v49 = vpack.i.bf16 %v15948_v8, %v15946_v7  ;;  %v3712_v4 = vld [vmem:[#allocation3 + $0x1d3] sm:$0xff] }
 0x5b6   : > { %v10481_v33 = vunpack.i.h.bf16 %v20403_v9  ;;  %v10480_v54 = vunpack.i.l.bf16 %v20403_v9  ;;  %v10256_v3 = vunpack.i.h.bf16 %v20404_v26  ;;  %v10255_v35 = vunpack.i.l.bf16 %v20404_v26  ;;  %v16495_v19 = vpop.permute.xlu1 %11413  ;;  %v3711_v9 = vld [vmem:[#allocation3 + $0x1cb] sm:$0xff]  ;;  %v20409_v48 = vld [vmem:[#allocation110_spill] sm:$0xff] }
 0x5b7   : > { %11928 = vrot.lane.b32.xlu0 %v20405_v63, %s12103_s21  ;;  %v10491_v58 = vunpack.i.h.bf16 %v20406_v42  ;;  %v10490_v2 = vunpack.i.l.bf16 %v20406_v42  ;;  %v16490_v22 = vsel %vm2299_vm6, %v7269_v27, %v11640_v46  ;;  %20407 = vst [vmem:[#allocation99_spill] sm:$0xff] %v16495_v19  ;;  %v16499_v26 = vsel %vm2332_vm7, %v16344_v43, %v10460_v50  ;;  %v20408_v40 = vld [vmem:[#allocation109_spill] sm:$0xff]  ;;  %v16504_v14 = vpop.permute.xlu0 %11648 }
 0x5b8   : > { %11693 = vrot.lane.b32.xlu1 %v20402_v49, %s12109_s29  ;;  %v16493_v49 = vsel %vm2299_vm6, %v7270_v57, %v11641_v20  ;;  %v10266_v63 = vunpack.i.h.bf16 %v20408_v40  ;;  %v10265_v0 = vunpack.i.l.bf16 %v20408_v40  ;;  %v10500_v42 = vunpack.i.l.bf16 %v20409_v48  ;;  %20410 = vst [vmem:[#allocation100_spill] sm:$0xff] %v16504_v14  ;;  %v20416_v20 = vld [vmem:[#allocation325_spill] sm:$0xff] }
 0x5b9   : > { %v16508_v46 = vsel %vm2332_vm7, %v16347_v34, %v10461_v28  ;;  %v16512_v27 = vsel %vm2332_vm7, %v16350_v17, %v10470_v23  ;;  %v16516_v43 = vsel %vm2332_vm7, %v16353_v56, %v10471_v13  ;;  %v20411_v40 = vpack.i.bf16 %v16035_v18, %v16033_v25  ;;  %v20412_v56 = vld [vmem:[#allocation358_spill] sm:$0xff] }
 0x5ba   : > { %v11712_v50 = vpack.i.bf16 %v16379_v44, %v16377_v36  ;;  %v16526_v34 = vsel %vm2332_vm7, %v16360_v45, %v10480_v54  ;;  %v16530_v17 = vsel %vm2332_vm7, %v16363_v29, %v10481_v33  ;;  %v10501_v28 = vunpack.i.h.bf16 %v20409_v48  ;;  %v16551_v44 = vpop.permute.xlu1 %11423  ;;  %v3743_v48 = vld [vmem:[#allocation3 + $0x1cc] sm:$0xff] }
 0x5bb   : > { %11938 = vrot.lane.b32.xlu0 %v20412_v56, %s12104_s22  ;;  %v11947_v57 = vpack.i.bf16 %v3712_v4, %v3711_v9  ;;  %v16537_v13 = vsel %vm2233_vm4, %v16181_v60, %v10256_v3  ;;  %v16541_v36 = vsel %vm2233_vm4, %v16174_v51, %v10255_v35  ;;  %v16545_v45 = vsel %vm2332_vm7, %v16370_v5, %v10490_v2  ;;  %v3744_v4 = vld [vmem:[#allocation3 + $0x1d4] sm:$0xff]  ;;  %v20417_v35 = vld [vmem:[#allocation327_spill] sm:$0xff]  ;;  %v20420_v56 = vld [vmem:[#allocation344_spill] sm:$0xff] }
 0x5bc   : > { %11703 = vrot.lane.b32.xlu1 %v20411_v40, %s12109_s29  ;;  %v16549_v29 = vsel %vm2332_vm7, %v16373_v30, %v10491_v58  ;;  %20413 = vst [vmem:[#allocation354_spill] sm:$0xff] %v16551_v44  ;;  %v16555_v60 = vsel %vm2233_vm4, %v16281_v21, %v10266_v63  ;;  %v16559_v51 = vsel %vm2233_vm4, %v16278_v31, %v10265_v0  ;;  %v20414_v33 = vld [vmem:[#allocation105_spill] sm:$0xff]  ;;  %v16566_v30 = vpop.permute.xlu0 %11658  ;;  %v11361_v54 = vunpack.i.h.bf16 %v20416_v20 }
 0x5bd   : > { %v16563_v5 = vsel %vm2332_vm7, %v16411_v24, %v10500_v42  ;;  %v10275_v23 = vunpack.i.l.bf16 %v20414_v33  ;;  %20415 = vst [vmem:[#allocation353_spill] sm:$0xff] %v16566_v30  ;;  %v11360_v3 = vunpack.i.l.bf16 %v20416_v20  ;;  %v11371_v58 = vunpack.i.h.bf16 %v20417_v35  ;;  %v20418_v24 = vld [vmem:[#allocation329_spill] sm:$0xff]  ;;  %v20419_v42 = vld [vmem:[#allocation106_spill] sm:$0xff] }
 0x5be   : > { %v11370_v21 = vunpack.i.l.bf16 %v20417_v35  ;;  %v16575_v31 = vsel %vm2332_vm7, %v16429_v39, %v10501_v28  ;;  %v11381_v0 = vunpack.i.h.bf16 %v20418_v24  ;;  %v11380_v2 = vunpack.i.l.bf16 %v20418_v24  ;;  %v20421_v24 = vld [vmem:[#allocation381_spill] sm:$0xff] }
 0x5bf   : > { %11948 = vrot.lane.b32.xlu0 %v11947_v57, %s12103_s21  ;;  %v11957_v9 = vpack.i.bf16 %v3744_v4, %v3743_v48  ;;  %v11441_v20 = vunpack.i.h.bf16 %v20420_v56  ;;  %v11440_v35 = vunpack.i.l.bf16 %v20420_v56  ;;  %v16588_v39 = vsel %vm2233_vm4, %v16384_v16, %v10275_v23  ;;  %v20423_v23 = vld [vmem:[#allocation362_spill] sm:$0xff]  ;;  %v20424_v28 = vld [vmem:[#allocation361_spill] sm:$0xff] }
 0x5c0   : > { %11713 = vrot.lane.b32.xlu1 %v11712_v50, %s12109_s29  ;;  %v16584_v50 = vpop.permute.xlu1 %11433  ;;  %v11521_v30 = vunpack.i.h.bf16 %v20421_v24  ;;  %v11520_v57 = vunpack.i.l.bf16 %v20421_v24  ;;  %v16593_v48 = vpop.permute.xlu0 %11668  ;;  %v7190_v4 = vsel %vm426_vm0, %v20378_v52, %v11361_v54  ;;  %v7189_v56 = vsel %vm426_vm0, %v20379_v53, %v11360_v3 }
 0x5c1   : > { %20422 = vst [vmem:[#allocation334_spill] sm:$0xff] %v16593_v48  ;;  %v7194_v40 = vsel %vm426_vm0, %v20392_v12, %v11371_v58  ;;  %v7193_v16 = vsel %vm426_vm0, %v20393_v59, %v11370_v21  ;;  %v20425_v63 = vpack.i.bf16 %v20423_v23, %v20424_v28  ;;  %v7198_v24 = vsel %vm426_vm0, %v15948_v8, %v11381_v0  ;;  %v20426_v12 = vld [vmem:[#allocation331_spill] sm:$0xff]  ;;  %v20427_v8 = vld [vmem:[#allocation346_spill] sm:$0xff] }
 0x5c2   : > { %v7197_v52 = vsel %vm426_vm0, %v15946_v7, %v11380_v2  ;;  %v11601_v54 = vunpack.i.h.bf16 %v16309_v37  ;;  %v11600_v53 = vunpack.i.l.bf16 %v16309_v37  ;;  %v11391_v3 = vunpack.i.h.bf16 %v20426_v12 }
 0x5c3   : > { %11958 = vrot.lane.b32.xlu0 %v11957_v9, %s12104_s22  ;;  %v11390_v59 = vunpack.i.l.bf16 %v20426_v12  ;;  %v7221_v58 = vsel %vm2233_vm4, %v7189_v56, %v11440_v35  ;;  %v7222_v21 = vsel %vm2233_vm4, %v7190_v4, %v11441_v20  ;;  %v11451_v0 = vunpack.i.h.bf16 %v20427_v8  ;;  %v20428_v35 = vld [vmem:[#allocation365_spill] sm:$0xff]  ;;  %v20429_v20 = vld [vmem:[#allocation363_spill] sm:$0xff] }
 0x5c4   : > { %11723 = vrot.lane.b32.xlu1 %v20425_v63, %s12102_s20  ;;  %v16618_v63 = vpop.permute.xlu1 %11443  ;;  %v11450_v7 = vunpack.i.l.bf16 %v20427_v8  ;;  %v7253_v2 = vsel %vm2266_vm5, %v7221_v58, %v11520_v57  ;;  %v7254_v37 = vsel %vm2266_vm5, %v7222_v21, %v11521_v30  ;;  %v11679_v28 = vpop.permute.xlu0 %11678  ;;  %v11531_v9 = vunpack.i.h.bf16 %v16019_v11  ;;  %v20431_v58 = vld [vmem:[#allocation348_spill] sm:$0xff] }
 0x5c5   : > { %v11530_v23 = vunpack.i.l.bf16 %v16019_v11  ;;  %v11681_v12 = vunpack.i.h.bf16 %v11679_v28  ;;  %v11680_v48 = vunpack.i.l.bf16 %v11679_v28  ;;  %v20430_v4 = vpack.i.bf16 %v20428_v35, %v20429_v20 }
 0x5c6   : > { %v7285_v56 = vsel %vm2299_vm6, %v7253_v2, %v11600_v53  ;;  %v7286_v8 = vsel %vm2299_vm6, %v7254_v37, %v11601_v54  ;;  %v11611_v57 = vunpack.i.h.bf16 %v16341_v38  ;;  %v11610_v30 = vunpack.i.l.bf16 %v16341_v38 }
 0x5c7   : > { %v11461_v21 = vunpack.i.h.bf16 %v20431_v58  ;;  %v11460_v14 = vunpack.i.l.bf16 %v20431_v58  ;;  %v16637_v11 = vsel %vm2332_vm7, %v7285_v56, %v11680_v48  ;;  %v16640_v28 = vsel %vm2332_vm7, %v7286_v8, %v11681_v12  ;;  %v20432_v12 = vld [vmem:[#allocation369_spill] sm:$0xff]  ;;  %v20433_v8 = vld [vmem:[#allocation364_spill] sm:$0xff] }
 0x5c8   : > { %11733 = vrot.lane.b32.xlu1 %v20430_v4, %s12102_s20  ;;  %v16642_v35 = vpop.permute.xlu1 %11453  ;;  %v7225_v53 = vsel %vm2233_vm4, %v7193_v16, %v11450_v7  ;;  %v7226_v54 = vsel %vm2233_vm4, %v7194_v40, %v11451_v0  ;;  %v11541_v2 = vunpack.i.h.bf16 %v16078_v55  ;;  %v11540_v38 = vunpack.i.l.bf16 %v16078_v55  ;;  %v11689_v37 = vpop.permute.xlu0 %11688 }
 0x5c9   : > { %v7257_v20 = vsel %vm2266_vm5, %v7225_v53, %v11530_v23  ;;  %v7258_v4 = vsel %vm2266_vm5, %v7226_v54, %v11531_v9  ;;  %v11691_v48 = vunpack.i.h.bf16 %v11689_v37  ;;  %v11690_v56 = vunpack.i.l.bf16 %v11689_v37  ;;  %v20437_v37 = vld [vmem:[#allocation350_spill] sm:$0xff] }
 0x5ca   : > { %v20434_v58 = vpack.i.bf16 %v20432_v12, %v20433_v8  ;;  %v7289_v16 = vsel %vm2299_vm6, %v7257_v20, %v11610_v30  ;;  %v7290_v40 = vsel %vm2299_vm6, %v7258_v4, %v11611_v57  ;;  %v11621_v0 = vunpack.i.h.bf16 %v16391_v61 }
 0x5cb   : > { %v11620_v55 = vunpack.i.l.bf16 %v16391_v61  ;;  %v7229_v7 = vsel %vm2233_vm4, %v7197_v52, %v11460_v14  ;;  %v7230_v23 = vsel %vm2233_vm4, %v7198_v24, %v11461_v21  ;;  %v16661_v9 = vsel %vm2332_vm7, %v7289_v16, %v11690_v56  ;;  %v20439_v56 = vld [vmem:[#allocation366_spill] sm:$0xff] }
 0x5cc   : > { %11743 = vrot.lane.b32.xlu1 %v20434_v58, %s12102_s20  ;;  %20435 = vst [vmem:[#allocation33_spill] sm:$0xff] %v16661_v9  ;;  %v16664_v53 = vsel %vm2332_vm7, %v7290_v40, %v11691_v48  ;;  %v16666_v54 = vpop.permute.xlu1 %11463  ;;  %v11471_v30 = vunpack.i.h.bf16 %v20437_v37  ;;  %v11470_v57 = vunpack.i.l.bf16 %v20437_v37  ;;  %v7261_v20 = vsel %vm2266_vm5, %v7229_v7, %v11540_v38  ;;  %v11699_v4 = vpop.permute.xlu0 %11698  ;;  %v20438_v48 = vld [vmem:[#allocation370_spill] sm:$0xff]  ;;  %v20511_v9 = vld [vmem:[#allocation123_spill] sm:$0xff] }
 0x5cd   : > { %20436 = vst [vmem:[#allocation101_spill] sm:$0xff] %v16664_v53  ;;  %v7262_v61 = vsel %vm2266_vm5, %v7230_v23, %v11541_v2  ;;  %v11551_v14 = vunpack.i.h.bf16 %v16118_v10  ;;  %v11550_v24 = vunpack.i.l.bf16 %v16118_v10  ;;  %v11701_v52 = vunpack.i.h.bf16 %v11699_v4 }
 0x5ce   : > { %v11700_v21 = vunpack.i.l.bf16 %v11699_v4  ;;  %v20440_v12 = vpack.i.bf16 %v20438_v48, %v20439_v56  ;;  %v7293_v8 = vsel %vm2299_vm6, %v7261_v20, %v11620_v55  ;;  %v7294_v58 = vsel %vm2299_vm6, %v7262_v61, %v11621_v0  ;;  %v20446_v4 = vld [vmem:[#allocation367_spill] sm:$0xff] }
 0x5cf   : > { %v11631_v38 = vunpack.i.h.bf16 %v16437_v6  ;;  %v11630_v2 = vunpack.i.l.bf16 %v16437_v6  ;;  %v7202_v16 = vsel %vm426_vm0, %v16035_v18, %v11391_v3  ;;  %v7201_v10 = vsel %vm426_vm0, %v16033_v25, %v11390_v59 }
 0x5d0   : > { %11753 = vrot.lane.b32.xlu1 %v20440_v12, %s12102_s20  ;;  %v16687_v40 = vsel %vm2332_vm7, %v7293_v8, %v11700_v21  ;;  %v16690_v7 = vsel %vm2332_vm7, %v7294_v58, %v11701_v52  ;;  %v16692_v23 = vpop.permute.xlu1 %11473  ;;  %v20443_v0 = vunpack.i.h.bf16 %v20414_v33  ;;  %v20444_v6 = vunpack.i.l.bf16 %v20419_v42  ;;  %v11709_v59 = vpop.permute.xlu0 %11708  ;;  %v20448_v21 = vld [vmem:[#allocation62_spill] sm:$0xff] }
 0x5d1   : > { %20441 = vst [vmem:[#allocation65_spill] sm:$0xff] %v16687_v40  ;;  %20442 = vst [vmem:[#allocation70_spill] sm:$0xff] %v16690_v7  ;;  %v7233_v25 = vsel %vm2233_vm4, %v7201_v10, %v11470_v57  ;;  %v7234_v3 = vsel %vm2233_vm4, %v7202_v16, %v11471_v30  ;;  %v11711_v33 = vunpack.i.h.bf16 %v11709_v59  ;;  %v11710_v61 = vunpack.i.l.bf16 %v11709_v59  ;;  %v20454_v10 = vld [vmem:[#allocation87_spill] sm:$0xff]  ;;  %v20508_v40 = vld [vmem:[#allocation376_spill] sm:$0xff] }
 0x5d2   : > { %v16698_v55 = vsel %vm2233_vm4, %v16387_v41, %v20443_v0  ;;  %v16704_v18 = vsel %vm2332_vm7, %v16440_v15, %v20444_v6  ;;  %v7265_v37 = vsel %vm2266_vm5, %v7233_v25, %v11550_v24  ;;  %v7266_v20 = vsel %vm2266_vm5, %v7234_v3, %v11551_v14  ;;  %v20445_v41 = vld [vmem:[#allocation371_spill] sm:$0xff]  ;;  %v20456_v3 = vld [vmem:[#allocation96_spill] sm:$0xff] }
 0x5d3   : > { %v20447_v52 = vpack.i.bf16 %v20445_v41, %v20446_v4  ;;  %v10286_v48 = vunpack.i.h.bf16 %v20448_v21  ;;  %v10285_v15 = vunpack.i.l.bf16 %v20448_v21  ;;  %v7297_v57 = vsel %vm2299_vm6, %v7265_v37, %v11630_v2  ;;  %v20450_v24 = vld [vmem:[#allocation103_spill] sm:$0xff]  ;;  %v20459_v4 = vld [vmem:[#allocation45_spill] sm:$0xff] }
 0x5d4   : > { %v7298_v30 = vsel %vm2299_vm6, %v7266_v20, %v11631_v38  ;;  %v20449_v56 = vunpack.i.h.bf16 %v20419_v42  ;;  %v10520_v12 = vunpack.i.l.bf16 %v20450_v24  ;;  %v16726_v8 = vsel %vm2332_vm7, %v7297_v57, %v11710_v61  ;;  %v16731_v16 = vpop.permute.xlu1 %11483  ;;  %v20455_v0 = vld [vmem:[#allocation107_spill] sm:$0xff]  ;;  %v20458_v61 = vld [vmem:[#allocation46_spill] sm:$0xff] }
 0x5d5   : > { %11763 = vrot.lane.b32.xlu1 %v20447_v52, %s12102_s20  ;;  %20451 = vst [vmem:[#allocation351_spill] sm:$0xff] %v16726_v8  ;;  %v16729_v58 = vsel %vm2332_vm7, %v7298_v30, %v11711_v33  ;;  %20453 = vst [vmem:[#allocation355_spill] sm:$0xff] %v16731_v16  ;;  %v10521_v2 = vunpack.i.h.bf16 %v20450_v24  ;;  %v10296_v38 = vunpack.i.h.bf16 %v20454_v10  ;;  %v10295_v42 = vunpack.i.l.bf16 %v20454_v10  ;;  %v20460_v57 = vld [vmem:[#allocation95_spill] sm:$0xff]  ;;  %v20482_v16 = vld [vmem:[#allocation93_spill] sm:$0xff] }
 0x5d6   : > { %v16722_v14 = vsel %vm2332_vm7, %v16443_v32, %v20449_v56  ;;  %20452 = vst [vmem:[#allocation356_spill] sm:$0xff] %v16729_v58  ;;  %v10531_v6 = vunpack.i.h.bf16 %v20455_v0  ;;  %v11719_v32 = vpop.permute.xlu0 %11718  ;;  %v10530_v25 = vunpack.i.l.bf16 %v20455_v0  ;;  %v10306_v59 = vunpack.i.h.bf16 %v20456_v3  ;;  %v3677_v56 = vld [vmem:[#allocation3 + $0x1b2] sm:$0xff]  ;;  %v3678_v24 = vld [vmem:[#allocation3 + $0x1ba] sm:$0xff]  ;;  %v20464_v0 = vld [vmem:[#allocation352_spill] sm:$0xff] }
 0x5d7   : > { %v11721_v37 = vunpack.i.h.bf16 %v11719_v32  ;;  %v11720_v20 = vunpack.i.l.bf16 %v11719_v32  ;;  %v20457_v33 = vpack.i.bf16 %v15990_v1, %v15988_v47  ;;  %v16745_v41 = vsel %vm2266_vm5, %v20458_v61, %v10286_v48 }
 0x5d8   : > { %v16749_v52 = vsel %vm2266_vm5, %v20459_v4, %v10285_v15  ;;  %v10305_v21 = vunpack.i.l.bf16 %v20456_v3  ;;  %v10540_v30 = vunpack.i.l.bf16 %v20460_v57  ;;  %v16755_v10 = vsel %vm2332_vm7, %v16452_v62, %v10520_v12  ;;  %v16766_v15 = vpop.permute.xlu1 %11493  ;;  %v20465_v3 = vld [vmem:[#allocation396_spill] sm:$0xff]  ;;  %v20466_v12 = vld [vmem:[#allocation391_spill] sm:$0xff]  ;;  %v20470_v4 = vld [vmem:[#allocation98_spill] sm:$0xff] }
 0x5d9   : > { %11773 = vrot.lane.b32.xlu1 %v20457_v33, %s12102_s20  ;;  %v10541_v1 = vunpack.i.h.bf16 %v20460_v57  ;;  %v16760_v47 = vsel %vm2332_vm7, %v16490_v22, %v11720_v20  ;;  %v16764_v48 = vsel %vm2332_vm7, %v16493_v49, %v11721_v37  ;;  %20463 = vst [vmem:[#allocation63_spill] sm:$0xff] %v16766_v15  ;;  %v16770_v32 = vsel %vm2332_vm7, %v20464_v0, %v10521_v2  ;;  %v20467_v22 = vld [vmem:[#allocation89_spill] sm:$0xff]  ;;  %v20469_v49 = vld [vmem:[#allocation47_spill] sm:$0xff] }
 0x5da   : > { %20461 = vst [vmem:[#allocation72_spill] sm:$0xff] %v16760_v47  ;;  %20462 = vst [vmem:[#allocation336_spill] sm:$0xff] %v16764_v48  ;;  %v16774_v62 = vsel %vm2266_vm5, %v20465_v3, %v10296_v38  ;;  %v16778_v33 = vsel %vm2266_vm5, %v20466_v12, %v10295_v42  ;;  %v10316_v20 = vunpack.i.h.bf16 %v20467_v22  ;;  %v16781_v61 = vpop.permute.xlu0 %11728  ;;  %v16785_v37 = vsel %vm2365_vm8, %v20469_v49, %v10530_v25  ;;  %v20471_v57 = vld [vmem:[#allocation401_spill] sm:$0xff]  ;;  %v20472_v0 = vld [vmem:[#allocation399_spill] sm:$0xff] }
 0x5db   : > { %20468 = vst [vmem:[#allocation104_spill] sm:$0xff] %v16781_v61  ;;  %v16789_v2 = vsel %vm2365_vm8, %v20470_v4, %v10531_v6  ;;  %v16793_v38 = vsel %vm2266_vm5, %v20471_v57, %v10306_v59  ;;  %v20473_v42 = vld [vmem:[#allocation398_spill] sm:$0xff]  ;;  %v11792_v12 = vpack.i.bf16 %v3678_v24, %v3677_v56  ;;  %v20475_v15 = vld [vmem:[#allocation57_spill] sm:$0xff]  ;;  %v16805_v25 = vsel %vm2365_vm8, %v16499_v26, %v10540_v30  ;;  %v20480_v30 = vld [vmem:[#allocation91_spill] sm:$0xff] }
 0x5dc   : > { %v20474_v3 = vpack.i.bf16 %v20472_v0, %v20473_v42  ;;  %v16801_v61 = vsel %vm2266_vm5, %v20475_v15, %v10305_v21  ;;  %v10315_v6 = vunpack.i.l.bf16 %v20467_v22  ;;  %v20476_v49 = vld [vmem:[#allocation102_spill] sm:$0xff]  ;;  %v16811_v59 = vsel %vm2365_vm8, %v16508_v46, %v10541_v1  ;;  %v16816_v21 = vpop.permute.xlu1 %11503  ;;  %v20479_v15 = vld [vmem:[#allocation60_spill] sm:$0xff] }
 0x5dd   : > { %v10550_v4 = vunpack.i.l.bf16 %v20476_v49  ;;  %v10551_v57 = vunpack.i.h.bf16 %v20476_v49  ;;  %v20477_v0 = vld [vmem:[#allocation66_spill] sm:$0xff]  ;;  %20478 = vst [vmem:[#allocation74_spill] sm:$0xff] %v16816_v21  ;;  %v16820_v26 = vsel %vm2266_vm5, %v20479_v15, %v10316_v20  ;;  %v10561_v22 = vunpack.i.h.bf16 %v20480_v30  ;;  %v20485_v49 = vld [vmem:[#allocation111_spill] sm:$0xff]  ;;  %v20489_v20 = vld [vmem:[#allocation113_spill] sm:$0xff] }
 0x5de   : > { %11783 = vrot.lane.b32.xlu1 %v20474_v3, %s12102_s20  ;;  %v10326_v56 = vunpack.i.h.bf16 %v20477_v0  ;;  %v10325_v24 = vunpack.i.l.bf16 %v20477_v0  ;;  %v10560_v42 = vunpack.i.l.bf16 %v20480_v30  ;;  %v20481_v3 = vld [vmem:[#allocation75_spill] sm:$0xff]  ;;  %v16828_v1 = vpop.permute.xlu0 %11738  ;;  %v20487_v0 = vld [vmem:[#allocation112_spill] sm:$0xff]  ;;  %v10336_v15 = vunpack.i.h.bf16 %v20489_v20 }
 0x5df   : > { %v16826_v46 = vadd.f32 %v20482_v16, %v20481_v3  ;;  %20484 = vst [vmem:[#allocation359_spill] sm:$0xff] %v16828_v1  ;;  %v16832_v44 = vadd.f32 %v20481_v3, %v20485_v49  ;;  %v16836_v21 = vadd.f32 %v20487_v0, %v20481_v3  ;;  %v10335_v19 = vunpack.i.l.bf16 %v20489_v20  ;;  %v20490_v30 = vld [vmem:[#allocation59_spill] sm:$0xff]  ;;  %v20491_v49 = vld [vmem:[#allocation114_spill] sm:$0xff]  ;;  %v20494_v20 = vld [vmem:[#allocation68_spill] sm:$0xff] }
 0x5e0   : > { %v16843_v16 = vsel %vm2266_vm5, %v20490_v30, %v10315_v6  ;;  %v16847_v1 = vsel %vm2365_vm8, %v16512_v27, %v10550_v4  ;;  %v16851_v48 = vadd.f32 %v20481_v3, %v20491_v49  ;;  %v20493_v0 = vld [vmem:[#allocation115_spill] sm:$0xff]  ;;  %v16856_v58 = vsel %vm2365_vm8, %v16516_v43, %v10551_v57  ;;  %v16867_v4 = vpop.permute.xlu1 %11513  ;;  %v20505_v57 = vld [vmem:[#allocation120_spill] sm:$0xff] }
 0x5e1   : > { %20483 = vst [vmem:[#allocation64_spill] sm:$0xff] %v16826_v46  ;;  %20486 = vst [vmem:[#allocation48_spill] sm:$0xff] %v16832_v44  ;;  %v10570_v47 = vunpack.i.l.bf16 %v20493_v0  ;;  %v20495_v6 = vld [vmem:[#allocation67_spill] sm:$0xff]  ;;  %v10571_v27 = vunpack.i.h.bf16 %v20493_v0  ;;  %v16871_v49 = vsel %vm2365_vm8, %v16526_v34, %v10560_v42  ;;  %v16875_v43 = vsel %vm2365_vm8, %v16530_v17, %v10561_v22  ;;  %v20498_v17 = vld [vmem:[#allocation372_spill] sm:$0xff] }
 0x5e2   : > { %20488 = vst [vmem:[#allocation35_spill] sm:$0xff] %v16836_v21  ;;  %11793 = vrot.lane.b32.xlu1 %v11792_v12, %s12102_s20  ;;  %20492 = vst [vmem:[#allocation108_spill] sm:$0xff] %v16851_v48  ;;  %v16860_v12 = vsel %vm2266_vm5, %v20494_v20, %v10326_v56  ;;  %v16864_v30 = vsel %vm2266_vm5, %v20495_v6, %v10325_v24  ;;  %v20496_v56 = vld [vmem:[#allocation116_spill] sm:$0xff]  ;;  %v16879_v8 = vpop.permute.xlu0 %11748  ;;  %v16885_v6 = vsel %vm2266_vm5, %v16541_v36, %v10335_v19  ;;  %v20501_v21 = vld [vmem:[#allocation117_spill] sm:$0xff] }
 0x5e3   : > { %v10345_v20 = vunpack.i.l.bf16 %v20496_v56  ;;  %20497 = vst [vmem:[#allocation25_spill] sm:$0xff] %v16879_v8  ;;  %v16889_v34 = vsel %vm2266_vm5, %v16537_v13, %v10336_v15  ;;  %v20499_v22 = vld [vmem:[#allocation368_spill] sm:$0xff]  ;;  %v16898_v24 = vsel %vm2365_vm8, %v16545_v45, %v10570_v47  ;;  %v10346_v0 = vunpack.i.h.bf16 %v20496_v56  ;;  %v20502_v15 = vld [vmem:[#allocation118_spill] sm:$0xff]  ;;  %v20504_v47 = vld [vmem:[#allocation119_spill] sm:$0xff] }
 0x5e4   : > { %v20500_v42 = vpack.i.bf16 %v20498_v17, %v20499_v22  ;;  %v10580_v19 = vunpack.i.l.bf16 %v20501_v21  ;;  %v16904_v36 = vsel %vm2365_vm8, %v16549_v29, %v10571_v27  ;;  %v10581_v13 = vunpack.i.h.bf16 %v20501_v21  ;;  %v16909_v22 = vpop.permute.xlu1 %11523  ;;  %v20506_v27 = vld [vmem:[#allocation121_spill] sm:$0xff]  ;;  %v20507_v8 = vld [vmem:[#allocation122_spill] sm:$0xff] }
 0x5e5   : > { %v10356_v46 = vunpack.i.h.bf16 %v20502_v15  ;;  %v10355_v17 = vunpack.i.l.bf16 %v20502_v15  ;;  %20503 = vst [vmem:[#allocation26_spill] sm:$0xff] %v16909_v22  ;;  %v16913_v45 = vsel %vm2266_vm5, %v16559_v51, %v10345_v20  ;;  %v10591_v56 = vunpack.i.h.bf16 %v20504_v47  ;;  %v20509_v51 = vld [vmem:[#allocation373_spill] sm:$0xff] }
 0x5e6   : > { %11803 = vrot.lane.b32.xlu1 %v20500_v42, %s12103_s21  ;;  %v10590_v42 = vunpack.i.l.bf16 %v20504_v47  ;;  %v10365_v48 = vunpack.i.l.bf16 %v20505_v57  ;;  %v16918_v29 = vpop.permute.xlu0 %11758  ;;  %v10366_v21 = vunpack.i.h.bf16 %v20505_v57  ;;  %v10601_v44 = vunpack.i.h.bf16 %v20506_v27 }
 0x5e7   : > { %v10600_v15 = vunpack.i.l.bf16 %v20506_v27  ;;  %v10375_v7 = vunpack.i.l.bf16 %v20507_v8  ;;  %v20510_v20 = vpack.i.bf16 %v20508_v40, %v20509_v51  ;;  %v16930_v47 = vsel %vm2266_vm5, %v16555_v60, %v10346_v0 }
 0x5e8   : > { %v16934_v53 = vsel %vm2365_vm8, %v16563_v5, %v10580_v19  ;;  %v10376_v57 = vunpack.i.h.bf16 %v20507_v8  ;;  %v10610_v22 = vunpack.i.l.bf16 %v20511_v9  ;;  %v16940_v27 = vsel %vm2365_vm8, %v16575_v31, %v10581_v13  ;;  %v16951_v5 = vpop.permute.xlu1 %11533  ;;  %v20513_v19 = vld [vmem:[#allocation124_spill] sm:$0xff] }
 0x5e9   : > { %v16944_v40 = vsel %vm2266_vm5, %v16588_v39, %v10355_v17  ;;  %v16948_v60 = vsel %vm2266_vm5, %v16698_v55, %v10356_v46  ;;  %v10611_v0 = vunpack.i.h.bf16 %v20511_v9  ;;  %20512 = vst [vmem:[#allocation76_spill] sm:$0xff] %v16951_v5  ;;  %v16955_v8 = vsel %vm2365_vm8, %v16704_v18, %v10590_v42  ;;  %v20516_v46 = vld [vmem:[#allocation374_spill] sm:$0xff]  ;;  %v20529_v5 = vld [vmem:[#allocation131_spill] sm:$0xff] }
 0x5ea   : > { %11813 = vrot.lane.b32.xlu1 %v20510_v20, %s12103_s21  ;;  %v16959_v31 = vsel %vm2365_vm8, %v16722_v14, %v10591_v56  ;;  %v16963_v39 = vsel %vm2299_vm6, %v16749_v52, %v10365_v48  ;;  %v10385_v13 = vunpack.i.l.bf16 %v20513_v19  ;;  %v16966_v55 = vpop.permute.xlu0 %11768  ;;  %v16970_v9 = vsel %vm2299_vm6, %v16745_v41, %v10366_v21  ;;  %v20515_v48 = vld [vmem:[#allocation377_spill] sm:$0xff]  ;;  %v20519_v42 = vld [vmem:[#allocation126_spill] sm:$0xff] }
 0x5eb   : > { %20514 = vst [vmem:[#allocation339_spill] sm:$0xff] %v16966_v55  ;;  %v16974_v18 = vsel %vm2365_vm8, %v16755_v10, %v10600_v15  ;;  %v16978_v14 = vsel %vm2365_vm8, %v16770_v32, %v10601_v44  ;;  %v16982_v52 = vsel %vm2299_vm6, %v16778_v33, %v10375_v7  ;;  %v20517_v17 = vpack.i.bf16 %v20515_v48, %v20516_v46  ;;  %v20518_v32 = vld [vmem:[#allocation125_spill] sm:$0xff] }
 0x5ec   : > { %v16990_v41 = vsel %vm2299_vm6, %v16774_v62, %v10376_v57  ;;  %v16994_v10 = vsel %vm2398_vm9, %v16785_v37, %v10610_v22  ;;  %v10386_v44 = vunpack.i.h.bf16 %v20513_v19  ;;  %v10620_v56 = vunpack.i.l.bf16 %v20518_v32  ;;  %v17005_v62 = vpop.permute.xlu1 %11543  ;;  %v20521_v22 = vld [vmem:[#allocation127_spill] sm:$0xff]  ;;  %v20522_v57 = vld [vmem:[#allocation128_spill] sm:$0xff]  ;;  %v20524_v48 = vld [vmem:[#allocation129_spill] sm:$0xff] }
 0x5ed   : > { %v17000_v7 = vsel %vm2398_vm9, %v16789_v2, %v10611_v0  ;;  %v10621_v33 = vunpack.i.h.bf16 %v20518_v32  ;;  %v10396_v21 = vunpack.i.h.bf16 %v20519_v42  ;;  %v10395_v15 = vunpack.i.l.bf16 %v20519_v42  ;;  %20520 = vst [vmem:[#allocation29_spill] sm:$0xff] %v17005_v62  ;;  %v20525_v32 = vld [vmem:[#allocation130_spill] sm:$0xff] }
 0x5ee   : > { %11823 = vrot.lane.b32.xlu1 %v20517_v17, %s12103_s21  ;;  %v17009_v37 = vsel %vm2299_vm6, %v16801_v61, %v10385_v13  ;;  %v10631_v51 = vunpack.i.h.bf16 %v20521_v22  ;;  %v10630_v20 = vunpack.i.l.bf16 %v20521_v22  ;;  %v10405_v19 = vunpack.i.l.bf16 %v20522_v57  ;;  %v17014_v2 = vpop.permute.xlu0 %11778  ;;  %v20526_v62 = vld [vmem:[#allocation378_spill] sm:$0xff]  ;;  %v20527_v61 = vld [vmem:[#allocation375_spill] sm:$0xff] }
 0x5ef   : > { %20523 = vst [vmem:[#allocation109_spill] sm:$0xff] %v17014_v2  ;;  %v10406_v0 = vunpack.i.h.bf16 %v20522_v57  ;;  %v10641_v46 = vunpack.i.h.bf16 %v20524_v48  ;;  %v10640_v17 = vunpack.i.l.bf16 %v20524_v48  ;;  %v10415_v42 = vunpack.i.l.bf16 %v20525_v32 }
 0x5f0   : > { %v20528_v13 = vpack.i.bf16 %v20526_v62, %v20527_v61  ;;  %v17026_v22 = vsel %vm2299_vm6, %v16793_v38, %v10386_v44  ;;  %v17030_v2 = vsel %vm2398_vm9, %v16805_v25, %v10620_v56  ;;  %v10416_v57 = vunpack.i.h.bf16 %v20525_v32  ;;  %v17047_v25 = vpop.permute.xlu1 %11553 }
 0x5f1   : > { %v10650_v55 = vunpack.i.l.bf16 %v20529_v5  ;;  %v17036_v48 = vsel %vm2398_vm9, %v16811_v59, %v10621_v33  ;;  %v17040_v62 = vsel %vm2299_vm6, %v16843_v16, %v10395_v15  ;;  %v17044_v38 = vsel %vm2299_vm6, %v16820_v26, %v10396_v21  ;;  %20530 = vst [vmem:[#allocation110_spill] sm:$0xff] %v17047_v25  ;;  %v20531_v33 = vld [vmem:[#allocation132_spill] sm:$0xff]  ;;  %v20533_v21 = vld [vmem:[#allocation382_spill] sm:$0xff]  ;;  %v20547_v25 = vld [vmem:[#allocation143_spill] sm:$0xff] }
 0x5f2   : > { %11833 = vrot.lane.b32.xlu1 %v20528_v13, %s12103_s21  ;;  %v10651_v44 = vunpack.i.h.bf16 %v20529_v5  ;;  %v17051_v56 = vsel %vm2398_vm9, %v16847_v1, %v10630_v20  ;;  %v17055_v59 = vsel %vm2398_vm9, %v16856_v58, %v10631_v51  ;;  %v17059_v16 = vsel %vm2299_vm6, %v16864_v30, %v10405_v19  ;;  %v17062_v26 = vpop.permute.xlu0 %11788  ;;  %v20534_v51 = vld [vmem:[#allocation379_spill] sm:$0xff]  ;;  %v20536_v19 = vld [vmem:[#allocation133_spill] sm:$0xff] }
 0x5f3   : > { %v10425_v15 = vunpack.i.l.bf16 %v20531_v33  ;;  %20532 = vst [vmem:[#allocation358_spill] sm:$0xff] %v17062_v26  ;;  %v17066_v5 = vsel %vm2299_vm6, %v16860_v12, %v10406_v0  ;;  %v17070_v1 = vsel %vm2398_vm9, %v16871_v49, %v10640_v17  ;;  %v17074_v58 = vsel %vm2398_vm9, %v16875_v43, %v10641_v46  ;;  %v20537_v17 = vld [vmem:[#allocation134_spill] sm:$0xff] }
 0x5f4   : > { %v17078_v30 = vsel %vm2299_vm6, %v16885_v6, %v10415_v42  ;;  %v20535_v20 = vpack.i.bf16 %v20533_v21, %v20534_v51  ;;  %v17086_v12 = vsel %vm2299_vm6, %v16889_v34, %v10416_v57  ;;  %v17090_v49 = vsel %vm2398_vm9, %v16898_v24, %v10650_v55  ;;  %v17101_v34 = vpop.permute.xlu1 %11563  ;;  %v20539_v55 = vld [vmem:[#allocation135_spill] sm:$0xff]  ;;  %v20542_v21 = vld [vmem:[#allocation141_spill] sm:$0xff] }
 0x5f5   : > { %v10426_v43 = vunpack.i.h.bf16 %v20531_v33  ;;  %v10660_v0 = vunpack.i.l.bf16 %v20536_v19  ;;  %v17096_v6 = vsel %vm2398_vm9, %v16904_v36, %v10651_v44  ;;  %v10661_v46 = vunpack.i.h.bf16 %v20536_v19  ;;  %20538 = vst [vmem:[#allocation105_spill] sm:$0xff] %v17101_v34  ;;  %v20540_v57 = vld [vmem:[#allocation139_spill] sm:$0xff]  ;;  %v20543_v19 = vld [vmem:[#allocation142_spill] sm:$0xff] }
 0x5f6   : > { %11843 = vrot.lane.b32.xlu1 %v20535_v20, %s12104_s22  ;;  %v10436_v32 = vunpack.i.h.bf16 %v20537_v17  ;;  %v10435_v42 = vunpack.i.l.bf16 %v20537_v17  ;;  %v17105_v24 = vsel %vm2299_vm6, %v16913_v45, %v10425_v15  ;;  %v10671_v61 = vunpack.i.h.bf16 %v20539_v55  ;;  %v17110_v36 = vpop.permute.xlu0 %11798  ;;  %v20544_v34 = vld [vmem:[#allocation383_spill] sm:$0xff]  ;;  %v20545_v45 = vld [vmem:[#allocation380_spill] sm:$0xff] }
 0x5f7   : > { %v10670_v13 = vunpack.i.l.bf16 %v20539_v55  ;;  %v10445_v33 = vunpack.i.l.bf16 %v20540_v57  ;;  %20541 = vst [vmem:[#allocation325_spill] sm:$0xff] %v17110_v36  ;;  %v10446_v44 = vunpack.i.h.bf16 %v20540_v57  ;;  %v10681_v51 = vunpack.i.h.bf16 %v20542_v21 }
 0x5f8   : > { %v10680_v20 = vunpack.i.l.bf16 %v20542_v21  ;;  %v10455_v17 = vunpack.i.l.bf16 %v20543_v19  ;;  %v20546_v15 = vpack.i.bf16 %v20544_v34, %v20545_v45  ;;  %v17122_v55 = vsel %vm2299_vm6, %v16930_v47, %v10426_v43 }
 0x5f9   : > { %v17126_v36 = vsel %vm2398_vm9, %v16934_v53, %v10660_v0  ;;  %v10456_v57 = vunpack.i.h.bf16 %v20543_v19  ;;  %v10690_v26 = vunpack.i.l.bf16 %v20547_v25  ;;  %v17132_v21 = vsel %vm2398_vm9, %v16940_v27, %v10661_v46  ;;  %v17143_v53 = vpop.permute.xlu1 %11573  ;;  %v20549_v46 = vld [vmem:[#allocation137_spill] sm:$0xff]  ;;  %v20557_v19 = vld [vmem:[#allocation146_spill] sm:$0xff] }
 0x5fa   : > { %11853 = vrot.lane.b32.xlu1 %v20546_v15, %s12104_s22  ;;  %v17136_v34 = vsel %vm2299_vm6, %v16944_v40, %v10435_v42  ;;  %v17140_v47 = vsel %vm2299_vm6, %v16948_v60, %v10436_v32  ;;  %v10691_v43 = vunpack.i.h.bf16 %v20547_v25  ;;  %20548 = vst [vmem:[#allocation327_spill] sm:$0xff] %v17143_v53  ;;  %v17147_v0 = vsel %vm2398_vm9, %v16955_v8, %v10670_v13  ;;  %v17161_v32 = vpop.permute.xlu0 %11808  ;;  %v20553_v42 = vld [vmem:[#allocation384_spill] sm:$0xff] }
 0x5fb   : > { %v17151_v27 = vsel %vm2398_vm9, %v16959_v31, %v10671_v61  ;;  %v17155_v40 = vadd.f32 %v20481_v3, %v20549_v46  ;;  %v17159_v60 = vsel %vm2332_vm7, %v16963_v39, %v10445_v33  ;;  %20551 = vst [vmem:[#allocation106_spill] sm:$0xff] %v17161_v32  ;;  %v17165_v25 = vsel %vm2332_vm7, %v16970_v9, %v10446_v44  ;;  %v20552_v39 = vld [vmem:[#allocation386_spill] sm:$0xff]  ;;  %v20555_v13 = vld [vmem:[#allocation144_spill] sm:$0xff]  ;;  %v20556_v44 = vld [vmem:[#allocation145_spill] sm:$0xff] }
 0x5fc   : > { %v17169_v8 = vsel %vm2398_vm9, %v16974_v18, %v10680_v20  ;;  %v17173_v31 = vsel %vm2398_vm9, %v16978_v14, %v10681_v51  ;;  %v17177_v3 = vsel %vm2332_vm7, %v16982_v52, %v10455_v17  ;;  %v20554_v61 = vpack.i.bf16 %v20552_v39, %v20553_v42  ;;  %v20565_v32 = vld [vmem:[#allocation385_spill] sm:$0xff] }
 0x5fd   : > { %20550 = vst [vmem:[#allocation329_spill] sm:$0xff] %v17155_v40  ;;  %v17185_v9 = vsel %vm2332_vm7, %v16990_v41, %v10456_v57  ;;  %v17189_v18 = vsel %vm2431_vm10, %v16994_v10, %v10690_v26  ;;  %v10466_v14 = vunpack.i.h.bf16 %v20555_v13  ;;  %v10465_v33 = vunpack.i.l.bf16 %v20555_v13  ;;  %v17200_v41 = vpop.permute.xlu1 %11583  ;;  %v20559_v10 = vld [vmem:[#allocation147_spill] sm:$0xff]  ;;  %v20560_v57 = vld [vmem:[#allocation148_spill] sm:$0xff]  ;;  %v20563_v13 = vld [vmem:[#allocation150_spill] sm:$0xff] }
 0x5fe   : > { %11863 = vrot.lane.b32.xlu1 %v20554_v61, %s12104_s22  ;;  %v17195_v52 = vsel %vm2431_vm10, %v17000_v7, %v10691_v43  ;;  %v10701_v51 = vunpack.i.h.bf16 %v20556_v44  ;;  %v10700_v20 = vunpack.i.l.bf16 %v20556_v44  ;;  %v10475_v17 = vunpack.i.l.bf16 %v20557_v19  ;;  %20558 = vst [vmem:[#allocation344_spill] sm:$0xff] %v17200_v41  ;;  %v17206_v39 = vpop.permute.xlu0 %11818  ;;  %v20562_v43 = vld [vmem:[#allocation149_spill] sm:$0xff]  ;;  %v20564_v40 = vld [vmem:[#allocation387_spill] sm:$0xff] }
 0x5ff   : > { %v10476_v45 = vunpack.i.h.bf16 %v20557_v19  ;;  %v10711_v26 = vunpack.i.h.bf16 %v20559_v10  ;;  %v10710_v15 = vunpack.i.l.bf16 %v20559_v10  ;;  %v10485_v46 = vunpack.i.l.bf16 %v20560_v57  ;;  %20561 = vst [vmem:[#allocation381_spill] sm:$0xff] %v17206_v39  ;;  %v20567_v41 = vld [vmem:[#allocation151_spill] sm:$0xff] }
 0x600   : > { %v10486_v7 = vunpack.i.h.bf16 %v20560_v57  ;;  %v10721_v42 = vunpack.i.h.bf16 %v20562_v43  ;;  %v10720_v61 = vunpack.i.l.bf16 %v20562_v43  ;;  %v10495_v44 = vunpack.i.l.bf16 %v20563_v13 }
 0x601   : > { %v20566_v19 = vpack.i.bf16 %v20564_v40, %v20565_v32  ;;  %v17218_v10 = vsel %vm2332_vm7, %v17009_v37, %v10465_v33  ;;  %v17222_v39 = vsel %vm2332_vm7, %v17026_v22, %v10466_v14  ;;  %v10496_v57 = vunpack.i.h.bf16 %v20563_v13  ;;  %v17239_v22 = vpop.permute.xlu1 %11593 }
 0x602   : > { %v10730_v53 = vunpack.i.l.bf16 %v20567_v41  ;;  %v17228_v43 = vsel %vm2431_vm10, %v17030_v2, %v10700_v20  ;;  %v17232_v40 = vsel %vm2431_vm10, %v17036_v48, %v10701_v51  ;;  %v17236_v37 = vsel %vm2332_vm7, %v17040_v62, %v10475_v17  ;;  %v17257_v33 = vpop.permute.xlu0 %11828  ;;  %v20570_v20 = vld [vmem:[#allocation388_spill] sm:$0xff] }
 0x603   : > { %11873 = vrot.lane.b32.xlu1 %v20566_v19, %s12104_s22  ;;  %v10731_v32 = vunpack.i.h.bf16 %v20567_v41  ;;  %v17243_v14 = vsel %vm2332_vm7, %v17044_v38, %v10476_v45  ;;  %v17247_v2 = vsel %vm2431_vm10, %v17051_v56, %v10710_v15  ;;  %v17251_v48 = vsel %vm2431_vm10, %v17055_v59, %v10711_v26  ;;  %v20574_v41 = vld [vmem:[#allocation152_spill] sm:$0xff]  ;;  %v20576_v26 = vld [vmem:[#allocation153_spill] sm:$0xff] }
 0x604   : > { %v17255_v62 = vsel %vm2332_vm7, %v17059_v16, %v10485_v46  ;;  %v17261_v51 = vsel %vm2332_vm7, %v17066_v5, %v10486_v7  ;;  %v17265_v38 = vsel %vm2431_vm10, %v17070_v1, %v10720_v61  ;;  %v17269_v56 = vsel %vm2431_vm10, %v17074_v58, %v10721_v42  ;;  %v20569_v16 = vld [vmem:[#allocation389_spill] sm:$0xff]  ;;  %v20577_v7 = vld [vmem:[#allocation154_spill] sm:$0xff] }
 0x605   : > { %v17273_v59 = vsel %vm2332_vm7, %v17078_v30, %v10495_v44  ;;  %v20571_v17 = vpack.i.bf16 %v20569_v16, %v20570_v20  ;;  %v17281_v5 = vsel %vm2332_vm7, %v17086_v12, %v10496_v57  ;;  %v17285_v1 = vsel %vm2431_vm10, %v17090_v49, %v10730_v53  ;;  %v17296_v12 = vpop.permute.xlu1 %11603  ;;  %v20578_v49 = vld [vmem:[#allocation155_spill] sm:$0xff]  ;;  %v20579_v44 = vld [vmem:[#allocation156_spill] sm:$0xff] }
 0x606   : > { %20568 = vst [vmem:[#allocation362_spill] sm:$0xff] %v17273_v59  ;;  %20572 = vst [vmem:[#allocation361_spill] sm:$0xff] %v17281_v5  ;;  %v10506_v58 = vunpack.i.h.bf16 %v20574_v41  ;;  %v10505_v45 = vunpack.i.l.bf16 %v20574_v41  ;;  %v17291_v30 = vsel %vm2431_vm10, %v17096_v6, %v10731_v32  ;;  %v10741_v15 = vunpack.i.h.bf16 %v20576_v26  ;;  %v17302_v57 = vpop.permute.xlu0 %11838  ;;  %v20580_v32 = vld [vmem:[#allocation157_spill] sm:$0xff]  ;;  %v20587_v5 = vld [vmem:[#allocation159_spill] sm:$0xff] }
 0x607   : > { %11883 = vrot.lane.b32.xlu1 %v20571_v17, %s12103_s21  ;;  %20573 = vst [vmem:[#allocation331_spill] sm:$0xff] %v17285_v1  ;;  %20575 = vst [vmem:[#allocation346_spill] sm:$0xff] %v17291_v30  ;;  %v10740_v46 = vunpack.i.l.bf16 %v20576_v26  ;;  %v10515_v42 = vunpack.i.l.bf16 %v20577_v7  ;;  %v10516_v61 = vunpack.i.h.bf16 %v20577_v7  ;;  %v10751_v53 = vunpack.i.h.bf16 %v20578_v49  ;;  %v20581_v17 = vld [vmem:[#allocation158_spill] sm:$0xff]  ;;  %v20582_v26 = vld [vmem:[#allocation52_spill] sm:$0xff] }
 0x608   : > { %v10750_v13 = vunpack.i.l.bf16 %v20578_v49  ;;  %v10525_v19 = vunpack.i.l.bf16 %v20579_v44  ;;  %v10526_v6 = vunpack.i.h.bf16 %v20579_v44  ;;  %v10761_v16 = vunpack.i.h.bf16 %v20580_v32  ;;  %v20583_v30 = vld [vmem:[#allocation390_spill] sm:$0xff] }
 0x609   : > { %v10760_v20 = vunpack.i.l.bf16 %v20580_v32  ;;  %v10535_v41 = vunpack.i.l.bf16 %v20581_v17  ;;  %v20584_v7 = vpack.i.bf16 %v20582_v26, %v20583_v30  ;;  %v17314_v49 = vsel %vm2332_vm7, %v17105_v24, %v10505_v45  ;;  %v20608_v26 = vld [vmem:[#allocation84_spill] sm:$0xff] }
 0x60a   : > { %20585 = vst [vmem:[#allocation365_spill] sm:$0xff] %v17314_v49  ;;  %v17318_v1 = vsel %vm2332_vm7, %v17122_v55, %v10506_v58  ;;  %v10536_v44 = vunpack.i.h.bf16 %v20581_v17  ;;  %v10770_v59 = vunpack.i.l.bf16 %v20587_v5  ;;  %v17324_v32 = vsel %vm2431_vm10, %v17126_v36, %v10740_v46  ;;  %v17335_v55 = vpop.permute.xlu1 %11613  ;;  %v20600_v46 = vld [vmem:[#allocation393_spill] sm:$0xff] }
 0x60b   : > { %11893 = vrot.lane.b32.xlu1 %v20584_v7, %s12104_s22  ;;  %20586 = vst [vmem:[#allocation363_spill] sm:$0xff] %v17318_v1  ;;  %20588 = vst [vmem:[#allocation348_spill] sm:$0xff] %v17324_v32  ;;  %v17328_v30 = vsel %vm2431_vm10, %v17132_v21, %v10741_v15  ;;  %v17332_v24 = vsel %vm2332_vm7, %v17136_v34, %v10515_v42  ;;  %v10771_v45 = vunpack.i.h.bf16 %v20587_v5  ;;  %v17353_v15 = vpop.permute.xlu0 %11848  ;;  %v11366_v7 = vunpack.i.h.bf16 %v20608_v26  ;;  %v20611_v17 = vld [vmem:[#allocation397_spill] sm:$0xff] }
 0x60c   : > { %20589 = vst [vmem:[#allocation369_spill] sm:$0xff] %v17328_v30  ;;  %20590 = vst [vmem:[#allocation364_spill] sm:$0xff] %v17332_v24  ;;  %v17339_v58 = vsel %vm2332_vm7, %v17140_v47, %v10516_v61  ;;  %v17343_v36 = vsel %vm2431_vm10, %v17147_v0, %v10750_v13  ;;  %v17347_v21 = vsel %vm2431_vm10, %v17151_v27, %v10751_v53  ;;  %v17375_v61 = vld [vmem:[#allocation3 + $0x1b3] sm:$0xff]  ;;  %v17387_v13 = vld [vmem:[#allocation3 + $0x1bb] sm:$0xff]  ;;  %v11761_v32 = vunpack.i.h.bf16 %v16918_v29 }
 0x60d   : > { %20591 = vst [vmem:[#allocation350_spill] sm:$0xff] %v17339_v58  ;;  %20592 = vst [vmem:[#allocation370_spill] sm:$0xff] %v17343_v36  ;;  %v17351_v34 = vsel %vm2365_vm8, %v17159_v60, %v10525_v19  ;;  %v17357_v5 = vsel %vm2365_vm8, %v17165_v25, %v10526_v6  ;;  %v17361_v47 = vsel %vm2431_vm10, %v17169_v8, %v10760_v20  ;;  %v20599_v60 = vld [vmem:[#allocation394_spill] sm:$0xff]  ;;  %v12074_v30 = vld [vmem:[#allocation3 + $0x169] sm:$0xff] }
 0x60e   : > { %20593 = vst [vmem:[#allocation366_spill] sm:$0xff] %v17347_v21  ;;  %20594 = vst [vmem:[#allocation371_spill] sm:$0xff] %v17351_v34  ;;  %v17365_v0 = vsel %vm2431_vm10, %v17173_v31, %v10761_v16  ;;  %v17369_v27 = vsel %vm2365_vm8, %v17177_v3, %v10535_v41  ;;  %v20601_v42 = vpack.i.bf16 %v20599_v60, %v20600_v46  ;;  %v20604_v31 = vld [vmem:[#allocation80_spill] sm:$0xff]  ;;  %v17389_v19 = vld [vmem:[#allocation3 + $0x1b4] sm:$0xff]  ;;  %v17400_v41 = vpop.permute.xlu1 %11623  ;;  %v11436_v34 = vunpack.i.h.bf16 %v16584_v50 }
 0x60f   : > { %20595 = vst [vmem:[#allocation367_spill] sm:$0xff] %v17357_v5  ;;  %20596 = vst [vmem:[#allocation62_spill] sm:$0xff] %v17361_v47  ;;  %v17379_v25 = vsel %vm2365_vm8, %v17185_v9, %v10536_v44  ;;  %v17383_v8 = vsel %vm2507_vm11, %v17189_v18, %v10770_v59  ;;  %v11356_v53 = vunpack.i.h.bf16 %v20604_v31  ;;  %v11355_v3 = vunpack.i.l.bf16 %v20604_v31  ;;  %v17391_v6 = vld [vmem:[#allocation3 + $0x1bc] sm:$0xff]  ;;  %v20606_v9 = vld [vmem:[#allocation160_spill] sm:$0xff]  ;;  %v17406_v31 = vpop.permute.xlu0 %11858 }
 0x610   : > { %20597 = vst [vmem:[#allocation103_spill] sm:$0xff] %v17365_v0  ;;  %20598 = vst [vmem:[#allocation87_spill] sm:$0xff] %v17369_v27  ;;  %11903 = vrot.lane.b32.xlu1 %v20601_v42, %s12103_s21  ;;  %v17395_v16 = vsel %vm2507_vm11, %v17195_v52, %v10771_v45  ;;  %v20607_v18 = vld [vmem:[#allocation161_spill] sm:$0xff]  ;;  %v11365_v44 = vunpack.i.l.bf16 %v20608_v26  ;;  %v20610_v52 = vld [vmem:[#allocation86_spill] sm:$0xff] }
 0x611   : > { %20602 = vst [vmem:[#allocation107_spill] sm:$0xff] %v17379_v25  ;;  %20603 = vst [vmem:[#allocation96_spill] sm:$0xff] %v17383_v8  ;;  %v20609_v60 = vld [vmem:[#allocation85_spill] sm:$0xff]  ;;  %v11386_v45 = vunpack.i.h.bf16 %v20610_v52  ;;  %v11385_v20 = vunpack.i.l.bf16 %v20610_v52  ;;  %v12067_v25 = vld [vmem:[#allocation3 + $0xe1] sm:$0xff] }
 0x612   : > { %20605 = vst [vmem:[#allocation46_spill] sm:$0xff] %v17395_v16  ;;  %v11376_v46 = vunpack.i.h.bf16 %v20609_v60  ;;  %v11375_v42 = vunpack.i.l.bf16 %v20609_v60  ;;  %v20612_v16 = vld [vmem:[#allocation395_spill] sm:$0xff]  ;;  %v7188_v60 = vsel %vm426_vm0, %v12067_v25, %v11356_v53  ;;  %v20614_v47 = vld [vmem:[#allocation94_spill] sm:$0xff]  ;;  %v17426_v8 = vpop.permute.xlu1 %11633  ;;  %v12070_v53 = vld [vmem:[#allocation3 + $0x109] sm:$0xff] }
 0x613   : > { %v20613_v59 = vpack.i.bf16 %v20611_v17, %v20612_v16  ;;  %v12068_v27 = vld [vmem:[#allocation3 + $0xd9] sm:$0xff]  ;;  %v11396_v5 = vunpack.i.h.bf16 %v20614_v47  ;;  %v11395_v52 = vunpack.i.l.bf16 %v20614_v47  ;;  %v11435_v16 = vunpack.i.l.bf16 %v16584_v50  ;;  %v12069_v26 = vld [vmem:[#allocation3 + $0x111] sm:$0xff]  ;;  %v11869_v58 = vpop.permute.xlu0 %11868 }
 0x614   : > { %v7187_v0 = vsel %vm426_vm0, %v12068_v27, %v11355_v3  ;;  %v11446_v17 = vunpack.i.h.bf16 %v16618_v63  ;;  %v7192_v25 = vsel %vm426_vm0, %v12069_v26, %v11366_v7  ;;  %v7191_v27 = vsel %vm426_vm0, %v12070_v53, %v11365_v44  ;;  %v12071_v3 = vld [vmem:[#allocation3 + $0x141] sm:$0xff]  ;;  %v12072_v47 = vld [vmem:[#allocation3 + $0x139] sm:$0xff]  ;;  %v12073_v50 = vld [vmem:[#allocation3 + $0x171] sm:$0xff] }
 0x615   : > { %11913 = vrot.lane.b32.xlu1 %v20613_v59, %s12104_s22  ;;  %v11445_v59 = vunpack.i.l.bf16 %v16618_v63  ;;  %v7196_v21 = vsel %vm426_vm0, %v12071_v3, %v11376_v46  ;;  %v7195_v36 = vsel %vm426_vm0, %v12072_v47, %v11375_v42  ;;  %v7200_v24 = vsel %vm426_vm0, %v12073_v50, %v11386_v45  ;;  %v20615_v26 = vld [vmem:[#allocation55_spill] sm:$0xff]  ;;  %v20616_v44 = vld [vmem:[#allocation53_spill] sm:$0xff] }
 0x616   : > { %v7199_v63 = vsel %vm426_vm0, %v12074_v30, %v11385_v20  ;;  %v11760_v7 = vunpack.i.l.bf16 %v16918_v29  ;;  %v20617_v53 = vpack.i.bf16 %v20615_v26, %v20616_v44  ;;  %v12075_v46 = vld [vmem:[#allocation3 + $0x1a1] sm:$0xff]  ;;  %v12076_v42 = vld [vmem:[#allocation3 + $0x199] sm:$0xff]  ;;  %v11871_v45 = vunpack.i.h.bf16 %v11869_v58  ;;  %v17448_v49 = vpop.permute.xlu1 %11643 }
 0x617   : > { %v17441_v3 = vsel %vm426_vm0, %v12075_v46, %v11396_v5  ;;  %v7203_v47 = vsel %vm426_vm0, %v12076_v42, %v11395_v52  ;;  %v11870_v50 = vunpack.i.l.bf16 %v11869_v58  ;;  %v7219_v30 = vsel %vm2233_vm4, %v7187_v0, %v11435_v16  ;;  %v20618_v16 = vld [vmem:[#allocation56_spill] sm:$0xff] }
 0x618   : > { %v7220_v20 = vsel %vm2233_vm4, %v7188_v60, %v11436_v34  ;;  %v7223_v29 = vsel %vm2233_vm4, %v7191_v27, %v11445_v59  ;;  %v7224_v1 = vsel %vm2233_vm4, %v7192_v25, %v11446_v17  ;;  %v11456_v26 = vunpack.i.h.bf16 %v16642_v35  ;;  %v20619_v17 = vld [vmem:[#allocation400_spill] sm:$0xff] }
 0x619   : > { %11923 = vrot.lane.b32.xlu1 %v20617_v53, %s12103_s21  ;;  %v11455_v5 = vunpack.i.l.bf16 %v16642_v35  ;;  %v11466_v44 = vunpack.i.h.bf16 %v16666_v54  ;;  %v11465_v52 = vunpack.i.l.bf16 %v16666_v54  ;;  %v11879_v53 = vpop.permute.xlu0 %11878  ;;  %v7349_v58 = vsel %vm2365_vm8, %v16637_v11, %v11760_v7  ;;  %v12046_v35 = vld [vmem:[%s19362_s5] sm:$0xff]  }
 0x61a   : > { %v7350_v34 = vsel %vm2365_vm8, %v16640_v28, %v11761_v32  ;;  %v11881_v0 = vunpack.i.h.bf16 %v11879_v53  ;;  %v11880_v60 = vunpack.i.l.bf16 %v11879_v53  ;;  %v20620_v59 = vpack.i.bf16 %v20618_v16, %v20619_v17  ;;  %v20621_v32 = vld [vmem:[#allocation26_spill] sm:$0xff]  ;;  %v17477_v53 = vpop.permute.xlu1 %11653  ;;  %9370 = vmatprep.subr.bf16.mxu0 %v12046_v35  ;;  %v20622_v17 = vld [vmem:[#allocation339_spill] sm:$0xff] }
 0x61b   : > { %v11475_v54 = vunpack.i.l.bf16 %v16692_v23  ;;  %v11516_v25 = vunpack.i.h.bf16 %v16867_v4  ;;  %v7381_v11 = vsel %vm2398_vm9, %v7349_v58, %v11870_v50  ;;  %v7382_v27 = vsel %vm2398_vm9, %v7350_v34, %v11871_v45  ;;  %9371 = vmatpush3.bf16.msra.mxu0 %v12046_v35 }
 0x61c   : > { %v11515_v28 = vunpack.i.l.bf16 %v16867_v4  ;;  %v11525_v7 = vunpack.i.l.bf16 %v20621_v32  ;;  %v17472_v46 = vsel %vm2431_vm10, %v7381_v11, %v11880_v60  ;;  %v17475_v42 = vsel %vm2431_vm10, %v7382_v27, %v11881_v0 }
 0x61d   : > { %11933 = vrot.lane.b32.xlu1 %v20620_v59, %s12104_s22  ;;  %v11526_v16 = vunpack.i.h.bf16 %v20621_v32  ;;  %v11771_v59 = vunpack.i.h.bf16 %v20622_v17  ;;  %v11770_v50 = vunpack.i.l.bf16 %v20622_v17  ;;  %v11889_v45 = vpop.permute.xlu0 %11888  ;;  %v7227_v58 = vsel %vm2233_vm4, %v7195_v36, %v11455_v5  ;;  %v20624_v32 = vld [vmem:[#allocation76_spill] sm:$0xff]  ;;  %v20625_v5 = vld [vmem:[#allocation33_spill] sm:$0xff] }
 0x61e   : > { %v7228_v34 = vsel %vm2233_vm4, %v7196_v21, %v11456_v26  ;;  %v17487_v0 = vsel %vm2233_vm4, %v7199_v63, %v11465_v52  ;;  %v17490_v60 = vsel %vm2233_vm4, %v7200_v24, %v11466_v44  ;;  %v20623_v11 = vpack.i.bf16 %v17387_v13, %v17375_v61  ;;  %v17504_v26 = vpop.permute.xlu1 %11663  ;;  %v20626_v52 = vld [vmem:[#allocation101_spill] sm:$0xff] }
 0x61f   : > { %v11476_v27 = vunpack.i.h.bf16 %v16692_v23  ;;  %v11535_v17 = vunpack.i.l.bf16 %v20624_v32  ;;  %v11891_v35 = vunpack.i.h.bf16 %v11889_v45  ;;  %v11890_v4 = vunpack.i.l.bf16 %v11889_v45 }
 0x620   : > { %v17499_v36 = vsel %vm2233_vm4, %v7203_v47, %v11475_v54  ;;  %v7251_v21 = vsel %vm2266_vm5, %v7219_v30, %v11515_v28  ;;  %v7252_v63 = vsel %vm2266_vm5, %v7220_v20, %v11516_v25  ;;  %v7255_v24 = vsel %vm2266_vm5, %v7223_v29, %v11525_v7  ;;  %v20628_v28 = vld [vmem:[#allocation109_spill] sm:$0xff] }
 0x621   : > { %11943 = vrot.lane.b32.xlu1 %v20623_v11, %s12103_s21  ;;  %v7256_v61 = vsel %vm2266_vm5, %v7224_v1, %v11526_v16  ;;  %v11536_v13 = vunpack.i.h.bf16 %v20624_v32  ;;  %v7353_v44 = vsel %vm2365_vm8, %v20625_v5, %v11770_v50  ;;  %v7354_v45 = vsel %vm2365_vm8, %v20626_v52, %v11771_v59  ;;  %v11899_v47 = vpop.permute.xlu0 %11898  ;;  %s9221_s21 = sshll.u32 %s21014_s10, 6 }
 0x622   : > { %v11596_v54 = vunpack.i.h.bf16 %v17239_v22  ;;  %v11595_v30 = vunpack.i.l.bf16 %v17239_v22  ;;  %v11901_v20 = vunpack.i.h.bf16 %v11899_v47  ;;  %v11900_v25 = vunpack.i.l.bf16 %v11899_v47  ;;  %s19257_s29 = scalar_lea.vmem %s19366_s9, %s9221_s21 }
 0x623   : > { %v20627_v29 = vpack.i.bf16 %v17391_v6, %v17389_v19  ;;  %v7259_v1 = vsel %vm2266_vm5, %v7227_v58, %v11535_v17  ;;  %v11781_v7 = vunpack.i.h.bf16 %v20628_v28  ;;  %v7385_v16 = vsel %vm2398_vm9, %v7353_v44, %v11890_v4  ;;  %v11674_v19 = vpop.permute.xlu1 %11673  ;;  %v20630_v44 = vld [vmem:[#allocation29_spill] sm:$0xff] }
 0x624   : > { %v7386_v59 = vsel %vm2398_vm9, %v7354_v45, %v11891_v35  ;;  %v11780_v50 = vunpack.i.l.bf16 %v20628_v28  ;;  %v11606_v11 = vunpack.i.h.bf16 %v17296_v12  ;;  %v17525_v22 = vsel %vm2431_vm10, %v7385_v16, %v11900_v25  ;;  %v20631_v16 = vld [vmem:[#allocation65_spill] sm:$0xff] }
 0x625   : > { %11953 = vrot.lane.b32.xlu1 %v20627_v29, %s12104_s22  ;;  %20629 = vst [vmem:[#allocation45_spill] sm:$0xff] %v17525_v22  ;;  %v17528_v32 = vsel %vm2431_vm10, %v7386_v59, %v11901_v20  ;;  %v11605_v6 = vunpack.i.l.bf16 %v17296_v12  ;;  %v11676_v17 = vunpack.i.h.bf16 %v11674_v19  ;;  %v11675_v4 = vunpack.i.l.bf16 %v11674_v19  ;;  %v11909_v5 = vpop.permute.xlu0 %11908  ;;  %v20633_v19 = vld [vmem:[#allocation358_spill] sm:$0xff] }
 0x626   : > { %v7260_v35 = vsel %vm2266_vm5, %v7228_v34, %v11536_v13  ;;  %v11546_v52 = vunpack.i.h.bf16 %v20630_v44  ;;  %v7283_v45 = vsel %vm2299_vm6, %v7251_v21, %v11595_v30  ;;  %v7284_v47 = vsel %vm2299_vm6, %v7252_v63, %v11596_v54  ;;  %v20632_v34 = vld [vmem:[#allocation70_spill] sm:$0xff] }
 0x627   : > { %v17538_v20 = vsel %vm2332_vm7, %v7283_v45, %v11675_v4  ;;  %v17541_v25 = vsel %vm2332_vm7, %v7284_v47, %v11676_v17  ;;  %v11911_v12 = vunpack.i.h.bf16 %v11909_v5  ;;  %v11910_v29 = vunpack.i.l.bf16 %v11909_v5  ;;  %v11684_v30 = vpop.permute.xlu1 %11683 }
 0x628   : > { %v11545_v28 = vunpack.i.l.bf16 %v20630_v44  ;;  %v7357_v59 = vsel %vm2365_vm8, %v20631_v16, %v11780_v50  ;;  %v7358_v13 = vsel %vm2365_vm8, %v20632_v34, %v11781_v7  ;;  %v11791_v21 = vunpack.i.h.bf16 %v20633_v19 }
 0x629   : > { %v7287_v63 = vsel %vm2299_vm6, %v7255_v24, %v11605_v6  ;;  %v7288_v54 = vsel %vm2299_vm6, %v7256_v61, %v11606_v11  ;;  %v11686_v4 = vunpack.i.h.bf16 %v11684_v30  ;;  %v11685_v17 = vunpack.i.l.bf16 %v11684_v30  ;;  %v11919_v45 = vpop.permute.xlu0 %11918 }
 0x62a   : > { %v11616_v5 = vunpack.i.h.bf16 %v17335_v55  ;;  %v11615_v44 = vunpack.i.l.bf16 %v17335_v55  ;;  %v11921_v47 = vunpack.i.h.bf16 %v11919_v45  ;;  %v11920_v58 = vunpack.i.l.bf16 %v11919_v45 }
 0x62b   : > { %v7389_v50 = vsel %vm2398_vm9, %v7357_v59, %v11910_v29  ;;  %v7390_v7 = vsel %vm2398_vm9, %v7358_v13, %v11911_v12  ;;  %v17556_v16 = vsel %vm2332_vm7, %v7287_v63, %v11685_v17  ;;  %v17559_v24 = vsel %vm2332_vm7, %v7288_v54, %v11686_v4  ;;  %v11694_v34 = vpop.permute.xlu1 %11693  ;;  %v12047_v12 = vld [vmem:[%s19362_s5 + $0x8] sm:$0xff]  }
 0x62c   : > { %v11790_v61 = vunpack.i.l.bf16 %v20633_v19  ;;  %v11626_v11 = vunpack.i.h.bf16 %v17400_v41  ;;  %v17564_v6 = vsel %vm2431_vm10, %v7389_v50, %v11920_v58  ;;  %v17567_v55 = vsel %vm2431_vm10, %v7390_v7, %v11921_v47  ;;  %9372 = vmatprep.subr.bf16.mxu0 %v12047_v12  ;;  %v20638_v50 = vld [vmem:[#allocation110_spill] sm:$0xff] }
 0x62d   : > { %20634 = vst [vmem:[#allocation95_spill] sm:$0xff] %v17564_v6  ;;  %20635 = vst [vmem:[#allocation352_spill] sm:$0xff] %v17567_v55  ;;  %v11625_v29 = vunpack.i.l.bf16 %v17400_v41  ;;  %v11696_v13 = vunpack.i.h.bf16 %v11694_v34  ;;  %v11695_v19 = vunpack.i.l.bf16 %v11694_v34  ;;  %v11929_v30 = vpop.permute.xlu0 %11928  ;;  %v7263_v58 = vsel %vm2266_vm5, %v17487_v0, %v11545_v28  ;;  %9373 = vmatpush3.bf16.msra.mxu0 %v12047_v12  ;;  %v20639_v28 = vld [vmem:[#allocation351_spill] sm:$0xff] }
 0x62e   : > { %v7264_v63 = vsel %vm2266_vm5, %v17490_v60, %v11546_v52  ;;  %v7291_v54 = vsel %vm2299_vm6, %v7259_v1, %v11615_v44  ;;  %v7292_v4 = vsel %vm2299_vm6, %v7260_v35, %v11616_v5  ;;  %v11931_v45 = vunpack.i.h.bf16 %v11929_v30  ;;  %v20640_v1 = vld [vmem:[#allocation356_spill] sm:$0xff] }
 0x62f   : > { %v17582_v17 = vsel %vm2332_vm7, %v7291_v54, %v11695_v19  ;;  %v17585_v41 = vsel %vm2332_vm7, %v7292_v4, %v11696_v13  ;;  %v11930_v47 = vunpack.i.l.bf16 %v11929_v30  ;;  %v11556_v7 = vunpack.i.h.bf16 %v20638_v50  ;;  %v11704_v52 = vpop.permute.xlu1 %11703 }
 0x630   : > { %20636 = vst [vmem:[#allocation396_spill] sm:$0xff] %v17582_v17  ;;  %20637 = vst [vmem:[#allocation391_spill] sm:$0xff] %v17585_v41  ;;  %v11555_v0 = vunpack.i.l.bf16 %v20638_v50  ;;  %v7361_v60 = vsel %vm2365_vm8, %v20639_v28, %v11790_v61  ;;  %v7362_v35 = vsel %vm2365_vm8, %v20640_v1, %v11791_v21  ;;  %v7295_v5 = vsel %vm2299_vm6, %v7263_v58, %v11625_v29  ;;  %v20700_v41 = vld [vmem:[#allocation100_spill] sm:$0xff]  ;;  %v20701_v17 = vld [vmem:[#allocation105_spill] sm:$0xff] }
 0x631   : > { %v7296_v44 = vsel %vm2299_vm6, %v7264_v63, %v11626_v11  ;;  %v11706_v34 = vunpack.i.h.bf16 %v11704_v52  ;;  %v11705_v13 = vunpack.i.l.bf16 %v11704_v52  ;;  %v11939_v19 = vpop.permute.xlu0 %11938  ;;  %v11636_v12 = vunpack.i.h.bf16 %v17426_v8 }
 0x632   : > { %v11635_v30 = vunpack.i.l.bf16 %v17426_v8  ;;  %v11941_v54 = vunpack.i.h.bf16 %v11939_v19  ;;  %v11940_v4 = vunpack.i.l.bf16 %v11939_v19  ;;  %v7393_v50 = vsel %vm2398_vm9, %v7361_v60, %v11930_v47  ;;  %v12048_v47 = vld [vmem:[%s19362_s5 + $0x10] sm:$0xff]  }
 0x633   : > { %v7394_v61 = vsel %vm2398_vm9, %v7362_v35, %v11931_v45  ;;  %v17600_v21 = vsel %vm2332_vm7, %v7295_v5, %v11705_v13  ;;  %v17603_v29 = vsel %vm2332_vm7, %v7296_v44, %v11706_v34  ;;  %v7236_v11 = vsel %vm2233_vm4, %v17441_v3, %v11476_v27  ;;  %v11714_v45 = vpop.permute.xlu1 %11713  ;;  %9374 = vmatprep.subr.bf16.mxu0 %v12048_v47 }
 0x634   : > { %20641 = vst [vmem:[#allocation89_spill] sm:$0xff] %v17600_v21  ;;  %20642 = vst [vmem:[#allocation47_spill] sm:$0xff] %v17603_v29  ;;  %v7267_v8 = vsel %vm2266_vm5, %v17499_v36, %v11555_v0  ;;  %v17612_v58 = vsel %vm2431_vm10, %v7393_v50, %v11940_v4  ;;  %v17615_v63 = vsel %vm2431_vm10, %v7394_v61, %v11941_v54  ;;  %v11716_v3 = vunpack.i.h.bf16 %v11714_v45  ;;  %v20645_v36 = vld [vmem:[#allocation325_spill] sm:$0xff]  ;;  %v20653_v50 = vld [vmem:[#allocation162_spill] sm:$0xff] }
 0x635   : > { %20643 = vst [vmem:[#allocation98_spill] sm:$0xff] %v17612_v58  ;;  %20644 = vst [vmem:[#allocation401_spill] sm:$0xff] %v17615_v63  ;;  %v7268_v28 = vsel %vm2266_vm5, %v7236_v11, %v11556_v7  ;;  %v11715_v27 = vunpack.i.l.bf16 %v11714_v45  ;;  %v11949_v60 = vpop.permute.xlu0 %11948  ;;  %v11801_v0 = vunpack.i.h.bf16 %v20645_v36  ;;  %v11800_v1 = vunpack.i.l.bf16 %v20645_v36  ;;  %9375 = vmatpush3.bf16.msra.mxu0 %v12048_v47  ;;  %v17649_v4 = vld [vmem:[%s19361_s4] ss:$0 sm:$0xff]  ;;  %v20659_v45 = vld [vmem:[#allocation164_spill] sm:$0xff] }
 0x636   : > { %v7299_v35 = vsel %vm2299_vm6, %v7267_v8, %v11635_v30  ;;  %v7300_v52 = vsel %vm2299_vm6, %v7268_v28, %v11636_v12  ;;  %v11951_v44 = vunpack.i.h.bf16 %v11949_v60  ;;  %v11950_v34 = vunpack.i.l.bf16 %v11949_v60  ;;  %20652 = vst [vmem:[#allocation66_spill] sm:$0xff] %v17649_v4  ;;  %v20661_v28 = vld [vmem:[#allocation165_spill] sm:$0xff]  ;;  %v20662_v60 = vld [vmem:[#allocation72_spill] sm:$0xff]  ;;  %v20698_v58 = vld [vmem:[#allocation74_spill] sm:$0xff] }
 0x637   : > { %v17628_v5 = vsel %vm2332_vm7, %v7299_v35, %v11715_v27  ;;  %v17631_v7 = vsel %vm2332_vm7, %v7300_v52, %v11716_v3  ;;  %v20648_v13 = vunpack.i.l.bf16 %v20606_v9  ;;  %v20650_v30 = vunpack.i.h.bf16 %v20606_v9  ;;  %v17655_v11 = vpop.permute.xlu1 %11723  ;;  %v20663_v35 = vld [vmem:[#allocation336_spill] sm:$0xff] }
 0x638   : > { %20646 = vst [vmem:[#allocation399_spill] sm:$0xff] %v17628_v5  ;;  %20647 = vst [vmem:[#allocation398_spill] sm:$0xff] %v17631_v7  ;;  %v10781_v54 = vunpack.i.h.bf16 %v20607_v18  ;;  %v17653_v61 = vadd.f32 %v17649_v4, %v20653_v50  ;;  %v17669_v47 = vadd.f32 %v17649_v4, %v20659_v45  ;;  %v10555_v3 = vunpack.i.l.bf16 %v20661_v28  ;;  %v20666_v45 = vld [vmem:[#allocation167_spill] sm:$0xff]  ;;  %v20681_v7 = vld [vmem:[#allocation340_spill] sm:$0xff] }
 0x639   : > { %v17637_v19 = vsel %vm2365_vm8, %v17218_v10, %v20648_v13  ;;  %v17643_v12 = vsel %vm2365_vm8, %v17222_v39, %v20650_v30  ;;  %v20655_v10 = vunpack.i.l.bf16 %v20607_v18  ;;  %v20657_v39 = vld [vmem:[#allocation163_spill] sm:$0xff]  ;;  %v11959_v27 = vpop.permute.xlu0 %11958  ;;  %v7365_v36 = vsel %vm2365_vm8, %v20662_v60, %v11800_v1  ;;  %v20664_v30 = vld [vmem:[#allocation166_spill] sm:$0xff] }
 0x63a   : > { %20649 = vst [vmem:[#allocation57_spill] sm:$0xff] %v17637_v19  ;;  %20651 = vst [vmem:[#allocation102_spill] sm:$0xff] %v17643_v12  ;;  %v17665_v8 = vadd.f32 %v17649_v4, %v20657_v39  ;;  %v7366_v18 = vsel %vm2365_vm8, %v20663_v35, %v11801_v0  ;;  %v11961_v52 = vunpack.i.h.bf16 %v11959_v27  ;;  %v10556_v13 = vunpack.i.h.bf16 %v20661_v28  ;;  %v12080_v60 = vld [vmem:[#allocation3 + $0x99] sm:$0xff] }
 0x63b   : > { %20654 = vst [vmem:[#allocation60_spill] sm:$0xff] %v17653_v61  ;;  %v17661_v9 = vsel %vm2507_vm11, %v17228_v43, %v20655_v10  ;;  %20660 = vst [vmem:[#allocation93_spill] sm:$0xff] %v17669_v47  ;;  %v11960_v43 = vunpack.i.l.bf16 %v11959_v27  ;;  %v17679_v50 = vadd.f32 %v17649_v4, %v20664_v30  ;;  %v7397_v10 = vsel %vm2398_vm9, %v7365_v36, %v11950_v34  ;;  %v17691_v27 = vpop.permute.xlu1 %11733  ;;  %v20677_v34 = vld [vmem:[#allocation323_spill] sm:$0xff]  ;;  %v20695_v12 = vld [vmem:[#allocation354_spill] sm:$0xff] }
 0x63c   : > { %20656 = vst [vmem:[#allocation91_spill] sm:$0xff] %v17661_v9  ;;  %20658 = vst [vmem:[#allocation75_spill] sm:$0xff] %v17665_v8  ;;  %v7398_v39 = vsel %vm2398_vm9, %v7366_v18, %v11951_v44  ;;  %v10791_v23 = vunpack.i.h.bf16 %v20666_v45  ;;  %v10790_v59 = vunpack.i.l.bf16 %v20666_v45  ;;  %v17695_v28 = vsel %vm2507_vm11, %v17232_v40, %v10781_v54  ;;  %v20671_v18 = vld [vmem:[#allocation168_spill] sm:$0xff]  ;;  %v20678_v54 = vld [vmem:[#allocation169_spill] sm:$0xff] }
 0x63d   : > { %20665 = vst [vmem:[#allocation111_spill] sm:$0xff] %v17679_v50  ;;  %v17686_v1 = vsel %vm2431_vm10, %v7397_v10, %v11960_v43  ;;  %v17689_v0 = vsel %vm2431_vm10, %v7398_v39, %v11961_v52  ;;  %20669 = vst [vmem:[#allocation59_spill] sm:$0xff] %v17695_v28  ;;  %v17704_v35 = vsel %vm2365_vm8, %v17236_v37, %v10555_v3  ;;  %v10565_v52 = vunpack.i.l.bf16 %v20671_v18  ;;  %v20672_v43 = vld [vmem:[#allocation319_spill] sm:$0xff]  ;;  %v20674_v39 = vld [vmem:[#allocation321_spill] sm:$0xff] }
 0x63e   : > { %20667 = vst [vmem:[#allocation112_spill] sm:$0xff] %v17686_v1  ;;  %20668 = vst [vmem:[#allocation113_spill] sm:$0xff] %v17689_v0  ;;  %v11331_v30 = vunpack.i.h.bf16 %v20672_v43  ;;  %v17710_v40 = vsel %vm2365_vm8, %v17243_v14, %v10556_v13  ;;  %v11330_v10 = vunpack.i.l.bf16 %v20672_v43  ;;  %v11341_v45 = vunpack.i.h.bf16 %v20674_v39  ;;  %v12049_v13 = vld [vmem:[%s19362_s5 + $0x18] sm:$0xff]   ;;  %v20690_v1 = vld [vmem:[#allocation333_spill] sm:$0xff] }
 0x63f   : > { %20670 = vst [vmem:[#allocation114_spill] sm:$0xff] %v17704_v35  ;;  %20673 = vst [vmem:[#allocation115_spill] sm:$0xff] %v17710_v40  ;;  %v17717_v36 = vsel %vm2507_vm11, %v17247_v2, %v10790_v59  ;;  %v17721_v37 = vsel %vm2507_vm11, %v17251_v48, %v10791_v23  ;;  %v11340_v3 = vunpack.i.l.bf16 %v20674_v39  ;;  %v11351_v44 = vunpack.i.h.bf16 %v20677_v34  ;;  %v17725_v14 = vpop.permute.xlu1 %11743  ;;  %v20679_v59 = vld [vmem:[#allocation337_spill] sm:$0xff]  ;;  %9376 = vmatprep.subr.bf16.mxu0 %v12049_v13  ;;  %v12079_v8 = vld [vmem:[#allocation3 + $0x61] sm:$0xff] }
 0x640   : > { %20675 = vst [vmem:[#allocation68_spill] sm:$0xff] %v17717_v36  ;;  %20676 = vst [vmem:[#allocation67_spill] sm:$0xff] %v17721_v37  ;;  %v11350_v2 = vunpack.i.l.bf16 %v20677_v34  ;;  %v11410_v47 = vunpack.i.l.bf16 %v20679_v59  ;;  %v17736_v48 = vsel %vm2365_vm8, %v17255_v62, %v10565_v52  ;;  %v12078_v39 = vld [vmem:[#allocation3 + $0x69] sm:$0xff]  ;;  %v11411_v50 = vunpack.i.h.bf16 %v20679_v59  ;;  %9377 = vmatpush3.bf16.msra.mxu0 %v12049_v13  ;;  %v12081_v62 = vld [vmem:[#allocation3 + $0x91] sm:$0xff] }
 0x641   : > { %20680 = vst [vmem:[#allocation116_spill] sm:$0xff] %v17736_v48  ;;  %v7178_v61 = vsel %vm426_vm0, %v12078_v39, %v11331_v30  ;;  %v7177_v43 = vsel %vm426_vm0, %v12079_v8, %v11330_v10  ;;  %v7182_v34 = vsel %vm426_vm0, %v12080_v60, %v11341_v45  ;;  %v11421_v5 = vunpack.i.h.bf16 %v20681_v7  ;;  %v12082_v23 = vld [vmem:[#allocation3 + $0xc9] sm:$0xff]  ;;  %v20682_v39 = vld [vmem:[#allocation342_spill] sm:$0xff]  ;;  %v12083_v8 = vld [vmem:[#allocation3 + $0xc1] sm:$0xff] }
 0x642   : > { %v11420_v37 = vunpack.i.l.bf16 %v20681_v7  ;;  %v7181_v52 = vsel %vm426_vm0, %v12081_v62, %v11340_v3  ;;  %v7186_v30 = vsel %vm426_vm0, %v12082_v23, %v11351_v44  ;;  %v11431_v59 = vunpack.i.h.bf16 %v20682_v39  ;;  %v20683_v45 = vld [vmem:[#allocation44_spill] sm:$0xff]  ;;  %v20685_v23 = vld [vmem:[#allocation50_spill] sm:$0xff]  ;;  %v20686_v40 = vld [vmem:[#allocation61_spill] sm:$0xff] }
 0x643   : > { %v11430_v48 = vunpack.i.l.bf16 %v20682_v39  ;;  %v17749_v29 = vpop.permute.xlu1 %11753  ;;  %v7185_v60 = vsel %vm426_vm0, %v12083_v8, %v11350_v2  ;;  %v7209_v10 = vsel %vm2233_vm4, %v7177_v43, %v11410_v47  ;;  %v11491_v7 = vunpack.i.h.bf16 %v20683_v45  ;;  %v20684_v62 = vld [vmem:[#allocation360_spill] sm:$0xff]  ;;  %v20689_v35 = vld [vmem:[#allocation71_spill] sm:$0xff] }
 0x644   : > { %v11490_v13 = vunpack.i.l.bf16 %v20683_v45  ;;  %v7210_v3 = vsel %vm2233_vm4, %v7178_v61, %v11411_v50  ;;  %v11501_v21 = vunpack.i.h.bf16 %v20684_v62  ;;  %v11500_v44 = vunpack.i.l.bf16 %v20684_v62  ;;  %v20687_v61 = vld [vmem:[#allocation69_spill] sm:$0xff] }
 0x645   : > { %v11510_v36 = vunpack.i.l.bf16 %v20685_v23  ;;  %v7213_v39 = vsel %vm2233_vm4, %v7181_v52, %v11420_v37  ;;  %v7214_v4 = vsel %vm2233_vm4, %v7182_v34, %v11421_v5  ;;  %v11326_v2 = vunpack.i.h.bf16 %v20686_v40  ;;  %v12050_v37 = vld [vmem:[%s19362_s5 + $0x20] sm:$0xff]  }
 0x646   : > { %v11325_v47 = vunpack.i.l.bf16 %v20686_v40  ;;  %v7217_v43 = vsel %vm2233_vm4, %v7185_v60, %v11430_v48  ;;  %v17765_v8 = vsel %vm2233_vm4, %v7186_v30, %v11431_v59  ;;  %v11336_v50 = vunpack.i.h.bf16 %v20687_v61  ;;  %v20688_v48 = vld [vmem:[#allocation73_spill] sm:$0xff]  ;;  %9378 = vmatprep.subr.bf16.mxu0 %v12050_v37 }
 0x647   : > { %v11335_v45 = vunpack.i.l.bf16 %v20687_v61  ;;  %v17769_v62 = vpop.permute.xlu1 %11763  ;;  %v17775_v5 = vsel %vm2266_vm5, %v7209_v10, %v11490_v13  ;;  %v17778_v40 = vsel %vm2266_vm5, %v7210_v3, %v11491_v7  ;;  %v11346_v34 = vunpack.i.h.bf16 %v20688_v48  ;;  %v3456_v10 = vld [vmem:[#allocation3 + $0x49] sm:$0xff]  ;;  %v3457_v13 = vld [vmem:[#allocation3 + $0x51] sm:$0xff]  ;;  %9379 = vmatpush3.bf16.msra.mxu0 %v12050_v37  ;;  %v20697_v37 = vld [vmem:[#allocation63_spill] sm:$0xff] }
 0x648   : > { %v11345_v52 = vunpack.i.l.bf16 %v20688_v48  ;;  %v17783_v30 = vsel %vm2266_vm5, %v7213_v39, %v11500_v44  ;;  %v17786_v59 = vsel %vm2266_vm5, %v7214_v4, %v11501_v21  ;;  %v17790_v61 = vsel %vm2266_vm5, %v7217_v43, %v11510_v36  ;;  %v12084_v39 = vld [vmem:[#allocation3 + $0x81] sm:$0xff]  ;;  %v12085_v4 = vld [vmem:[#allocation3 + $0x79] sm:$0xff]  ;;  %v20691_v43 = vld [vmem:[#allocation77_spill] sm:$0xff] }
 0x649   : > { %v7176_v7 = vsel %vm426_vm0, %v3457_v13, %v11326_v2  ;;  %v7175_v3 = vsel %vm426_vm0, %v3456_v10, %v11325_v47  ;;  %v11405_v44 = vunpack.i.l.bf16 %v20690_v1  ;;  %v7180_v21 = vsel %vm426_vm0, %v12084_v39, %v11336_v50  ;;  %v12086_v2 = vld [vmem:[#allocation3 + $0xb1] sm:$0xff]  ;;  %v12087_v10 = vld [vmem:[#allocation3 + $0xa9] sm:$0xff]  ;;  %v20693_v50 = vld [vmem:[#allocation83_spill] sm:$0xff] }
 0x64a   : > { %v7179_v60 = vsel %vm426_vm0, %v12085_v4, %v11335_v45  ;;  %v7184_v47 = vsel %vm426_vm0, %v12086_v2, %v11346_v34  ;;  %v7183_v13 = vsel %vm426_vm0, %v12087_v10, %v11345_v52  ;;  %v11406_v48 = vunpack.i.h.bf16 %v20690_v1  ;;  %v20694_v4 = vld [vmem:[#allocation99_spill] sm:$0xff] }
 0x64b   : > { %v17800_v28 = vpop.permute.xlu1 %11773  ;;  %v11416_v36 = vunpack.i.h.bf16 %v20694_v4  ;;  %v11415_v0 = vunpack.i.l.bf16 %v20694_v4  ;;  %v7207_v9 = vsel %vm2233_vm4, %v7175_v3, %v11405_v44  ;;  %v11426_v19 = vunpack.i.h.bf16 %v20695_v12  ;;  %v20696_v2 = vld [vmem:[#allocation355_spill] sm:$0xff] }
 0x64c   : > { %20692 = vst [vmem:[#allocation372_spill] sm:$0xff] %v17800_v28  ;;  %v11425_v34 = vunpack.i.l.bf16 %v20695_v12  ;;  %v11485_v52 = vunpack.i.l.bf16 %v20696_v2  ;;  %v11486_v10 = vunpack.i.h.bf16 %v20696_v2  ;;  %v11496_v1 = vunpack.i.h.bf16 %v20697_v37  ;;  %v20702_v28 = vld [vmem:[#allocation327_spill] sm:$0xff] }
 0x64d   : > { %v11495_v39 = vunpack.i.l.bf16 %v20697_v37  ;;  %v11505_v45 = vunpack.i.l.bf16 %v20698_v58  ;;  %v7208_v4 = vsel %vm2233_vm4, %v7176_v7, %v11406_v48  ;;  %v11506_v44 = vunpack.i.h.bf16 %v20698_v58 }
 0x64e   : > { %v11565_v12 = vunpack.i.l.bf16 %v20701_v17  ;;  %v7211_v6 = vsel %vm2233_vm4, %v7179_v60, %v11415_v0  ;;  %v7212_v2 = vsel %vm2233_vm4, %v7180_v21, %v11416_v36  ;;  %v11566_v55 = vunpack.i.h.bf16 %v20701_v17 }
 0x64f   : > { %v11575_v37 = vunpack.i.l.bf16 %v20702_v28  ;;  %v7215_v22 = vsel %vm2233_vm4, %v7183_v13, %v11425_v34  ;;  %v7239_v7 = vsel %vm2266_vm5, %v7207_v9, %v11485_v52  ;;  %v11576_v48 = vunpack.i.h.bf16 %v20702_v28  ;;  %v12051_v28 = vld [vmem:[%s19362_s5 + $0x28] sm:$0xff]  }
 0x650   : > { %v17818_v63 = vpop.permute.xlu1 %11783  ;;  %v7240_v58 = vsel %vm2266_vm5, %v7208_v4, %v11486_v10  ;;  %v7243_v3 = vsel %vm2266_vm5, %v7211_v6, %v11495_v39  ;;  %v7244_v0 = vsel %vm2266_vm5, %v7212_v2, %v11496_v1  ;;  %v7247_v60 = vsel %vm2266_vm5, %v7215_v22, %v11505_v45  ;;  %v20703_v39 = vld [vmem:[#allocation344_spill] sm:$0xff]  ;;  %9380 = vmatprep.subr.bf16.mxu0 %v12051_v28 }
 0x651   : > { %20699 = vst [vmem:[#allocation368_spill] sm:$0xff] %v17818_v63  ;;  %v7216_v63 = vsel %vm2233_vm4, %v7184_v47, %v11426_v19  ;;  %v7271_v36 = vsel %vm2299_vm6, %v7239_v7, %v11565_v12  ;;  %v11646_v19 = vunpack.i.h.bf16 %v17448_v49  ;;  %v11645_v9 = vunpack.i.l.bf16 %v17448_v49  ;;  %9381 = vmatpush3.bf16.msra.mxu0 %v12051_v28 }
 0x652   : > { %v7248_v17 = vsel %vm2266_vm5, %v7216_v63, %v11506_v44  ;;  %v7272_v6 = vsel %vm2299_vm6, %v7240_v58, %v11566_v55  ;;  %v7275_v47 = vsel %vm2299_vm6, %v7243_v3, %v11575_v37  ;;  %v11726_v22 = vunpack.i.h.bf16 %v17655_v11 }
 0x653   : > { %v11725_v13 = vunpack.i.l.bf16 %v17655_v11  ;;  %v7276_v63 = vsel %vm2299_vm6, %v7244_v0, %v11576_v48  ;;  %v11586_v45 = vunpack.i.h.bf16 %v20703_v39  ;;  %v11585_v34 = vunpack.i.l.bf16 %v20703_v39 }
 0x654   : > { %v17836_v21 = vpop.permute.xlu1 %11793  ;;  %v11655_v49 = vunpack.i.l.bf16 %v17477_v53  ;;  %v11841_v52 = vunpack.i.h.bf16 %v17302_v57  ;;  %v11840_v10 = vunpack.i.l.bf16 %v17302_v57  ;;  %v11851_v55 = vunpack.i.h.bf16 %v17353_v15 }
 0x655   : > { %v11656_v1 = vunpack.i.h.bf16 %v17477_v53  ;;  %v7303_v11 = vsel %vm2332_vm7, %v7271_v36, %v11645_v9  ;;  %v7304_v3 = vsel %vm2332_vm7, %v7272_v6, %v11646_v19  ;;  %v11736_v7 = vunpack.i.h.bf16 %v17691_v27 }
 0x656   : > { %v7335_v2 = vsel %vm2365_vm8, %v7303_v11, %v11725_v13  ;;  %v7336_v37 = vsel %vm2365_vm8, %v7304_v3, %v11726_v22  ;;  %v11735_v57 = vunpack.i.l.bf16 %v17691_v27  ;;  %v11850_v48 = vunpack.i.l.bf16 %v17353_v15 }
 0x657   : > { %v7307_v53 = vsel %vm2332_vm7, %v7275_v47, %v11655_v49  ;;  %v7308_v36 = vsel %vm2332_vm7, %v7276_v63, %v11656_v1  ;;  %v11665_v19 = vunpack.i.l.bf16 %v17504_v26  ;;  %v11666_v22 = vunpack.i.h.bf16 %v17504_v26  ;;  %v12052_v47 = vld [vmem:[%s19362_s5 + $0x30] ss:$0 sps:$4 sm:$0x33]  }
 0x658   : > { %v11804_v4 = vpop.permute.xlu1 %11803  ;;  %v7339_v39 = vsel %vm2365_vm8, %v7307_v53, %v11735_v57  ;;  %v7340_v63 = vsel %vm2365_vm8, %v7308_v36, %v11736_v7  ;;  %v11746_v49 = vunpack.i.h.bf16 %v17725_v14  ;;  %v11745_v1 = vunpack.i.l.bf16 %v17725_v14  ;;  %9452 = vmatprep.subr.msk.bf16.mxu0 %vm475_vm2, %v12052_v47  ;;  %v20705_v36 = vld [vmem:[#allocation104_spill] sm:$0xff] }
 0x659   : > { %v11806_v44 = vunpack.i.h.bf16 %v11804_v4  ;;  %v11805_v12 = vunpack.i.l.bf16 %v11804_v4  ;;  %v7717_v4 = vsel %vm475_vm2, %v12052_v47, 0  ;;  %v7280_v11 = vsel %vm2299_vm6, %v7248_v17, %v11586_v45 }
 0x65a   : > { %9383 = vmatpush3.bf16.msra.mxu0 %v7717_v4  ;;  %v11861_v7 = vunpack.i.h.bf16 %v17406_v31  ;;  %v11860_v57 = vunpack.i.l.bf16 %v17406_v31  ;;  %v11650_v45 = vunpack.i.l.bf16 %v20700_v41  ;;  %v20708_v47 = vunpack.i.h.bf16 %v20689_v35 }
 0x65b   : > { %v7367_v58 = vsel %vm2398_vm9, %v7335_v2, %v11805_v12  ;;  %v7368_v0 = vsel %vm2398_vm9, %v7336_v37, %v11806_v44  ;;  %vm6085_vm0 = vcmask 457728   ;;  %vm7559_vm2 = vcmask 523264  }
 0x65c   : > { %v11814_v9 = vpop.permute.xlu1 %11813  ;;  %v7399_v28 = vsel %vm2431_vm10, %v7367_v58, %v11840_v10  ;;  %v7400_v6 = vsel %vm2431_vm10, %v7368_v0, %v11841_v52  ;;  %v7279_v10 = vsel %vm2299_vm6, %v7247_v60, %v11585_v34  ;;  %v7312_v34 = vsel %vm2332_vm7, %v7280_v11, %v11666_v22  ;;  %v20704_v58 = vld [vmem:[#allocation353_spill] sm:$0xff] }
 0x65d   : > { %v11816_v27 = vunpack.i.h.bf16 %v11814_v9  ;;  %v11815_v13 = vunpack.i.l.bf16 %v11814_v9  ;;  %v11962_v15 = vpack.i.bf16 %v7400_v6, %v7399_v28  ;;  %v7311_v3 = vsel %vm2332_vm7, %v7279_v10, %v11665_v19  ;;  %v20711_v10 = vld [vmem:[#allocation106_spill] sm:$0xff] }
 0x65e   : > { %v7343_v53 = vsel %vm2365_vm8, %v7311_v3, %v11745_v1  ;;  %v7344_v17 = vsel %vm2365_vm8, %v7312_v34, %v11746_v49  ;;  %v11731_v19 = vunpack.i.h.bf16 %v20705_v36  ;;  %v11730_v9 = vunpack.i.l.bf16 %v20705_v36  ;;  %v20718_v36 = vld [vmem:[#allocation25_spill] sm:$0xff] }
 0x65f   : > { %v7371_v52 = vsel %vm2398_vm9, %v7339_v39, %v11815_v13  ;;  %v7372_v26 = vsel %vm2398_vm9, %v7340_v63, %v11816_v27  ;;  %11963 = vrot.lane.b32.xlu1 %v11962_v15, %s12117_s16  ;;  %v20706_v22 = vunpack.i.h.bf16 %v20685_v23  ;;  %v20707_v13 = vunpack.i.l.bf16 %v20689_v35 }
 0x660   : > { %v11824_v44 = vpop.permute.xlu1 %11823  ;;  %v7403_v14 = vsel %vm2431_vm10, %v7371_v52, %v11850_v48  ;;  %v7404_v60 = vsel %vm2431_vm10, %v7372_v26, %v11851_v55  ;;  %v11660_v48 = vunpack.i.l.bf16 %v20704_v58  ;;  %v7274_v39 = vsel %vm2299_vm6, %v17778_v40, %v20708_v47 }
 0x661   : > { %v11826_v12 = vunpack.i.h.bf16 %v11824_v44  ;;  %v11825_v2 = vunpack.i.l.bf16 %v11824_v44  ;;  %v11972_v37 = vpack.i.bf16 %v7404_v60, %v7403_v14  ;;  %v7250_v27 = vsel %vm2266_vm5, %v17765_v8, %v20706_v22 }
 0x662   : > { %v7273_v15 = vsel %vm2299_vm6, %v17775_v5, %v20707_v13  ;;  %v20709_v49 = vunpack.i.l.bf16 %v20691_v43  ;;  %v20710_v23 = vunpack.i.h.bf16 %v20691_v43  ;;  %v11811_v52 = vunpack.i.h.bf16 %v20711_v10 }
 0x663   : > { %v7375_v55 = vsel %vm2398_vm9, %v7343_v53, %v11825_v2  ;;  %v7376_v0 = vsel %vm2398_vm9, %v7344_v17, %v11826_v12  ;;  %11973 = vrot.lane.b32.xlu1 %v11972_v37, %s12117_s16  ;;  %v11810_v5 = vunpack.i.l.bf16 %v20711_v10  ;;  %v20712_v35 = vunpack.i.l.bf16 %v20693_v50  ;;  %v20717_v17 = vld [vmem:[#allocation334_spill] sm:$0xff] }
 0x664   : > { %v17901_v28 = vpop.permute.xlu1 %11833  ;;  %v7407_v31 = vsel %vm2431_vm10, %v7375_v55, %v11860_v57  ;;  %v7408_v6 = vsel %vm2431_vm10, %v7376_v0, %v11861_v7  ;;  %v7277_v1 = vsel %vm2299_vm6, %v17783_v30, %v20709_v49  ;;  %v7278_v8 = vsel %vm2299_vm6, %v17786_v59, %v20710_v23  ;;  %v20716_v7 = vld [vmem:[#allocation381_spill] sm:$0xff] }
 0x665   : > { %v11982_v63 = vpack.i.bf16 %v7408_v6, %v7407_v31  ;;  %v7281_v40 = vsel %vm2299_vm6, %v17790_v61, %v20712_v35  ;;  %v20713_v26 = vunpack.i.h.bf16 %v20693_v50  ;;  %v7305_v30 = vsel %vm2332_vm7, %v7273_v15, %v11650_v45  ;;  %v20715_v50 = vld [vmem:[#allocation359_spill] sm:$0xff] }
 0x666   : > { %v20714_v43 = vunpack.i.h.bf16 %v20700_v41  ;;  %v11661_v59 = vunpack.i.h.bf16 %v20704_v58  ;;  %v7309_v3 = vsel %vm2332_vm7, %v7277_v1, %v11660_v48  ;;  %v7337_v44 = vsel %vm2365_vm8, %v7305_v30, %v11730_v9 }
 0x667   : > { %v7282_v4 = vsel %vm2299_vm6, %v7250_v27, %v20713_v26  ;;  %11983 = vrot.lane.b32.xlu1 %v11982_v63, %s12117_s16  ;;  %v11741_v60 = vunpack.i.h.bf16 %v20715_v50  ;;  %v11740_v34 = vunpack.i.l.bf16 %v20715_v50  ;;  %v7369_v41 = vsel %vm2398_vm9, %v7337_v44, %v11810_v5 }
 0x668   : > { %v7306_v11 = vsel %vm2332_vm7, %v7274_v39, %v20714_v43  ;;  %v11844_v14 = vpop.permute.xlu1 %11843  ;;  %v11821_v57 = vunpack.i.h.bf16 %v20716_v7  ;;  %v11820_v53 = vunpack.i.l.bf16 %v20716_v7  ;;  %v11671_v45 = vunpack.i.h.bf16 %v20717_v17 }
 0x669   : > { %v7338_v61 = vsel %vm2365_vm8, %v7306_v11, %v11731_v19  ;;  %v11846_v12 = vunpack.i.h.bf16 %v11844_v14  ;;  %v11845_v2 = vunpack.i.l.bf16 %v11844_v14  ;;  %v11670_v58 = vunpack.i.l.bf16 %v20717_v17  ;;  %v20721_v14 = vld [vmem:[#allocation170_spill] sm:$0xff]  ;;  %v20723_v17 = vld [vmem:[#allocation172_spill] sm:$0xff] }
 0x66a   : > { %v7370_v37 = vsel %vm2398_vm9, %v7338_v61, %v11811_v52  ;;  %v7310_v0 = vsel %vm2332_vm7, %v7278_v8, %v11661_v59  ;;  %v11751_v19 = vunpack.i.h.bf16 %v20718_v36  ;;  %v11750_v9 = vunpack.i.l.bf16 %v20718_v36 }
 0x66b   : > { %v7401_v48 = vsel %vm2431_vm10, %v7369_v41, %v11845_v2  ;;  %v7402_v55 = vsel %vm2431_vm10, %v7370_v37, %v11846_v12  ;;  %v7341_v22 = vsel %vm2365_vm8, %v7309_v3, %v11740_v34  ;;  %v7342_v27 = vsel %vm2365_vm8, %v7310_v0, %v11741_v60  ;;  %v20722_v12 = vld [vmem:[#allocation171_spill] sm:$0xff]  ;;  %v20724_v0 = vld [vmem:[#allocation173_spill] sm:$0xff] }
 0x66c   : > { %v11967_v31 = vpack.i.bf16 %v7402_v55, %v7401_v48  ;;  %v11854_v6 = vpop.permute.xlu1 %11853  ;;  %v7373_v47 = vsel %vm2398_vm9, %v7341_v22, %v11820_v53  ;;  %v7374_v39 = vsel %vm2398_vm9, %v7342_v27, %v11821_v57  ;;  %v11831_v63 = vunpack.i.h.bf16 %v17257_v33  ;;  %v20727_v27 = vld [vmem:[#allocation174_spill] sm:$0xff] }
 0x66d   : > { %v11856_v13 = vunpack.i.h.bf16 %v11854_v6  ;;  %v11855_v15 = vunpack.i.l.bf16 %v11854_v6  ;;  %v11830_v49 = vunpack.i.l.bf16 %v17257_v33  ;;  %v7313_v1 = vsel %vm2332_vm7, %v7281_v40, %v11670_v58  ;;  %v20726_v6 = vld [vmem:[#allocation362_spill] sm:$0xff] }
 0x66e   : > { %11968 = vrot.lane.b32.xlu0 %v11967_v31, %s12117_s16  ;;  %v7314_v23 = vsel %vm2332_vm7, %v7282_v4, %v11671_v45  ;;  %v20719_v52 = vunpack.i.h.bf16 %v20671_v18  ;;  %v7345_v35 = vsel %vm2365_vm8, %v7313_v1, %v11750_v9  ;;  %v11756_v40 = vunpack.i.h.bf16 %v17749_v29 }
 0x66f   : > { %v7405_v8 = vsel %vm2431_vm10, %v7373_v47, %v11855_v15  ;;  %v7406_v10 = vsel %vm2431_vm10, %v7374_v39, %v11856_v13  ;;  %v7346_v33 = vsel %vm2365_vm8, %v7314_v23, %v11751_v19  ;;  %v11755_v4 = vunpack.i.l.bf16 %v17749_v29  ;;  %v20728_v39 = vld [vmem:[#allocation361_spill] sm:$0xff]  ;;  %v20730_v23 = vld [vmem:[#allocation346_spill] sm:$0xff] }
 0x670   : > { %v17971_v5 = vsel %vm2365_vm8, %v17261_v51, %v20719_v52  ;;  %v11977_v26 = vpack.i.bf16 %v7406_v10, %v7405_v8  ;;  %v11864_v30 = vpop.permute.xlu1 %11863  ;;  %v7377_v59 = vsel %vm2398_vm9, %v7345_v35, %v11830_v49  ;;  %v7378_v18 = vsel %vm2398_vm9, %v7346_v33, %v11831_v63  ;;  %v20729_v49 = vld [vmem:[#allocation331_spill] sm:$0xff]  ;;  %v20731_v10 = vld [vmem:[#allocation365_spill] sm:$0xff] }
 0x671   : > { %v11866_v43 = vunpack.i.h.bf16 %v11864_v30  ;;  %v11865_v11 = vunpack.i.l.bf16 %v11864_v30  ;;  %v11836_v3 = vunpack.i.h.bf16 %v17901_v28  ;;  %v11835_v51 = vunpack.i.l.bf16 %v17901_v28  ;;  %v20733_v30 = vld [vmem:[#allocation363_spill] sm:$0xff] }
 0x672   : > { %11978 = vrot.lane.b32.xlu0 %v11977_v26, %s12117_s16  ;;  %v20720_v44 = vunpack.i.l.bf16 %v20678_v54  ;;  %v10576_v29 = vunpack.i.h.bf16 %v20721_v14  ;;  %v10575_v34 = vunpack.i.l.bf16 %v20721_v14  ;;  %v10811_v2 = vunpack.i.h.bf16 %v20722_v12 }
 0x673   : > { %v7409_v50 = vsel %vm2431_vm10, %v7377_v59, %v11865_v11  ;;  %v7410_v60 = vsel %vm2431_vm10, %v7378_v18, %v11866_v43  ;;  %v10810_v28 = vunpack.i.l.bf16 %v20722_v12  ;;  %v7347_v7 = vsel %vm2365_vm8, %v17538_v20, %v11755_v4  ;;  %v20735_v43 = vld [vmem:[#allocation369_spill] sm:$0xff]  ;;  %v20736_v18 = vld [vmem:[#allocation364_spill] sm:$0xff] }
 0x674   : > { %v17986_v61 = vsel %vm2507_vm11, %v17265_v38, %v20720_v44  ;;  %v11987_v41 = vpack.i.bf16 %v7410_v60, %v7409_v50  ;;  %v7348_v38 = vsel %vm2365_vm8, %v17541_v25, %v11756_v40  ;;  %v10586_v45 = vunpack.i.h.bf16 %v20723_v17  ;;  %v20734_v40 = vld [vmem:[#allocation348_spill] sm:$0xff] }
 0x675   : > { %v11874_v37 = vpop.permute.xlu1 %11873  ;;  %v10585_v58 = vunpack.i.l.bf16 %v20723_v17  ;;  %v7379_v48 = vsel %vm2398_vm9, %v7347_v7, %v11835_v51  ;;  %v7380_v55 = vsel %vm2398_vm9, %v7348_v38, %v11836_v3  ;;  %v10821_v36 = vunpack.i.h.bf16 %v20724_v0  ;;  %v20738_v44 = vld [vmem:[#allocation176_spill] sm:$0xff]  ;;  %v20740_v38 = vld [vmem:[#allocation45_spill] sm:$0xff] }
 0x676   : > { %v11876_v57 = vunpack.i.h.bf16 %v11874_v37  ;;  %v11875_v53 = vunpack.i.l.bf16 %v11874_v37  ;;  %11988 = vrot.lane.b32.xlu0 %v11987_v41, %s12117_s16  ;;  %v10820_v19 = vunpack.i.l.bf16 %v20724_v0  ;;  %v20725_v9 = vunpack.i.h.bf16 %v20678_v54 }
 0x677   : > { %v18015_v22 = vsel %vm2365_vm8, %v20726_v6, %v10575_v34  ;;  %v10595_v13 = vunpack.i.l.bf16 %v20727_v27  ;;  %v18020_v63 = vsel %vm2365_vm8, %v20728_v39, %v10576_v29  ;;  %v18024_v1 = vsel %vm2507_vm11, %v20729_v49, %v10810_v28  ;;  %v20739_v28 = vld [vmem:[#allocation177_spill] sm:$0xff]  ;;  %v20749_v49 = vld [vmem:[#allocation179_spill] sm:$0xff] }
 0x678   : > { %v7411_v20 = vsel %vm2431_vm10, %v7379_v48, %v11875_v53  ;;  %v7412_v25 = vsel %vm2431_vm10, %v7380_v55, %v11876_v57  ;;  %v18011_v31 = vsel %vm2507_vm11, %v17269_v56, %v20725_v9  ;;  %v11766_v54 = vunpack.i.h.bf16 %v17769_v62  ;;  %v20742_v53 = vld [vmem:[#allocation178_spill] sm:$0xff]  ;;  %v20746_v9 = vld [vmem:[#allocation371_spill] sm:$0xff] }
 0x679   : > { %v11992_v15 = vpack.i.bf16 %v7412_v25, %v7411_v20  ;;  %v11884_v47 = vpop.permute.xlu1 %11883  ;;  %v11765_v56 = vunpack.i.l.bf16 %v17769_v62  ;;  %v18030_v8 = vsel %vm2507_vm11, %v20730_v23, %v10811_v2  ;;  %v18034_v52 = vsel %vm2365_vm8, %v20731_v10, %v10585_v58  ;;  %v20743_v58 = vld [vmem:[#allocation350_spill] sm:$0xff]  ;;  %v20750_v10 = vld [vmem:[#allocation352_spill] sm:$0xff] }
 0x67a   : > { %v11886_v35 = vunpack.i.h.bf16 %v11884_v47  ;;  %v11885_v33 = vunpack.i.l.bf16 %v11884_v47  ;;  %v20732_v26 = vpack.i.bf16 %v17475_v42, %v17472_v46  ;;  %v18043_v62 = vsel %vm2365_vm8, %v20733_v30, %v10586_v45  ;;  %v20737_v46 = vld [vmem:[#allocation175_spill] sm:$0xff]  ;;  %v20744_v55 = vld [vmem:[#allocation370_spill] sm:$0xff] }
 0x67b   : > { %11993 = vrot.lane.b32.xlu1 %v11992_v15, %s12117_s16  ;;  %v18047_v4 = vsel %vm2507_vm11, %v20734_v40, %v10820_v19  ;;  %v18051_v11 = vsel %vm2507_vm11, %v20735_v43, %v10821_v36  ;;  %v10596_v59 = vunpack.i.h.bf16 %v20727_v27  ;;  %v18056_v3 = vsel %vm2365_vm8, %v20736_v18, %v10595_v13  ;;  %v20745_v20 = vld [vmem:[#allocation366_spill] sm:$0xff]  ;;  %v20747_v27 = vld [vmem:[#allocation372_spill] sm:$0xff]  ;;  %v20748_v47 = vld [vmem:[#allocation367_spill] sm:$0xff] }
 0x67c   : > { %11998 = vrot.lane.b32.xlu0 %v20732_v26, %s12117_s16  ;;  %v10831_v42 = vunpack.i.h.bf16 %v20737_v46  ;;  %v10830_v51 = vunpack.i.l.bf16 %v20737_v46  ;;  %v10605_v14 = vunpack.i.l.bf16 %v20738_v44  ;;  %v7351_v50 = vsel %vm2365_vm8, %v17556_v16, %v11765_v56  ;;  %v20753_v26 = vld [vmem:[#allocation62_spill] sm:$0xff]  ;;  %v20754_v40 = vld [vmem:[#allocation103_spill] sm:$0xff] }
 0x67d   : > { %v11894_v29 = vpop.permute.xlu1 %11893  ;;  %v7352_v60 = vsel %vm2365_vm8, %v17559_v24, %v11766_v54  ;;  %v10606_v2 = vunpack.i.h.bf16 %v20738_v44  ;;  %v10841_v41 = vunpack.i.h.bf16 %v20739_v28  ;;  %v7383_v37 = vsel %vm2398_vm9, %v7351_v50, %v11885_v33  ;;  %v20757_v44 = vld [vmem:[#allocation180_spill] sm:$0xff]  ;;  %v20758_v50 = vld [vmem:[#allocation181_spill] sm:$0xff] }
 0x67e   : > { %v11896_v34 = vunpack.i.h.bf16 %v11894_v29  ;;  %v11895_v12 = vunpack.i.l.bf16 %v11894_v29  ;;  %v7384_v7 = vsel %vm2398_vm9, %v7352_v60, %v11886_v35  ;;  %v20741_v57 = vpack.i.bf16 %v17528_v32, %v20740_v38  ;;  %v20751_v35 = vld [vmem:[#allocation95_spill] sm:$0xff]  ;;  %v20761_v38 = vld [vmem:[#allocation96_spill] sm:$0xff] }
 0x67f   : > { %v10840_v16 = vunpack.i.l.bf16 %v20739_v28  ;;  %v10615_v17 = vunpack.i.l.bf16 %v20742_v53  ;;  %v18079_v48 = vsel %vm2365_vm8, %v20743_v58, %v10596_v59  ;;  %v18083_v0 = vsel %vm2507_vm11, %v20744_v55, %v10830_v51  ;;  %v20755_v59 = vld [vmem:[#allocation87_spill] sm:$0xff]  ;;  %v20765_v55 = vld [vmem:[#allocation182_spill] sm:$0xff] }
 0x680   : > { %12008 = vrot.lane.b32.xlu0 %v20741_v57, %s12117_s16  ;;  %v7415_v24 = vsel %vm2431_vm10, %v7383_v37, %v11895_v12  ;;  %v7416_v45 = vsel %vm2431_vm10, %v7384_v7, %v11896_v34  ;;  %v10616_v36 = vunpack.i.h.bf16 %v20742_v53  ;;  %v18088_v25 = vsel %vm2507_vm11, %v20745_v20, %v10831_v42  ;;  %v20756_v42 = vld [vmem:[#allocation107_spill] sm:$0xff]  ;;  %v20759_v12 = vld [vmem:[#allocation396_spill] sm:$0xff] }
 0x681   : > { %v12002_v32 = vpack.i.bf16 %v7416_v45, %v7415_v24  ;;  %v18092_v6 = vsel %vm2398_vm9, %v20746_v9, %v10605_v14  ;;  %v11776_v13 = vunpack.i.h.bf16 %v20747_v27  ;;  %v11775_v15 = vunpack.i.l.bf16 %v20747_v27  ;;  %v20760_v28 = vld [vmem:[#allocation391_spill] sm:$0xff]  ;;  %v20762_v24 = vld [vmem:[#allocation401_spill] sm:$0xff]  ;;  %v20763_v45 = vld [vmem:[#allocation98_spill] sm:$0xff] }
 0x682   : > { %v11904_v19 = vpop.permute.xlu1 %11903  ;;  %v18098_v39 = vsel %vm2398_vm9, %v20748_v47, %v10606_v2  ;;  %v10850_v54 = vunpack.i.l.bf16 %v20749_v49  ;;  %v20752_v33 = vpack.i.bf16 %v20750_v10, %v20751_v35  ;;  %v18108_v30 = vsel %vm2507_vm11, %v20753_v26, %v10840_v16  ;;  %v20766_v9 = vld [vmem:[#allocation46_spill] sm:$0xff]  ;;  %v20768_v47 = vld [vmem:[#allocation183_spill] sm:$0xff]  ;;  %v20771_v26 = vld [vmem:[#allocation368_spill] sm:$0xff] }
 0x683   : > { %v11906_v56 = vunpack.i.h.bf16 %v11904_v19  ;;  %v11905_v23 = vunpack.i.l.bf16 %v11904_v19  ;;  %12003 = vrot.lane.b32.xlu1 %v12002_v32, %s12117_s16  ;;  %v18112_v43 = vsel %vm2507_vm11, %v20754_v40, %v10841_v41  ;;  %v18116_v18 = vsel %vm2398_vm9, %v20755_v59, %v10615_v17  ;;  %v20770_v35 = vld [vmem:[#allocation91_spill] sm:$0xff] }
 0x684   : > { %12018 = vrot.lane.b32.xlu0 %v20752_v33, %s12117_s16  ;;  %v10851_v46 = vunpack.i.h.bf16 %v20749_v49  ;;  %v18121_v51 = vsel %vm2398_vm9, %v20756_v42, %v10616_v36  ;;  %v10626_v14 = vunpack.i.h.bf16 %v20757_v44  ;;  %v10625_v29 = vunpack.i.l.bf16 %v20757_v44 }
 0x685   : > { %v10860_v60 = vunpack.i.l.bf16 %v20758_v50  ;;  %v7355_v2 = vsel %vm2365_vm8, %v20759_v12, %v11775_v15  ;;  %v7356_v41 = vsel %vm2365_vm8, %v20760_v28, %v11776_v13  ;;  %v18132_v57 = vsel %vm5953_vm12, %v20761_v38, %v10850_v54  ;;  %v20767_v13 = vld [vmem:[#allocation57_spill] sm:$0xff]  ;;  %v20777_v28 = vld [vmem:[#allocation115_spill] sm:$0xff] }
 0x686   : > { %v10861_v16 = vunpack.i.h.bf16 %v20758_v50  ;;  %v7387_v53 = vsel %vm2398_vm9, %v7355_v2, %v11905_v23  ;;  %v7388_v17 = vsel %vm2398_vm9, %v7356_v41, %v11906_v56  ;;  %v20764_v58 = vpack.i.bf16 %v20762_v24, %v20763_v45  ;;  %v20769_v23 = vld [vmem:[#allocation102_spill] sm:$0xff]  ;;  %v20782_v45 = vld [vmem:[#allocation187_spill] sm:$0xff] }
 0x687   : > { %v11914_v34 = vpop.permute.xlu1 %11913  ;;  %v10636_v36 = vunpack.i.h.bf16 %v20765_v55  ;;  %v10635_v32 = vunpack.i.l.bf16 %v20765_v55  ;;  %v18147_v27 = vsel %vm5953_vm12, %v20766_v9, %v10851_v46  ;;  %v18151_v15 = vsel %vm2398_vm9, %v20767_v13, %v10625_v29  ;;  %v20772_v46 = vld [vmem:[#allocation59_spill] sm:$0xff] }
 0x688   : > { %v11916_v37 = vunpack.i.h.bf16 %v11914_v34  ;;  %v11915_v7 = vunpack.i.l.bf16 %v11914_v34  ;;  %12028 = vrot.lane.b32.xlu0 %v20764_v58, %s12117_s16  ;;  %v10870_v49 = vunpack.i.l.bf16 %v20768_v47  ;;  %v18156_v10 = vsel %vm2398_vm9, %v20769_v23, %v10626_v14  ;;  %v20773_v14 = vld [vmem:[#allocation113_spill] sm:$0xff]  ;;  %v20774_v34 = vld [vmem:[#allocation112_spill] sm:$0xff]  ;;  %v20785_v13 = vld [vmem:[#allocation47_spill] sm:$0xff] }
 0x689   : > { %v18160_v33 = vsel %vm5953_vm12, %v20770_v35, %v10860_v60  ;;  %v11786_v40 = vunpack.i.h.bf16 %v20771_v26  ;;  %v11785_v59 = vunpack.i.l.bf16 %v20771_v26  ;;  %v18166_v42 = vsel %vm5953_vm12, %v20772_v46, %v10861_v16  ;;  %v20776_v60 = vld [vmem:[#allocation114_spill] sm:$0xff]  ;;  %v20780_v16 = vld [vmem:[#allocation185_spill] sm:$0xff] }
 0x68a   : > { %v7419_v19 = vsel %vm2431_vm10, %v7387_v53, %v11915_v7  ;;  %v7420_v20 = vsel %vm2431_vm10, %v7388_v17, %v11916_v37  ;;  %v10871_v44 = vunpack.i.h.bf16 %v20768_v47  ;;  %v20775_v12 = vpack.i.bf16 %v20773_v14, %v20774_v34  ;;  %v20778_v37 = vld [vmem:[#allocation184_spill] sm:$0xff]  ;;  %v20779_v7 = vld [vmem:[#allocation66_spill] sm:$0xff]  ;;  %v20786_v23 = vld [vmem:[#allocation189_spill] sm:$0xff] }
 0x68b   : > { %v12012_v54 = vpack.i.bf16 %v7420_v20, %v7419_v19  ;;  %v11924_v56 = vpop.permute.xlu1 %11923  ;;  %v18176_v2 = vsel %vm2398_vm9, %v20776_v60, %v10635_v32  ;;  %v18180_v41 = vsel %vm2398_vm9, %v20777_v28, %v10636_v36  ;;  %v18184_v38 = vadd.f32 %v20779_v7, %v20778_v37  ;;  %v20781_v17 = vld [vmem:[#allocation68_spill] sm:$0xff]  ;;  %v20784_v20 = vld [vmem:[#allocation89_spill] sm:$0xff]  ;;  %v20787_v14 = vld [vmem:[#allocation190_spill] sm:$0xff] }
 0x68c   : > { %v11926_v29 = vunpack.i.h.bf16 %v11924_v56  ;;  %v11925_v50 = vunpack.i.l.bf16 %v11924_v56  ;;  %12038 = vrot.lane.b32.xlu0 %v20775_v12, %s12117_s16  ;;  %v18188_v53 = vadd.f32 %v20779_v7, %v20780_v16  ;;  %v18192_v24 = vsel %vm5953_vm12, %v20781_v17, %v10870_v49  ;;  %v20783_v32 = vld [vmem:[#allocation188_spill] sm:$0xff]  ;;  %v20788_v28 = vld [vmem:[#allocation67_spill] sm:$0xff] }
 0x68d   : > { %12013 = vrot.lane.b32.xlu1 %v12012_v54, %s12117_s16  ;;  %v10646_v58 = vunpack.i.h.bf16 %v20782_v45  ;;  %v10645_v55 = vunpack.i.l.bf16 %v20782_v45  ;;  %v18198_v36 = vadd.f32 %v20779_v7, %v20783_v32  ;;  %v7359_v9 = vsel %vm2365_vm8, %v20784_v20, %v11785_v59  ;;  %v20789_v7 = vld [vmem:[#allocation116_spill] sm:$0xff]  ;;  %v20870_v37 = vld [vmem:[#allocation291_spill] sm:$0xff] }
 0x68e   : > { %v7360_v47 = vsel %vm2365_vm8, %v20785_v13, %v11786_v40  ;;  %v10881_v49 = vunpack.i.h.bf16 %v20786_v23  ;;  %v10880_v35 = vunpack.i.l.bf16 %v20786_v23  ;;  %v7391_v26 = vsel %vm2398_vm9, %v7359_v9, %v11925_v50 }
 0x68f   : > { %v11934_v19 = vpop.permute.xlu1 %11933  ;;  %v7392_v46 = vsel %vm2398_vm9, %v7360_v47, %v11926_v29  ;;  %v10656_v34 = vunpack.i.h.bf16 %v20787_v14  ;;  %v10655_v12 = vunpack.i.l.bf16 %v20787_v14  ;;  %v18214_v40 = vsel %vm5953_vm12, %v20788_v28, %v10871_v44  ;;  %v20791_v47 = vld [vmem:[#allocation192_spill] sm:$0xff] }
 0x690   : > { %v11936_v54 = vunpack.i.h.bf16 %v11934_v19  ;;  %v11935_v56 = vunpack.i.l.bf16 %v11934_v19  ;;  %v18219_v16 = vsel %vm2398_vm9, %v20789_v7, %v10645_v55  ;;  %v18223_v17 = vsel %vm2398_vm9, %v17971_v5, %v10646_v58 }
 0x691   : > { %v11796_v32 = vunpack.i.h.bf16 %v17836_v21  ;;  %v11795_v19 = vunpack.i.l.bf16 %v17836_v21  ;;  %v18230_v44 = vsel %vm5953_vm12, %v17986_v61, %v10880_v35  ;;  %v18234_v55 = vsel %vm5953_vm12, %v18011_v31, %v10881_v49  ;;  %v20790_v21 = vld [vmem:[#allocation191_spill] sm:$0xff] }
 0x692   : > { %v7423_v60 = vsel %vm2431_vm10, %v7391_v26, %v11935_v56  ;;  %v7424_v59 = vsel %vm2431_vm10, %v7392_v46, %v11936_v54  ;;  %v18239_v5 = vsel %vm2398_vm9, %v18015_v22, %v10655_v12  ;;  %v18243_v58 = vsel %vm2398_vm9, %v18020_v63, %v10656_v34  ;;  %v20792_v56 = vld [vmem:[#allocation193_spill] sm:$0xff]  ;;  %v20793_v22 = vld [vmem:[#allocation399_spill] sm:$0xff]  ;;  %v20794_v46 = vld [vmem:[#allocation398_spill] sm:$0xff] }
 0x693   : > { %v12022_v50 = vpack.i.bf16 %v7424_v59, %v7423_v60  ;;  %v11944_v29 = vpop.permute.xlu1 %11943  ;;  %v10891_v13 = vunpack.i.h.bf16 %v20790_v21  ;;  %v10890_v61 = vunpack.i.l.bf16 %v20790_v21  ;;  %v10666_v54 = vunpack.i.h.bf16 %v20791_v47  ;;  %v20795_v12 = vld [vmem:[#allocation194_spill] sm:$0xff] }
 0x694   : > { %v11946_v20 = vunpack.i.h.bf16 %v11944_v29  ;;  %v11945_v9 = vunpack.i.l.bf16 %v11944_v29  ;;  %v10665_v31 = vunpack.i.l.bf16 %v20791_v47  ;;  %v10901_v23 = vunpack.i.h.bf16 %v20792_v56 }
 0x695   : > { %12023 = vrot.lane.b32.xlu1 %v12022_v50, %s12117_s16  ;;  %v10900_v49 = vunpack.i.l.bf16 %v20792_v56  ;;  %v7363_v26 = vsel %vm2365_vm8, %v20793_v22, %v11795_v19  ;;  %v7364_v63 = vsel %vm2365_vm8, %v20794_v46, %v11796_v32  ;;  %v10676_v60 = vunpack.i.h.bf16 %v20795_v12  ;;  %v20796_v50 = vld [vmem:[#allocation195_spill] sm:$0xff] }
 0x696   : > { %v10675_v59 = vunpack.i.l.bf16 %v20795_v12  ;;  %v7395_v28 = vsel %vm2398_vm9, %v7363_v26, %v11945_v9  ;;  %v7396_v7 = vsel %vm2398_vm9, %v7364_v63, %v11946_v20  ;;  %v10911_v29 = vunpack.i.h.bf16 %v20796_v50 }
 0x697   : > { %v11954_v35 = vpop.permute.xlu1 %11953  ;;  %v10910_v21 = vunpack.i.l.bf16 %v20796_v50  ;;  %v18265_v32 = vsel %vm5953_vm12, %v18024_v1, %v10890_v61  ;;  %v18269_v56 = vsel %vm5953_vm12, %v18030_v8, %v10891_v13  ;;  %v18274_v20 = vsel %vm2398_vm9, %v18034_v52, %v10665_v31 }
 0x698   : > { %v11956_v14 = vunpack.i.h.bf16 %v11954_v35  ;;  %v11955_v34 = vunpack.i.l.bf16 %v11954_v35  ;;  %v20797_v35 = vld [vmem:[#allocation196_spill] sm:$0xff]  ;;  %v18278_v26 = vsel %vm2398_vm9, %v18043_v62, %v10666_v54  ;;  %v18282_v46 = vsel %vm5953_vm12, %v18047_v4, %v10900_v49  ;;  %v20798_v62 = vld [vmem:[#allocation197_spill] sm:$0xff]  ;;  %v20800_v49 = vld [vmem:[#allocation199_spill] sm:$0xff] }
 0x699   : > { %v10685_v9 = vunpack.i.l.bf16 %v20797_v35  ;;  %v10686_v1 = vunpack.i.h.bf16 %v20797_v35  ;;  %v18287_v8 = vsel %vm5953_vm12, %v18051_v11, %v10901_v23  ;;  %v18291_v13 = vsel %vm2398_vm9, %v18056_v3, %v10675_v59  ;;  %v20799_v3 = vld [vmem:[#allocation198_spill] sm:$0xff] }
 0x69a   : > { %v7427_v47 = vsel %vm2431_vm10, %v7395_v28, %v11955_v34  ;;  %v7428_v19 = vsel %vm2431_vm10, %v7396_v7, %v11956_v14  ;;  %v18295_v52 = vsel %vm2398_vm9, %v18079_v48, %v10676_v60  ;;  %v10920_v61 = vunpack.i.l.bf16 %v20798_v62  ;;  %v20802_v60 = vld [vmem:[#allocation201_spill] sm:$0xff]  ;;  %v20803_v7 = vld [vmem:[#allocation202_spill] sm:$0xff] }
 0x69b   : > { %v12032_v22 = vpack.i.bf16 %v7428_v19, %v7427_v47  ;;  %v18301_v4 = vsel %vm5953_vm12, %v18083_v0, %v10910_v21  ;;  %v18305_v11 = vsel %vm5953_vm12, %v18088_v25, %v10911_v29  ;;  %v10921_v54 = vunpack.i.h.bf16 %v20798_v62  ;;  %v20801_v25 = vld [vmem:[#allocation200_spill] sm:$0xff]  ;;  %v20804_v47 = vld [vmem:[#allocation203_spill] sm:$0xff] }
 0x69c   : > { %v10695_v31 = vunpack.i.l.bf16 %v20799_v3  ;;  %v18311_v48 = vsel %vm2431_vm10, %v18092_v6, %v10685_v9  ;;  %v10696_v23 = vunpack.i.h.bf16 %v20799_v3  ;;  %v10931_v63 = vunpack.i.h.bf16 %v20800_v49 }
 0x69d   : > { %12033 = vrot.lane.b32.xlu1 %v12032_v22, %s12117_s16  ;;  %v10930_v14 = vunpack.i.l.bf16 %v20800_v49  ;;  %v18318_v0 = vsel %vm2431_vm10, %v18098_v39, %v10686_v1  ;;  %v10706_v34 = vunpack.i.h.bf16 %v20801_v25  ;;  %v10705_v12 = vunpack.i.l.bf16 %v20801_v25  ;;  %v20805_v22 = vld [vmem:[#allocation204_spill] sm:$0xff]  ;;  %v20808_v49 = vld [vmem:[#allocation211_spill] sm:$0xff] }
 0x69e   : > { %v10940_v59 = vunpack.i.l.bf16 %v20802_v60  ;;  %v18325_v6 = vsel %vm5953_vm12, %v18108_v30, %v10920_v61  ;;  %v10941_v28 = vunpack.i.h.bf16 %v20802_v60  ;;  %v10716_v50 = vunpack.i.h.bf16 %v20803_v7 }
 0x69f   : > { %v10715_v29 = vunpack.i.l.bf16 %v20803_v7  ;;  %v18332_v39 = vsel %vm5953_vm12, %v18112_v43, %v10921_v54  ;;  %v18336_v21 = vsel %vm2431_vm10, %v18116_v18, %v10695_v31  ;;  %v10951_v19 = vunpack.i.h.bf16 %v20804_v47  ;;  %v20807_v31 = vld [vmem:[#allocation209_spill] sm:$0xff] }
 0x6a0   : > { %v10950_v35 = vunpack.i.l.bf16 %v20804_v47  ;;  %v18342_v30 = vsel %vm2431_vm10, %v18121_v51, %v10696_v23  ;;  %v18346_v9 = vsel %vm5986_vm13, %v18132_v57, %v10930_v14  ;;  %v18350_v43 = vsel %vm5986_vm13, %v18147_v27, %v10931_v63  ;;  %v20812_v47 = vld [vmem:[#allocation215_spill] sm:$0xff] }
 0x6a1   : > { %v10725_v1 = vunpack.i.l.bf16 %v20805_v22  ;;  %v18355_v18 = vsel %vm2431_vm10, %v18151_v15, %v10705_v12  ;;  %v18359_v62 = vsel %vm2431_vm10, %v18156_v10, %v10706_v34  ;;  %v18363_v51 = vsel %vm5986_vm13, %v18160_v33, %v10940_v59  ;;  %v20806_v10 = vld [vmem:[#allocation205_spill] sm:$0xff] }
 0x6a2   : > { %v10726_v57 = vunpack.i.h.bf16 %v20805_v22  ;;  %v18368_v27 = vsel %vm5986_vm13, %v18166_v42, %v10941_v28  ;;  %v18372_v61 = vsel %vm2431_vm10, %v18176_v2, %v10715_v29  ;;  %v18376_v15 = vsel %vm2431_vm10, %v18180_v41, %v10716_v50  ;;  %v20810_v12 = vld [vmem:[#allocation213_spill] sm:$0xff]  ;;  %v20811_v28 = vld [vmem:[#allocation214_spill] sm:$0xff] }
 0x6a3   : > { %v10960_v54 = vunpack.i.l.bf16 %v20806_v10  ;;  %v18381_v33 = vsel %vm5986_vm13, %v18192_v24, %v10950_v35  ;;  %v18385_v3 = vsel %vm5986_vm13, %v18214_v40, %v10951_v19  ;;  %v10961_v42 = vunpack.i.h.bf16 %v20806_v10  ;;  %v20809_v40 = vld [vmem:[#allocation212_spill] sm:$0xff] }
 0x6a4   : > { %v10735_v23 = vunpack.i.l.bf16 %v20807_v31  ;;  %v18391_v2 = vsel %vm2431_vm10, %v18219_v16, %v10725_v1  ;;  %v10736_v41 = vunpack.i.h.bf16 %v20807_v31  ;;  %v10971_v63 = vunpack.i.h.bf16 %v20808_v49 }
 0x6a5   : > { %v10970_v14 = vunpack.i.l.bf16 %v20808_v49  ;;  %v18398_v24 = vsel %vm2431_vm10, %v18223_v17, %v10726_v57  ;;  %v10746_v25 = vunpack.i.h.bf16 %v20809_v40  ;;  %v10745_v34 = vunpack.i.l.bf16 %v20809_v40 }
 0x6a6   : > { %v10980_v60 = vunpack.i.l.bf16 %v20810_v12  ;;  %v6001_v16 = vsel %vm5986_vm13, %v18230_v44, %v10960_v54  ;;  %v10981_v59 = vunpack.i.h.bf16 %v20810_v12  ;;  %v10756_v7 = vunpack.i.h.bf16 %v20811_v28 }
 0x6a7   : > { %v10755_v50 = vunpack.i.l.bf16 %v20811_v28  ;;  %v6002_v17 = vsel %vm5986_vm13, %v18234_v55, %v10961_v42  ;;  %v18412_v29 = vsel %vm2431_vm10, %v18239_v5, %v10735_v23  ;;  %v10991_v19 = vunpack.i.h.bf16 %v20812_v47  ;;  %v20813_v55 = vld [vmem:[#allocation216_spill] sm:$0xff]  ;;  %v20814_v5 = vld [vmem:[#allocation31_spill] sm:$0xff] }
 0x6a8   : > { %v10990_v35 = vunpack.i.l.bf16 %v20812_v47  ;;  %v18418_v44 = vsel %vm2431_vm10, %v18243_v58, %v10736_v41  ;;  %v18422_v22 = vsel %vm5986_vm13, %v18265_v32, %v10970_v14  ;;  %v18426_v1 = vsel %vm5986_vm13, %v18269_v56, %v10971_v63  ;;  %v20817_v63 = vld [vmem:[#allocation219_spill] sm:$0xff] }
 0x6a9   : > { %v10765_v57 = vunpack.i.l.bf16 %v20813_v55  ;;  %v18432_v10 = vsel %vm2431_vm10, %v18274_v20, %v10745_v34  ;;  %v18436_v58 = vsel %vm2431_vm10, %v18278_v26, %v10746_v25  ;;  %v18440_v32 = vsel %vm5986_vm13, %v18282_v46, %v10980_v60  ;;  %v20815_v26 = vld [vmem:[#allocation218_spill] sm:$0xff]  ;;  %v20819_v25 = vld [vmem:[#allocation220_spill] sm:$0xff]  ;;  %v20820_v60 = vld [vmem:[#allocation221_spill] sm:$0xff] }
 0x6aa   : > { %8844 = vxpose.xlu0.b32.start [1/16] (narrow) %v20814_v5, 8  ;;  %v10766_v54 = vunpack.i.h.bf16 %v20813_v55  ;;  %v18445_v56 = vsel %vm5986_vm13, %v18287_v8, %v10981_v59  ;;  %v18449_v42 = vsel %vm2431_vm10, %v18291_v13, %v10755_v50  ;;  %v18453_v20 = vsel %vm2431_vm10, %v18295_v52, %v10756_v7  ;;  %v20816_v8 = vld [vmem:[#allocation217_spill] sm:$0xff]  ;;  %v20821_v7 = vld [vmem:[#allocation222_spill] sm:$0xff] }
 0x6ab   : > { %v10775_v31 = vunpack.i.l.bf16 %v20815_v26  ;;  %v18458_v46 = vsel %vm5986_vm13, %v18301_v4, %v10990_v35  ;;  %v18462_v23 = vsel %vm5986_vm13, %v18305_v11, %v10991_v19  ;;  %v11001_v41 = vunpack.i.h.bf16 %v20816_v8  ;;  %v20818_v4 = vld [vmem:[#allocation20_spill] sm:$0xff] }
 0x6ac   : > { %v10776_v49 = vunpack.i.h.bf16 %v20815_v26  ;;  %v18468_v13 = vsel %vm2507_vm11, %v18311_v48, %v10765_v57  ;;  %v11000_v52 = vunpack.i.l.bf16 %v20816_v8  ;;  %v11011_v14 = vunpack.i.h.bf16 %v20817_v63  ;;  %v20823_v57 = vld [vmem:[#allocation227_spill] sm:$0xff] }
 0x6ad   : > { %v11010_v40 = vunpack.i.l.bf16 %v20817_v63  ;;  %v18476_v11 = vsel %vm2507_vm11, %v18318_v0, %v10766_v54  ;;  %v10786_v34 = vunpack.i.h.bf16 %v20819_v25  ;;  %v10785_v12 = vunpack.i.l.bf16 %v20819_v25  ;;  %v20822_v0 = vld [vmem:[#allocation223_spill] sm:$0xff] }
 0x6ae   : > { %8845 = vxpose.xlu0.b32.cont [2/16] (narrow) %v20818_v4, 8  ;;  %v11020_v59 = vunpack.i.l.bf16 %v20820_v60  ;;  %v5925_v48 = vsel %vm2507_vm11, %v18336_v21, %v10775_v31  ;;  %v11021_v28 = vunpack.i.h.bf16 %v20820_v60  ;;  %v10796_v50 = vunpack.i.h.bf16 %v20821_v7  ;;  %v20824_v31 = vld [vmem:[#allocation229_spill] sm:$0xff]  ;;  %v20825_v4 = vld [vmem:[#allocation27_spill] sm:$0xff] }
 0x6af   : > { %v10795_v47 = vunpack.i.l.bf16 %v20821_v7  ;;  %v5926_v19 = vsel %vm2507_vm11, %v18342_v30, %v10776_v49  ;;  %v11031_v35 = vunpack.i.h.bf16 %v20822_v0  ;;  %v11030_v55 = vunpack.i.l.bf16 %v20822_v0 }
 0x6b0   : > { %v10805_v5 = vunpack.i.l.bf16 %v20823_v57  ;;  %v6022_v54 = vsel %vm6019_vm14, %v18346_v9, %v11010_v40  ;;  %v18495_v21 = vsel %vm6019_vm14, %v18350_v43, %v11011_v14  ;;  %v10806_v26 = vunpack.i.h.bf16 %v20823_v57 }
 0x6b1   : > { %v11040_v63 = vunpack.i.l.bf16 %v20824_v31  ;;  %v18502_v30 = vsel %vm2507_vm11, %v18355_v18, %v10785_v12  ;;  %v18506_v49 = vsel %vm2507_vm11, %v18359_v62, %v10786_v34  ;;  %v18510_v9 = vsel %vm6019_vm14, %v18363_v51, %v11020_v59  ;;  %v20826_v62 = vld [vmem:[#allocation230_spill] sm:$0xff] }
 0x6b2   : > { %8846 = vxpose.xlu0.b32.cont [3/16] (narrow) %v20825_v4, 8  ;;  %v11041_v43 = vunpack.i.h.bf16 %v20824_v31  ;;  %v18515_v14 = vsel %vm6019_vm14, %v18368_v27, %v11021_v28  ;;  %v18519_v40 = vsel %vm2507_vm11, %v18372_v61, %v10795_v47  ;;  %v18523_v18 = vsel %vm2507_vm11, %v18376_v15, %v10796_v50  ;;  %v20830_v47 = vld [vmem:[#allocation237_spill] sm:$0xff] }
 0x6b3   : > { %v10815_v25 = vunpack.i.l.bf16 %v20826_v62  ;;  %v18528_v51 = vsel %vm6019_vm14, %v18381_v33, %v11030_v55  ;;  %v18532_v34 = vsel %vm6019_vm14, %v18385_v3, %v11031_v35  ;;  %v18536_v27 = vsel %vm2507_vm11, %v18391_v2, %v10805_v5  ;;  %v20827_v33 = vld [vmem:[#allocation231_spill] sm:$0xff]  ;;  %v20831_v35 = vld [vmem:[#allocation238_spill] sm:$0xff] }
 0x6b4   : > { %v10816_v61 = vunpack.i.h.bf16 %v20826_v62  ;;  %v18541_v15 = vsel %vm2507_vm11, %v18398_v24, %v10806_v26  ;;  %v18544_v12 = vsel %vm6019_vm14, %v6001_v16, %v11040_v63  ;;  %v11051_v60 = vunpack.i.h.bf16 %v20827_v33  ;;  %v20828_v3 = vld [vmem:[#allocation19_spill] sm:$0xff] }
 0x6b5   : > { %v11050_v59 = vunpack.i.l.bf16 %v20827_v33  ;;  %v18550_v28 = vsel %vm6019_vm14, %v6002_v17, %v11041_v43  ;;  %v20829_v2 = vld [vmem:[#allocation235_spill] sm:$0xff]  ;;  %v11060_v0 = vunpack.i.l.bf16 %v20830_v47  ;;  %v18557_v24 = vsel %vm2507_vm11, %v18412_v29, %v10815_v25  ;;  %v20834_v25 = vld [vmem:[#allocation246_spill] sm:$0xff] }
 0x6b6   : > { %8847 = vxpose.xlu0.b32.cont [4/16] (narrow) %v20828_v3, 8  ;;  %v10826_v7 = vunpack.i.h.bf16 %v20829_v2  ;;  %v10825_v50 = vunpack.i.l.bf16 %v20829_v2  ;;  %v11061_v16 = vunpack.i.h.bf16 %v20830_v47  ;;  %v10836_v55 = vunpack.i.h.bf16 %v20831_v35  ;;  %v20832_v5 = vld [vmem:[#allocation239_spill] sm:$0xff] }
 0x6b7   : > { %v10835_v57 = vunpack.i.l.bf16 %v20831_v35  ;;  %v18564_v17 = vsel %vm2507_vm11, %v18418_v44, %v10816_v61  ;;  %v11071_v26 = vunpack.i.h.bf16 %v20832_v5  ;;  %v11070_v31 = vunpack.i.l.bf16 %v20832_v5  ;;  %v20833_v63 = vld [vmem:[#allocation243_spill] sm:$0xff] }
 0x6b8   : > { %v10845_v4 = vunpack.i.l.bf16 %v20833_v63  ;;  %v18571_v29 = vsel %vm6019_vm14, %v18422_v22, %v11050_v59  ;;  %v18575_v43 = vsel %vm6019_vm14, %v18426_v1, %v11051_v60  ;;  %v10846_v62 = vunpack.i.h.bf16 %v20833_v63  ;;  %v20835_v44 = vld [vmem:[#allocation39_spill] sm:$0xff] }
 0x6b9   : > { %v10855_v33 = vunpack.i.l.bf16 %v20834_v25  ;;  %v18582_v61 = vsel %vm2507_vm11, %v18432_v10, %v10825_v50  ;;  %v18586_v3 = vsel %vm2507_vm11, %v18436_v58, %v10826_v7  ;;  %v18590_v22 = vsel %vm6019_vm14, %v18440_v32, %v11060_v0  ;;  %v20836_v58 = vld [vmem:[#allocation247_spill] sm:$0xff] }
 0x6ba   : > { %8848 = vxpose.xlu0.b32.cont [5/16] (narrow) %v20835_v44, 8  ;;  %v10856_v1 = vunpack.i.h.bf16 %v20834_v25  ;;  %v18595_v60 = vsel %vm6019_vm14, %v18445_v56, %v11061_v16  ;;  %v18599_v59 = vsel %vm2507_vm11, %v18449_v42, %v10835_v57  ;;  %v18603_v10 = vsel %vm2507_vm11, %v18453_v20, %v10836_v55  ;;  %v20837_v47 = vld [vmem:[#allocation251_spill] sm:$0xff]  ;;  %v20838_v16 = vld [vmem:[#allocation24_spill] sm:$0xff]  ;;  %v20840_v57 = vld [vmem:[#allocation254_spill] sm:$0xff] }
 0x6bb   : > { %v11090_v2 = vunpack.i.l.bf16 %v20836_v58  ;;  %v18608_v32 = vsel %vm6019_vm14, %v18458_v46, %v11070_v31  ;;  %v18612_v7 = vsel %vm6019_vm14, %v18462_v23, %v11071_v26  ;;  %v18616_v56 = vsel %vm5953_vm12, %v18468_v13, %v10845_v4  ;;  %v20839_v13 = vld [vmem:[#allocation253_spill] sm:$0xff]  ;;  %v20841_v26 = vld [vmem:[#allocation255_spill] sm:$0xff] }
 0x6bc   : > { %v11091_v42 = vunpack.i.h.bf16 %v20836_v58  ;;  %v18621_v20 = vsel %vm5953_vm12, %v18476_v11, %v10846_v62  ;;  %v18624_v50 = vsel %vm5953_vm12, %v5925_v48, %v10855_v33  ;;  %v10866_v46 = vunpack.i.h.bf16 %v20837_v47  ;;  %v20843_v33 = vld [vmem:[#allocation261_spill] sm:$0xff] }
 0x6bd   : > { %v10865_v0 = vunpack.i.l.bf16 %v20837_v47  ;;  %v18630_v23 = vsel %vm5953_vm12, %v5926_v19, %v10856_v1  ;;  %v11101_v35 = vunpack.i.h.bf16 %v20839_v13  ;;  %v11100_v55 = vunpack.i.l.bf16 %v20839_v13  ;;  %v20842_v19 = vld [vmem:[#allocation259_spill] sm:$0xff] }
 0x6be   : > { %8849 = vxpose.xlu0.b32.cont [6/16] (narrow) %v20838_v16, 8  ;;  %v10875_v5 = vunpack.i.l.bf16 %v20840_v57  ;;  %v18636_v11 = vsel %vm6052_vm15, %v6022_v54, %v11090_v2  ;;  %v10876_v48 = vunpack.i.h.bf16 %v20840_v57  ;;  %v11111_v31 = vunpack.i.h.bf16 %v20841_v26  ;;  %v20844_v2 = vld [vmem:[#allocation262_spill] sm:$0xff]  ;;  %v20848_v57 = vld [vmem:[#allocation267_spill] sm:$0xff] }
 0x6bf   : > { %v11110_v63 = vunpack.i.l.bf16 %v20841_v26  ;;  %v18643_v4 = vsel %vm6052_vm15, %v18495_v21, %v11091_v42  ;;  %v10886_v62 = vunpack.i.h.bf16 %v20842_v19  ;;  %v10885_v25 = vunpack.i.l.bf16 %v20842_v19  ;;  %v20845_v21 = vld [vmem:[#allocation37_spill] sm:$0xff] }
 0x6c0   : > { %v11120_v44 = vunpack.i.l.bf16 %v20843_v33  ;;  %v18650_v54 = vsel %vm5953_vm12, %v18502_v30, %v10865_v0  ;;  %v18654_v1 = vsel %vm5953_vm12, %v18506_v49, %v10866_v46  ;;  %v11121_v58 = vunpack.i.h.bf16 %v20843_v33  ;;  %v20850_v26 = vld [vmem:[#allocation269_spill] sm:$0xff] }
 0x6c1   : > { %v10895_v47 = vunpack.i.l.bf16 %v20844_v2  ;;  %v18661_v42 = vsel %vm6052_vm15, %v18510_v9, %v11100_v55  ;;  %v18665_v16 = vsel %vm6052_vm15, %v18515_v14, %v11101_v35  ;;  %v18669_v30 = vsel %vm5953_vm12, %v18519_v40, %v10875_v5  ;;  %v20846_v14 = vld [vmem:[#allocation263_spill] sm:$0xff]  ;;  %v20847_v55 = vld [vmem:[#allocation8_spill] sm:$0xff] }
 0x6c2   : > { %8850 = vxpose.xlu0.b32.cont [7/16] (narrow) %v20845_v21, 8  ;;  %v10896_v49 = vunpack.i.h.bf16 %v20844_v2  ;;  %v18674_v46 = vsel %vm5953_vm12, %v18523_v18, %v10876_v48  ;;  %v18678_v0 = vsel %vm6052_vm15, %v18528_v51, %v11110_v63  ;;  %v18682_v9 = vsel %vm6052_vm15, %v18532_v34, %v11111_v31  ;;  %v20849_v48 = vld [vmem:[#allocation23_spill] sm:$0xff]  ;;  %v20854_v21 = vld [vmem:[#allocation278_spill] sm:$0xff] }
 0x6c3   : > { %v11130_v13 = vunpack.i.l.bf16 %v20846_v14  ;;  %v18687_v40 = vsel %vm5953_vm12, %v18536_v27, %v10885_v25  ;;  %v18691_v35 = vsel %vm5953_vm12, %v18541_v15, %v10886_v62  ;;  %v18695_v18 = vsel %vm6052_vm15, %v18544_v12, %v11120_v44  ;;  %v20852_v25 = vld [vmem:[#allocation271_spill] sm:$0xff] }
 0x6c4   : > { %v11131_v51 = vunpack.i.h.bf16 %v20846_v14  ;;  %v18701_v34 = vsel %vm6052_vm15, %v18550_v28, %v11121_v58  ;;  %v18705_v27 = vsel %vm5953_vm12, %v18557_v24, %v10895_v47  ;;  %v10906_v5 = vunpack.i.h.bf16 %v20848_v57  ;;  %v20851_v28 = vld [vmem:[#allocation270_spill] sm:$0xff]  ;;  %v20853_v58 = vld [vmem:[#allocation275_spill] sm:$0xff] }
 0x6c5   : > { %v10905_v15 = vunpack.i.l.bf16 %v20848_v57  ;;  %v18712_v12 = vsel %vm5953_vm12, %v18564_v17, %v10896_v49  ;;  %v11141_v31 = vunpack.i.h.bf16 %v20850_v26  ;;  %v11140_v63 = vunpack.i.l.bf16 %v20850_v26  ;;  %v20855_v14 = vld [vmem:[#allocation7_spill] sm:$0xff]  ;;  %v20857_v57 = vld [vmem:[#allocation41_spill] sm:$0xff] }
 0x6c6   : > { %8812 = vxpose.xlu1.b32.start [1/16] (narrow) %v20847_v55, 8  ;;  %8851 = vxpose.xlu0.b32.cont [8/16] (narrow) %v20849_v48, 8  ;;  %v10916_v19 = vunpack.i.h.bf16 %v20851_v28  ;;  %v18719_v24 = vsel %vm6052_vm15, %v18571_v29, %v11130_v13  ;;  %v10915_v62 = vunpack.i.l.bf16 %v20851_v28  ;;  %v11151_v33 = vunpack.i.h.bf16 %v20852_v25  ;;  %v20859_v28 = vld [vmem:[#allocation5_spill] sm:$0xff] }
 0x6c7   : > { %v11150_v44 = vunpack.i.l.bf16 %v20852_v25  ;;  %v18726_v17 = vsel %vm6052_vm15, %v18575_v43, %v11131_v51  ;;  %v10926_v2 = vunpack.i.h.bf16 %v20853_v58  ;;  %v10925_v47 = vunpack.i.l.bf16 %v20853_v58  ;;  %v20856_v43 = vld [vmem:[#allocation279_spill] sm:$0xff]  ;;  %v20861_v25 = vld [vmem:[#allocation30_spill] sm:$0xff]  ;;  %v20863_v58 = vld [vmem:[#allocation316_spill] sm:$0xff] }
 0x6c8   : > { %v10936_v49 = vunpack.i.h.bf16 %v20854_v21  ;;  %v18734_v29 = vsel %vm5953_vm12, %v18582_v61, %v10905_v15  ;;  %v18738_v13 = vsel %vm5953_vm12, %v18586_v3, %v10906_v5  ;;  %v10935_v55 = vunpack.i.l.bf16 %v20854_v21  ;;  %v20864_v21 = vld [vmem:[#allocation332_spill] sm:$0xff] }
 0x6c9   : > { %v11170_v51 = vunpack.i.l.bf16 %v20856_v43  ;;  %v18745_v48 = vsel %vm6052_vm15, %v18590_v22, %v11140_v63  ;;  %v18749_v26 = vsel %vm6052_vm15, %v18595_v60, %v11141_v31  ;;  %v18753_v61 = vsel %vm5953_vm12, %v18603_v10, %v10916_v19  ;;  %v20858_v60 = vld [vmem:[#allocation283_spill] sm:$0xff] }
 0x6ca   : > { %8813 = vxpose.xlu1.b32.cont [2/16] (narrow) %v20855_v14, 8  ;;  %8852 = vxpose.xlu0.b32.cont [9/16] (narrow) %v20857_v57, 8  ;;  %v11171_v3 = vunpack.i.h.bf16 %v20856_v43  ;;  %v18758_v5 = vsel %vm5953_vm12, %v18599_v59, %v10915_v62  ;;  %v18762_v15 = vsel %vm6052_vm15, %v18608_v32, %v11150_v44  ;;  %v18766_v22 = vsel %vm6052_vm15, %v18612_v7, %v11151_v33  ;;  %v20862_v33 = vld [vmem:[#allocation285_spill] sm:$0xff] }
 0x6cb   : > { %v10946_v31 = vunpack.i.h.bf16 %v20858_v60  ;;  %v5988_v10 = vsel %vm5986_vm13, %v18621_v20, %v10926_v2  ;;  %v5987_v63 = vsel %vm5986_vm13, %v18616_v56, %v10925_v47  ;;  %v18775_v59 = vsel %vm5986_vm13, %v18630_v23, %v10936_v49  ;;  %v20860_v20 = vld [vmem:[#allocation300_spill] sm:$0xff] }
 0x6cc   : > { %v10945_v32 = vunpack.i.l.bf16 %v20858_v60  ;;  %v18781_v7 = vsel %vm5986_vm13, %v18624_v50, %v10935_v55  ;;  %v18785_v19 = vsel %vm6085_vm0, %v18636_v11, %v11170_v51  ;;  %v11006_v62 = vunpack.i.h.bf16 %v20860_v20  ;;  %v20865_v55 = vld [vmem:[#allocation286_spill] sm:$0xff]  ;;  %v20866_v51 = vld [vmem:[#allocation32_spill] sm:$0xff] }
 0x6cd   : > { %v11005_v56 = vunpack.i.l.bf16 %v20860_v20  ;;  %v18792_v23 = vsel %vm6085_vm0, %v18643_v4, %v11171_v3  ;;  %v11181_v44 = vunpack.i.h.bf16 %v20862_v33  ;;  %v11086_v2 = vunpack.i.h.bf16 %v20863_v58  ;;  %v20867_v60 = vld [vmem:[#allocation6_spill] sm:$0xff] }
 0x6ce   : > { %8814 = vxpose.xlu1.b32.cont [3/16] (narrow) %v20859_v28, 8  ;;  %8853 = vxpose.xlu0.b32.cont [10/16] (narrow) %v20861_v25, 8  ;;  %v11085_v50 = vunpack.i.l.bf16 %v20863_v58  ;;  %v18799_v11 = vsel %vm5986_vm13, %v18654_v1, %v10946_v31  ;;  %v11180_v47 = vunpack.i.l.bf16 %v20862_v33  ;;  %v11166_v49 = vunpack.i.h.bf16 %v20864_v21  ;;  %v20868_v31 = vld [vmem:[#allocation287_spill] sm:$0xff]  ;;  %v20869_v33 = vld [vmem:[#allocation40_spill] sm:$0xff] }
 0x6cf   : > { %v11165_v14 = vunpack.i.l.bf16 %v20864_v21  ;;  %v18806_v4 = vsel %vm5986_vm13, %v18650_v54, %v10945_v32  ;;  %v10956_v43 = vunpack.i.h.bf16 %v20865_v55  ;;  %v11246_v57 = vunpack.i.h.bf16 %v20866_v51 }
 0x6d0   : > { %v11245_v3 = vunpack.i.l.bf16 %v20866_v51  ;;  %v10955_v1 = vunpack.i.l.bf16 %v20865_v55  ;;  %v11191_v28 = vunpack.i.h.bf16 %v20868_v31  ;;  %v6020_v20 = vsel %vm6019_vm14, %v5987_v63, %v11005_v56 }
 0x6d1   : > { %v6021_v25 = vsel %vm6019_vm14, %v5988_v10, %v11006_v62  ;;  %v11190_v54 = vunpack.i.l.bf16 %v20868_v31  ;;  %v6053_v32 = vsel %vm6052_vm15, %v6020_v20, %v11085_v50  ;;  %v11964_v21 = vpop.permute.xlu1 %11963  ;;  %v10966_v63 = vunpack.i.h.bf16 %v20870_v37  ;;  %v20871_v31 = vld [vmem:[#allocation12_spill] sm:$0xff]  ;;  %v20872_v50 = vld [vmem:[#allocation293_spill] sm:$0xff] }
 0x6d2   : > { %8815 = vxpose.xlu1.b32.cont [4/16] (narrow) %v20867_v60, 8  ;;  %8854 = vxpose.xlu0.b32.cont [11/16] (narrow) %v20869_v33, 8  ;;  %v6054_v58 = vsel %vm6052_vm15, %v6021_v25, %v11086_v2  ;;  %v6086_v51 = vsel %vm6085_vm0, %v6053_v32, %v11165_v14  ;;  %v11966_v60 = vunpack.i.h.bf16 %v11964_v21  ;;  %v11965_v45 = vunpack.i.l.bf16 %v11964_v21  ;;  %v20873_v25 = vld [vmem:[#allocation28_spill] sm:$0xff]  ;;  %v20874_v33 = vld [vmem:[#allocation294_spill] sm:$0xff]  ;;  %v20875_v21 = vld [vmem:[#allocation295_spill] sm:$0xff] }
 0x6d3   : > { %v6087_v55 = vsel %vm6085_vm0, %v6054_v58, %v11166_v49  ;;  %v10965_v10 = vunpack.i.l.bf16 %v20870_v37  ;;  %v6119_v62 = vsel %vm6118_vm1, %v6086_v51, %v11245_v3  ;;  %v11200_v2 = vunpack.i.l.bf16 %v20872_v50 }
 0x6d4   : > { %v6120_v56 = vsel %vm6118_vm1, %v6087_v55, %v11246_v57  ;;  %v7560_v14 = vsel %vm7559_vm2, %v6119_v62, %v11965_v45  ;;  %v11201_v49 = vunpack.i.h.bf16 %v20872_v50  ;;  %v10976_v32 = vunpack.i.h.bf16 %v20874_v33  ;;  %v20876_v55 = vld [vmem:[#allocation245_spill] sm:$0xff] }
 0x6d5   : > { %v7561_v20 = vsel %vm7559_vm2, %v6120_v56, %v11966_v60  ;;  %v10975_v37 = vunpack.i.l.bf16 %v20874_v33  ;;  %v18836_v57 = vsel %vm6085_vm0, %v18661_v42, %v11180_v47  ;;  %v18840_v58 = vsel %vm6085_vm0, %v18665_v16, %v11181_v44  ;;  %v20877_v16 = vld [vmem:[#allocation10_spill] sm:$0xff]  ;;  %v20878_v47 = vld [vmem:[#allocation43_spill] sm:$0xff] }
 0x6d6   : > { %8816 = vxpose.xlu1.b32.cont [5/16] (narrow) %v20871_v31, 8  ;;  %8855 = vxpose.xlu0.b32.cont [12/16] (narrow) %v20873_v25, 8  ;;  %v7592_v3 = vpack.c.bf16 %v7561_v20, %v7560_v14  ;;  %v11211_v45 = vunpack.i.h.bf16 %v20875_v21  ;;  %v11210_v51 = vunpack.i.l.bf16 %v20875_v21  ;;  %v11081_v60 = vunpack.i.h.bf16 %v20876_v55  ;;  %v11974_v20 = vpop.permute.xlu1 %11973  ;;  %v20883_v14 = vld [vmem:[#allocation11_spill] sm:$0xff] }
 0x6d7   : > { %v18847_v62 = vsel %vm5986_vm13, %v18674_v46, %v10956_v43  ;;  %v18851_v56 = vsel %vm5986_vm13, %v18669_v30, %v10955_v1  ;;  %v18855_v42 = vsel %vm6085_vm0, %v18678_v0, %v11190_v54  ;;  %v18861_v44 = vsel %vm6085_vm0, %v18682_v9, %v11191_v28 }
 0x6d8   : > { %9384 = vmatprep.mubr.msk.bf16.mxu0 %vm7667_vm3, %v7592_v3  ;;  %v18865_v46 = vsel %vm5986_vm13, %v18691_v35, %v10966_v63  ;;  %v18869_v30 = vsel %vm5986_vm13, %v18687_v40, %v10965_v10  ;;  %v18873_v0 = vsel %vm6085_vm0, %v18695_v18, %v11200_v2  ;;  %v18878_v43 = vsel %vm6085_vm0, %v18701_v34, %v11201_v49  ;;  %v20879_v40 = vld [vmem:[#allocation296_spill] sm:$0xff]  ;;  %v20880_v34 = vld [vmem:[#allocation302_spill] sm:$0xff]  ;;  %v20881_v10 = vld [vmem:[#allocation297_spill] sm:$0xff] }
 0x6d9   : > { %v18882_v9 = vsel %vm5986_vm13, %v18712_v12, %v10976_v32  ;;  %v18886_v35 = vsel %vm5986_vm13, %v18705_v27, %v10975_v37  ;;  %v10986_v1 = vunpack.i.h.bf16 %v20879_v40  ;;  %v18891_v18 = vsel %vm6085_vm0, %v18719_v24, %v11210_v51  ;;  %v20882_v27 = vld [vmem:[#allocation318_spill] sm:$0xff]  ;;  %v20884_v24 = vld [vmem:[#allocation303_spill] sm:$0xff] }
 0x6da   : > { %8817 = vxpose.xlu1.b32.cont [6/16] (narrow) %v20877_v16, 8  ;;  %8856 = vxpose.xlu0.b32.cont [13/16] (narrow) %v20878_v47, 8  ;;  %v18895_v28 = vsel %vm6085_vm0, %v18726_v17, %v11211_v45  ;;  %v11016_v54 = vunpack.i.h.bf16 %v20880_v34  ;;  %v11015_v63 = vunpack.i.l.bf16 %v20880_v34  ;;  %v10985_v12 = vunpack.i.l.bf16 %v20879_v40  ;;  %v20885_v49 = vld [vmem:[#allocation335_spill] sm:$0xff]  ;;  %v20886_v37 = vld [vmem:[#allocation38_spill] sm:$0xff] }
 0x6db   : > { %v11220_v31 = vunpack.i.l.bf16 %v20881_v10  ;;  %v11096_v50 = vunpack.i.h.bf16 %v20882_v27  ;;  %v11095_v2 = vunpack.i.l.bf16 %v20882_v27  ;;  %v11251_v25 = vunpack.i.h.bf16 %v20884_v24  ;;  %v20887_v45 = vld [vmem:[#allocation34_spill] sm:$0xff] }
 0x6dc   : > { %v11250_v17 = vunpack.i.l.bf16 %v20884_v24  ;;  %v11176_v33 = vunpack.i.h.bf16 %v20885_v49  ;;  %v11175_v32 = vunpack.i.l.bf16 %v20885_v49  ;;  %v18911_v3 = vsel %vm5986_vm13, %v18738_v13, %v10986_v1  ;;  %v20888_v24 = vld [vmem:[#allocation9_spill] sm:$0xff] }
 0x6dd   : > { %v11221_v21 = vunpack.i.h.bf16 %v20881_v10  ;;  %v11256_v51 = vunpack.i.h.bf16 %v20887_v45  ;;  %v11255_v16 = vunpack.i.l.bf16 %v20887_v45  ;;  %v6024_v47 = vsel %vm6019_vm14, %v18781_v7, %v11015_v63  ;;  %v20889_v63 = vld [vmem:[#allocation42_spill] sm:$0xff] }
 0x6de   : > { %8818 = vxpose.xlu1.b32.cont [7/16] (narrow) %v20883_v14, 8  ;;  %8857 = vxpose.xlu0.b32.cont [14/16] (narrow) %v20886_v37, 8  ;;  %v6025_v40 = vsel %vm6019_vm14, %v18775_v59, %v11016_v54  ;;  %v11976_v34 = vunpack.i.h.bf16 %v11974_v20  ;;  %v11975_v27 = vunpack.i.l.bf16 %v11974_v20  ;;  %v18922_v14 = vsel %vm5986_vm13, %v18734_v29, %v10985_v12  ;;  %v20890_v20 = vld [vmem:[#allocation304_spill] sm:$0xff] }
 0x6df   : > { %v18926_v13 = vsel %vm6085_vm0, %v18745_v48, %v11220_v31  ;;  %v6057_v1 = vsel %vm6052_vm15, %v6024_v47, %v11095_v2  ;;  %v6058_v10 = vsel %vm6052_vm15, %v6025_v40, %v11096_v50  ;;  %v6121_v7 = vsel %vm6118_vm1, %v18785_v19, %v11250_v17 }
 0x6e0   : > { %v6122_v59 = vsel %vm6118_vm1, %v18792_v23, %v11251_v25  ;;  %v6090_v54 = vsel %vm6085_vm0, %v6057_v1, %v11175_v32  ;;  %v6091_v29 = vsel %vm6085_vm0, %v6058_v10, %v11176_v33  ;;  %v11969_v48 = vpop.permute.xlu0 %11968  ;;  %v11026_v49 = vunpack.i.h.bf16 %v20890_v20  ;;  %v20891_v25 = vld [vmem:[#allocation305_spill] sm:$0xff]  ;;  %v20894_v1 = vld [vmem:[#allocation338_spill] sm:$0xff] }
 0x6e1   : > { %v6123_v12 = vsel %vm6118_vm1, %v6090_v54, %v11255_v16  ;;  %v6124_v31 = vsel %vm6118_vm1, %v6091_v29, %v11256_v51  ;;  %v11971_v50 = vunpack.i.h.bf16 %v11969_v48  ;;  %v11970_v2 = vunpack.i.l.bf16 %v11969_v48  ;;  %v20892_v16 = vld [vmem:[#allocation18_spill] sm:$0xff]  ;;  %v20893_v51 = vld [vmem:[#allocation320_spill] sm:$0xff] }
 0x6e2   : > { %8819 = vxpose.xlu1.b32.cont [8/16] (narrow) %v20888_v24, 8  ;;  %8858 = vxpose.xlu0.b32.cont [15/16] (narrow) %v20889_v63, 8  ;;  %v11025_v19 = vunpack.i.l.bf16 %v20890_v20  ;;  %v7565_v17 = vsel %vm7559_vm2, %v6124_v31, %v11976_v34  ;;  %v7564_v23 = vsel %vm7559_vm2, %v6123_v12, %v11975_v27  ;;  %v11261_v32 = vunpack.i.h.bf16 %v20891_v25  ;;  %v11984_v24 = vpop.permute.xlu1 %11983  ;;  %v20895_v54 = vld [vmem:[#allocation36_spill] sm:$0xff]  ;;  %v20896_v12 = vld [vmem:[#allocation298_spill] sm:$0xff] }
 0x6e3   : > { %v11260_v33 = vunpack.i.l.bf16 %v20891_v25  ;;  %v7562_v37 = vsel %vm7559_vm2, %v6121_v7, %v11970_v2  ;;  %v7563_v45 = vsel %vm7559_vm2, %v6122_v59, %v11971_v50  ;;  %v11106_v47 = vunpack.i.h.bf16 %v20893_v51  ;;  %v20897_v50 = vld [vmem:[#allocation357_spill] sm:$0xff] }
 0x6e4   : > { %v11105_v40 = vunpack.i.l.bf16 %v20893_v51  ;;  %v11186_v10 = vunpack.i.h.bf16 %v20894_v1  ;;  %v7593_v34 = vpack.c.bf16 %v7563_v45, %v7562_v37  ;;  %v11979_v27 = vpop.permute.xlu0 %11978  ;;  %v11185_v29 = vunpack.i.l.bf16 %v20894_v1  ;;  %v20898_v45 = vld [vmem:[#allocation14_spill] sm:$0xff] }
 0x6e5   : > { %v7594_v63 = vpack.c.bf16 %v7565_v17, %v7564_v23  ;;  %v11981_v48 = vunpack.i.h.bf16 %v11979_v27  ;;  %v11980_v7 = vunpack.i.l.bf16 %v11979_v27  ;;  %v18956_v59 = vsel %vm6085_vm0, %v18749_v26, %v11221_v21 }
 0x6e6   : > { %8820 = vxpose.xlu1.b32.cont [9/16] (narrow) %v20892_v16, 8  ;;  %8859 = vxpose.xlu0.b32.end [16/16] (narrow) %v20895_v54, 8  ;;  %v10996_v31 = vunpack.i.h.bf16 %v20896_v12  ;;  %v11266_v2 = vunpack.i.h.bf16 %v20897_v50  ;;  %v11265_v20 = vunpack.i.l.bf16 %v20897_v50  ;;  %v6028_v25 = vsel %vm6019_vm14, %v18806_v4, %v11025_v19  ;;  %v20899_v4 = vld [vmem:[#allocation79_spill] sm:$0xff] }
 0x6e7   : > { %9385 = vmatmul.mubr.msk.bf16.vlgmr.msra.gmra.mrb[32].mxu0 %vm7667_vm3, %v7593_v34  ;;  %v6029_v17 = vsel %vm6019_vm14, %v18799_v11, %v11026_v49  ;;  %v11986_v23 = vunpack.i.h.bf16 %v11984_v24  ;;  %v11985_v37 = vunpack.i.l.bf16 %v11984_v24  ;;  %v6125_v26 = vsel %vm6118_vm1, %v18836_v57, %v11260_v33  ;;  %v20901_v33 = vld [vmem:[#allocation306_spill] sm:$0xff]  ;;  %v20902_v54 = vld [vmem:[#allocation307_spill] sm:$0xff] }
 0x6e8   : > { %9388 = vmatprep.mubr.msk.bf16.mxu0 %vm7667_vm3, %v7594_v63  ;;  %v6126_v21 = vsel %vm6118_vm1, %v18840_v58, %v11261_v32  ;;  %v6061_v16 = vsel %vm6052_vm15, %v6028_v25, %v11105_v40  ;;  %v6062_v51 = vsel %vm6052_vm15, %v6029_v17, %v11106_v47  ;;  %v20900_v19 = vmax.f32 %v20899_v4, 0.0  ;;  %v11989_v47 = vpop.permute.xlu0 %11988  ;;  %v20903_v63 = vld [vmem:[#allocation15_spill] sm:$0xff]  ;;  %v20908_v4 = vld [vmem:[#allocation49_spill] sm:$0xff] }
 0x6e9   : > { %v6094_v11 = vsel %vm6085_vm0, %v6061_v16, %v11185_v29  ;;  %v6095_v49 = vsel %vm6085_vm0, %v6062_v51, %v11186_v10  ;;  %v7566_v1 = vsel %vm7559_vm2, %v6125_v26, %v11980_v7  ;;  %v7567_v24 = vsel %vm7559_vm2, %v6126_v21, %v11981_v48  ;;  %v20904_v7 = vld [vmem:[#allocation322_spill] sm:$0xff]  ;;  %v20907_v26 = vld [vmem:[#allocation341_spill] sm:$0xff] }
 0x6ea   : > { %8821 = vxpose.xlu1.b32.cont [10/16] (narrow) %v20898_v45, 8  ;;  %8878 = vxpose.xlu0.b32.start [1/16] (narrow) %v20900_v19, 8  ;;  %v10995_v57 = vunpack.i.l.bf16 %v20896_v12  ;;  %v11035_v34 = vunpack.i.l.bf16 %v20901_v33  ;;  %v6127_v58 = vsel %vm6118_vm1, %v6094_v11, %v11265_v20  ;;  %v6128_v32 = vsel %vm6118_vm1, %v6095_v49, %v11266_v2  ;;  %v20905_v2 = vld [vmem:[#allocation82_spill] sm:$0xff] }
 0x6eb   : > { %v11036_v40 = vunpack.i.h.bf16 %v20901_v33  ;;  %v11270_v27 = vunpack.i.l.bf16 %v20902_v54  ;;  %v7569_v29 = vsel %vm7559_vm2, %v6128_v32, %v11986_v23  ;;  %v7568_v10 = vsel %vm7559_vm2, %v6127_v58, %v11985_v37  ;;  %v20909_v32 = vld [vmem:[#allocation13_spill] sm:$0xff] }
 0x6ec   : > { %v11271_v48 = vunpack.i.h.bf16 %v20902_v54  ;;  %v11116_v50 = vunpack.i.h.bf16 %v20904_v7  ;;  %v11115_v25 = vunpack.i.l.bf16 %v20904_v7  ;;  %v7595_v20 = vpack.c.bf16 %v7567_v24, %v7566_v1 }
 0x6ed   : > { %v11994_v17 = vpop.permute.xlu1 %11993  ;;  %v20906_v45 = vmax.f32 %v20905_v2, 0.0  ;;  %v11196_v21 = vunpack.i.h.bf16 %v20907_v26  ;;  %v11195_v16 = vunpack.i.l.bf16 %v20907_v26  ;;  %v11991_v23 = vunpack.i.h.bf16 %v11989_v47 }
 0x6ee   : > { %8822 = vxpose.xlu1.b32.cont [11/16] (narrow) %v20903_v63, 8  ;;  %v11990_v51 = vunpack.i.l.bf16 %v11989_v47  ;;  %v6032_v37 = vsel %vm6019_vm14, %v18851_v56, %v11035_v34  ;;  %v11276_v19 = vunpack.i.h.bf16 %v20908_v4  ;;  %v11275_v11 = vunpack.i.l.bf16 %v20908_v4  ;;  %v20910_v34 = vld [vmem:[#allocation308_spill] sm:$0xff]  ;;  %v20916_v4 = vld [vmem:[#allocation81_spill] sm:$0xff] }
 0x6ef   : > { %8879 = vxpose.xlu0.b32.cont [2/16] (narrow) %v20906_v45, 8  ;;  %v7596_v49 = vpack.c.bf16 %v7569_v29, %v7568_v10  ;;  %9389 = vmatmul.mubr.msk.bf16.gmra.mrb[36].mxu0 %vm7667_vm3, %v7595_v20  ;;  %v6033_v1 = vsel %vm6019_vm14, %v18847_v62, %v11036_v40  ;;  %v6129_v24 = vsel %vm6118_vm1, %v18855_v42, %v11270_v27  ;;  %v11996_v33 = vunpack.i.h.bf16 %v11994_v17  ;;  %v20911_v10 = vld [vmem:[#allocation78_spill] sm:$0xff]  ;;  %v20913_v20 = vld [vmem:[#allocation309_spill] sm:$0xff] }
 0x6f0   : > { %v11995_v58 = vunpack.i.l.bf16 %v11994_v17  ;;  %v6130_v56 = vsel %vm6118_vm1, %v18861_v44, %v11271_v48  ;;  %v11045_v47 = vunpack.i.l.bf16 %v20910_v34  ;;  %v6065_v54 = vsel %vm6052_vm15, %v6032_v37, %v11115_v25  ;;  %v11999_v25 = vpop.permute.xlu0 %11998 }
 0x6f1   : > { %v6066_v29 = vsel %vm6052_vm15, %v6033_v1, %v11116_v50  ;;  %9392 = vmatprep.mubr.msk.bf16.mxu0 %vm7667_vm3, %v7596_v49  ;;  %v20912_v62 = vmax.f32 %v20911_v10, 0.0  ;;  %v6098_v42 = vsel %vm6085_vm0, %v6065_v54, %v11195_v16  ;;  %v7570_v27 = vsel %vm7559_vm2, %v6129_v24, %v11990_v51 }
 0x6f2   : > { %8823 = vxpose.xlu1.b32.cont [12/16] (narrow) %v20909_v32, 8  ;;  %v6099_v40 = vsel %vm6085_vm0, %v6066_v29, %v11196_v21  ;;  %v7571_v63 = vsel %vm7559_vm2, %v6130_v56, %v11991_v23  ;;  %v19020_v44 = vsel %vm5986_vm13, %v18758_v5, %v10995_v57  ;;  %v11046_v48 = vunpack.i.h.bf16 %v20910_v34  ;;  %v20914_v21 = vld [vmem:[#allocation22_spill] sm:$0xff]  ;;  %v20915_v57 = vld [vmem:[#allocation324_spill] sm:$0xff]  ;;  %v20919_v32 = vld [vmem:[#allocation51_spill] sm:$0xff] }
 0x6f3   : > { %8880 = vxpose.xlu0.b32.cont [3/16] (narrow) %v20912_v62, 8  ;;  %v6131_v7 = vsel %vm6118_vm1, %v6098_v42, %v11275_v11  ;;  %v6132_v50 = vsel %vm6118_vm1, %v6099_v40, %v11276_v19  ;;  %v11281_v17 = vunpack.i.h.bf16 %v20913_v20  ;;  %v11280_v2 = vunpack.i.l.bf16 %v20913_v20  ;;  %v20918_v11 = vld [vmem:[#allocation343_spill] sm:$0xff]  ;;  %v20920_v62 = vld [vmem:[#allocation17_spill] sm:$0xff]  ;;  %v20921_v42 = vld [vmem:[#allocation310_spill] sm:$0xff] }
 0x6f4   : > { %v7573_v45 = vsel %vm7559_vm2, %v6132_v50, %v11996_v33  ;;  %v7572_v26 = vsel %vm7559_vm2, %v6131_v7, %v11995_v58  ;;  %v6036_v5 = vsel %vm6019_vm14, %v18869_v30, %v11045_v47  ;;  %v11126_v16 = vunpack.i.h.bf16 %v20915_v57  ;;  %v20924_v20 = vld [vmem:[#allocation311_spill] sm:$0xff] }
 0x6f5   : > { %v11125_v23 = vunpack.i.l.bf16 %v20915_v57  ;;  %v7597_v51 = vpack.c.bf16 %v7571_v63, %v7570_v27  ;;  %v12004_v37 = vpop.permute.xlu1 %12003  ;;  %v20917_v19 = vmax.f32 %v20916_v4, 0.0  ;;  %v11206_v49 = vunpack.i.h.bf16 %v20918_v11 }
 0x6f6   : > { %8824 = vxpose.xlu1.b32.cont [13/16] (narrow) %v20914_v21, 8  ;;  %v11205_v1 = vunpack.i.l.bf16 %v20918_v11  ;;  %v12001_v24 = vunpack.i.h.bf16 %v11999_v25  ;;  %v12000_v33 = vunpack.i.l.bf16 %v11999_v25  ;;  %v6037_v58 = vsel %vm6019_vm14, %v18865_v46, %v11046_v48  ;;  %v20922_v48 = vld [vmem:[#allocation90_spill] sm:$0xff]  ;;  %v12009_v21 = vpop.permute.xlu0 %12008 }
 0x6f7   : > { %8881 = vxpose.xlu0.b32.cont [4/16] (narrow) %v20917_v19, 8  ;;  %v11286_v30 = vunpack.i.h.bf16 %v20919_v32  ;;  %v11285_v56 = vunpack.i.l.bf16 %v20919_v32  ;;  %v7598_v34 = vpack.c.bf16 %v7573_v45, %v7572_v26  ;;  %9393 = vmatmul.mubr.msk.bf16.gmra.mrb[40].mxu0 %vm7667_vm3, %v7597_v51  ;;  %v6133_v47 = vsel %vm6118_vm1, %v18873_v0, %v11280_v2  ;;  %v20927_v19 = vld [vmem:[#allocation345_spill] sm:$0xff]  ;;  %v20930_v32 = vld [vmem:[#allocation392_spill] sm:$0xff] }
 0x6f8   : > { %v6134_v54 = vsel %vm6118_vm1, %v18878_v43, %v11281_v17  ;;  %v12006_v29 = vunpack.i.h.bf16 %v12004_v37  ;;  %v12005_v10 = vunpack.i.l.bf16 %v12004_v37  ;;  %v11056_v40 = vunpack.i.h.bf16 %v20921_v42  ;;  %v20926_v37 = vld [vmem:[#allocation21_spill] sm:$0xff] }
 0x6f9   : > { %v11055_v46 = vunpack.i.l.bf16 %v20921_v42  ;;  %v6069_v27 = vsel %vm6052_vm15, %v6036_v5, %v11125_v23  ;;  %v6070_v63 = vsel %vm6052_vm15, %v6037_v58, %v11126_v16  ;;  %9396 = vmatprep.mubr.msk.bf16.mxu0 %vm7667_vm3, %v7598_v34  ;;  %v20923_v7 = vmax.f32 %v20922_v48, 0.0  ;;  %v20925_v5 = vld [vmem:[#allocation326_spill] sm:$0xff] }
 0x6fa   : > { %8825 = vxpose.xlu1.b32.cont [14/16] (narrow) %v20920_v62, 8  ;;  %v6102_v0 = vsel %vm6085_vm0, %v6069_v27, %v11205_v1  ;;  %v6103_v43 = vsel %vm6085_vm0, %v6070_v63, %v11206_v49  ;;  %v7574_v50 = vsel %vm7559_vm2, %v6133_v47, %v12000_v33  ;;  %v7575_v25 = vsel %vm7559_vm2, %v6134_v54, %v12001_v24  ;;  %v20928_v33 = vld [vmem:[#allocation97_spill] sm:$0xff]  ;;  %v20931_v63 = vld [vmem:[#allocation16_spill] sm:$0xff] }
 0x6fb   : > { %8882 = vxpose.xlu0.b32.cont [5/16] (narrow) %v20923_v7, 8  ;;  %v11291_v17 = vunpack.i.h.bf16 %v20924_v20  ;;  %v11290_v2 = vunpack.i.l.bf16 %v20924_v20  ;;  %v6135_v45 = vsel %vm6118_vm1, %v6102_v0, %v11285_v56  ;;  %v6136_v26 = vsel %vm6118_vm1, %v6103_v43, %v11286_v30 }
 0x6fc   : > { %v11136_v57 = vunpack.i.h.bf16 %v20925_v5  ;;  %v11135_v16 = vunpack.i.l.bf16 %v20925_v5  ;;  %v7577_v23 = vsel %vm7559_vm2, %v6136_v26, %v12006_v29  ;;  %v7576_v51 = vsel %vm7559_vm2, %v6135_v45, %v12005_v10  ;;  %v20936_v26 = vld [vmem:[#allocation313_spill] sm:$0xff] }
 0x6fd   : > { %v6040_v4 = vsel %vm6019_vm14, %v18886_v35, %v11055_v46  ;;  %v11216_v11 = vunpack.i.h.bf16 %v20927_v19  ;;  %v11215_v49 = vunpack.i.l.bf16 %v20927_v19  ;;  %v7599_v1 = vpack.c.bf16 %v7575_v25, %v7574_v50  ;;  %v20935_v25 = vld [vmem:[#allocation312_spill] sm:$0xff] }
 0x6fe   : > { %8826 = vxpose.xlu1.b32.cont [15/16] (narrow) %v20926_v37, 8  ;;  %v20929_v58 = vmax.f32 %v20928_v33, 0.0  ;;  %v11296_v30 = vunpack.i.h.bf16 %v20930_v32  ;;  %v11295_v56 = vunpack.i.l.bf16 %v20930_v32  ;;  %v12011_v34 = vunpack.i.h.bf16 %v12009_v21 }
 0x6ff   : > { %v12014_v24 = vpop.permute.xlu1 %12013  ;;  %v12010_v47 = vunpack.i.l.bf16 %v12009_v21  ;;  %v6041_v54 = vsel %vm6019_vm14, %v18882_v9, %v11056_v40  ;;  %v7600_v29 = vpack.c.bf16 %v7577_v23, %v7576_v51  ;;  %9397 = vmatmul.mubr.msk.bf16.gmra.mrb[44].mxu0 %vm7667_vm3, %v7599_v1  ;;  %v19083_v62 = vsel %vm5986_vm13, %v18753_v61, %v10996_v31  ;;  %v20932_v9 = vld [vmem:[#allocation299_spill] sm:$0xff]  ;;  %v20933_v61 = vld [vmem:[#allocation88_spill] sm:$0xff] }
 0x700   : > { %8883 = vxpose.xlu0.b32.cont [6/16] (narrow) %v20929_v58, 8  ;;  %v12016_v35 = vunpack.i.h.bf16 %v12014_v24  ;;  %v12015_v10 = vunpack.i.l.bf16 %v12014_v24  ;;  %v6137_v42 = vsel %vm6118_vm1, %v18891_v18, %v11290_v2  ;;  %v6073_v46 = vsel %vm6052_vm15, %v6040_v4, %v11135_v16  ;;  %v20938_v51 = vld [vmem:[#allocation75_spill] sm:$0xff]  ;;  %v20942_v58 = vld [vmem:[#allocation92_spill] sm:$0xff] }
 0x701   : > { %v6074_v27 = vsel %vm6052_vm15, %v6041_v54, %v11136_v57  ;;  %v11230_v40 = vunpack.i.l.bf16 %v20932_v9  ;;  %v6138_v48 = vsel %vm6118_vm1, %v18895_v28, %v11291_v17  ;;  %v6106_v12 = vsel %vm6085_vm0, %v6073_v46, %v11215_v49  ;;  %9400 = vmatprep.mubr.msk.bf16.mxu0 %vm7667_vm3, %v7600_v29  ;;  %v12019_v17 = vpop.permute.xlu0 %12018  ;;  %v20937_v57 = vld [vmem:[#allocation328_spill] sm:$0xff]  ;;  %v20940_v4 = vld [vmem:[#allocation347_spill] sm:$0xff]  ;;  %v20941_v49 = vld [vmem:[#allocation54_spill] sm:$0xff] }
 0x702   : > { %8827 = vxpose.xlu1.b32.end [16/16] (narrow) %v20931_v63, 8  ;;  %v6107_v7 = vsel %vm6085_vm0, %v6074_v27, %v11216_v11  ;;  %v20934_v31 = vmax.f32 %v20933_v61, 0.0  ;;  %v6139_v18 = vsel %vm6118_vm1, %v6106_v12, %v11295_v56  ;;  %v7578_v43 = vsel %vm7559_vm2, %v6137_v42, %v12010_v47 }
 0x703   : > { %v6140_v0 = vsel %vm6118_vm1, %v6107_v7, %v11296_v30  ;;  %v7579_v50 = vsel %vm7559_vm2, %v6138_v48, %v12011_v34  ;;  %v11066_v20 = vunpack.i.h.bf16 %v20935_v25  ;;  %v11065_v28 = vunpack.i.l.bf16 %v20935_v25  ;;  %v20944_v48 = vld [vmem:[#allocation111_spill] sm:$0xff] }
 0x704   : > { %8884 = vxpose.xlu0.b32.cont [7/16] (narrow) %v20934_v31, 8  ;;  %v7581_v2 = vsel %vm7559_vm2, %v6140_v0, %v12016_v35  ;;  %v7580_v45 = vsel %vm7559_vm2, %v6139_v18, %v12015_v10  ;;  %v11301_v21 = vunpack.i.h.bf16 %v20936_v26  ;;  %v11300_v5 = vunpack.i.l.bf16 %v20936_v26 }
 0x705   : > { %v11146_v16 = vunpack.i.h.bf16 %v20937_v57  ;;  %v11145_v23 = vunpack.i.l.bf16 %v20937_v57  ;;  %v20939_v37 = vmax.f32 %v20938_v51, 0.0  ;;  %v11226_v19 = vunpack.i.h.bf16 %v20940_v4 }
 0x706   : > { %v11225_v11 = vunpack.i.l.bf16 %v20940_v4  ;;  %v11306_v1 = vunpack.i.h.bf16 %v20941_v49  ;;  %v7601_v24 = vpack.c.bf16 %v7579_v50, %v7578_v43  ;;  %v20943_v32 = vmax.f32 %v20942_v58, 0.0  ;;  %v20948_v43 = vld [vmem:[#allocation314_spill] sm:$0xff] }
 0x707   : > { %8910 = vxpose.xlu1.b32.start [1/16] (narrow) %v20939_v37, 8  ;;  %v12024_v33 = vpop.permute.xlu1 %12023  ;;  %v11305_v30 = vunpack.i.l.bf16 %v20941_v49  ;;  %v12021_v56 = vunpack.i.h.bf16 %v12019_v17  ;;  %v12020_v34 = vunpack.i.l.bf16 %v12019_v17  ;;  %v7602_v47 = vpack.c.bf16 %v7581_v2, %v7580_v45  ;;  %v20950_v45 = vld [vmem:[#allocation330_spill] sm:$0xff]  ;;  %v20955_v49 = vld [vmem:[#allocation108_spill] sm:$0xff] }
 0x708   : > { %8885 = vxpose.xlu0.b32.cont [8/16] (narrow) %v20943_v32, 8  ;;  %v6044_v54 = vsel %vm6019_vm14, %v18922_v14, %v11065_v28  ;;  %v6045_v29 = vsel %vm6019_vm14, %v18911_v3, %v11066_v20  ;;  %v12026_v35 = vunpack.i.h.bf16 %v12024_v33  ;;  %v12025_v10 = vunpack.i.l.bf16 %v12024_v33  ;;  %9401 = vmatmul.mubr.msk.bf16.gmra.mrb[48].mxu0 %vm7667_vm3, %v7601_v24  ;;  %v20949_v28 = vld [vmem:[#allocation315_spill] sm:$0xff]  ;;  %v20954_v37 = vld [vmem:[#allocation58_spill] sm:$0xff] }
 0x709   : > { %v11231_v42 = vunpack.i.h.bf16 %v20932_v9  ;;  %v6112_v46 = vsel %vm6085_vm0, %v18762_v15, %v11230_v40  ;;  %v6077_v27 = vsel %vm6052_vm15, %v6044_v54, %v11145_v23  ;;  %v6078_v63 = vsel %vm6052_vm15, %v6045_v29, %v11146_v16  ;;  %9404 = vmatprep.mubr.msk.bf16.mxu0 %vm7667_vm3, %v7602_v47  ;;  %v20946_v15 = vld [vmem:[#allocation48_spill] sm:$0xff]  ;;  %v20953_v16 = vld [vmem:[#allocation349_spill] sm:$0xff] }
 0x70a   : > { %v20945_v12 = vmax.f32 %v20944_v48, 0.0  ;;  %v6141_v3 = vsel %vm6118_vm1, %v18926_v13, %v11300_v5  ;;  %v6142_v14 = vsel %vm6118_vm1, %v18956_v59, %v11301_v21  ;;  %v6110_v9 = vsel %vm6085_vm0, %v6077_v27, %v11225_v11  ;;  %v12029_v59 = vpop.permute.xlu0 %12028  ;;  %v20951_v5 = vld [vmem:[#allocation60_spill] sm:$0xff]  ;;  %v20957_v27 = vld [vmem:[#allocation93_spill] sm:$0xff] }
 0x70b   : > { %v6111_v7 = vsel %vm6085_vm0, %v6078_v63, %v11226_v19  ;;  %v20947_v40 = vmax.f32 %v20946_v15, 0.0  ;;  %v6143_v61 = vsel %vm6118_vm1, %v6110_v9, %v11305_v30  ;;  %v7582_v18 = vsel %vm7559_vm2, %v6141_v3, %v12020_v34  ;;  %v20959_v3 = vld [vmem:[#allocation64_spill] sm:$0xff]  ;;  %v20961_v15 = vld [vmem:[#allocation277_spill] sm:$0xff] }
 0x70c   : > { %8911 = vxpose.xlu1.b32.cont [2/16] (narrow) %v20945_v12, 8  ;;  %v6144_v31 = vsel %vm6118_vm1, %v6111_v7, %v11306_v1  ;;  %v7583_v0 = vsel %vm7559_vm2, %v6142_v14, %v12021_v56  ;;  %v11076_v13 = vunpack.i.h.bf16 %v20948_v43  ;;  %v11075_v50 = vunpack.i.l.bf16 %v20948_v43 }
 0x70d   : > { %8886 = vxpose.xlu0.b32.cont [9/16] (narrow) %v20947_v40, 8  ;;  %v7585_v25 = vsel %vm7559_vm2, %v6144_v31, %v12026_v35  ;;  %v7584_v20 = vsel %vm7559_vm2, %v6143_v61, %v12025_v10  ;;  %v11311_v17 = vunpack.i.h.bf16 %v20949_v28  ;;  %v11310_v2 = vunpack.i.l.bf16 %v20949_v28  ;;  %v20964_v28 = vld [vmem:[#allocation317_spill] sm:$0xff] }
 0x70e   : > { %v11156_v26 = vunpack.i.h.bf16 %v20950_v45  ;;  %v11155_v21 = vunpack.i.l.bf16 %v20950_v45  ;;  %v20952_v57 = vmax.f32 %v20951_v5, 0.0  ;;  %v11236_v23 = vunpack.i.h.bf16 %v20953_v16  ;;  %v12039_v61 = vpop.permute.xlu0 %12038  ;;  %v12088_v5 = vld [vmem:[%s19361_s4] ss:$0 sm:$0xff] }
 0x70f   : > { %v11235_v51 = vunpack.i.l.bf16 %v20953_v16  ;;  %v11316_v4 = vunpack.i.h.bf16 %v20954_v37  ;;  %v7603_v19 = vpack.c.bf16 %v7583_v0, %v7582_v18  ;;  %v12034_v11 = vpop.permute.xlu1 %12033  ;;  %v20956_v1 = vmax.f32 %v20955_v49, 0.0  ;;  %v20970_v49 = vld [vmem:[#allocation186_spill] sm:$0xff] }
 0x710   : > { %8912 = vxpose.xlu1.b32.cont [3/16] (narrow) %v20952_v57, 8  ;;  %v11315_v24 = vunpack.i.l.bf16 %v20954_v37  ;;  %v12031_v33 = vunpack.i.h.bf16 %v12029_v59  ;;  %v12030_v58 = vunpack.i.l.bf16 %v12029_v59  ;;  %v7604_v32 = vpack.c.bf16 %v7585_v25, %v7584_v20  ;;  %v20968_v57 = vld [vmem:[#allocation140_spill] sm:$0xff] }
 0x711   : > { %8887 = vxpose.xlu0.b32.cont [10/16] (narrow) %v20956_v1, 8  ;;  %v6048_v30 = vsel %vm6019_vm14, %v19020_v44, %v11075_v50  ;;  %v6049_v56 = vsel %vm6019_vm14, %v19083_v62, %v11076_v13  ;;  %v12036_v34 = vunpack.i.h.bf16 %v12034_v11  ;;  %v12035_v47 = vunpack.i.l.bf16 %v12034_v11  ;;  %9405 = vmatmul.mubr.msk.bf16.gmra.mrb[52].mxu0 %vm7667_vm3, %v7603_v19  ;;  %v20962_v13 = vld [vmem:[#allocation301_spill] sm:$0xff] }
 0x712   : > { %v11080_v54 = vunpack.i.l.bf16 %v20876_v55  ;;  %v6113_v29 = vsel %vm6085_vm0, %v18766_v22, %v11231_v42  ;;  %v6081_v35 = vsel %vm6052_vm15, %v6048_v30, %v11155_v21  ;;  %v6082_v10 = vsel %vm6052_vm15, %v6049_v56, %v11156_v26  ;;  %9408 = vmatprep.mubr.msk.bf16.mxu0 %vm7667_vm3, %v7604_v32  ;;  %v20967_v21 = vld [vmem:[#allocation329_spill] sm:$0xff] }
 0x713   : > { %v20958_v63 = vmax.f32 %v20957_v27, 0.0  ;;  %v6145_v44 = vsel %vm6118_vm1, %v6112_v46, %v11310_v2  ;;  %v6146_v62 = vsel %vm6118_vm1, %v6113_v29, %v11311_v17  ;;  %v6114_v48 = vsel %vm6085_vm0, %v6081_v35, %v11235_v51  ;;  %v20973_v29 = vld [vmem:[#allocation138_spill] sm:$0xff] }
 0x714   : > { %v6115_v12 = vsel %vm6085_vm0, %v6082_v10, %v11236_v23  ;;  %v20960_v14 = vmax.f32 %v20959_v3, 0.0  ;;  %v6147_v22 = vsel %vm6118_vm1, %v6114_v48, %v11315_v24  ;;  %v7586_v9 = vsel %vm7559_vm2, %v6145_v44, %v12030_v58  ;;  %v20971_v58 = vld [vmem:[#allocation136_spill] sm:$0xff]  ;;  %v20974_v10 = vld [vmem:[#allocation210_spill] sm:$0xff] }
 0x715   : > { %8913 = vxpose.xlu1.b32.cont [4/16] (narrow) %v20958_v63, 8  ;;  %v6148_v42 = vsel %vm6118_vm1, %v6115_v12, %v11316_v4  ;;  %v7587_v7 = vsel %vm7559_vm2, %v6146_v62, %v12031_v33  ;;  %v11161_v40 = vunpack.i.h.bf16 %v20961_v15  ;;  %v11160_v46 = vunpack.i.l.bf16 %v20961_v15  ;;  %v20975_v44 = vld [vmem:[#allocation206_spill] sm:$0xff]  ;;  %v20976_v3 = vld [vmem:[#allocation208_spill] sm:$0xff] }
 0x716   : > { %8888 = vxpose.xlu0.b32.cont [11/16] (narrow) %v20960_v14, 8  ;;  %v7589_v31 = vsel %vm7559_vm2, %v6148_v42, %v12036_v34  ;;  %v7588_v18 = vsel %vm7559_vm2, %v6147_v22, %v12035_v47  ;;  %v6017_v0 = vsel %vm5986_vm13, %v18325_v6, %v11000_v52  ;;  %v6018_v43 = vsel %vm5986_vm13, %v18332_v39, %v11001_v41  ;;  %v20965_v6 = vld [vmem:[#allocation35_spill] sm:$0xff]  ;;  %v20977_v42 = vld [vmem:[#allocation225_spill] sm:$0xff]  ;;  %v20978_v15 = vld [vmem:[#allocation228_spill] sm:$0xff] }
 0x717   : > { %v11241_v50 = vunpack.i.h.bf16 %v20962_v13  ;;  %v11240_v59 = vunpack.i.l.bf16 %v20962_v13  ;;  %v20963_v25 = vmax.f32 %v18188_v53, 0.0  ;;  %v6050_v20 = vsel %vm6019_vm14, %v6017_v0, %v11080_v54  ;;  %v20972_v34 = vld [vmem:[#allocation207_spill] sm:$0xff]  ;;  %v20980_v0 = vld [vmem:[#allocation226_spill] sm:$0xff] }
 0x718   : > { %v11321_v17 = vunpack.i.h.bf16 %v20964_v28  ;;  %v11320_v2 = vunpack.i.l.bf16 %v20964_v28  ;;  %v7605_v45 = vpack.c.bf16 %v7587_v7, %v7586_v9  ;;  %v20966_v52 = vmax.f32 %v20965_v6, 0.0 }
 0x719   : > { %8914 = vxpose.xlu1.b32.cont [5/16] (narrow) %v20963_v25, 8  ;;  %v6051_v39 = vsel %vm6019_vm14, %v6018_v43, %v11081_v60  ;;  %v12041_v8 = vunpack.i.h.bf16 %v12039_v61  ;;  %v12040_v41 = vunpack.i.l.bf16 %v12039_v61  ;;  %v7606_v26 = vpack.c.bf16 %v7589_v31, %v7588_v18 }
 0x71a   : > { %8889 = vxpose.xlu0.b32.cont [12/16] (narrow) %v20966_v52, 8  ;;  %v2732_v53 = vmax.f32 %v20967_v21, 0.0  ;;  %v2645_v16 = vadd.f32 %v12088_v5, %v20968_v57  ;;  %v6083_v23 = vsel %vm6052_vm15, %v6050_v20, %v11160_v46  ;;  %v6084_v51 = vsel %vm6052_vm15, %v6051_v39, %v11161_v40  ;;  %9409 = vmatmul.mubr.msk.bf16.gmra.mrb[56].mxu0 %vm7667_vm3, %v7605_v45  ;;  %v20979_v46 = vld [vmem:[#allocation224_spill] sm:$0xff] }
 0x71b   : > { %v6116_v55 = vsel %vm6085_vm0, %v6083_v23, %v11240_v59  ;;  %v6117_v60 = vsel %vm6085_vm0, %v6084_v51, %v11241_v50  ;;  %v20969_v37 = vmax.f32 %v18198_v36, 0.0  ;;  %9412 = vmatprep.mubr.msk.bf16.mxu0 %vm7667_vm3, %v7606_v26  ;;  %v2742_v11 = vmax.f32 %v18184_v38, 0.0  ;;  %v19239_v50 = vld [vmem:[%s19363_s6] ss:$0 sm:$0xff] }
 0x71c   : > { %v6149_v4 = vsel %vm6118_vm1, %v6116_v55, %v11320_v2  ;;  %v6150_v19 = vsel %vm6118_vm1, %v6117_v60, %v11321_v17  ;;  %v2685_v1 = vadd.f32 %v12088_v5, %v20970_v49  ;;  %v2650_v32 = vadd.f32 %v12088_v5, %v20971_v58 }
 0x71d   : > { %8915 = vxpose.xlu1.b32.cont [6/16] (narrow) %v20969_v37, 8  ;;  %v7590_v24 = vsel %vm7559_vm2, %v6149_v4, %v12040_v41  ;;  %v7591_v33 = vsel %vm7559_vm2, %v6150_v19, %v12041_v8  ;;  %v2733_v30 = vmax.f32 %v2645_v16, 0.0  ;;  %v2690_v47 = vadd.f32 %v12088_v5, %v20972_v34 }
 0x71e   : > { %8890 = vxpose.xlu0.b32.cont [13/16] (narrow) %v2732_v53, 8  ;;  %v7607_v36 = vpack.c.bf16 %v7591_v33, %v7590_v24  ;;  %v2743_v56 = vmax.f32 %v2685_v1, 0.0  ;;  %v2734_v54 = vmax.f32 %v2650_v32, 0.0  ;;  %v2653_v35 = vadd.f32 %v12088_v5, %v20973_v29 }
 0x71f   : > { %v2744_v38 = vmax.f32 %v2690_v47, 0.0  ;;  %v2693_v27 = vadd.f32 %v12088_v5, %v20974_v10  ;;  %v2698_v62 = vadd.f32 %v12088_v5, %v20975_v44  ;;  %v2701_v14 = vadd.f32 %v12088_v5, %v20976_v3 }
 0x720   : > { %v2735_v63 = vmax.f32 %v2653_v35, 0.0  ;;  %v2706_v9 = vadd.f32 %v12088_v5, %v20977_v42  ;;  %v2709_v40 = vadd.f32 %v12088_v5, %v20978_v15  ;;  %v2714_v61 = vadd.f32 %v12088_v5, %v20979_v46 }
 0x721   : > { %8916 = vxpose.xlu1.b32.cont [7/16] (narrow) %v2742_v11, 8  ;;  %v2745_v48 = vmax.f32 %v2693_v27, 0.0  ;;  %v2746_v12 = vmax.f32 %v2698_v62, 0.0  ;;  %v2747_v22 = vmax.f32 %v2701_v14, 0.0  ;;  %v2717_v43 = vadd.f32 %v12088_v5, %v20980_v0 }
 0x722   : > { %8891 = vxpose.xlu0.b32.cont [14/16] (narrow) %v2733_v30, 8  ;;  %9413 = vmatmul.mubr.msk.bf16.gmra.mrb[60].mxu0 %vm7667_vm3, %v7607_v36  ;;  %v2748_v7 = vmax.f32 %v2706_v9, 0.0  ;;  %v2749_v31 = vmax.f32 %v2709_v40, 0.0  ;;  %v2750_v18 = vmax.f32 %v2714_v61, 0.0 }
 0x723   : > { %v2751_v13 = vmax.f32 %v2717_v43, 0.0 }
 0x725   : > { %8917 = vxpose.xlu1.b32.cont [8/16] (narrow) %v2743_v56, 8 }
 0x726   : > { %8892 = vxpose.xlu0.b32.cont [15/16] (narrow) %v2734_v54, 8 }
 0x729   : > { %8918 = vxpose.xlu1.b32.cont [9/16] (narrow) %v2744_v38, 8 }
 0x72a   : > { %8893 = vxpose.xlu0.b32.end [16/16] (narrow) %v2735_v63, 8  ;;  %v8860_v35 = vpop.trf.xlu0 }
 0x72b   : > { %8877 = vst [vmem:[%s19257_s29 + $0x8] sm:$0xff] %v8860_v35 }
 0x72d   : > { %8919 = vxpose.xlu1.b32.cont [10/16] (narrow) %v2745_v48, 8 }
 0x731   : > { %8920 = vxpose.xlu1.b32.cont [11/16] (narrow) %v2746_v12, 8 }
 0x735   : > { %8921 = vxpose.xlu1.b32.cont [12/16] (narrow) %v2747_v22, 8 }
 0x739   : > { %8922 = vxpose.xlu1.b32.cont [13/16] (narrow) %v2748_v7, 8 }
 0x73d   : > { %8923 = vxpose.xlu1.b32.cont [14/16] (narrow) %v2749_v31, 8 }
 0x741   : > { %8924 = vxpose.xlu1.b32.cont [15/16] (narrow) %v2750_v18, 8 }
 0x745   : > { %8925 = vxpose.xlu1.b32.end [16/16] (narrow) %v2751_v13, 8 }
 0x746   : > { %v8828_v54 = vpop.trf.xlu1 }
 0x747   : > { %8876 = vst [vmem:[%s19257_s29] sm:$0xff] %v8828_v54 }
 0x76e   : > { %v8894_v62 = vpop.trf.xlu0 }
 0x76f   : > { %8942 = vst [vmem:[%s19257_s29 + $0x10] sm:$0xff] %v8894_v62 }
 0x789   : > { %v8926_v44 = vpop.trf.xlu1 }
 0x78a   : > { %8943 = vst [vmem:[%s19257_s29 + $0x18] sm:$0xff] %v8926_v44  ;;  %v20985_v44 = vld [vmem:[#allocation241_spill] sm:$0xff] }
 0x7ba   : > { %v9386_v59 = vpop.f32.mrb[32].mxu0 }
 0x7bb   : > { %v7753_v25 = vpop.f32.mrb[33].mxu0  ;;  %v7762_v6 = vadd.f32 %v9386_v59, %v19239_v50 }
 0x7bc   : > { %v7754_v20 = vadd.f32 %v19239_v50, %v7753_v25  ;;  %v9387_v28 = vpop.f32.mrb[34].mxu0 }
 0x7bd   : > { %v7756_v17 = vpop.f32.mrb[35].mxu0  ;;  %v7882_v21 = vmax.f32 %v7762_v6, 0.0  ;;  %v7765_v53 = vadd.f32 %v9387_v28, %v19239_v50 }
 0x7be   : > { %v7880_v2 = vmax.f32 %v7754_v20, 0.0  ;;  %v7757_v45 = vadd.f32 %v19239_v50, %v7756_v17 }
 0x7bf   : > { %v7883_v5 = vmax.f32 %v7765_v53, 0.0 }
 0x7c0   : > { %8944 = vxpose.xlu0.b32.start [1/16] (narrow) %v7880_v2, 8  ;;  %v7881_v52 = vmax.f32 %v7757_v45, 0.0 }
 0x7c2   : > { %v9390_v39 = vpop.f32.mrb[36].mxu0 }
 0x7c3   : > { %v7769_v8 = vpop.f32.mrb[37].mxu0  ;;  %v7778_v4 = vadd.f32 %v9390_v39, %v19239_v50 }
 0x7c4   : > { %v9391_v41 = vpop.f32.mrb[38].mxu0  ;;  %8945 = vxpose.xlu0.b32.cont [2/16] (narrow) %v7881_v52, 8  ;;  %v7770_v57 = vadd.f32 %v19239_v50, %v7769_v8 }
 0x7c5   : > { %v7772_v26 = vpop.f32.mrb[39].mxu0  ;;  %v7886_v33 = vmax.f32 %v7778_v4, 0.0  ;;  %v7781_v58 = vadd.f32 %v9391_v41, %v19239_v50 }
 0x7c6   : > { %v7884_v60 = vmax.f32 %v7770_v57, 0.0  ;;  %v7773_v37 = vadd.f32 %v19239_v50, %v7772_v26 }
 0x7c7   : > { %v7887_v32 = vmax.f32 %v7781_v58, 0.0 }
 0x7c8   : > { %8946 = vxpose.xlu0.b32.cont [3/16] (narrow) %v7882_v21, 8  ;;  %v7885_v19 = vmax.f32 %v7773_v37, 0.0 }
 0x7ca   : > { %v9394_v16 = vpop.f32.mrb[40].mxu0 }
 0x7cb   : > { %v7785_v23 = vpop.f32.mrb[41].mxu0  ;;  %v7794_v48 = vadd.f32 %v9394_v16, %v19239_v50 }
 0x7cc   : > { %v9395_v51 = vpop.f32.mrb[42].mxu0  ;;  %8947 = vxpose.xlu0.b32.cont [4/16] (narrow) %v7883_v5, 8  ;;  %v7786_v30 = vadd.f32 %v19239_v50, %v7785_v23 }
 0x7cd   : > { %v7788_v55 = vpop.f32.mrb[43].mxu0  ;;  %v7890_v15 = vmax.f32 %v7794_v48, 0.0  ;;  %v7797_v40 = vadd.f32 %v9395_v51, %v19239_v50 }
 0x7ce   : > { %v7888_v38 = vmax.f32 %v7786_v30, 0.0  ;;  %v7789_v10 = vadd.f32 %v19239_v50, %v7788_v55 }
 0x7cf   : > { %v7891_v18 = vmax.f32 %v7797_v40, 0.0 }
 0x7d0   : > { %8948 = vxpose.xlu0.b32.cont [5/16] (narrow) %v7884_v60, 8  ;;  %v7889_v12 = vmax.f32 %v7789_v10, 0.0 }
 0x7d2   : > { %v19248_v11 = vpop.f32.mrb[44].mxu0 }
 0x7d3   : > { %v7801_v49 = vpop.f32.mrb[45].mxu0  ;;  %v7810_v41 = vadd.f32 %v19248_v11, %v19239_v50 }
 0x7d4   : > { %v19250_v1 = vpop.f32.mrb[46].mxu0  ;;  %8949 = vxpose.xlu0.b32.cont [6/16] (narrow) %v7885_v19, 8  ;;  %v7802_v31 = vadd.f32 %v19239_v50, %v7801_v49 }
 0x7d5   : > { %v7804_v24 = vpop.f32.mrb[47].mxu0  ;;  %v7894_v55 = vmax.f32 %v7810_v41, 0.0  ;;  %v7813_v4 = vadd.f32 %v19250_v1, %v19239_v50  ;;  %v20994_v41 = vld [vmem:[#allocation264_spill] sm:$0xff] }
 0x7d6   : > { %v7892_v17 = vmax.f32 %v7802_v31, 0.0  ;;  %v7805_v6 = vadd.f32 %v19239_v50, %v7804_v24  ;;  %v19292_v24 = vld [vmem:[%s19365_s8] ss:$0 sm:$0xff] }
 0x7d7   : > { %v8670_v62 = vadd.f32 %v19292_v24, %v20985_v44 }
 0x7d8   : > { %8950 = vxpose.xlu0.b32.cont [7/16] (narrow) %v7886_v33, 8  ;;  %v7893_v26 = vmax.f32 %v7805_v6, 0.0  ;;  %v20981_v33 = vld [vmem:[#allocation233_spill] sm:$0xff] }
 0x7d9   : > { %v8654_v58 = vadd.f32 %v19292_v24, %v20981_v33  ;;  %v20999_v33 = vld [vmem:[#allocation260_spill] sm:$0xff] }
 0x7db   : > { %v9402_v36 = vpop.f32.mrb[48].mxu0  ;;  %v8780_v1 = vmax.f32 %v8654_v58, 0.0  ;;  %v8705_v58 = vadd.f32 %v19292_v24, %v20999_v33 }
 0x7dc   : > { %v7817_v56 = vpop.f32.mrb[49].mxu0  ;;  %8951 = vxpose.xlu0.b32.cont [8/16] (narrow) %v7887_v32, 8  ;;  %v7826_v3 = vadd.f32 %v9402_v36, %v19239_v50  ;;  %v7895_v32 = vmax.f32 %v7813_v4, 0.0  ;;  %v20982_v36 = vld [vmem:[#allocation236_spill] sm:$0xff] }
 0x7dd   : > { %v7818_v34 = vadd.f32 %v19239_v50, %v7817_v56  ;;  %v9403_v47 = vpop.f32.mrb[50].mxu0  ;;  %v8657_v56 = vadd.f32 %v19292_v24, %v20982_v36  ;;  %v21001_v36 = vld [vmem:[#allocation256_spill] sm:$0xff] }
 0x7de   : > { %v7820_v29 = vpop.f32.mrb[51].mxu0  ;;  %v7898_v46 = vmax.f32 %v7826_v3, 0.0  ;;  %v7829_v61 = vadd.f32 %v9403_v47, %v19239_v50  ;;  %v20986_v3 = vld [vmem:[#allocation244_spill] sm:$0xff] }
 0x7df   : > { %v7896_v27 = vmax.f32 %v7818_v34, 0.0  ;;  %v7821_v63 = vadd.f32 %v19239_v50, %v7820_v29  ;;  %v8781_v54 = vmax.f32 %v8657_v56, 0.0  ;;  %v8710_v56 = vadd.f32 %v19292_v24, %v21001_v36 }
 0x7e0   : > { %8952 = vxpose.xlu0.b32.cont [9/16] (narrow) %v7888_v38, 8  ;;  %v7899_v0 = vmax.f32 %v7829_v61, 0.0  ;;  %v20984_v38 = vld [vmem:[#allocation234_spill] sm:$0xff] }
 0x7e1   : > { %8976 = vxpose.xlu1.b32.start [1/16] (narrow) %v7896_v27, 8  ;;  %v7897_v14 = vmax.f32 %v7821_v63, 0.0  ;;  %v8665_v10 = vadd.f32 %v19292_v24, %v20984_v38 }
 0x7e3   : > { %v8783_v63 = vmax.f32 %v8665_v10, 0.0 }
 0x7e4   : > { %v9406_v22 = vpop.f32.mrb[52].mxu0  ;;  %8953 = vxpose.xlu0.b32.cont [10/16] (narrow) %v7889_v12, 8  ;;  %v8784_v12 = vmax.f32 %v8670_v62, 0.0 }
 0x7e5   : > { %v7833_v42 = vpop.f32.mrb[53].mxu0  ;;  %8977 = vxpose.xlu1.b32.cont [2/16] (narrow) %v7897_v14, 8  ;;  %v7842_v21 = vadd.f32 %v9406_v22, %v19239_v50  ;;  %v8673_v14 = vadd.f32 %v19292_v24, %v20986_v3 }
 0x7e6   : > { %v9407_v9 = vpop.f32.mrb[54].mxu0  ;;  %v7834_v43 = vadd.f32 %v19239_v50, %v7833_v42  ;;  %v20987_v42 = vld [vmem:[#allocation240_spill] sm:$0xff] }
 0x7e7   : > { %v7836_v7 = vpop.f32.mrb[55].mxu0  ;;  %v7902_v19 = vmax.f32 %v7842_v21, 0.0  ;;  %v7845_v11 = vadd.f32 %v9407_v9, %v19239_v50  ;;  %v8678_v9 = vadd.f32 %v19292_v24, %v20987_v42  ;;  %v21007_v42 = vld [vmem:[#allocation280_spill] sm:$0xff] }
 0x7e8   : > { %8954 = vxpose.xlu0.b32.cont [11/16] (narrow) %v7890_v15, 8  ;;  %v7900_v52 = vmax.f32 %v7834_v43, 0.0  ;;  %v7837_v39 = vadd.f32 %v19239_v50, %v7836_v7  ;;  %v8785_v7 = vmax.f32 %v8673_v14, 0.0  ;;  %v21006_v14 = vld [vmem:[#allocation284_spill] sm:$0xff] }
 0x7e9   : > { %8978 = vxpose.xlu1.b32.cont [3/16] (narrow) %v7898_v46, 8  ;;  %v7903_v30 = vmax.f32 %v7845_v11, 0.0  ;;  %v8786_v40 = vmax.f32 %v8678_v9, 0.0  ;;  %v20988_v46 = vld [vmem:[#allocation242_spill] sm:$0xff]  ;;  %v8806_v9 = vmax.f32 %v21007_v42, 0.0 }
 0x7ea   : > { %v7901_v53 = vmax.f32 %v7837_v39, 0.0  ;;  %v8681_v61 = vadd.f32 %v19292_v24, %v20988_v46  ;;  %v21010_v46 = vld [vmem:[#allocation292_spill] sm:$0xff] }
 0x7ec   : > { %8955 = vxpose.xlu0.b32.cont [12/16] (narrow) %v7891_v18, 8  ;;  %v8787_v18 = vmax.f32 %v8681_v61, 0.0  ;;  %v8809_v61 = vmax.f32 %v21010_v46, 0.0 }
 0x7ed   : > { %v9410_v13 = vpop.f32.mrb[56].mxu0  ;;  %8979 = vxpose.xlu1.b32.cont [4/16] (narrow) %v7899_v0, 8  ;;  %v20989_v0 = vld [vmem:[#allocation249_spill] sm:$0xff] }
 0x7ee   : > { %v7858_v59 = vadd.f32 %v9410_v13, %v19239_v50  ;;  %v7849_v25 = vpop.f32.mrb[57].mxu0  ;;  %v8686_v43 = vadd.f32 %v19292_v24, %v20989_v0  ;;  %v20990_v13 = vld [vmem:[#allocation265_spill] sm:$0xff]  ;;  %v21012_v0 = vld [vmem:[#allocation290_spill] sm:$0xff] }
 0x7ef   : > { %v7850_v20 = vadd.f32 %v19239_v50, %v7849_v25  ;;  %v9411_v28 = vpop.f32.mrb[58].mxu0 }
 0x7f0   : > { %v7861_v2 = vadd.f32 %v9411_v28, %v19239_v50  ;;  %v7852_v45 = vpop.f32.mrb[59].mxu0  ;;  %8956 = vxpose.xlu0.b32.cont [13/16] (narrow) %v7892_v17, 8  ;;  %v7906_v27 = vmax.f32 %v7858_v59, 0.0  ;;  %v8718_v59 = vadd.f32 %v19292_v24, %v20990_v13  ;;  %v20991_v28 = vld [vmem:[#allocation252_spill] sm:$0xff] }
 0x7f1   : > { %v7853_v8 = vadd.f32 %v19239_v50, %v7852_v45  ;;  %8980 = vxpose.xlu1.b32.cont [5/16] (narrow) %v7900_v52, 8  ;;  %v7904_v34 = vmax.f32 %v7850_v20, 0.0  ;;  %v8788_v20 = vmax.f32 %v8686_v43, 0.0  ;;  %v8689_v17 = vadd.f32 %v19292_v24, %v20991_v28  ;;  %v20992_v45 = vld [vmem:[#allocation268_spill] sm:$0xff] }
 0x7f2   : > { %v7907_v48 = vmax.f32 %v7861_v2, 0.0  ;;  %v8796_v2 = vmax.f32 %v8718_v59, 0.0  ;;  %v8721_v6 = vadd.f32 %v19292_v24, %v20992_v45  ;;  %v20993_v52 = vld [vmem:[#allocation248_spill] sm:$0xff]  ;;  %v8811_v43 = vmax.f32 %v21012_v0, 0.0 }
 0x7f3   : > { %v7905_v29 = vmax.f32 %v7853_v8, 0.0  ;;  %v8694_v39 = vadd.f32 %v19292_v24, %v20993_v52  ;;  %v8789_v8 = vmax.f32 %v8689_v17, 0.0 }
 0x7f4   : > { %8957 = vxpose.xlu0.b32.cont [14/16] (narrow) %v7893_v26, 8  ;;  %v8726_v26 = vadd.f32 %v19292_v24, %v20994_v41  ;;  %v8797_v21 = vmax.f32 %v8721_v6, 0.0 }
 0x7f5   : > { %v9414_v5 = vpop.f32.mrb[60].mxu0  ;;  %8981 = vxpose.xlu1.b32.cont [6/16] (narrow) %v7901_v53, 8  ;;  %v8790_v53 = vmax.f32 %v8694_v39, 0.0 }
 0x7f6   : > { %v7874_v57 = vadd.f32 %v9414_v5, %v19239_v50  ;;  %v7865_v16 = vpop.f32.mrb[61].mxu0  ;;  %v20995_v5 = vld [vmem:[#allocation250_spill] sm:$0xff] }
 0x7f7   : > { %v7866_v23 = vadd.f32 %v19239_v50, %v7865_v16  ;;  %v9415_v51 = vpop.f32.mrb[62].mxu0  ;;  %v8798_v16 = vmax.f32 %v8726_v26, 0.0 }
 0x7f8   : > { %v7877_v60 = vadd.f32 %v9415_v51, %v19239_v50  ;;  %v7868_v37 = vpop.f32.mrb[63].mxu0  ;;  %8958 = vxpose.xlu0.b32.cont [15/16] (narrow) %v7894_v55, 8  ;;  %v7910_v31 = vmax.f32 %v7874_v57, 0.0  ;;  %v8697_v57 = vadd.f32 %v19292_v24, %v20995_v5 }
 0x7f9   : > { %v7869_v49 = vadd.f32 %v19239_v50, %v7868_v37  ;;  %8982 = vxpose.xlu1.b32.cont [7/16] (narrow) %v7902_v19, 8  ;;  %v20983_v50 = vld [vmem:[#allocation232_spill] sm:$0xff]  ;;  %v7908_v22 = vmax.f32 %v7866_v23, 0.0  ;;  %v20996_v23 = vld [vmem:[#allocation266_spill] sm:$0xff]  ;;  %v20998_v19 = vld [vmem:[#allocation273_spill] sm:$0xff] }
 0x7fa   : > { %v8662_v47 = vadd.f32 %v19292_v24, %v20983_v50  ;;  %v7911_v25 = vmax.f32 %v7877_v60, 0.0  ;;  %v8729_v51 = vadd.f32 %v19292_v24, %v20996_v23  ;;  %v8791_v55 = vmax.f32 %v8697_v57, 0.0  ;;  %v20997_v60 = vld [vmem:[#allocation257_spill] sm:$0xff]  ;;  %v21002_v50 = vld [vmem:[#allocation272_spill] sm:$0xff] }
 0x7fb   : > { %v7909_v15 = vmax.f32 %v7869_v49, 0.0  ;;  %v8702_v37 = vadd.f32 %v19292_v24, %v20997_v60  ;;  %v8734_v11 = vadd.f32 %v19292_v24, %v20998_v19 }
 0x7fc   : > { %8959 = vxpose.xlu0.b32.end [16/16] (narrow) %v7895_v32, 8  ;;  %v8782_v35 = vmax.f32 %v8662_v47, 0.0  ;;  %v8799_v4 = vmax.f32 %v8729_v51, 0.0  ;;  %v8742_v47 = vadd.f32 %v19292_v24, %v21002_v50 }
 0x7fd   : > { %8983 = vxpose.xlu1.b32.cont [8/16] (narrow) %v7903_v30, 8  ;;  %v8792_v49 = vmax.f32 %v8702_v37, 0.0  ;;  %v8800_v32 = vmax.f32 %v8734_v11, 0.0  ;;  %v21000_v30 = vld [vmem:[#allocation276_spill] sm:$0xff] }
 0x7fe   : > { %v8802_v10 = vmax.f32 %v8742_v47, 0.0 }
 0x800   : > { %9010 = vxpose.xlu0.b32.start [1/16] (narrow) %v8780_v1, 8  ;;  %v8737_v1 = vadd.f32 %v19292_v24, %v21000_v30 }
 0x801   : > { %8984 = vxpose.xlu1.b32.cont [9/16] (narrow) %v7904_v34, 8  ;;  %v8793_v34 = vmax.f32 %v8705_v58, 0.0 }
 0x804   : > { %9011 = vxpose.xlu0.b32.cont [2/16] (narrow) %v8781_v54, 8  ;;  %v8801_v54 = vmax.f32 %v8737_v1, 0.0 }
 0x805   : > { %8985 = vxpose.xlu1.b32.cont [10/16] (narrow) %v7905_v29, 8  ;;  %v8794_v29 = vmax.f32 %v8710_v56, 0.0 }
 0x808   : > { %9012 = vxpose.xlu0.b32.cont [3/16] (narrow) %v8782_v35, 8  ;;  %v21003_v35 = vld [vmem:[#allocation258_spill] sm:$0xff] }
 0x809   : > { %8986 = vxpose.xlu1.b32.cont [11/16] (narrow) %v7906_v27, 8  ;;  %v8713_v38 = vadd.f32 %v19292_v24, %v21003_v35  ;;  %v21004_v27 = vld [vmem:[#allocation274_spill] sm:$0xff] }
 0x80b   : > { %v8795_v44 = vmax.f32 %v8713_v38, 0.0 }
 0x80c   : > { %9013 = vxpose.xlu0.b32.cont [4/16] (narrow) %v8783_v63, 8  ;;  %v8745_v63 = vadd.f32 %v19292_v24, %v21004_v27  ;;  %v21008_v24 = vld [vmem:[#allocation282_spill] sm:$0xff] }
 0x80d   : > { %8987 = vxpose.xlu1.b32.cont [12/16] (narrow) %v7907_v48, 8  ;;  %v21005_v48 = vld [vmem:[#allocation281_spill] sm:$0xff] }
 0x80e   : > { %v8803_v62 = vmax.f32 %v8745_v63, 0.0 }
 0x810   : > { %9014 = vxpose.xlu0.b32.cont [5/16] (narrow) %v8784_v12, 8  ;;  %v8804_v12 = vmax.f32 %v21005_v48, 0.0 }
 0x811   : > { %8988 = vxpose.xlu1.b32.cont [13/16] (narrow) %v7908_v22, 8  ;;  %v8805_v22 = vmax.f32 %v21006_v14, 0.0 }
 0x814   : > { %9015 = vxpose.xlu0.b32.cont [6/16] (narrow) %v8785_v7, 8  ;;  %v8807_v7 = vmax.f32 %v21008_v24, 0.0 }
 0x815   : > { %8989 = vxpose.xlu1.b32.cont [14/16] (narrow) %v7909_v15, 8  ;;  %v21009_v15 = vld [vmem:[#allocation289_spill] sm:$0xff] }
 0x818   : > { %9016 = vxpose.xlu0.b32.cont [7/16] (narrow) %v8786_v40, 8  ;;  %v8808_v40 = vmax.f32 %v21009_v15, 0.0 }
 0x819   : > { %8990 = vxpose.xlu1.b32.cont [15/16] (narrow) %v7910_v31, 8  ;;  %v21011_v31 = vld [vmem:[#allocation288_spill] sm:$0xff] }
 0x81c   : > { %9017 = vxpose.xlu0.b32.cont [8/16] (narrow) %v8787_v18, 8  ;;  %v8810_v18 = vmax.f32 %v21011_v31, 0.0 }
 0x81d   : > { %8991 = vxpose.xlu1.b32.end [16/16] (narrow) %v7911_v25, 8 }
 0x820   : > { %9018 = vxpose.xlu0.b32.cont [9/16] (narrow) %v8788_v20, 8 }
 0x821   : > { %9042 = vxpose.xlu1.b32.start [1/16] (narrow) %v8796_v2, 8 }
 0x824   : > { %9019 = vxpose.xlu0.b32.cont [10/16] (narrow) %v8789_v8, 8 }
 0x825   : > { %9043 = vxpose.xlu1.b32.cont [2/16] (narrow) %v8797_v21, 8 }
 0x828   : > { %9020 = vxpose.xlu0.b32.cont [11/16] (narrow) %v8790_v53, 8 }
 0x829   : > { %9044 = vxpose.xlu1.b32.cont [3/16] (narrow) %v8798_v16, 8 }
 0x82c   : > { %9021 = vxpose.xlu0.b32.cont [12/16] (narrow) %v8791_v55, 8 }
 0x82d   : > { %9045 = vxpose.xlu1.b32.cont [4/16] (narrow) %v8799_v4, 8 }
 0x830   : > { %9022 = vxpose.xlu0.b32.cont [13/16] (narrow) %v8792_v49, 8 }
 0x831   : > { %9046 = vxpose.xlu1.b32.cont [5/16] (narrow) %v8800_v32, 8 }
 0x834   : > { %9023 = vxpose.xlu0.b32.cont [14/16] (narrow) %v8793_v34, 8 }
 0x835   : > { %9047 = vxpose.xlu1.b32.cont [6/16] (narrow) %v8801_v54, 8 }
 0x838   : > { %9024 = vxpose.xlu0.b32.cont [15/16] (narrow) %v8794_v29, 8 }
 0x839   : > { %9048 = vxpose.xlu1.b32.cont [7/16] (narrow) %v8802_v10, 8 }
 0x83c   : > { %9025 = vxpose.xlu0.b32.end [16/16] (narrow) %v8795_v44, 8 }
 0x83d   : > { %9049 = vxpose.xlu1.b32.cont [8/16] (narrow) %v8803_v62, 8 }
 0x840   : > { %v8960_v3 = vpop.trf.xlu0 }
 0x841   : > { %9050 = vxpose.xlu1.b32.cont [9/16] (narrow) %v8804_v12, 8  ;;  %9008 = vst [vmem:[%s19257_s29 + $0x20] sm:$0xff] %v8960_v3 }
 0x845   : > { %9051 = vxpose.xlu1.b32.cont [10/16] (narrow) %v8805_v22, 8 }
 0x849   : > { %9052 = vxpose.xlu1.b32.cont [11/16] (narrow) %v8806_v9, 8 }
 0x84d   : > { %9053 = vxpose.xlu1.b32.cont [12/16] (narrow) %v8807_v7, 8 }
 0x851   : > { %9054 = vxpose.xlu1.b32.cont [13/16] (narrow) %v8808_v40, 8 }
 0x855   : > { %9055 = vxpose.xlu1.b32.cont [14/16] (narrow) %v8809_v61, 8 }
 0x859   : > { %9056 = vxpose.xlu1.b32.cont [15/16] (narrow) %v8810_v18, 8 }
 0x85d   : > { %9057 = vxpose.xlu1.b32.end [16/16] (narrow) %v8811_v43, 8 }
 0x861   : > { %v8992_v13 = vpop.trf.xlu1 }
 0x862   : > { %9009 = vst [vmem:[%s19257_s29 + $0x28] sm:$0xff] %v8992_v13 }
 0x880   : > { %v9026_v59 = vpop.trf.xlu0 }
 0x881   : > { %9074 = vst [vmem:[%s19257_s29 + $0x30] sm:$0xff] %v9026_v59 }
 0x8a1   : > { %v9058_v25 = vpop.trf.xlu1 }
 0x8a2   : > { %9075 = vst [vmem:[%s19257_s29 + $0x38] sm:$0xff] %v9058_v25 }
 0x8a3 PF: > { %s19_s30 = sadd.s32 1, %s12096_s30  }
 0x8a4   : > { %p16_p4 = scmp.ge.s32.totalorder %s19_s30, 4  }
 0x8a6   :  { %18 = sbr.rel (!%p16_p4) target bundleno = 1 (0x1), region = 94 }

</bundles_post_ra>
